<compile_context>
chip_gen: v6e
topology: v6e:2x2x1
jax: 0.10.0
libtpu: 0.0.40
codegen_flags: <defaults>
</compile_context>

<pallas_src>
import jax
import jax.numpy as jnp
from jax.experimental import pallas as pl
from jax.experimental.pallas import tpu as pltpu

IMAGENET_MEAN = jnp.array([0.485, 0.456, 0.406], jnp.float32)
IMAGENET_STD = jnp.array([0.229, 0.224, 0.225], jnp.float32)

_VMEM_LIMIT = 32 * 1024 * 1024  # explicit scoped-VMEM cap (safe on v5e/v6e/v7x)


def _round_up(x, m):
    return ((x + m - 1) // m) * m


def _row_tile(n, cap, align=1):
    """Largest t <= cap with t | n and (t % align == 0 or t == n)."""
    cap = max(1, min(cap, n))
    for t in range(cap, 0, -1):
        if n % t == 0 and (t % align == 0 or t == n):
            return t
    return n


# ------------------------------ Pallas kernels -------------------------------

def _conv3x3_relu_kernel(t_ref, w_ref, b_ref, o_ref):
    # t_ref: (TM, 9*Cin) bf16 im2col taps; w_ref: (9*Cin, Cout) bf16; b_ref: (1, Cout) f32.
    acc = jnp.dot(t_ref[...], w_ref[...], preferred_element_type=jnp.float32)
    o_ref[...] = jnp.maximum(acc + b_ref[...], 0.0).astype(o_ref.dtype)


def _maxpool2x2_kernel(x_ref, o_ref):
    # x_ref: (TR, 2, Wo, 2, C) -- (row tile, vertical pair, out width, horizontal pair, channels)
    # o_ref: (TR, Wo, C)
    x = x_ref[...]                                 # full-tile load; only array indexing below
    m = jnp.maximum(x[:, 0], x[:, 1])              # (TR, Wo, 2, C) -- vertical max
    o_ref[...] = jnp.maximum(m[:, :, 0, :], m[:, :, 1, :])  # horizontal max


def _l1_pair_sum_kernel(f_ref, o_ref):
    # f_ref: (2, TL, C) -- [0]=x features, [1]=y features.  o_ref: (1,1) f32 accumulator.
    @pl.when(pl.program_id(0) == 0)
    def _():
        o_ref[...] = jnp.zeros_like(o_ref)
    f = f_ref[...].astype(jnp.float32)
    d = jnp.abs(f[0] - f[1])                                   # (TL, C)
    o_ref[...] += jnp.sum(d, axis=1, keepdims=True).sum(axis=0, keepdims=True)


# ------------------------------- JAX wrappers ---------------------------------

def conv3x3_relu(x, w, b):
    """3x3 conv (stride 1, pad 1) + ReLU.  x: (N,H,W,Cin), w: (3,3,Cin,Cout) f32, b: (Cout,) f32."""
    N, H, W, Cin = x.shape
    Cout = w.shape[-1]
    M = N * H * W
    K = 9 * Cin

    xp = jnp.pad(x.astype(jnp.bfloat16), ((0, 0), (1, 1), (1, 1), (0, 0)))
    # Single K-concatenated im2col array: one (M, 9*Cin) HBM array instead of 9 stacked tap planes.
    taps = jnp.concatenate(
        [xp[:, dy:dy + H, dx:dx + W, :].reshape(M, Cin)
         for dy in range(3) for dx in range(3)], axis=1)            # (M, 9*Cin) bf16
    wf = w.astype(jnp.bfloat16).reshape(K, Cout)                    # tap-major, matches concat order
    bf = b.astype(jnp.float32).reshape(1, Cout)

    # ~2 MiB of bf16 taps per block; multiple of 128 rows; capped at 1024 (fits v7x 64 MiB VMEM).
    tm = max(128, min(1024, ((2 * 1024 * 1024) // (K * 2)) // 128 * 128))
    tm = min(tm, _round_up(M, 128))
    mp = _round_up(M, tm)
    if mp != M:
        taps = jnp.pad(taps, ((0, mp - M), (0, 0)))                 # ragged-M handling

    cost = pl.CostEstimate(
        flops=2 * mp * K * Cout, transcendentals=0,
        bytes_accessed=mp * K * 2 + K * Cout * 2 + Cout * 4 + mp * Cout * 2)

    out = pl.pallas_call(
        _conv3x3_relu_kernel,
        out_shape=jax.ShapeDtypeStruct((mp, Cout), jnp.bfloat16),
        grid=(mp // tm,),
        in_specs=[
            pl.BlockSpec((tm, K), lambda i: (i, 0)),
            pl.BlockSpec((K, Cout), lambda i: (0, 0)),
            pl.BlockSpec((1, Cout), lambda i: (0, 0)),
        ],
        out_specs=pl.BlockSpec((tm, Cout), lambda i: (i, 0)),
        compiler_params=pltpu.CompilerParams(
            dimension_semantics=("parallel",), vmem_limit_bytes=_VMEM_LIMIT),
        cost_estimate=cost,
    )(taps, wf, bf)
    if mp != M:
        out = out[:M]
    return out.reshape(N, H, W, Cout)


def maxpool2x2(x):
    """2x2 max pool, stride 2.  x: (N,H,W,C) -> (N,H//2,W//2,C)."""
    N, H, W, C = x.shape
    Ho, Wo = H // 2, W // 2
    R = N * Ho
    # Free reshape (HBM metadata only): exposes both pooling pairs as explicit dims.
    xr = x.reshape(R, 2, Wo, 2, C)

    row_bytes = 2 * W * C * x.dtype.itemsize
    tr = _row_tile(R, max(1, (2 * 1024 * 1024) // row_bytes))

    out = pl.pallas_call(
        _maxpool2x2_kernel,
        out_shape=jax.ShapeDtypeStruct((R, Wo, C), x.dtype),
        grid=(R // tr,),
        in_specs=[pl.BlockSpec((tr, 2, Wo, 2, C), lambda i: (i, 0, 0, 0, 0))],
        out_specs=pl.BlockSpec((tr, Wo, C), lambda i: (i, 0, 0)),
        compiler_params=pltpu.CompilerParams(
            dimension_semantics=("parallel",), vmem_limit_bytes=_VMEM_LIMIT),
    )(xr)
    return out.reshape(N, Ho, Wo, C)


def l1_mean_pair(feat):
    """nn.L1Loss() (mean) between feat[0] and feat[1] of a batched (2,H,W,C) feature map."""
    _, H, W, C = feat.shape
    hw = H * W
    f = feat.reshape(2, hw, C)
    tl = _row_tile(hw, 1024, align=8)
    s = pl.pallas_call(
        _l1_pair_sum_kernel,
        out_shape=jax.ShapeDtypeStruct((1, 1), jnp.float32),
        grid=(hw // tl,),
        in_specs=[pl.BlockSpec((2, tl, C), lambda i: (0, i, 0))],
        out_specs=pl.BlockSpec((1, 1), lambda i: (0, 0)),
        compiler_params=pltpu.CompilerParams(
            dimension_semantics=("arbitrary",), vmem_limit_bytes=_VMEM_LIMIT),
    )(f)
    return s[0, 0] / (hw * C)


# ------------------------------- VGG19 slices ----------------------------------

def init_vgg_params(key):
    # Deterministic synthetic weights with the exact VGG19 conv shapes needed for slice1..slice3
    # (conv1_1, conv1_2, conv2_1, conv2_2, conv3_1).  Pretrained weights cannot be loaded in-script.
    shapes = [(3, 3, 3, 64), (3, 3, 64, 64), (3, 3, 64, 128),
              (3, 3, 128, 128), (3, 3, 128, 256)]
    params = []
    for i, s in enumerate(shapes):
        kw, kb = jax.random.split(jax.random.fold_in(key, i))
        fan_in = s[0] * s[1] * s[2]
        w = jax.random.normal(kw, s, jnp.float32) / jnp.sqrt(float(fan_in))
        bb = 0.01 * jax.random.normal(kb, (s[-1],), jnp.float32)
        params.append((w, bb))
    return params


def vgg19_slices(x, params):
    h1 = conv3x3_relu(x, *params[0])              # slice1: conv1_1+ReLU      -> relu1_1
    h = conv3x3_relu(h1, *params[1])              # slice2: conv1_2+ReLU
    h = maxpool2x2(h)                             #         maxpool
    h2 = conv3x3_relu(h, *params[2])              #         conv2_1+ReLU      -> relu2_1
    h = conv3x3_relu(h2, *params[3])              # slice3: conv2_2+ReLU
    h = maxpool2x2(h)                             #         maxpool
    h3 = conv3x3_relu(h, *params[4])              #         conv3_1+ReLU      -> relu3_1
    return [h1, h2, h3]


def preprocess(img_hwc_255):
    # TODO(synk): the data-dependent bounding-box crop (np.where(x<240) min/max +-10) and the
    # PIL round-trip / undefined `tf` transform produce dynamic shapes and have no static-shape
    # Pallas equivalent; only the ToTensor + ImageNet Normalize part is applied here.
    x = img_hwc_255.astype(jnp.float32) / 255.0
    x = (x - IMAGENET_MEAN) / IMAGENET_STD
    return x[None].astype(jnp.bfloat16)           # (1, H, W, 3) channels-last


def perceptual_loss(x_img, y_img, params):
    weights = [1.0 / 32, 1.0 / 16, 1.0 / 8, 1.0 / 4, 1.0]
    # Run x and y as one N=2 batch: weights DMA'd once, L1 reads both halves of one tensor.
    xy = jnp.concatenate([preprocess(x_img), preprocess(y_img)], axis=0)
    feats = vgg19_slices(xy, params)              # each (2,H,W,C); [1] plays y (.detach() no-op fwd)
    loss = jnp.float32(0.0)
    for i, f in enumerate(feats):                 # 3 slices, matching the reference forward
        loss = loss + weights[i] * l1_mean_pair(f)
    return loss


if __name__ == "__main__":
    key = jax.random.PRNGKey(0)
    kx, ky, kp = jax.random.split(key, 3)
    H = W = 16  # small spatial size for the synthetic test
    x_img = jax.random.uniform(kx, (H, W, 3), jnp.float32, 0.0, 255.0)
    y_img = jax.random.uniform(ky, (H, W, 3), jnp.float32, 0.0, 255.0)
    params = init_vgg_params(kp)

    loss = jax.jit(perceptual_loss)(x_img, y_img, params)
    jax.block_until_ready(loss)
    print("KERNEL_OK")
</pallas_src>

<mosaic_0001>
module attributes {stable_mosaic.version = 11 : i64} {
  func.func @_conv3x3_relu_kernel(%arg0: i32, %arg1: memref<512x27xbf16, #tpu.memory_space<vmem>>, %arg2: memref<27x64xbf16, #tpu.memory_space<vmem>>, %arg3: memref<1x64xf32, #tpu.memory_space<vmem>>, %arg4: memref<512x64xbf16, #tpu.memory_space<vmem>>) attributes {dimension_semantics = [#tpu.dimension_semantics<parallel>], iteration_bounds = array<i64: 1>, scalar_prefetch = 0 : i64, scratch_operands = 0 : i64, tpu.core_type = #tpu.core_type<tc>, window_params = [{transform_indices = @transform_0, window_bounds = array<i64: 512, 27>}, {pipeline_mode = #tpu.pipeline_mode<synchronous>, transform_indices = @transform_1, window_bounds = array<i64: 27, 64>}, {pipeline_mode = #tpu.pipeline_mode<synchronous>, transform_indices = @transform_2, window_bounds = array<i64: 1, 64>}, {transform_indices = @transform_3, window_bounds = array<i64: 512, 64>}]} {
    %c0 = arith.constant 0 : index
    %c0_0 = arith.constant 0 : index
    %0 = vector.load %arg1[%c0, %c0_0] : memref<512x27xbf16, #tpu.memory_space<vmem>>, vector<512x27xbf16>
    %c0_1 = arith.constant 0 : index
    %c0_2 = arith.constant 0 : index
    %1 = vector.load %arg2[%c0_1, %c0_2] : memref<27x64xbf16, #tpu.memory_space<vmem>>, vector<27x64xbf16>
    %cst = arith.constant dense<0.000000e+00> : vector<512x64xf32>
    %2 = tpu.matmul %0, %1, %cst {dimension_numbers = #tpu.dot_dimension_numbers<[1], [0], [0], [1], [0, 0, 1, 1], [], []>} : vector<512x27xbf16>, vector<27x64xbf16>, vector<512x64xf32> -> vector<512x64xf32>
    %c0_3 = arith.constant 0 : index
    %c0_4 = arith.constant 0 : index
    %3 = vector.load %arg3[%c0_3, %c0_4] : memref<1x64xf32, #tpu.memory_space<vmem>>, vector<1x64xf32>
    %4 = vector.broadcast %3 : vector<1x64xf32> to vector<512x64xf32>
    %5 = arith.addf %2, %4 : vector<512x64xf32>
    %cst_5 = arith.constant 0.000000e+00 : f32
    %6 = vector.broadcast %cst_5 : f32 to vector<512x64xf32>
    %7 = arith.maximumf %5, %6 : vector<512x64xf32>
    %8 = arith.truncf %7 : vector<512x64xf32> to vector<512x64xbf16>
    %c0_6 = arith.constant 0 : index
    %c0_7 = arith.constant 0 : index
    %9 = vector.load %arg4[%c0_6, %c0_7] : memref<512x64xbf16, #tpu.memory_space<vmem>>, vector<512x64xbf16>
    tpu.vector_store %arg4[%c0_6, %c0_7], %8 {strides = array<i32>} : memref<512x64xbf16, #tpu.memory_space<vmem>>, vector<512x64xbf16>,
    return
  }
  func.func @transform_0(%arg0: i32) -> (i32, i32) {
    %c0_i32 = arith.constant 0 : i32
    %c0_i32_0 = arith.constant 0 : i32
    return %arg0, %c0_i32 : i32, i32
  }
  func.func @transform_1(%arg0: i32) -> (i32, i32) {
    %c0_i32 = arith.constant 0 : i32
    %c0_i32_0 = arith.constant 0 : i32
    %c0_i32_1 = arith.constant 0 : i32
    return %c0_i32, %c0_i32_0 : i32, i32
  }
  func.func @transform_2(%arg0: i32) -> (i32, i32) {
    %c0_i32 = arith.constant 0 : i32
    %c0_i32_0 = arith.constant 0 : i32
    %c0_i32_1 = arith.constant 0 : i32
    return %c0_i32, %c0_i32_0 : i32, i32
  }
  func.func @transform_3(%arg0: i32) -> (i32, i32) {
    %c0_i32 = arith.constant 0 : i32
    %c0_i32_0 = arith.constant 0 : i32
    return %arg0, %c0_i32 : i32, i32
  }
}

module attributes {stable_mosaic.version = 11 : i64} {
  func.func @_conv3x3_relu_kernel(%arg0: i32, %arg1: memref<512x576xbf16, #tpu.memory_space<vmem>>, %arg2: memref<576x64xbf16, #tpu.memory_space<vmem>>, %arg3: memref<1x64xf32, #tpu.memory_space<vmem>>, %arg4: memref<512x64xbf16, #tpu.memory_space<vmem>>) attributes {dimension_semantics = [#tpu.dimension_semantics<parallel>], iteration_bounds = array<i64: 1>, scalar_prefetch = 0 : i64, scratch_operands = 0 : i64, tpu.core_type = #tpu.core_type<tc>, window_params = [{transform_indices = @transform_0, window_bounds = array<i64: 512, 576>}, {pipeline_mode = #tpu.pipeline_mode<synchronous>, transform_indices = @transform_1, window_bounds = array<i64: 576, 64>}, {pipeline_mode = #tpu.pipeline_mode<synchronous>, transform_indices = @transform_2, window_bounds = array<i64: 1, 64>}, {transform_indices = @transform_3, window_bounds = array<i64: 512, 64>}]} {
    %c0 = arith.constant 0 : index
    %c0_0 = arith.constant 0 : index
    %0 = vector.load %arg1[%c0, %c0_0] : memref<512x576xbf16, #tpu.memory_space<vmem>>, vector<512x576xbf16>
    %c0_1 = arith.constant 0 : index
    %c0_2 = arith.constant 0 : index
    %1 = vector.load %arg2[%c0_1, %c0_2] : memref<576x64xbf16, #tpu.memory_space<vmem>>, vector<576x64xbf16>
    %cst = arith.constant dense<0.000000e+00> : vector<512x64xf32>
    %2 = tpu.matmul %0, %1, %cst {dimension_numbers = #tpu.dot_dimension_numbers<[1], [0], [0], [1], [0, 0, 1, 1], [], []>} : vector<512x576xbf16>, vector<576x64xbf16>, vector<512x64xf32> -> vector<512x64xf32>
    %c0_3 = arith.constant 0 : index
    %c0_4 = arith.constant 0 : index
    %3 = vector.load %arg3[%c0_3, %c0_4] : memref<1x64xf32, #tpu.memory_space<vmem>>, vector<1x64xf32>
    %4 = vector.broadcast %3 : vector<1x64xf32> to vector<512x64xf32>
    %5 = arith.addf %2, %4 : vector<512x64xf32>
    %cst_5 = arith.constant 0.000000e+00 : f32
    %6 = vector.broadcast %cst_5 : f32 to vector<512x64xf32>
    %7 = arith.maximumf %5, %6 : vector<512x64xf32>
    %8 = arith.truncf %7 : vector<512x64xf32> to vector<512x64xbf16>
    %c0_6 = arith.constant 0 : index
    %c0_7 = arith.constant 0 : index
    %9 = vector.load %arg4[%c0_6, %c0_7] : memref<512x64xbf16, #tpu.memory_space<vmem>>, vector<512x64xbf16>
    tpu.vector_store %arg4[%c0_6, %c0_7], %8 {strides = array<i32>} : memref<512x64xbf16, #tpu.memory_space<vmem>>, vector<512x64xbf16>,
    return
  }
  func.func @transform_0(%arg0: i32) -> (i32, i32) {
    %c0_i32 = arith.constant 0 : i32
    %c0_i32_0 = arith.constant 0 : i32
    return %arg0, %c0_i32 : i32, i32
  }
  func.func @transform_1(%arg0: i32) -> (i32, i32) {
    %c0_i32 = arith.constant 0 : i32
    %c0_i32_0 = arith.constant 0 : i32
    %c0_i32_1 = arith.constant 0 : i32
    return %c0_i32, %c0_i32_0 : i32, i32
  }
  func.func @transform_2(%arg0: i32) -> (i32, i32) {
    %c0_i32 = arith.constant 0 : i32
    %c0_i32_0 = arith.constant 0 : i32
    %c0_i32_1 = arith.constant 0 : i32
    return %c0_i32, %c0_i32_0 : i32, i32
  }
  func.func @transform_3(%arg0: i32) -> (i32, i32) {
    %c0_i32 = arith.constant 0 : i32
    %c0_i32_0 = arith.constant 0 : i32
    return %arg0, %c0_i32 : i32, i32
  }
}

module attributes {stable_mosaic.version = 11 : i64} {
  func.func @_maxpool2x2_kernel(%arg0: i32, %arg1: memref<16x2x8x2x64xbf16, #tpu.memory_space<vmem>>, %arg2: memref<16x8x64xbf16, #tpu.memory_space<vmem>>) attributes {dimension_semantics = [#tpu.dimension_semantics<parallel>], iteration_bounds = array<i64: 1>, scalar_prefetch = 0 : i64, scratch_operands = 0 : i64, tpu.core_type = #tpu.core_type<tc>, window_params = [{transform_indices = @transform_0, window_bounds = array<i64: 16, 2, 8, 2, 64>}, {transform_indices = @transform_1, window_bounds = array<i64: 16, 8, 64>}]} {
    %c0 = arith.constant 0 : index
    %c0_0 = arith.constant 0 : index
    %c0_1 = arith.constant 0 : index
    %c0_2 = arith.constant 0 : index
    %c0_3 = arith.constant 0 : index
    %0 = vector.load %arg1[%c0, %c0_0, %c0_1, %c0_2, %c0_3] : memref<16x2x8x2x64xbf16, #tpu.memory_space<vmem>>, vector<16x2x8x2x64xbf16>
    %1 = vector.extract_strided_slice %0 {offsets = [0, 0, 0, 0, 0], sizes = [16, 1, 8, 2, 64], strides = [1, 1, 1, 1, 1]} : vector<16x2x8x2x64xbf16> to vector<16x1x8x2x64xbf16>
    %2 = vector.shape_cast %1 : vector<16x1x8x2x64xbf16> to vector<16x8x2x64xbf16>
    %3 = vector.extract_strided_slice %0 {offsets = [0, 1, 0, 0, 0], sizes = [16, 1, 8, 2, 64], strides = [1, 1, 1, 1, 1]} : vector<16x2x8x2x64xbf16> to vector<16x1x8x2x64xbf16>
    %4 = vector.shape_cast %3 : vector<16x1x8x2x64xbf16> to vector<16x8x2x64xbf16>
    %5 = arith.maximumf %2, %4 : vector<16x8x2x64xbf16>
    %6 = vector.extract_strided_slice %5 {offsets = [0, 0, 0, 0], sizes = [16, 8, 1, 64], strides = [1, 1, 1, 1]} : vector<16x8x2x64xbf16> to vector<16x8x1x64xbf16>
    %7 = vector.shape_cast %6 : vector<16x8x1x64xbf16> to vector<16x8x64xbf16>
    %8 = vector.extract_strided_slice %5 {offsets = [0, 0, 1, 0], sizes = [16, 8, 1, 64], strides = [1, 1, 1, 1]} : vector<16x8x2x64xbf16> to vector<16x8x1x64xbf16>
    %9 = vector.shape_cast %8 : vector<16x8x1x64xbf16> to vector<16x8x64xbf16>
    %10 = arith.maximumf %7, %9 : vector<16x8x64xbf16>
    %c0_4 = arith.constant 0 : index
    %c0_5 = arith.constant 0 : index
    %c0_6 = arith.constant 0 : index
    %11 = vector.load %arg2[%c0_4, %c0_5, %c0_6] : memref<16x8x64xbf16, #tpu.memory_space<vmem>>, vector<16x8x64xbf16>
    tpu.vector_store %arg2[%c0_4, %c0_5, %c0_6], %10 {strides = array<i32>} : memref<16x8x64xbf16, #tpu.memory_space<vmem>>, vector<16x8x64xbf16>,
    return
  }
  func.func @transform_0(%arg0: i32) -> (i32, i32, i32, i32, i32) {
    %c0_i32 = arith.constant 0 : i32
    %c0_i32_0 = arith.constant 0 : i32
    %c0_i32_1 = arith.constant 0 : i32
    %c0_i32_2 = arith.constant 0 : i32
    %c0_i32_3 = arith.constant 0 : i32
    return %arg0, %c0_i32, %c0_i32_0, %c0_i32_1, %c0_i32_2 : i32, i32, i32, i32, i32
  }
  func.func @transform_1(%arg0: i32) -> (i32, i32, i32) {
    %c0_i32 = arith.constant 0 : i32
    %c0_i32_0 = arith.constant 0 : i32
    %c0_i32_1 = arith.constant 0 : i32
    return %arg0, %c0_i32, %c0_i32_0 : i32, i32, i32
  }
}

module attributes {stable_mosaic.version = 11 : i64} {
  func.func @_conv3x3_relu_kernel(%arg0: i32, %arg1: memref<128x576xbf16, #tpu.memory_space<vmem>>, %arg2: memref<576x128xbf16, #tpu.memory_space<vmem>>, %arg3: memref<1x128xf32, #tpu.memory_space<vmem>>, %arg4: memref<128x128xbf16, #tpu.memory_space<vmem>>) attributes {dimension_semantics = [#tpu.dimension_semantics<parallel>], iteration_bounds = array<i64: 1>, scalar_prefetch = 0 : i64, scratch_operands = 0 : i64, tpu.core_type = #tpu.core_type<tc>, window_params = [{transform_indices = @transform_0, window_bounds = array<i64: 128, 576>}, {pipeline_mode = #tpu.pipeline_mode<synchronous>, transform_indices = @transform_1, window_bounds = array<i64: 576, 128>}, {pipeline_mode = #tpu.pipeline_mode<synchronous>, transform_indices = @transform_2, window_bounds = array<i64: 1, 128>}, {transform_indices = @transform_3, window_bounds = array<i64: 128, 128>}]} {
    %c0 = arith.constant 0 : index
    %c0_0 = arith.constant 0 : index
    %0 = vector.load %arg1[%c0, %c0_0] : memref<128x576xbf16, #tpu.memory_space<vmem>>, vector<128x576xbf16>
    %c0_1 = arith.constant 0 : index
    %c0_2 = arith.constant 0 : index
    %1 = vector.load %arg2[%c0_1, %c0_2] : memref<576x128xbf16, #tpu.memory_space<vmem>>, vector<576x128xbf16>
    %cst = arith.constant dense<0.000000e+00> : vector<128x128xf32>
    %2 = tpu.matmul %0, %1, %cst {dimension_numbers = #tpu.dot_dimension_numbers<[1], [0], [0], [1], [0, 0, 1, 1], [], []>} : vector<128x576xbf16>, vector<576x128xbf16>, vector<128x128xf32> -> vector<128x128xf32>
    %c0_3 = arith.constant 0 : index
    %c0_4 = arith.constant 0 : index
    %3 = vector.load %arg3[%c0_3, %c0_4] : memref<1x128xf32, #tpu.memory_space<vmem>>, vector<1x128xf32>
    %4 = vector.broadcast %3 : vector<1x128xf32> to vector<128x128xf32>
    %5 = arith.addf %2, %4 : vector<128x128xf32>
    %cst_5 = arith.constant 0.000000e+00 : f32
    %6 = vector.broadcast %cst_5 : f32 to vector<128x128xf32>
    %7 = arith.maximumf %5, %6 : vector<128x128xf32>
    %8 = arith.truncf %7 : vector<128x128xf32> to vector<128x128xbf16>
    %c0_6 = arith.constant 0 : index
    %c0_7 = arith.constant 0 : index
    %9 = vector.load %arg4[%c0_6, %c0_7] : memref<128x128xbf16, #tpu.memory_space<vmem>>, vector<128x128xbf16>
    tpu.vector_store %arg4[%c0_6, %c0_7], %8 {strides = array<i32>} : memref<128x128xbf16, #tpu.memory_space<vmem>>, vector<128x128xbf16>,
    return
  }
  func.func @transform_0(%arg0: i32) -> (i32, i32) {
    %c0_i32 = arith.constant 0 : i32
    %c0_i32_0 = arith.constant 0 : i32
    return %arg0, %c0_i32 : i32, i32
  }
  func.func @transform_1(%arg0: i32) -> (i32, i32) {
    %c0_i32 = arith.constant 0 : i32
    %c0_i32_0 = arith.constant 0 : i32
    %c0_i32_1 = arith.constant 0 : i32
    return %c0_i32, %c0_i32_0 : i32, i32
  }
  func.func @transform_2(%arg0: i32) -> (i32, i32) {
    %c0_i32 = arith.constant 0 : i32
    %c0_i32_0 = arith.constant 0 : i32
    %c0_i32_1 = arith.constant 0 : i32
    return %c0_i32, %c0_i32_0 : i32, i32
  }
  func.func @transform_3(%arg0: i32) -> (i32, i32) {
    %c0_i32 = arith.constant 0 : i32
    %c0_i32_0 = arith.constant 0 : i32
    return %arg0, %c0_i32 : i32, i32
  }
}

module attributes {stable_mosaic.version = 11 : i64} {
  func.func @_conv3x3_relu_kernel(%arg0: i32, %arg1: memref<128x1152xbf16, #tpu.memory_space<vmem>>, %arg2: memref<1152x128xbf16, #tpu.memory_space<vmem>>, %arg3: memref<1x128xf32, #tpu.memory_space<vmem>>, %arg4: memref<128x128xbf16, #tpu.memory_space<vmem>>) attributes {dimension_semantics = [#tpu.dimension_semantics<parallel>], iteration_bounds = array<i64: 1>, scalar_prefetch = 0 : i64, scratch_operands = 0 : i64, tpu.core_type = #tpu.core_type<tc>, window_params = [{transform_indices = @transform_0, window_bounds = array<i64: 128, 1152>}, {pipeline_mode = #tpu.pipeline_mode<synchronous>, transform_indices = @transform_1, window_bounds = array<i64: 1152, 128>}, {pipeline_mode = #tpu.pipeline_mode<synchronous>, transform_indices = @transform_2, window_bounds = array<i64: 1, 128>}, {transform_indices = @transform_3, window_bounds = array<i64: 128, 128>}]} {
    %c0 = arith.constant 0 : index
    %c0_0 = arith.constant 0 : index
    %0 = vector.load %arg1[%c0, %c0_0] : memref<128x1152xbf16, #tpu.memory_space<vmem>>, vector<128x1152xbf16>
    %c0_1 = arith.constant 0 : index
    %c0_2 = arith.constant 0 : index
    %1 = vector.load %arg2[%c0_1, %c0_2] : memref<1152x128xbf16, #tpu.memory_space<vmem>>, vector<1152x128xbf16>
    %cst = arith.constant dense<0.000000e+00> : vector<128x128xf32>
    %2 = tpu.matmul %0, %1, %cst {dimension_numbers = #tpu.dot_dimension_numbers<[1], [0], [0], [1], [0, 0, 1, 1], [], []>} : vector<128x1152xbf16>, vector<1152x128xbf16>, vector<128x128xf32> -> vector<128x128xf32>
    %c0_3 = arith.constant 0 : index
    %c0_4 = arith.constant 0 : index
    %3 = vector.load %arg3[%c0_3, %c0_4] : memref<1x128xf32, #tpu.memory_space<vmem>>, vector<1x128xf32>
    %4 = vector.broadcast %3 : vector<1x128xf32> to vector<128x128xf32>
    %5 = arith.addf %2, %4 : vector<128x128xf32>
    %cst_5 = arith.constant 0.000000e+00 : f32
    %6 = vector.broadcast %cst_5 : f32 to vector<128x128xf32>
    %7 = arith.maximumf %5, %6 : vector<128x128xf32>
    %8 = arith.truncf %7 : vector<128x128xf32> to vector<128x128xbf16>
    %c0_6 = arith.constant 0 : index
    %c0_7 = arith.constant 0 : index
    %9 = vector.load %arg4[%c0_6, %c0_7] : memref<128x128xbf16, #tpu.memory_space<vmem>>, vector<128x128xbf16>
    tpu.vector_store %arg4[%c0_6, %c0_7], %8 {strides = array<i32>} : memref<128x128xbf16, #tpu.memory_space<vmem>>, vector<128x128xbf16>,
    return
  }
  func.func @transform_0(%arg0: i32) -> (i32, i32) {
    %c0_i32 = arith.constant 0 : i32
    %c0_i32_0 = arith.constant 0 : i32
    return %arg0, %c0_i32 : i32, i32
  }
  func.func @transform_1(%arg0: i32) -> (i32, i32) {
    %c0_i32 = arith.constant 0 : i32
    %c0_i32_0 = arith.constant 0 : i32
    %c0_i32_1 = arith.constant 0 : i32
    return %c0_i32, %c0_i32_0 : i32, i32
  }
  func.func @transform_2(%arg0: i32) -> (i32, i32) {
    %c0_i32 = arith.constant 0 : i32
    %c0_i32_0 = arith.constant 0 : i32
    %c0_i32_1 = arith.constant 0 : i32
    return %c0_i32, %c0_i32_0 : i32, i32
  }
  func.func @transform_3(%arg0: i32) -> (i32, i32) {
    %c0_i32 = arith.constant 0 : i32
    %c0_i32_0 = arith.constant 0 : i32
    return %arg0, %c0_i32 : i32, i32
  }
}

module attributes {stable_mosaic.version = 11 : i64} {
  func.func @_maxpool2x2_kernel(%arg0: i32, %arg1: memref<8x2x4x2x128xbf16, #tpu.memory_space<vmem>>, %arg2: memref<8x4x128xbf16, #tpu.memory_space<vmem>>) attributes {dimension_semantics = [#tpu.dimension_semantics<parallel>], iteration_bounds = array<i64: 1>, scalar_prefetch = 0 : i64, scratch_operands = 0 : i64, tpu.core_type = #tpu.core_type<tc>, window_params = [{transform_indices = @transform_0, window_bounds = array<i64: 8, 2, 4, 2, 128>}, {transform_indices = @transform_1, window_bounds = array<i64: 8, 4, 128>}]} {
    %c0 = arith.constant 0 : index
    %c0_0 = arith.constant 0 : index
    %c0_1 = arith.constant 0 : index
    %c0_2 = arith.constant 0 : index
    %c0_3 = arith.constant 0 : index
    %0 = vector.load %arg1[%c0, %c0_0, %c0_1, %c0_2, %c0_3] : memref<8x2x4x2x128xbf16, #tpu.memory_space<vmem>>, vector<8x2x4x2x128xbf16>
    %1 = vector.extract_strided_slice %0 {offsets = [0, 0, 0, 0, 0], sizes = [8, 1, 4, 2, 128], strides = [1, 1, 1, 1, 1]} : vector<8x2x4x2x128xbf16> to vector<8x1x4x2x128xbf16>
    %2 = vector.shape_cast %1 : vector<8x1x4x2x128xbf16> to vector<8x4x2x128xbf16>
    %3 = vector.extract_strided_slice %0 {offsets = [0, 1, 0, 0, 0], sizes = [8, 1, 4, 2, 128], strides = [1, 1, 1, 1, 1]} : vector<8x2x4x2x128xbf16> to vector<8x1x4x2x128xbf16>
    %4 = vector.shape_cast %3 : vector<8x1x4x2x128xbf16> to vector<8x4x2x128xbf16>
    %5 = arith.maximumf %2, %4 : vector<8x4x2x128xbf16>
    %6 = vector.extract_strided_slice %5 {offsets = [0, 0, 0, 0], sizes = [8, 4, 1, 128], strides = [1, 1, 1, 1]} : vector<8x4x2x128xbf16> to vector<8x4x1x128xbf16>
    %7 = vector.shape_cast %6 : vector<8x4x1x128xbf16> to vector<8x4x128xbf16>
    %8 = vector.extract_strided_slice %5 {offsets = [0, 0, 1, 0], sizes = [8, 4, 1, 128], strides = [1, 1, 1, 1]} : vector<8x4x2x128xbf16> to vector<8x4x1x128xbf16>
    %9 = vector.shape_cast %8 : vector<8x4x1x128xbf16> to vector<8x4x128xbf16>
    %10 = arith.maximumf %7, %9 : vector<8x4x128xbf16>
    %c0_4 = arith.constant 0 : index
    %c0_5 = arith.constant 0 : index
    %c0_6 = arith.constant 0 : index
    %11 = vector.load %arg2[%c0_4, %c0_5, %c0_6] : memref<8x4x128xbf16, #tpu.memory_space<vmem>>, vector<8x4x128xbf16>
    tpu.vector_store %arg2[%c0_4, %c0_5, %c0_6], %10 {strides = array<i32>} : memref<8x4x128xbf16, #tpu.memory_space<vmem>>, vector<8x4x128xbf16>,
    return
  }
  func.func @transform_0(%arg0: i32) -> (i32, i32, i32, i32, i32) {
    %c0_i32 = arith.constant 0 : i32
    %c0_i32_0 = arith.constant 0 : i32
    %c0_i32_1 = arith.constant 0 : i32
    %c0_i32_2 = arith.constant 0 : i32
    %c0_i32_3 = arith.constant 0 : i32
    return %arg0, %c0_i32, %c0_i32_0, %c0_i32_1, %c0_i32_2 : i32, i32, i32, i32, i32
  }
  func.func @transform_1(%arg0: i32) -> (i32, i32, i32) {
    %c0_i32 = arith.constant 0 : i32
    %c0_i32_0 = arith.constant 0 : i32
    %c0_i32_1 = arith.constant 0 : i32
    return %arg0, %c0_i32, %c0_i32_0 : i32, i32, i32
  }
}

module attributes {stable_mosaic.version = 11 : i64} {
  func.func @_conv3x3_relu_kernel(%arg0: i32, %arg1: memref<128x1152xbf16, #tpu.memory_space<vmem>>, %arg2: memref<1152x256xbf16, #tpu.memory_space<vmem>>, %arg3: memref<1x256xf32, #tpu.memory_space<vmem>>, %arg4: memref<128x256xbf16, #tpu.memory_space<vmem>>) attributes {dimension_semantics = [#tpu.dimension_semantics<parallel>], iteration_bounds = array<i64: 1>, scalar_prefetch = 0 : i64, scratch_operands = 0 : i64, tpu.core_type = #tpu.core_type<tc>, window_params = [{transform_indices = @transform_0, window_bounds = array<i64: 128, 1152>}, {pipeline_mode = #tpu.pipeline_mode<synchronous>, transform_indices = @transform_1, window_bounds = array<i64: 1152, 256>}, {pipeline_mode = #tpu.pipeline_mode<synchronous>, transform_indices = @transform_2, window_bounds = array<i64: 1, 256>}, {transform_indices = @transform_3, window_bounds = array<i64: 128, 256>}]} {
    %c0 = arith.constant 0 : index
    %c0_0 = arith.constant 0 : index
    %0 = vector.load %arg1[%c0, %c0_0] : memref<128x1152xbf16, #tpu.memory_space<vmem>>, vector<128x1152xbf16>
    %c0_1 = arith.constant 0 : index
    %c0_2 = arith.constant 0 : index
    %1 = vector.load %arg2[%c0_1, %c0_2] : memref<1152x256xbf16, #tpu.memory_space<vmem>>, vector<1152x256xbf16>
    %cst = arith.constant dense<0.000000e+00> : vector<128x256xf32>
    %2 = tpu.matmul %0, %1, %cst {dimension_numbers = #tpu.dot_dimension_numbers<[1], [0], [0], [1], [0, 0, 1, 1], [], []>} : vector<128x1152xbf16>, vector<1152x256xbf16>, vector<128x256xf32> -> vector<128x256xf32>
    %c0_3 = arith.constant 0 : index
    %c0_4 = arith.constant 0 : index
    %3 = vector.load %arg3[%c0_3, %c0_4] : memref<1x256xf32, #tpu.memory_space<vmem>>, vector<1x256xf32>
    %4 = vector.broadcast %3 : vector<1x256xf32> to vector<128x256xf32>
    %5 = arith.addf %2, %4 : vector<128x256xf32>
    %cst_5 = arith.constant 0.000000e+00 : f32
    %6 = vector.broadcast %cst_5 : f32 to vector<128x256xf32>
    %7 = arith.maximumf %5, %6 : vector<128x256xf32>
    %8 = arith.truncf %7 : vector<128x256xf32> to vector<128x256xbf16>
    %c0_6 = arith.constant 0 : index
    %c0_7 = arith.constant 0 : index
    %9 = vector.load %arg4[%c0_6, %c0_7] : memref<128x256xbf16, #tpu.memory_space<vmem>>, vector<128x256xbf16>
    tpu.vector_store %arg4[%c0_6, %c0_7], %8 {strides = array<i32>} : memref<128x256xbf16, #tpu.memory_space<vmem>>, vector<128x256xbf16>,
    return
  }
  func.func @transform_0(%arg0: i32) -> (i32, i32) {
    %c0_i32 = arith.constant 0 : i32
    %c0_i32_0 = arith.constant 0 : i32
    return %arg0, %c0_i32 : i32, i32
  }
  func.func @transform_1(%arg0: i32) -> (i32, i32) {
    %c0_i32 = arith.constant 0 : i32
    %c0_i32_0 = arith.constant 0 : i32
    %c0_i32_1 = arith.constant 0 : i32
    return %c0_i32, %c0_i32_0 : i32, i32
  }
  func.func @transform_2(%arg0: i32) -> (i32, i32) {
    %c0_i32 = arith.constant 0 : i32
    %c0_i32_0 = arith.constant 0 : i32
    %c0_i32_1 = arith.constant 0 : i32
    return %c0_i32, %c0_i32_0 : i32, i32
  }
  func.func @transform_3(%arg0: i32) -> (i32, i32) {
    %c0_i32 = arith.constant 0 : i32
    %c0_i32_0 = arith.constant 0 : i32
    return %arg0, %c0_i32 : i32, i32
  }
}

module attributes {stable_mosaic.version = 11 : i64} {
  func.func @_l1_pair_sum_kernel(%arg0: i32, %arg1: memref<2x64x128xbf16, #tpu.memory_space<vmem>>, %arg2: memref<1x1xf32, #tpu.memory_space<vmem>>) attributes {dimension_semantics = [#tpu.dimension_semantics<arbitrary>], iteration_bounds = array<i64: 1>, scalar_prefetch = 0 : i64, scratch_operands = 0 : i64, tpu.core_type = #tpu.core_type<tc>, window_params = [{transform_indices = @transform_0, window_bounds = array<i64: 2, 64, 128>}, {pipeline_mode = #tpu.pipeline_mode<synchronous>, transform_indices = @transform_1, window_bounds = array<i64: 1, 1>}]} {
    %c0_i32 = arith.constant 0 : i32
    %0 = arith.cmpi eq, %arg0, %c0_i32 : i32
    %1 = arith.extui %0 : i1 to i32
    %c0_i32_0 = arith.constant 0 : i32
    %2 = arith.cmpi ne, %1, %c0_i32_0 : i32
    scf.if %2 {
      %cst_8 = arith.constant 0.000000e+00 : f32
      %18 = vector.broadcast %cst_8 : f32 to vector<1x1xf32>
      %c0_9 = arith.constant 0 : index
      %c0_10 = arith.constant 0 : index
      %19 = vector.load %arg2[%c0_9, %c0_10] : memref<1x1xf32, #tpu.memory_space<vmem>>, vector<1x1xf32>
      tpu.vector_store %arg2[%c0_9, %c0_10], %18 {strides = array<i32>} : memref<1x1xf32, #tpu.memory_space<vmem>>, vector<1x1xf32>,
    } else {
    }
    %c0 = arith.constant 0 : index
    %c0_1 = arith.constant 0 : index
    %c0_2 = arith.constant 0 : index
    %3 = vector.load %arg1[%c0, %c0_1, %c0_2] : memref<2x64x128xbf16, #tpu.memory_space<vmem>>, vector<2x64x128xbf16>
    %4 = arith.extf %3 : vector<2x64x128xbf16> to vector<2x64x128xf32>
    %5 = vector.extract_strided_slice %4 {offsets = [0, 0, 0], sizes = [1, 64, 128], strides = [1, 1, 1]} : vector<2x64x128xf32> to vector<1x64x128xf32>
    %6 = vector.shape_cast %5 : vector<1x64x128xf32> to vector<64x128xf32>
    %7 = vector.extract_strided_slice %4 {offsets = [1, 0, 0], sizes = [1, 64, 128], strides = [1, 1, 1]} : vector<2x64x128xf32> to vector<1x64x128xf32>
    %8 = vector.shape_cast %7 : vector<1x64x128xf32> to vector<64x128xf32>
    %9 = arith.subf %6, %8 : vector<64x128xf32>
    %10 = math.absf %9 : vector<64x128xf32>
    %c0_3 = arith.constant 0 : index
    %c0_4 = arith.constant 0 : index
    %11 = vector.load %arg2[%c0_3, %c0_4] : memref<1x1xf32, #tpu.memory_space<vmem>>, vector<1x1xf32>
    %cst = arith.constant dense<0.000000e+00> : vector<64xf32>
    %12 = vector.multi_reduction <add>, %10, %cst [1] : vector<64x128xf32> to vector<64xf32>
    %13 = vector.shape_cast %12 : vector<64xf32> to vector<64x1xf32>
    %cst_5 = arith.constant dense<0.000000e+00> : vector<1xf32>
    %14 = vector.multi_reduction <add>, %13, %cst_5 [0] : vector<64x1xf32> to vector<1xf32>
    %15 = vector.shape_cast %14 : vector<1xf32> to vector<1x1xf32>
    %16 = arith.addf %11, %15 : vector<1x1xf32>
    %c0_6 = arith.constant 0 : index
    %c0_7 = arith.constant 0 : index
    %17 = vector.load %arg2[%c0_6, %c0_7] : memref<1x1xf32, #tpu.memory_space<vmem>>, vector<1x1xf32>
    tpu.vector_store %arg2[%c0_6, %c0_7], %16 {strides = array<i32>} : memref<1x1xf32, #tpu.memory_space<vmem>>, vector<1x1xf32>,
    return
  }
  func.func @transform_0(%arg0: i32) -> (i32, i32, i32) {
    %c0_i32 = arith.constant 0 : i32
    %c0_i32_0 = arith.constant 0 : i32
    %c0_i32_1 = arith.constant 0 : i32
    return %c0_i32, %arg0, %c0_i32_0 : i32, i32, i32
  }
  func.func @transform_1(%arg0: i32) -> (i32, i32) {
    %c0_i32 = arith.constant 0 : i32
    %c0_i32_0 = arith.constant 0 : i32
    %c0_i32_1 = arith.constant 0 : i32
    return %c0_i32, %c0_i32_0 : i32, i32
  }
}

module attributes {stable_mosaic.version = 11 : i64} {
  func.func @_l1_pair_sum_kernel(%arg0: i32, %arg1: memref<2x16x256xbf16, #tpu.memory_space<vmem>>, %arg2: memref<1x1xf32, #tpu.memory_space<vmem>>) attributes {dimension_semantics = [#tpu.dimension_semantics<arbitrary>], iteration_bounds = array<i64: 1>, scalar_prefetch = 0 : i64, scratch_operands = 0 : i64, tpu.core_type = #tpu.core_type<tc>, window_params = [{transform_indices = @transform_0, window_bounds = array<i64: 2, 16, 256>}, {pipeline_mode = #tpu.pipeline_mode<synchronous>, transform_indices = @transform_1, window_bounds = array<i64: 1, 1>}]} {
    %c0_i32 = arith.constant 0 : i32
    %0 = arith.cmpi eq, %arg0, %c0_i32 : i32
    %1 = arith.extui %0 : i1 to i32
    %c0_i32_0 = arith.constant 0 : i32
    %2 = arith.cmpi ne, %1, %c0_i32_0 : i32
    scf.if %2 {
      %cst_8 = arith.constant 0.000000e+00 : f32
      %18 = vector.broadcast %cst_8 : f32 to vector<1x1xf32>
      %c0_9 = arith.constant 0 : index
      %c0_10 = arith.constant 0 : index
      %19 = vector.load %arg2[%c0_9, %c0_10] : memref<1x1xf32, #tpu.memory_space<vmem>>, vector<1x1xf32>
      tpu.vector_store %arg2[%c0_9, %c0_10], %18 {strides = array<i32>} : memref<1x1xf32, #tpu.memory_space<vmem>>, vector<1x1xf32>,
    } else {
    }
    %c0 = arith.constant 0 : index
    %c0_1 = arith.constant 0 : index
    %c0_2 = arith.constant 0 : index
    %3 = vector.load %arg1[%c0, %c0_1, %c0_2] : memref<2x16x256xbf16, #tpu.memory_space<vmem>>, vector<2x16x256xbf16>
    %4 = arith.extf %3 : vector<2x16x256xbf16> to vector<2x16x256xf32>
    %5 = vector.extract_strided_slice %4 {offsets = [0, 0, 0], sizes = [1, 16, 256], strides = [1, 1, 1]} : vector<2x16x256xf32> to vector<1x16x256xf32>
    %6 = vector.shape_cast %5 : vector<1x16x256xf32> to vector<16x256xf32>
    %7 = vector.extract_strided_slice %4 {offsets = [1, 0, 0], sizes = [1, 16, 256], strides = [1, 1, 1]} : vector<2x16x256xf32> to vector<1x16x256xf32>
    %8 = vector.shape_cast %7 : vector<1x16x256xf32> to vector<16x256xf32>
    %9 = arith.subf %6, %8 : vector<16x256xf32>
    %10 = math.absf %9 : vector<16x256xf32>
    %c0_3 = arith.constant 0 : index
    %c0_4 = arith.constant 0 : index
    %11 = vector.load %arg2[%c0_3, %c0_4] : memref<1x1xf32, #tpu.memory_space<vmem>>, vector<1x1xf32>
    %cst = arith.constant dense<0.000000e+00> : vector<16xf32>
    %12 = vector.multi_reduction <add>, %10, %cst [1] : vector<16x256xf32> to vector<16xf32>
    %13 = vector.shape_cast %12 : vector<16xf32> to vector<16x1xf32>
    %cst_5 = arith.constant dense<0.000000e+00> : vector<1xf32>
    %14 = vector.multi_reduction <add>, %13, %cst_5 [0] : vector<16x1xf32> to vector<1xf32>
    %15 = vector.shape_cast %14 : vector<1xf32> to vector<1x1xf32>
    %16 = arith.addf %11, %15 : vector<1x1xf32>
    %c0_6 = arith.constant 0 : index
    %c0_7 = arith.constant 0 : index
    %17 = vector.load %arg2[%c0_6, %c0_7] : memref<1x1xf32, #tpu.memory_space<vmem>>, vector<1x1xf32>
    tpu.vector_store %arg2[%c0_6, %c0_7], %16 {strides = array<i32>} : memref<1x1xf32, #tpu.memory_space<vmem>>, vector<1x1xf32>,
    return
  }
  func.func @transform_0(%arg0: i32) -> (i32, i32, i32) {
    %c0_i32 = arith.constant 0 : i32
    %c0_i32_0 = arith.constant 0 : i32
    %c0_i32_1 = arith.constant 0 : i32
    return %c0_i32, %arg0, %c0_i32_0 : i32, i32, i32
  }
  func.func @transform_1(%arg0: i32) -> (i32, i32) {
    %c0_i32 = arith.constant 0 : i32
    %c0_i32_0 = arith.constant 0 : i32
    %c0_i32_1 = arith.constant 0 : i32
    return %c0_i32, %c0_i32_0 : i32, i32
  }
}

module attributes {stable_mosaic.version = 11 : i64} {
  func.func @_l1_pair_sum_kernel(%arg0: i32, %arg1: memref<2x256x64xbf16, #tpu.memory_space<vmem>>, %arg2: memref<1x1xf32, #tpu.memory_space<vmem>>) attributes {dimension_semantics = [#tpu.dimension_semantics<arbitrary>], iteration_bounds = array<i64: 1>, scalar_prefetch = 0 : i64, scratch_operands = 0 : i64, tpu.core_type = #tpu.core_type<tc>, window_params = [{transform_indices = @transform_0, window_bounds = array<i64: 2, 256, 64>}, {pipeline_mode = #tpu.pipeline_mode<synchronous>, transform_indices = @transform_1, window_bounds = array<i64: 1, 1>}]} {
    %c0_i32 = arith.constant 0 : i32
    %0 = arith.cmpi eq, %arg0, %c0_i32 : i32
    %1 = arith.extui %0 : i1 to i32
    %c0_i32_0 = arith.constant 0 : i32
    %2 = arith.cmpi ne, %1, %c0_i32_0 : i32
    scf.if %2 {
      %cst_8 = arith.constant 0.000000e+00 : f32
      %18 = vector.broadcast %cst_8 : f32 to vector<1x1xf32>
      %c0_9 = arith.constant 0 : index
      %c0_10 = arith.constant 0 : index
      %19 = vector.load %arg2[%c0_9, %c0_10] : memref<1x1xf32, #tpu.memory_space<vmem>>, vector<1x1xf32>
      tpu.vector_store %arg2[%c0_9, %c0_10], %18 {strides = array<i32>} : memref<1x1xf32, #tpu.memory_space<vmem>>, vector<1x1xf32>,
    } else {
    }
    %c0 = arith.constant 0 : index
    %c0_1 = arith.constant 0 : index
    %c0_2 = arith.constant 0 : index
    %3 = vector.load %arg1[%c0, %c0_1, %c0_2] : memref<2x256x64xbf16, #tpu.memory_space<vmem>>, vector<2x256x64xbf16>
    %4 = arith.extf %3 : vector<2x256x64xbf16> to vector<2x256x64xf32>
    %5 = vector.extract_strided_slice %4 {offsets = [0, 0, 0], sizes = [1, 256, 64], strides = [1, 1, 1]} : vector<2x256x64xf32> to vector<1x256x64xf32>
    %6 = vector.shape_cast %5 : vector<1x256x64xf32> to vector<256x64xf32>
    %7 = vector.extract_strided_slice %4 {offsets = [1, 0, 0], sizes = [1, 256, 64], strides = [1, 1, 1]} : vector<2x256x64xf32> to vector<1x256x64xf32>
    %8 = vector.shape_cast %7 : vector<1x256x64xf32> to vector<256x64xf32>
    %9 = arith.subf %6, %8 : vector<256x64xf32>
    %10 = math.absf %9 : vector<256x64xf32>
    %c0_3 = arith.constant 0 : index
    %c0_4 = arith.constant 0 : index
    %11 = vector.load %arg2[%c0_3, %c0_4] : memref<1x1xf32, #tpu.memory_space<vmem>>, vector<1x1xf32>
    %cst = arith.constant dense<0.000000e+00> : vector<256xf32>
    %12 = vector.multi_reduction <add>, %10, %cst [1] : vector<256x64xf32> to vector<256xf32>
    %13 = vector.shape_cast %12 : vector<256xf32> to vector<256x1xf32>
    %cst_5 = arith.constant dense<0.000000e+00> : vector<1xf32>
    %14 = vector.multi_reduction <add>, %13, %cst_5 [0] : vector<256x1xf32> to vector<1xf32>
    %15 = vector.shape_cast %14 : vector<1xf32> to vector<1x1xf32>
    %16 = arith.addf %11, %15 : vector<1x1xf32>
    %c0_6 = arith.constant 0 : index
    %c0_7 = arith.constant 0 : index
    %17 = vector.load %arg2[%c0_6, %c0_7] : memref<1x1xf32, #tpu.memory_space<vmem>>, vector<1x1xf32>
    tpu.vector_store %arg2[%c0_6, %c0_7], %16 {strides = array<i32>} : memref<1x1xf32, #tpu.memory_space<vmem>>, vector<1x1xf32>,
    return
  }
  func.func @transform_0(%arg0: i32) -> (i32, i32, i32) {
    %c0_i32 = arith.constant 0 : i32
    %c0_i32_0 = arith.constant 0 : i32
    %c0_i32_1 = arith.constant 0 : i32
    return %c0_i32, %arg0, %c0_i32_0 : i32, i32, i32
  }
  func.func @transform_1(%arg0: i32) -> (i32, i32) {
    %c0_i32 = arith.constant 0 : i32
    %c0_i32_0 = arith.constant 0 : i32
    %c0_i32_1 = arith.constant 0 : i32
    return %c0_i32, %c0_i32_0 : i32, i32
  }
}

</mosaic_0001>

<bundles_post_ra>
// kernel: perceptual_loss.10
= control target key start
LH: loop header
LB: loop body
LE: loop exit
PB: predicated region body
PF: predicated region fallthrough
CT: control target
= control target key end

     0   :  { %vm358_vm0 = vcmask 1044480   ;;  %vm359_vm1 = vcmask 1045504   ;;  %v1379_v1 = vmov 65535   ;;  %vm261_vm2 = vcmask 220160   ;;  %s1859_s1 = inlined_call_operand.vmem [shape: bf16[27,64], index: 1, kind: input, shape index: {}]   ;;  %s1860_s0 = inlined_call_operand.vmem [shape: bf16[512,27], index: 0, kind: input, shape index: {}]   ;;  %s1861_s2 = inlined_call_operand.vmem [shape: f32[1,64], index: 2, kind: input, shape index: {}]   ;;  %s1862_s3 = inlined_call_operand.vmem [shape: bf16[512,64], index: 3, kind: output, shape index: {}]  }
   0x1   :  { %v1345_v0 = vld [vmem:[%s1859_s1 + $0x8] sm:$0x3f]   ;;  %v360_v2 = vsel %vm358_vm0, 4294967295, %v1379_v1  ;;  %v1347_v4 = vld [vmem:[%s1860_s0] sm:$0xff]   ;;  %v1351_v10 = vld [vmem:[%s1860_s0 + $0x10] sm:$0xff]   ;;  %vm974_vm3 = vcmask 519168  }
   0x2   :  { %v361_v3 = vsel %vm359_vm1, %v360_v2, 0  ;;  %v1346_v6 = vld [vmem:[%s1859_s1] sm:$0xff]   ;;  %1276 = vmatprep.mubr.msk.bf16.mxu0 %vm261_vm2, %v1347_v4  ;;  %v1349_v8 = vld [vmem:[%s1860_s0 + $0x8] sm:$0xff]   ;;  %v1352_v11 = vld [vmem:[%s1860_s0 + $0x90] sm:$0xff]  }
   0x3   :  { %v363_v5 = vand.u32 %v1345_v0, %v361_v3  ;;  %v1348_v7 = vld [vmem:[%s1860_s0 + $0x80] sm:$0xff]   ;;  %v1350_v9 = vld [vmem:[%s1860_s0 + $0x88] sm:$0xff]   ;;  %v1353_v12 = vld [vmem:[%s1860_s0 + $0x18] sm:$0xff]  }
   0x4   :  { %1308 = vmatprep.mubr.msk.bf16.mxu1 %vm261_vm2, %v1348_v7  ;;  %v1354_v13 = vld [vmem:[%s1860_s0 + $0x98] sm:$0xff]   ;;  %v1355_v14 = vld [vmem:[%s1860_s0 + $0x20] sm:$0xff]   ;;  %v1357_v16 = vld [vmem:[%s1860_s0 + $0x28] sm:$0xff]  }
   0x5   :  { %1272 = vmatprep.subr.bf16.mxu0 %v363_v5  ;;  %1340 = vmatprep.subr.bf16.mxu1 %v363_v5  ;;  %v1356_v15 = vld [vmem:[%s1860_s0 + $0xa0] sm:$0xff]   ;;  %v1358_v17 = vld [vmem:[%s1860_s0 + $0xa8] sm:$0xff]   ;;  %v1359_v18 = vld [vmem:[%s1860_s0 + $0x30] sm:$0xff]  }
   0x6   :  { %1273 = vmatpush3.bf16.msra.mxu0 %v363_v5  ;;  %1342 = vmatpush3.bf16.msra.mxu1 %v363_v5  ;;  %v1360_v19 = vld [vmem:[%s1860_s0 + $0xb0] sm:$0xff]   ;;  %v1361_v20 = vld [vmem:[%s1860_s0 + $0x38] sm:$0xff]   ;;  %v1363_v22 = vld [vmem:[%s1860_s0 + $0x40] sm:$0xff]  }
   0x7   :  { %1274 = vmatprep.subr.bf16.mxu0 %v1346_v6  ;;  %1341 = vmatprep.subr.bf16.mxu1 %v1346_v6  ;;  %v1362_v21 = vld [vmem:[%s1860_s0 + $0xb8] sm:$0xff]   ;;  %v1364_v23 = vld [vmem:[%s1860_s0 + $0xc0] sm:$0xff]   ;;  %v1365_v24 = vld [vmem:[%s1860_s0 + $0x48] sm:$0xff]  }
   0x8   :  { %v1366_v25 = vld [vmem:[%s1860_s0 + $0xc8] sm:$0xff]   ;;  %v1367_v26 = vld [vmem:[%s1860_s0 + $0x50] sm:$0xff]   ;;  %v1369_v28 = vld [vmem:[%s1860_s0 + $0x58] sm:$0xff]  }
   0x9   :  { %v1368_v27 = vld [vmem:[%s1860_s0 + $0xd0] sm:$0xff]   ;;  %v1370_v29 = vld [vmem:[%s1860_s0 + $0xd8] sm:$0xff]   ;;  %v1371_v30 = vld [vmem:[%s1860_s0 + $0x60] sm:$0xff]  }
   0xa   :  { %1275 = vmatpush3.bf16.msra.mxu0 %v1346_v6  ;;  %1343 = vmatpush3.bf16.msra.mxu1 %v1346_v6  ;;  %v1372_v31 = vld [vmem:[%s1860_s0 + $0xe0] sm:$0xff]   ;;  %v1373_v32 = vld [vmem:[%s1860_s0 + $0x68] sm:$0xff]   ;;  %v1375_v34 = vld [vmem:[%s1860_s0 + $0x70] sm:$0xff]  }
   0xb   :  { %v1374_v33 = vld [vmem:[%s1860_s0 + $0xe8] sm:$0xff]   ;;  %v1376_v35 = vld [vmem:[%s1860_s0 + $0xf0] sm:$0xff]   ;;  %v1377_v36 = vld [vmem:[%s1860_s0 + $0x78] sm:$0xff]  }
   0xc   :  { %v1378_v37 = vld [vmem:[%s1860_s0 + $0xf8] sm:$0xff]   ;;  %v1537_v38 = vld [vmem:[%s1861_s2] ss:$0 sm:$0xff] }
   0xd   :  { %1277 = vmatmul.mubr.msk.bf16.vlgmr.msra.gmra.mxu0 %vm261_vm2, %v1349_v8  ;;  %1309 = vmatmul.mubr.msk.bf16.vlgmr.msra.gmra.mxu1 %vm261_vm2, %v1350_v9 }
   0xe   :  { %1280 = vmatprep.mubr.msk.bf16.mxu0 %vm261_vm2, %v1351_v10  ;;  %1312 = vmatprep.mubr.msk.bf16.mxu1 %vm261_vm2, %v1352_v11 }
  0x15   :  { %1281 = vmatmul.mubr.msk.bf16.gmra.mxu0 %vm261_vm2, %v1353_v12  ;;  %1313 = vmatmul.mubr.msk.bf16.gmra.mxu1 %vm261_vm2, %v1354_v13 }
  0x16   :  { %1284 = vmatprep.mubr.msk.bf16.mxu0 %vm261_vm2, %v1355_v14  ;;  %1316 = vmatprep.mubr.msk.bf16.mxu1 %vm261_vm2, %v1356_v15 }
  0x1d   :  { %1285 = vmatmul.mubr.msk.bf16.gmra.mxu0 %vm261_vm2, %v1357_v16  ;;  %1317 = vmatmul.mubr.msk.bf16.gmra.mxu1 %vm261_vm2, %v1358_v17 }
  0x1e   :  { %1288 = vmatprep.mubr.msk.bf16.mxu0 %vm261_vm2, %v1359_v18  ;;  %1320 = vmatprep.mubr.msk.bf16.mxu1 %vm261_vm2, %v1360_v19 }
  0x25   :  { %1289 = vmatmul.mubr.msk.bf16.gmra.mxu0 %vm261_vm2, %v1361_v20  ;;  %1321 = vmatmul.mubr.msk.bf16.gmra.mxu1 %vm261_vm2, %v1362_v21 }
  0x26   :  { %1292 = vmatprep.mubr.msk.bf16.mxu0 %vm261_vm2, %v1363_v22  ;;  %1324 = vmatprep.mubr.msk.bf16.mxu1 %vm261_vm2, %v1364_v23 }
  0x2d   :  { %1293 = vmatmul.mubr.msk.bf16.gmra.mxu0 %vm261_vm2, %v1365_v24  ;;  %1325 = vmatmul.mubr.msk.bf16.gmra.mxu1 %vm261_vm2, %v1366_v25 }
  0x2e   :  { %1296 = vmatprep.mubr.msk.bf16.mxu0 %vm261_vm2, %v1367_v26  ;;  %1328 = vmatprep.mubr.msk.bf16.mxu1 %vm261_vm2, %v1368_v27 }
  0x35   :  { %1297 = vmatmul.mubr.msk.bf16.gmra.mxu0 %vm261_vm2, %v1369_v28  ;;  %1329 = vmatmul.mubr.msk.bf16.gmra.mxu1 %vm261_vm2, %v1370_v29 }
  0x36   :  { %1300 = vmatprep.mubr.msk.bf16.mxu0 %vm261_vm2, %v1371_v30  ;;  %1332 = vmatprep.mubr.msk.bf16.mxu1 %vm261_vm2, %v1372_v31 }
  0x3d   :  { %1301 = vmatmul.mubr.msk.bf16.gmra.mxu0 %vm261_vm2, %v1373_v32  ;;  %1333 = vmatmul.mubr.msk.bf16.gmra.mxu1 %vm261_vm2, %v1374_v33 }
  0x3e   :  { %1304 = vmatprep.mubr.msk.bf16.mxu0 %vm261_vm2, %v1375_v34  ;;  %1336 = vmatprep.mubr.msk.bf16.mxu1 %vm261_vm2, %v1376_v35 }
  0x45   :  { %1305 = vmatmul.mubr.msk.bf16.gmra.mxu0 %vm261_vm2, %v1377_v36  ;;  %1337 = vmatmul.mubr.msk.bf16.gmra.mxu1 %vm261_vm2, %v1378_v37 }
  0xcd   :  { %v1278_v39 = vpop.f32.mrf.mxu0  ;;  %v1310_v40 = vpop.f32.mrf.mxu1 }
  0xce   :  { %v408_v41 = vadd.f32 %v1278_v39, %v1537_v38  ;;  %v536_v42 = vadd.f32 %v1310_v40, %v1537_v38 }
  0xcf   :  { %v399_v43 = vpop.f32.mrf.mxu0  ;;  %v527_v44 = vpop.f32.mrf.mxu1 }
  0xd0   :  { %v656_v45 = vmax.f32 %v408_v41, 0.0  ;;  %v688_v46 = vmax.f32 %v536_v42, 0.0  ;;  %v400_v47 = vadd.f32 %v1537_v38, %v399_v43  ;;  %v528_v48 = vadd.f32 %v1537_v38, %v527_v44 }
  0xd1   :  { %v1279_v49 = vpop.f32.mrf.mxu0  ;;  %v1311_v50 = vpop.f32.mrf.mxu1 }
  0xd2   :  { %v1176_v51 = vpack.c.bf16 %v656_v45, %v656_v45  ;;  %v1208_v52 = vpack.c.bf16 %v688_v46, %v688_v46  ;;  %v654_v53 = vmax.f32 %v400_v47, 0.0  ;;  %v686_v54 = vmax.f32 %v528_v48, 0.0 }
  0xd3   :  { %v411_v55 = vadd.f32 %v1279_v49, %v1537_v38  ;;  %v539_v56 = vadd.f32 %v1311_v50, %v1537_v38  ;;  %v402_v57 = vpop.f32.mrf.mxu0  ;;  %v530_v58 = vpop.f32.mrf.mxu1 }
  0xd4   :  { %977 = vst.msk [vmem:[%s1862_s3 + $0x8] sm:$0xf] %vm974_vm3, %v1176_v51  ;;  %1009 = vst.msk [vmem:[%s1862_s3 + $0x88] sm:$0xf] %vm974_vm3, %v1208_v52  ;;  %v1174_v59 = vpack.c.bf16 %v654_v53, %v654_v53  ;;  %v1206_v60 = vpack.c.bf16 %v686_v54, %v686_v54  ;;  %v403_v61 = vadd.f32 %v1537_v38, %v402_v57 }
  0xd5   :  { %v531_v62 = vadd.f32 %v1537_v38, %v530_v58  ;;  %v657_v63 = vmax.f32 %v411_v55, 0.0  ;;  %v689_v0 = vmax.f32 %v539_v56, 0.0  ;;  %v1282_v1 = vpop.f32.mrf.mxu0  ;;  %v1314_v2 = vpop.f32.mrf.mxu1 }
  0xd6   :  { %975 = vst.msk [vmem:[%s1862_s3] sm:$0xf] %vm974_vm3, %v1174_v59  ;;  %1007 = vst.msk [vmem:[%s1862_s3 + $0x80] sm:$0xf] %vm974_vm3, %v1206_v60  ;;  %v655_v3 = vmax.f32 %v403_v61, 0.0  ;;  %v424_v5 = vadd.f32 %v1282_v1, %v1537_v38  ;;  %v552_v6 = vadd.f32 %v1314_v2, %v1537_v38 }
  0xd7   :  { %v687_v4 = vmax.f32 %v531_v62, 0.0  ;;  %v1177_v7 = vpack.c.bf16 %v657_v63, %v657_v63  ;;  %v1209_v8 = vpack.c.bf16 %v689_v0, %v689_v0  ;;  %v415_v9 = vpop.f32.mrf.mxu0  ;;  %v543_v10 = vpop.f32.mrf.mxu1 }
  0xd8   :  { %v1175_v11 = vpack.c.bf16 %v655_v3, %v655_v3  ;;  %v660_v13 = vmax.f32 %v424_v5, 0.0  ;;  %v692_v14 = vmax.f32 %v552_v6, 0.0  ;;  %v416_v15 = vadd.f32 %v1537_v38, %v415_v9 }
  0xd9   :  { %v1207_v12 = vpack.c.bf16 %v687_v4, %v687_v4  ;;  %978 = vst.msk [vmem:[%s1862_s3 + $0xc] sm:$0xf] %vm974_vm3, %v1177_v7  ;;  %1010 = vst.msk [vmem:[%s1862_s3 + $0x8c] sm:$0xf] %vm974_vm3, %v1209_v8  ;;  %v544_v16 = vadd.f32 %v1537_v38, %v543_v10  ;;  %v1283_v17 = vpop.f32.mrf.mxu0  ;;  %v1315_v18 = vpop.f32.mrf.mxu1 }
  0xda   :  { %976 = vst.msk [vmem:[%s1862_s3 + $0x4] sm:$0xf] %vm974_vm3, %v1175_v11  ;;  %v1180_v19 = vpack.c.bf16 %v660_v13, %v660_v13  ;;  %v1212_v20 = vpack.c.bf16 %v692_v14, %v692_v14  ;;  %v427_v21 = vadd.f32 %v1283_v17, %v1537_v38  ;;  %v555_v22 = vadd.f32 %v1315_v18, %v1537_v38 }
  0xdb   :  { %1008 = vst.msk [vmem:[%s1862_s3 + $0x84] sm:$0xf] %vm974_vm3, %v1207_v12  ;;  %v658_v23 = vmax.f32 %v416_v15, 0.0  ;;  %v690_v24 = vmax.f32 %v544_v16, 0.0  ;;  %v418_v25 = vpop.f32.mrf.mxu0  ;;  %v546_v26 = vpop.f32.mrf.mxu1 }
  0xdc   :  { %981 = vst.msk [vmem:[%s1862_s3 + $0x18] sm:$0xf] %vm974_vm3, %v1180_v19  ;;  %1013 = vst.msk [vmem:[%s1862_s3 + $0x98] sm:$0xf] %vm974_vm3, %v1212_v20  ;;  %v661_v27 = vmax.f32 %v427_v21, 0.0  ;;  %v693_v28 = vmax.f32 %v555_v22, 0.0  ;;  %v419_v29 = vadd.f32 %v1537_v38, %v418_v25  ;;  %v547_v30 = vadd.f32 %v1537_v38, %v546_v26 }
  0xdd   :  { %v1178_v31 = vpack.c.bf16 %v658_v23, %v658_v23  ;;  %v1210_v32 = vpack.c.bf16 %v690_v24, %v690_v24  ;;  %v1286_v33 = vpop.f32.mrf.mxu0  ;;  %v1318_v34 = vpop.f32.mrf.mxu1 }
  0xde   :  { %v1181_v35 = vpack.c.bf16 %v661_v27, %v661_v27  ;;  %v1213_v36 = vpack.c.bf16 %v693_v28, %v693_v28  ;;  %v659_v37 = vmax.f32 %v419_v29, 0.0  ;;  %v691_v39 = vmax.f32 %v547_v30, 0.0 }
  0xdf   :  { %979 = vst.msk [vmem:[%s1862_s3 + $0x10] sm:$0xf] %vm974_vm3, %v1178_v31  ;;  %1011 = vst.msk [vmem:[%s1862_s3 + $0x90] sm:$0xf] %vm974_vm3, %v1210_v32  ;;  %v440_v40 = vadd.f32 %v1286_v33, %v1537_v38  ;;  %v568_v41 = vadd.f32 %v1318_v34, %v1537_v38  ;;  %v431_v42 = vpop.f32.mrf.mxu0  ;;  %v559_v43 = vpop.f32.mrf.mxu1 }
  0xe0   :  { %982 = vst.msk [vmem:[%s1862_s3 + $0x1c] sm:$0xf] %vm974_vm3, %v1181_v35  ;;  %1014 = vst.msk [vmem:[%s1862_s3 + $0x9c] sm:$0xf] %vm974_vm3, %v1213_v36  ;;  %v1179_v44 = vpack.c.bf16 %v659_v37, %v659_v37  ;;  %v1211_v45 = vpack.c.bf16 %v691_v39, %v691_v39  ;;  %v432_v46 = vadd.f32 %v1537_v38, %v431_v42 }
  0xe1   :  { %v560_v47 = vadd.f32 %v1537_v38, %v559_v43  ;;  %v664_v48 = vmax.f32 %v440_v40, 0.0  ;;  %v696_v49 = vmax.f32 %v568_v41, 0.0  ;;  %v1287_v50 = vpop.f32.mrf.mxu0  ;;  %v1319_v51 = vpop.f32.mrf.mxu1 }
  0xe2   :  { %980 = vst.msk [vmem:[%s1862_s3 + $0x14] sm:$0xf] %vm974_vm3, %v1179_v44  ;;  %1012 = vst.msk [vmem:[%s1862_s3 + $0x94] sm:$0xf] %vm974_vm3, %v1211_v45  ;;  %v662_v52 = vmax.f32 %v432_v46, 0.0  ;;  %v443_v54 = vadd.f32 %v1287_v50, %v1537_v38  ;;  %v571_v55 = vadd.f32 %v1319_v51, %v1537_v38 }
  0xe3   :  { %v694_v53 = vmax.f32 %v560_v47, 0.0  ;;  %v1184_v56 = vpack.c.bf16 %v664_v48, %v664_v48  ;;  %v1216_v57 = vpack.c.bf16 %v696_v49, %v696_v49  ;;  %v434_v58 = vpop.f32.mrf.mxu0  ;;  %v562_v59 = vpop.f32.mrf.mxu1 }
  0xe4   :  { %v1182_v60 = vpack.c.bf16 %v662_v52, %v662_v52  ;;  %v665_v62 = vmax.f32 %v443_v54, 0.0  ;;  %v697_v63 = vmax.f32 %v571_v55, 0.0  ;;  %v435_v0 = vadd.f32 %v1537_v38, %v434_v58 }
  0xe5   :  { %v1214_v61 = vpack.c.bf16 %v694_v53, %v694_v53  ;;  %985 = vst.msk [vmem:[%s1862_s3 + $0x28] sm:$0xf] %vm974_vm3, %v1184_v56  ;;  %1017 = vst.msk [vmem:[%s1862_s3 + $0xa8] sm:$0xf] %vm974_vm3, %v1216_v57  ;;  %v563_v1 = vadd.f32 %v1537_v38, %v562_v59  ;;  %v1290_v2 = vpop.f32.mrf.mxu0  ;;  %v1322_v3 = vpop.f32.mrf.mxu1 }
  0xe6   :  { %983 = vst.msk [vmem:[%s1862_s3 + $0x20] sm:$0xf] %vm974_vm3, %v1182_v60  ;;  %v1185_v4 = vpack.c.bf16 %v665_v62, %v665_v62  ;;  %v1217_v5 = vpack.c.bf16 %v697_v63, %v697_v63  ;;  %v456_v6 = vadd.f32 %v1290_v2, %v1537_v38  ;;  %v584_v7 = vadd.f32 %v1322_v3, %v1537_v38 }
  0xe7   :  { %1015 = vst.msk [vmem:[%s1862_s3 + $0xa0] sm:$0xf] %vm974_vm3, %v1214_v61  ;;  %v663_v8 = vmax.f32 %v435_v0, 0.0  ;;  %v695_v9 = vmax.f32 %v563_v1, 0.0  ;;  %v447_v10 = vpop.f32.mrf.mxu0  ;;  %v575_v11 = vpop.f32.mrf.mxu1 }
  0xe8   :  { %986 = vst.msk [vmem:[%s1862_s3 + $0x2c] sm:$0xf] %vm974_vm3, %v1185_v4  ;;  %1018 = vst.msk [vmem:[%s1862_s3 + $0xac] sm:$0xf] %vm974_vm3, %v1217_v5  ;;  %v668_v12 = vmax.f32 %v456_v6, 0.0  ;;  %v700_v13 = vmax.f32 %v584_v7, 0.0  ;;  %v448_v14 = vadd.f32 %v1537_v38, %v447_v10  ;;  %v576_v15 = vadd.f32 %v1537_v38, %v575_v11 }
  0xe9   :  { %v1183_v16 = vpack.c.bf16 %v663_v8, %v663_v8  ;;  %v1215_v17 = vpack.c.bf16 %v695_v9, %v695_v9  ;;  %v1291_v18 = vpop.f32.mrf.mxu0  ;;  %v1323_v19 = vpop.f32.mrf.mxu1 }
  0xea   :  { %v1188_v20 = vpack.c.bf16 %v668_v12, %v668_v12  ;;  %v1220_v21 = vpack.c.bf16 %v700_v13, %v700_v13  ;;  %v666_v22 = vmax.f32 %v448_v14, 0.0  ;;  %v698_v23 = vmax.f32 %v576_v15, 0.0 }
  0xeb   :  { %984 = vst.msk [vmem:[%s1862_s3 + $0x24] sm:$0xf] %vm974_vm3, %v1183_v16  ;;  %1016 = vst.msk [vmem:[%s1862_s3 + $0xa4] sm:$0xf] %vm974_vm3, %v1215_v17  ;;  %v459_v24 = vadd.f32 %v1291_v18, %v1537_v38  ;;  %v587_v25 = vadd.f32 %v1323_v19, %v1537_v38  ;;  %v450_v26 = vpop.f32.mrf.mxu0  ;;  %v578_v27 = vpop.f32.mrf.mxu1 }
  0xec   :  { %989 = vst.msk [vmem:[%s1862_s3 + $0x38] sm:$0xf] %vm974_vm3, %v1188_v20  ;;  %1021 = vst.msk [vmem:[%s1862_s3 + $0xb8] sm:$0xf] %vm974_vm3, %v1220_v21  ;;  %v1186_v28 = vpack.c.bf16 %v666_v22, %v666_v22  ;;  %v1218_v29 = vpack.c.bf16 %v698_v23, %v698_v23  ;;  %v451_v30 = vadd.f32 %v1537_v38, %v450_v26 }
  0xed   :  { %v579_v31 = vadd.f32 %v1537_v38, %v578_v27  ;;  %v669_v32 = vmax.f32 %v459_v24, 0.0  ;;  %v701_v33 = vmax.f32 %v587_v25, 0.0  ;;  %v1294_v34 = vpop.f32.mrf.mxu0  ;;  %v1326_v35 = vpop.f32.mrf.mxu1 }
  0xee   :  { %987 = vst.msk [vmem:[%s1862_s3 + $0x30] sm:$0xf] %vm974_vm3, %v1186_v28  ;;  %1019 = vst.msk [vmem:[%s1862_s3 + $0xb0] sm:$0xf] %vm974_vm3, %v1218_v29  ;;  %v667_v36 = vmax.f32 %v451_v30, 0.0  ;;  %v472_v39 = vadd.f32 %v1294_v34, %v1537_v38  ;;  %v600_v40 = vadd.f32 %v1326_v35, %v1537_v38 }
  0xef   :  { %v699_v37 = vmax.f32 %v579_v31, 0.0  ;;  %v1189_v41 = vpack.c.bf16 %v669_v32, %v669_v32  ;;  %v1221_v42 = vpack.c.bf16 %v701_v33, %v701_v33  ;;  %v463_v43 = vpop.f32.mrf.mxu0  ;;  %v591_v44 = vpop.f32.mrf.mxu1 }
  0xf0   :  { %v1187_v45 = vpack.c.bf16 %v667_v36, %v667_v36  ;;  %v672_v47 = vmax.f32 %v472_v39, 0.0  ;;  %v704_v48 = vmax.f32 %v600_v40, 0.0  ;;  %v464_v49 = vadd.f32 %v1537_v38, %v463_v43 }
  0xf1   :  { %v1219_v46 = vpack.c.bf16 %v699_v37, %v699_v37  ;;  %990 = vst.msk [vmem:[%s1862_s3 + $0x3c] sm:$0xf] %vm974_vm3, %v1189_v41  ;;  %1022 = vst.msk [vmem:[%s1862_s3 + $0xbc] sm:$0xf] %vm974_vm3, %v1221_v42  ;;  %v592_v50 = vadd.f32 %v1537_v38, %v591_v44  ;;  %v1295_v51 = vpop.f32.mrf.mxu0  ;;  %v1327_v52 = vpop.f32.mrf.mxu1 }
  0xf2   :  { %988 = vst.msk [vmem:[%s1862_s3 + $0x34] sm:$0xf] %vm974_vm3, %v1187_v45  ;;  %v1192_v53 = vpack.c.bf16 %v672_v47, %v672_v47  ;;  %v1224_v54 = vpack.c.bf16 %v704_v48, %v704_v48  ;;  %v475_v55 = vadd.f32 %v1295_v51, %v1537_v38  ;;  %v603_v56 = vadd.f32 %v1327_v52, %v1537_v38 }
  0xf3   :  { %1020 = vst.msk [vmem:[%s1862_s3 + $0xb4] sm:$0xf] %vm974_vm3, %v1219_v46  ;;  %v670_v57 = vmax.f32 %v464_v49, 0.0  ;;  %v702_v58 = vmax.f32 %v592_v50, 0.0  ;;  %v466_v59 = vpop.f32.mrf.mxu0  ;;  %v594_v60 = vpop.f32.mrf.mxu1 }
  0xf4   :  { %993 = vst.msk [vmem:[%s1862_s3 + $0x48] sm:$0xf] %vm974_vm3, %v1192_v53  ;;  %1025 = vst.msk [vmem:[%s1862_s3 + $0xc8] sm:$0xf] %vm974_vm3, %v1224_v54  ;;  %v673_v61 = vmax.f32 %v475_v55, 0.0  ;;  %v705_v62 = vmax.f32 %v603_v56, 0.0  ;;  %v467_v63 = vadd.f32 %v1537_v38, %v466_v59  ;;  %v595_v0 = vadd.f32 %v1537_v38, %v594_v60 }
  0xf5   :  { %v1190_v1 = vpack.c.bf16 %v670_v57, %v670_v57  ;;  %v1222_v2 = vpack.c.bf16 %v702_v58, %v702_v58  ;;  %v1298_v3 = vpop.f32.mrf.mxu0  ;;  %v1330_v4 = vpop.f32.mrf.mxu1 }
  0xf6   :  { %v1193_v5 = vpack.c.bf16 %v673_v61, %v673_v61  ;;  %v1225_v6 = vpack.c.bf16 %v705_v62, %v705_v62  ;;  %v671_v7 = vmax.f32 %v467_v63, 0.0  ;;  %v703_v8 = vmax.f32 %v595_v0, 0.0 }
  0xf7   :  { %991 = vst.msk [vmem:[%s1862_s3 + $0x40] sm:$0xf] %vm974_vm3, %v1190_v1  ;;  %1023 = vst.msk [vmem:[%s1862_s3 + $0xc0] sm:$0xf] %vm974_vm3, %v1222_v2  ;;  %v488_v9 = vadd.f32 %v1298_v3, %v1537_v38  ;;  %v616_v10 = vadd.f32 %v1330_v4, %v1537_v38  ;;  %v479_v11 = vpop.f32.mrf.mxu0  ;;  %v607_v12 = vpop.f32.mrf.mxu1 }
  0xf8   :  { %994 = vst.msk [vmem:[%s1862_s3 + $0x4c] sm:$0xf] %vm974_vm3, %v1193_v5  ;;  %1026 = vst.msk [vmem:[%s1862_s3 + $0xcc] sm:$0xf] %vm974_vm3, %v1225_v6  ;;  %v1191_v13 = vpack.c.bf16 %v671_v7, %v671_v7  ;;  %v1223_v14 = vpack.c.bf16 %v703_v8, %v703_v8  ;;  %v480_v15 = vadd.f32 %v1537_v38, %v479_v11 }
  0xf9   :  { %v608_v16 = vadd.f32 %v1537_v38, %v607_v12  ;;  %v676_v17 = vmax.f32 %v488_v9, 0.0  ;;  %v708_v18 = vmax.f32 %v616_v10, 0.0  ;;  %v1299_v19 = vpop.f32.mrf.mxu0  ;;  %v1331_v20 = vpop.f32.mrf.mxu1 }
  0xfa   :  { %992 = vst.msk [vmem:[%s1862_s3 + $0x44] sm:$0xf] %vm974_vm3, %v1191_v13  ;;  %1024 = vst.msk [vmem:[%s1862_s3 + $0xc4] sm:$0xf] %vm974_vm3, %v1223_v14  ;;  %v674_v21 = vmax.f32 %v480_v15, 0.0  ;;  %v491_v23 = vadd.f32 %v1299_v19, %v1537_v38  ;;  %v619_v24 = vadd.f32 %v1331_v20, %v1537_v38 }
  0xfb   :  { %v706_v22 = vmax.f32 %v608_v16, 0.0  ;;  %v1196_v25 = vpack.c.bf16 %v676_v17, %v676_v17  ;;  %v1228_v26 = vpack.c.bf16 %v708_v18, %v708_v18  ;;  %v482_v27 = vpop.f32.mrf.mxu0  ;;  %v610_v28 = vpop.f32.mrf.mxu1 }
  0xfc   :  { %v1194_v29 = vpack.c.bf16 %v674_v21, %v674_v21  ;;  %v677_v31 = vmax.f32 %v491_v23, 0.0  ;;  %v709_v32 = vmax.f32 %v619_v24, 0.0  ;;  %v483_v33 = vadd.f32 %v1537_v38, %v482_v27 }
  0xfd   :  { %v1226_v30 = vpack.c.bf16 %v706_v22, %v706_v22  ;;  %997 = vst.msk [vmem:[%s1862_s3 + $0x58] sm:$0xf] %vm974_vm3, %v1196_v25  ;;  %1029 = vst.msk [vmem:[%s1862_s3 + $0xd8] sm:$0xf] %vm974_vm3, %v1228_v26  ;;  %v611_v34 = vadd.f32 %v1537_v38, %v610_v28  ;;  %v1302_v35 = vpop.f32.mrf.mxu0  ;;  %v1334_v36 = vpop.f32.mrf.mxu1 }
  0xfe   :  { %995 = vst.msk [vmem:[%s1862_s3 + $0x50] sm:$0xf] %vm974_vm3, %v1194_v29  ;;  %v1197_v37 = vpack.c.bf16 %v677_v31, %v677_v31  ;;  %v1229_v39 = vpack.c.bf16 %v709_v32, %v709_v32  ;;  %v504_v40 = vadd.f32 %v1302_v35, %v1537_v38  ;;  %v632_v41 = vadd.f32 %v1334_v36, %v1537_v38 }
  0xff   :  { %1027 = vst.msk [vmem:[%s1862_s3 + $0xd0] sm:$0xf] %vm974_vm3, %v1226_v30  ;;  %v675_v42 = vmax.f32 %v483_v33, 0.0  ;;  %v707_v43 = vmax.f32 %v611_v34, 0.0  ;;  %v495_v44 = vpop.f32.mrf.mxu0  ;;  %v623_v45 = vpop.f32.mrf.mxu1 }
 0x100   :  { %998 = vst.msk [vmem:[%s1862_s3 + $0x5c] sm:$0xf] %vm974_vm3, %v1197_v37  ;;  %1030 = vst.msk [vmem:[%s1862_s3 + $0xdc] sm:$0xf] %vm974_vm3, %v1229_v39  ;;  %v680_v46 = vmax.f32 %v504_v40, 0.0  ;;  %v712_v47 = vmax.f32 %v632_v41, 0.0  ;;  %v496_v48 = vadd.f32 %v1537_v38, %v495_v44  ;;  %v624_v49 = vadd.f32 %v1537_v38, %v623_v45 }
 0x101   :  { %v1195_v50 = vpack.c.bf16 %v675_v42, %v675_v42  ;;  %v1227_v51 = vpack.c.bf16 %v707_v43, %v707_v43  ;;  %v1303_v52 = vpop.f32.mrf.mxu0  ;;  %v1335_v53 = vpop.f32.mrf.mxu1 }
 0x102   :  { %v1200_v54 = vpack.c.bf16 %v680_v46, %v680_v46  ;;  %v1232_v55 = vpack.c.bf16 %v712_v47, %v712_v47  ;;  %v678_v56 = vmax.f32 %v496_v48, 0.0  ;;  %v710_v57 = vmax.f32 %v624_v49, 0.0 }
 0x103   :  { %996 = vst.msk [vmem:[%s1862_s3 + $0x54] sm:$0xf] %vm974_vm3, %v1195_v50  ;;  %1028 = vst.msk [vmem:[%s1862_s3 + $0xd4] sm:$0xf] %vm974_vm3, %v1227_v51  ;;  %v507_v58 = vadd.f32 %v1303_v52, %v1537_v38  ;;  %v635_v59 = vadd.f32 %v1335_v53, %v1537_v38  ;;  %v498_v60 = vpop.f32.mrf.mxu0  ;;  %v626_v61 = vpop.f32.mrf.mxu1 }
 0x104   :  { %1001 = vst.msk [vmem:[%s1862_s3 + $0x68] sm:$0xf] %vm974_vm3, %v1200_v54  ;;  %1033 = vst.msk [vmem:[%s1862_s3 + $0xe8] sm:$0xf] %vm974_vm3, %v1232_v55  ;;  %v1198_v62 = vpack.c.bf16 %v678_v56, %v678_v56  ;;  %v1230_v63 = vpack.c.bf16 %v710_v57, %v710_v57  ;;  %v499_v0 = vadd.f32 %v1537_v38, %v498_v60 }
 0x105   :  { %v627_v1 = vadd.f32 %v1537_v38, %v626_v61  ;;  %v681_v2 = vmax.f32 %v507_v58, 0.0  ;;  %v713_v3 = vmax.f32 %v635_v59, 0.0  ;;  %v1306_v4 = vpop.f32.mrf.mxu0  ;;  %v1338_v5 = vpop.f32.mrf.mxu1 }
 0x106   :  { %999 = vst.msk [vmem:[%s1862_s3 + $0x60] sm:$0xf] %vm974_vm3, %v1198_v62  ;;  %1031 = vst.msk [vmem:[%s1862_s3 + $0xe0] sm:$0xf] %vm974_vm3, %v1230_v63  ;;  %v679_v6 = vmax.f32 %v499_v0, 0.0  ;;  %v520_v8 = vadd.f32 %v1306_v4, %v1537_v38  ;;  %v648_v9 = vadd.f32 %v1338_v5, %v1537_v38 }
 0x107   :  { %v711_v7 = vmax.f32 %v627_v1, 0.0  ;;  %v1201_v10 = vpack.c.bf16 %v681_v2, %v681_v2  ;;  %v1233_v11 = vpack.c.bf16 %v713_v3, %v713_v3  ;;  %v511_v12 = vpop.f32.mrf.mxu0  ;;  %v639_v13 = vpop.f32.mrf.mxu1 }
 0x108   :  { %v1199_v14 = vpack.c.bf16 %v679_v6, %v679_v6  ;;  %v684_v16 = vmax.f32 %v520_v8, 0.0  ;;  %v716_v17 = vmax.f32 %v648_v9, 0.0  ;;  %v512_v18 = vadd.f32 %v1537_v38, %v511_v12 }
 0x109   :  { %v1231_v15 = vpack.c.bf16 %v711_v7, %v711_v7  ;;  %1002 = vst.msk [vmem:[%s1862_s3 + $0x6c] sm:$0xf] %vm974_vm3, %v1201_v10  ;;  %1034 = vst.msk [vmem:[%s1862_s3 + $0xec] sm:$0xf] %vm974_vm3, %v1233_v11  ;;  %v640_v19 = vadd.f32 %v1537_v38, %v639_v13  ;;  %v1307_v20 = vpop.f32.mrf.mxu0  ;;  %v1339_v21 = vpop.f32.mrf.mxu1 }
 0x10a   :  { %1000 = vst.msk [vmem:[%s1862_s3 + $0x64] sm:$0xf] %vm974_vm3, %v1199_v14  ;;  %v1204_v22 = vpack.c.bf16 %v684_v16, %v684_v16  ;;  %v1236_v23 = vpack.c.bf16 %v716_v17, %v716_v17  ;;  %v523_v24 = vadd.f32 %v1307_v20, %v1537_v38  ;;  %v651_v25 = vadd.f32 %v1339_v21, %v1537_v38 }
 0x10b   :  { %1032 = vst.msk [vmem:[%s1862_s3 + $0xe4] sm:$0xf] %vm974_vm3, %v1231_v15  ;;  %v682_v26 = vmax.f32 %v512_v18, 0.0  ;;  %v714_v27 = vmax.f32 %v640_v19, 0.0  ;;  %v514_v28 = vpop.f32.mrf.mxu0  ;;  %v642_v29 = vpop.f32.mrf.mxu1 }
 0x10c   :  { %1005 = vst.msk [vmem:[%s1862_s3 + $0x78] sm:$0xf] %vm974_vm3, %v1204_v22  ;;  %1037 = vst.msk [vmem:[%s1862_s3 + $0xf8] sm:$0xf] %vm974_vm3, %v1236_v23  ;;  %v685_v30 = vmax.f32 %v523_v24, 0.0  ;;  %v717_v31 = vmax.f32 %v651_v25, 0.0  ;;  %v515_v32 = vadd.f32 %v1537_v38, %v514_v28  ;;  %v643_v33 = vadd.f32 %v1537_v38, %v642_v29 }
 0x10d   :  { %v1202_v34 = vpack.c.bf16 %v682_v26, %v682_v26  ;;  %v1234_v35 = vpack.c.bf16 %v714_v27, %v714_v27 }
 0x10e   :  { %v1205_v36 = vpack.c.bf16 %v685_v30, %v685_v30  ;;  %v1237_v37 = vpack.c.bf16 %v717_v31, %v717_v31  ;;  %v683_v39 = vmax.f32 %v515_v32, 0.0  ;;  %v715_v40 = vmax.f32 %v643_v33, 0.0 }
 0x10f   :  { %1003 = vst.msk [vmem:[%s1862_s3 + $0x70] sm:$0xf] %vm974_vm3, %v1202_v34  ;;  %1035 = vst.msk [vmem:[%s1862_s3 + $0xf0] sm:$0xf] %vm974_vm3, %v1234_v35 }
 0x110   :  { %1006 = vst.msk [vmem:[%s1862_s3 + $0x7c] sm:$0xf] %vm974_vm3, %v1205_v36  ;;  %1038 = vst.msk [vmem:[%s1862_s3 + $0xfc] sm:$0xf] %vm974_vm3, %v1237_v37  ;;  %v1203_v38 = vpack.c.bf16 %v683_v39, %v683_v39  ;;  %v1235_v41 = vpack.c.bf16 %v715_v40, %v715_v40 }
 0x112   :  { %1004 = vst.msk [vmem:[%s1862_s3 + $0x74] sm:$0xf] %vm974_vm3, %v1203_v38  ;;  %1036 = vst.msk [vmem:[%s1862_s3 + $0xf4] sm:$0xf] %vm974_vm3, %v1235_v41 }

// kernel: perceptual_loss.11
= control target key start
LH: loop header
LB: loop body
LE: loop exit
PB: predicated region body
PF: predicated region fallthrough
CT: control target
= control target key end

     0   :  { %v3414_v0 = vmov 0   ;;  %vm1302_vm0 = vcmask 523264   ;;  %vm2586_vm1 = vcmask 519168   ;;  %s4793_s1 = inlined_call_operand.vmem [shape: bf16[576,64], index: 1, kind: input, shape index: {}]   ;;  %s4794_s0 = inlined_call_operand.vmem [shape: bf16[512,576], index: 0, kind: input, shape index: {}]   ;;  %s4795_s2 = inlined_call_operand.vmem [shape: f32[1,64], index: 2, kind: input, shape index: {}]   ;;  %s4796_s3 = inlined_call_operand.vmem [shape: bf16[512,64], index: 3, kind: output, shape index: {}]  }
   0x1   :  { %1399 = vmatprep.subr.bf16.mxu0 %v3414_v0  ;;  %3120 = vmatprep.subr.bf16.mxu1 %v3414_v0  ;;  %v3153_v1 = vld [vmem:[%s4793_s1 + $0x38] sm:$0xff]   ;;  %v3154_v2 = vld [vmem:[%s4793_s1 + $0x30] sm:$0xff]   ;;  %v3155_v3 = vld [vmem:[%s4793_s1 + $0x28] sm:$0xff]  }
   0x2   :  { %1400 = vmatpush1.bf16.msra.mxu0 %v3153_v1  ;;  %3136 = vmatpush1.bf16.msra.mxu1 %v3153_v1  ;;  %v3156_v4 = vld [vmem:[%s4793_s1 + $0x20] sm:$0xff]   ;;  %v3157_v5 = vld [vmem:[%s4793_s1 + $0x18] sm:$0xff]   ;;  %v3158_v7 = vld [vmem:[%s4793_s1 + $0x10] sm:$0xff]  }
   0x3   :  { %1401 = vmatprep.subr.bf16.mxu0 %v3414_v0  ;;  %3121 = vmatprep.subr.bf16.mxu1 %v3414_v0  ;;  %v3171_v6 = vld [vmem:[%s4794_s0 + $0x4] ss:$20 sps:$4 sm:$0xff]   ;;  %v3159_v9 = vld [vmem:[%s4793_s1 + $0x8] sm:$0xff]   ;;  %v3162_v12 = vld [vmem:[%s4793_s1 + $0x70] sm:$0xff]  }
   0x4   :  { %v3174_v8 = vld [vmem:[%s4794_s0 + $0x3c4] ss:$20 sps:$4 sm:$0xff]   ;;  %1431 = vmatprep.mubr.bf16.mxu0 %v3171_v6  ;;  %v3163_v13 = vld [vmem:[%s4793_s1 + $0x68] sm:$0xff]   ;;  %v3166_v16 = vld [vmem:[%s4793_s1 + $0x50] sm:$0xff]  }
   0x5   :  { %1623 = vmatprep.mubr.bf16.mxu1 %v3174_v8  ;;  %v3160_v10 = vld [vmem:[%s4793_s1] sm:$0xff]   ;;  %v3161_v11 = vld [vmem:[%s4793_s1 + $0x78] sm:$0xff]   ;;  %v3167_v17 = vld [vmem:[%s4793_s1 + $0x48] sm:$0xff]  }
   0x6   :  { %1402 = vmatpush1.bf16.msra.mxu0 %v3154_v2  ;;  %3137 = vmatpush1.bf16.msra.mxu1 %v3154_v2  ;;  %v3164_v14 = vld [vmem:[%s4793_s1 + $0x60] sm:$0xff]   ;;  %v3165_v15 = vld [vmem:[%s4793_s1 + $0x58] sm:$0xff]   ;;  %v3224_v25 = vld [vmem:[%s4793_s1 + $0x110] sm:$0xff]  }
   0x7   :  { %1403 = vmatprep.subr.bf16.mxu0 %v3414_v0  ;;  %3122 = vmatprep.subr.bf16.mxu1 %v3414_v0  ;;  %v3168_v18 = vld [vmem:[%s4793_s1 + $0x40] sm:$0xff]   ;;  %v3175_v19 = vld [vmem:[%s4793_s1 + $0x118] sm:$0xff]   ;;  %v3177_v26 = vld [vmem:[%s4793_s1 + $0xb0] sm:$0xff]  }
   0x8   :  { %v3169_v20 = vld [vmem:[%s4794_s0] ss:$20 sps:$4 sm:$0xff]   ;;  %v3176_v22 = vld [vmem:[%s4793_s1 + $0xb8] sm:$0xff]   ;;  %v3184_v29 = vld [vmem:[%s4793_s1 + $0xa8] sm:$0xff]  }
   0x9   :  { %v3172_v21 = vld [vmem:[%s4794_s0 + $0x3c0] ss:$20 sps:$4 sm:$0xff]   ;;  %v3182_v27 = vld [vmem:[%s4794_s0 + $0x28] ss:$20 sps:$4 sm:$0xff]   ;;  %v3190_v34 = vld [vmem:[%s4794_s0 + $0x50] ss:$20 sps:$4 sm:$0xff]  }
   0xa   :  { %1404 = vmatpush1.bf16.msra.mxu0 %v3155_v3  ;;  %3138 = vmatpush1.bf16.msra.mxu1 %v3155_v3  ;;  %v3178_v23 = vld [vmem:[%s4794_s0 + $0x2c] ss:$20 sps:$4 sm:$0xff]   ;;  %v3183_v28 = vld [vmem:[%s4794_s0 + $0x3e8] ss:$20 sps:$4 sm:$0xff]   ;;  %v3191_v35 = vld [vmem:[%s4794_s0 + $0x410] ss:$20 sps:$4 sm:$0xff]  }
   0xb   :  { %1405 = vmatprep.subr.bf16.mxu0 %v3414_v0  ;;  %3123 = vmatprep.subr.bf16.mxu1 %v3414_v0  ;;  %v3180_v24 = vld [vmem:[%s4794_s0 + $0x3ec] ss:$20 sps:$4 sm:$0xff]   ;;  %v3186_v31 = vld [vmem:[%s4794_s0 + $0x54] ss:$20 sps:$4 sm:$0xff]   ;;  %v3192_v36 = vld [vmem:[%s4793_s1 + $0x98] sm:$0xff]  }
   0xc   :  { %v3265_v30 = vld [vmem:[%s4793_s1 + $0x108] sm:$0xff]   ;;  %v3185_v33 = vld [vmem:[%s4793_s1 + $0xa0] sm:$0xff]   ;;  %v3194_v37 = vld [vmem:[%s4794_s0 + $0x7c] ss:$20 sps:$4 sm:$0xff]  }
   0xd   :  { %v3188_v32 = vld [vmem:[%s4794_s0 + $0x414] ss:$20 sps:$4 sm:$0xff]   ;;  %v3196_v38 = vld [vmem:[%s4794_s0 + $0x43c] ss:$20 sps:$4 sm:$0xff]   ;;  %v3198_v40 = vld [vmem:[%s4794_s0 + $0x78] ss:$20 sps:$4 sm:$0xff]  }
   0xe   :  { %1406 = vmatpush1.bf16.msra.mxu0 %v3156_v4  ;;  %3139 = vmatpush1.bf16.msra.mxu1 %v3156_v4  ;;  %v3193_v39 = vld [vmem:[%s4793_s1 + $0x90] sm:$0xff]   ;;  %v3199_v41 = vld [vmem:[%s4794_s0 + $0x438] ss:$20 sps:$4 sm:$0xff]   ;;  %v3302_v44 = vld [vmem:[%s4793_s1 + $0x100] sm:$0xff]  }
   0xf   :  { %1407 = vmatprep.subr.bf16.mxu0 %v3414_v0  ;;  %3124 = vmatprep.subr.bf16.mxu1 %v3414_v0  ;;  %v3200_v42 = vld [vmem:[%s4793_s1 + $0x88] sm:$0xff]   ;;  %v3202_v43 = vld [vmem:[%s4794_s0 + $0xa4] ss:$20 sps:$4 sm:$0xff]   ;;  %v3206_v47 = vld [vmem:[%s4794_s0 + $0xa0] ss:$20 sps:$4 sm:$0xff]  }
  0x10   :  { %v3204_v45 = vld [vmem:[%s4794_s0 + $0x464] ss:$20 sps:$4 sm:$0xff]   ;;  %v3207_v48 = vld [vmem:[%s4794_s0 + $0x460] ss:$20 sps:$4 sm:$0xff]   ;;  %v3214_v53 = vld [vmem:[%s4794_s0 + $0xc8] ss:$20 sps:$4 sm:$0xff]  }
  0x11   :  { %v3201_v46 = vld [vmem:[%s4793_s1 + $0x80] sm:$0xff]   ;;  %v3208_v49 = vld [vmem:[%s4793_s1 + $0xf8] sm:$0xff]   ;;  %v3209_v52 = vld [vmem:[%s4793_s1 + $0xf0] sm:$0xff]  }
  0x12   :  { %1408 = vmatpush1.bf16.msra.mxu0 %v3157_v5  ;;  %3140 = vmatpush1.bf16.msra.mxu1 %v3157_v5  ;;  %v3210_v50 = vld [vmem:[%s4794_s0 + $0xcc] ss:$20 sps:$4 sm:$0xff]   ;;  %v3215_v54 = vld [vmem:[%s4794_s0 + $0x488] ss:$20 sps:$4 sm:$0xff]   ;;  %v3222_v59 = vld [vmem:[%s4794_s0 + $0xf0] ss:$20 sps:$4 sm:$0xff]  }
  0x13   :  { %1409 = vmatprep.subr.bf16.mxu0 %v3414_v0  ;;  %3125 = vmatprep.subr.bf16.mxu1 %v3414_v0  ;;  %v3212_v51 = vld [vmem:[%s4794_s0 + $0x48c] ss:$20 sps:$4 sm:$0xff]   ;;  %v3218_v56 = vld [vmem:[%s4794_s0 + $0xf4] ss:$20 sps:$4 sm:$0xff]   ;;  %v3223_v60 = vld [vmem:[%s4794_s0 + $0x4b0] ss:$20 sps:$4 sm:$0xff]  }
  0x14   :  { %v3216_v55 = vld [vmem:[%s4793_s1 + $0xe8] sm:$0xff]   ;;  %v3217_v58 = vld [vmem:[%s4793_s1 + $0xe0] sm:$0xff]   ;;  %v3225_v61 = vld [vmem:[%s4793_s1 + $0xd8] sm:$0xff]  }
  0x15   :  { %v3220_v57 = vld [vmem:[%s4794_s0 + $0x4b4] ss:$20 sps:$4 sm:$0xff]   ;;  %v3227_v62 = vld [vmem:[%s4794_s0 + $0x11c] ss:$20 sps:$4 sm:$0xff]   ;;  %v3231_v2 = vld [vmem:[%s4794_s0 + $0x118] ss:$20 sps:$4 sm:$0xff]  }
  0x16   :  { %1410 = vmatpush1.bf16.msra.mxu0 %v3158_v7  ;;  %3141 = vmatpush1.bf16.msra.mxu1 %v3158_v7  ;;  %v3229_v63 = vld [vmem:[%s4794_s0 + $0x4dc] ss:$20 sps:$4 sm:$0xff]   ;;  %v3232_v3 = vld [vmem:[%s4794_s0 + $0x4d8] ss:$20 sps:$4 sm:$0xff]   ;;  %v3234_v7 = vld [vmem:[%s4793_s1 + $0xc0] sm:$0xff]  }
  0x17   :  { %1411 = vmatprep.subr.bf16.mxu0 %v3414_v0  ;;  %3126 = vmatprep.subr.bf16.mxu1 %v3414_v0  ;;  %v3226_v1 = vld [vmem:[%s4793_s1 + $0xd0] sm:$0xff]   ;;  %v3233_v4 = vld [vmem:[%s4793_s1 + $0xc8] sm:$0xff]   ;;  %v3235_v5 = vld [vmem:[%s4794_s0 + $0x144] ss:$20 sps:$4 sm:$0xff]  }
  0x18   :  { %v3239_v6 = vld [vmem:[%s4794_s0 + $0xc] ss:$20 sps:$4 sm:$0xff]   ;;  %v3237_v8 = vld [vmem:[%s4794_s0 + $0x8] ss:$20 sps:$4 sm:$0xff]  }
  0x1a   :  { %1412 = vmatpush1.bf16.msra.mxu0 %v3159_v9  ;;  %3142 = vmatpush1.bf16.msra.mxu1 %v3159_v9  ;;  %v3240_v9 = vld [vmem:[%s4794_s0 + $0x140] ss:$20 sps:$4 sm:$0xff]  }
  0x1b   :  { %1413 = vmatprep.subr.bf16.mxu0 %v3414_v0  ;;  %3127 = vmatprep.subr.bf16.mxu1 %v3414_v0 }
  0x1e   :  { %1414 = vmatpush1.bf16.msra.mxu0 %v3160_v10  ;;  %3143 = vmatpush1.bf16.msra.mxu1 %v3160_v10  ;;  %v3241_v10 = vld [vmem:[%s4794_s0 + $0x16c] ss:$20 sps:$4 sm:$0xff]  }
  0x1f   :  { %1415 = vmatprep.subr.bf16.mxu0 %v3414_v0  ;;  %3128 = vmatprep.subr.bf16.mxu1 %v3414_v0 }
  0x22   :  { %1416 = vmatpush2.bf16.msra.mxu0 %v3161_v11  ;;  %3144 = vmatpush2.bf16.msra.mxu1 %v3161_v11  ;;  %v3243_v11 = vld [vmem:[%s4794_s0 + $0x34] ss:$20 sps:$4 sm:$0xff]  }
  0x23   :  { %1417 = vmatprep.subr.bf16.mxu0 %v3414_v0  ;;  %3129 = vmatprep.subr.bf16.mxu1 %v3414_v0 }
  0x26   :  { %1418 = vmatpush2.bf16.msra.mxu0 %v3162_v12  ;;  %3145 = vmatpush2.bf16.msra.mxu1 %v3162_v12  ;;  %v3246_v12 = vld [vmem:[%s4794_s0 + $0x30] ss:$20 sps:$4 sm:$0xff]  }
  0x27   :  { %1419 = vmatprep.subr.bf16.mxu0 %v3414_v0  ;;  %3130 = vmatprep.subr.bf16.mxu1 %v3414_v0 }
  0x2a   :  { %1420 = vmatpush2.bf16.msra.mxu0 %v3163_v13  ;;  %3146 = vmatpush2.bf16.msra.mxu1 %v3163_v13  ;;  %v3247_v13 = vld [vmem:[%s4794_s0 + $0x194] ss:$20 sps:$4 sm:$0xff]  }
  0x2b   :  { %1421 = vmatprep.subr.bf16.mxu0 %v3414_v0  ;;  %3131 = vmatprep.subr.bf16.mxu1 %v3414_v0 }
  0x2e   :  { %1422 = vmatpush2.bf16.msra.mxu0 %v3164_v14  ;;  %3147 = vmatpush2.bf16.msra.mxu1 %v3164_v14  ;;  %v3249_v14 = vld [vmem:[%s4794_s0 + $0x5c] ss:$20 sps:$4 sm:$0xff]  }
  0x2f   :  { %1423 = vmatprep.subr.bf16.mxu0 %v3414_v0  ;;  %3132 = vmatprep.subr.bf16.mxu1 %v3414_v0 }
  0x32   :  { %1424 = vmatpush2.bf16.msra.mxu0 %v3165_v15  ;;  %3148 = vmatpush2.bf16.msra.mxu1 %v3165_v15  ;;  %v3251_v15 = vld [vmem:[%s4794_s0 + $0x190] ss:$20 sps:$4 sm:$0xff]  }
  0x33   :  { %1425 = vmatprep.subr.bf16.mxu0 %v3414_v0  ;;  %3133 = vmatprep.subr.bf16.mxu1 %v3414_v0 }
  0x36   :  { %1426 = vmatpush2.bf16.msra.mxu0 %v3166_v16  ;;  %3149 = vmatpush2.bf16.msra.mxu1 %v3166_v16  ;;  %v3252_v16 = vld [vmem:[%s4794_s0 + $0x58] ss:$20 sps:$4 sm:$0xff]  }
  0x37   :  { %1427 = vmatprep.subr.bf16.mxu0 %v3414_v0  ;;  %3134 = vmatprep.subr.bf16.mxu1 %v3414_v0 }
  0x3a   :  { %1428 = vmatpush2.bf16.msra.mxu0 %v3167_v17  ;;  %3150 = vmatpush2.bf16.msra.mxu1 %v3167_v17  ;;  %v3253_v17 = vld [vmem:[%s4794_s0 + $0x1bc] ss:$20 sps:$4 sm:$0xff]  }
  0x3b   :  { %1429 = vmatprep.subr.bf16.mxu0 %v3414_v0  ;;  %3135 = vmatprep.subr.bf16.mxu1 %v3414_v0 }
  0x3e   :  { %1430 = vmatpush2.bf16.msra.mxu0 %v3168_v18  ;;  %3151 = vmatpush2.bf16.msra.mxu1 %v3168_v18  ;;  %v3255_v18 = vld [vmem:[%s4794_s0 + $0x84] ss:$20 sps:$4 sm:$0xff]  }
  0x3f   :  { %1688 = vmatprep.subr.bf16.mxu1 %v3414_v0  ;;  %3048 = vmatprep.subr.bf16.mxu0 %v3175_v19 }
  0x41   :  { %1432 = vmatmul.mubr.bf16.vlgmr.msra.gmra.mxu0 %v3169_v20  ;;  %1624 = vmatmul.mubr.bf16.vlgmr.msra.gmra.mxu1 %v3172_v21  ;;  %v3258_v20 = vld [vmem:[%s4794_s0 + $0x80] ss:$20 sps:$4 sm:$0xff]   ;;  %v3259_v21 = vld [vmem:[%s4794_s0 + $0x1e4] ss:$20 sps:$4 sm:$0xff]  }
  0x42   :  { %1689 = vmatpush1.bf16.msra.mxu1 %v3176_v22  ;;  %3049 = vmatpush3.bf16.msra.mxu0 %v3175_v19  ;;  %v3257_v19 = vld [vmem:[%s4794_s0 + $0x1b8] ss:$20 sps:$4 sm:$0xff]  }
  0x43   :  { %1690 = vmatprep.subr.bf16.mxu1 %v3414_v0  ;;  %1439 = vmatprep.mubr.bf16.mxu0 %v3178_v23  ;;  %v3261_v22 = vld [vmem:[%s4794_s0 + $0xac] ss:$20 sps:$4 sm:$0xff]  }
  0x44   :  { %1631 = vmatprep.mubr.bf16.mxu1 %v3180_v24  ;;  %3050 = vmatprep.subr.bf16.mxu0 %v3224_v25  ;;  %v3263_v23 = vld [vmem:[%s4794_s0 + $0x1e0] ss:$20 sps:$4 sm:$0xff]   ;;  %v3264_v24 = vld [vmem:[%s4794_s0 + $0xa8] ss:$20 sps:$4 sm:$0xff]  }
  0x46   :  { %1691 = vmatpush1.bf16.msra.mxu1 %v3177_v26  ;;  %3051 = vmatpush3.bf16.msra.mxu0 %v3224_v25  ;;  %v3266_v25 = vld [vmem:[%s4794_s0 + $0x20c] ss:$20 sps:$4 sm:$0xff]   ;;  %v3268_v26 = vld [vmem:[%s4794_s0 + $0xd4] ss:$20 sps:$4 sm:$0xff]  }
  0x47   :  { %1692 = vmatprep.subr.bf16.mxu1 %v3414_v0  ;;  %3052 = vmatprep.subr.bf16.mxu0 %v3265_v30 }
  0x49   :  { %1440 = vmatmul.mubr.bf16.gmra.mxu0 %v3182_v27  ;;  %1632 = vmatmul.mubr.bf16.gmra.mxu1 %v3183_v28  ;;  %v3270_v27 = vld [vmem:[%s4794_s0 + $0x208] ss:$20 sps:$4 sm:$0xff]   ;;  %v3271_v28 = vld [vmem:[%s4794_s0 + $0xd0] ss:$20 sps:$4 sm:$0xff]  }
  0x4a   :  { %1693 = vmatpush1.bf16.msra.mxu1 %v3184_v29  ;;  %1447 = vmatprep.mubr.bf16.mxu0 %v3186_v31  ;;  %v3272_v29 = vld [vmem:[%s4794_s0 + $0x234] ss:$20 sps:$4 sm:$0xff]   ;;  %v3276_v31 = vld [vmem:[%s4794_s0 + $0x230] ss:$20 sps:$4 sm:$0xff]  }
  0x4b   :  { %1694 = vmatprep.subr.bf16.mxu1 %v3414_v0  ;;  %1639 = vmatprep.mubr.bf16.mxu1 %v3188_v32  ;;  %v3277_v32 = vld [vmem:[%s4794_s0 + $0xf8] ss:$20 sps:$4 sm:$0xff]  }
  0x4c   :  { %3053 = vmatpush3.bf16.msra.mxu0 %v3265_v30  ;;  %v3274_v30 = vld [vmem:[%s4794_s0 + $0xfc] ss:$20 sps:$4 sm:$0xff]  }
  0x4d   :  { %3054 = vmatprep.subr.bf16.mxu0 %v3302_v44 }
  0x4e   :  { %1695 = vmatpush1.bf16.msra.mxu1 %v3185_v33  ;;  %v3278_v33 = vld [vmem:[%s4794_s0 + $0x25c] ss:$20 sps:$4 sm:$0xff]  }
  0x4f   :  { %1696 = vmatprep.subr.bf16.mxu1 %v3414_v0 }
  0x50   :  { %3055 = vmatpush3.bf16.msra.mxu0 %v3302_v44  ;;  %v3295_v44 = vld [vmem:[%s4794_s0 + $0x170] ss:$20 sps:$4 sm:$0xff]  }
  0x51   :  { %1448 = vmatmul.mubr.bf16.gmra.mxu0 %v3190_v34  ;;  %1640 = vmatmul.mubr.bf16.gmra.mxu1 %v3191_v35  ;;  %v3280_v34 = vld [vmem:[%s4794_s0 + $0x124] ss:$20 sps:$4 sm:$0xff]  }
  0x52   :  { %1697 = vmatpush1.bf16.msra.mxu1 %v3192_v36  ;;  %1455 = vmatprep.mubr.bf16.mxu0 %v3194_v37  ;;  %v3282_v35 = vld [vmem:[%s4794_s0 + $0x258] ss:$20 sps:$4 sm:$0xff]   ;;  %v3283_v36 = vld [vmem:[%s4794_s0 + $0x120] ss:$20 sps:$4 sm:$0xff]  }
  0x53   :  { %1698 = vmatprep.subr.bf16.mxu1 %v3414_v0  ;;  %1647 = vmatprep.mubr.bf16.mxu1 %v3196_v38  ;;  %v3284_v37 = vld [vmem:[%s4794_s0 + $0x284] ss:$20 sps:$4 sm:$0xff]   ;;  %v3286_v38 = vld [vmem:[%s4794_s0 + $0x14c] ss:$20 sps:$4 sm:$0xff]  }
  0x56   :  { %1699 = vmatpush1.bf16.msra.mxu1 %v3193_v39  ;;  %v3288_v39 = vld [vmem:[%s4794_s0 + $0x280] ss:$20 sps:$4 sm:$0xff]  }
  0x57   :  { %1700 = vmatprep.subr.bf16.mxu1 %v3414_v0 }
  0x59   :  { %1456 = vmatmul.mubr.bf16.gmra.mxu0 %v3198_v40  ;;  %1648 = vmatmul.mubr.bf16.gmra.mxu1 %v3199_v41  ;;  %v3289_v40 = vld [vmem:[%s4794_s0 + $0x148] ss:$20 sps:$4 sm:$0xff]   ;;  %v3290_v41 = vld [vmem:[%s4794_s0 + $0x2ac] ss:$20 sps:$4 sm:$0xff]  }
  0x5a   :  { %1701 = vmatpush1.bf16.msra.mxu1 %v3200_v42  ;;  %1463 = vmatprep.mubr.bf16.mxu0 %v3202_v43  ;;  %v3292_v42 = vld [vmem:[%s4794_s0 + $0x174] ss:$20 sps:$4 sm:$0xff]  }
  0x5b   :  { %1702 = vmatprep.subr.bf16.mxu1 %v3414_v0  ;;  %1655 = vmatprep.mubr.bf16.mxu1 %v3204_v45  ;;  %v3294_v43 = vld [vmem:[%s4794_s0 + $0x2a8] ss:$20 sps:$4 sm:$0xff]  }
  0x5c   :  { %v3296_v45 = vld [vmem:[%s4794_s0 + $0x2d4] ss:$20 sps:$4 sm:$0xff]  }
  0x5e   :  { %1703 = vmatpush1.bf16.msra.mxu1 %v3201_v46  ;;  %v3298_v46 = vld [vmem:[%s4794_s0 + $0x19c] ss:$20 sps:$4 sm:$0xff]  }
  0x5f   :  { %1704 = vmatprep.subr.bf16.mxu1 %v3414_v0 }
  0x61   :  { %1464 = vmatmul.mubr.bf16.gmra.mxu0 %v3206_v47  ;;  %1656 = vmatmul.mubr.bf16.gmra.mxu1 %v3207_v48  ;;  %v3300_v47 = vld [vmem:[%s4794_s0 + $0x2d0] ss:$20 sps:$4 sm:$0xff]   ;;  %v3301_v48 = vld [vmem:[%s4794_s0 + $0x198] ss:$20 sps:$4 sm:$0xff]  }
  0x62   :  { %1705 = vmatpush2.bf16.msra.mxu1 %v3208_v49  ;;  %1471 = vmatprep.mubr.bf16.mxu0 %v3210_v50  ;;  %v3303_v49 = vld [vmem:[%s4794_s0 + $0x2fc] ss:$20 sps:$4 sm:$0xff]   ;;  %v3305_v50 = vld [vmem:[%s4794_s0 + $0x1c4] ss:$20 sps:$4 sm:$0xff]  }
  0x63   :  { %1706 = vmatprep.subr.bf16.mxu1 %v3414_v0  ;;  %1663 = vmatprep.mubr.bf16.mxu1 %v3212_v51  ;;  %v3307_v51 = vld [vmem:[%s4794_s0 + $0x2f8] ss:$20 sps:$4 sm:$0xff]  }
  0x66   :  { %1707 = vmatpush2.bf16.msra.mxu1 %v3209_v52  ;;  %v3308_v52 = vld [vmem:[%s4794_s0 + $0x1c0] ss:$20 sps:$4 sm:$0xff]  }
  0x67   :  { %1708 = vmatprep.subr.bf16.mxu1 %v3414_v0 }
  0x69   :  { %1472 = vmatmul.mubr.bf16.gmra.mxu0 %v3214_v53  ;;  %1664 = vmatmul.mubr.bf16.gmra.mxu1 %v3215_v54  ;;  %v3309_v53 = vld [vmem:[%s4794_s0 + $0x324] ss:$20 sps:$4 sm:$0xff]   ;;  %v3311_v54 = vld [vmem:[%s4794_s0 + $0x1ec] ss:$20 sps:$4 sm:$0xff]  }
  0x6a   :  { %1709 = vmatpush2.bf16.msra.mxu1 %v3216_v55  ;;  %1479 = vmatprep.mubr.bf16.mxu0 %v3218_v56  ;;  %v3313_v55 = vld [vmem:[%s4794_s0 + $0x320] ss:$20 sps:$4 sm:$0xff]   ;;  %v3314_v56 = vld [vmem:[%s4794_s0 + $0x1e8] ss:$20 sps:$4 sm:$0xff]  }
  0x6b   :  { %1710 = vmatprep.subr.bf16.mxu1 %v3414_v0  ;;  %1671 = vmatprep.mubr.bf16.mxu1 %v3220_v57  ;;  %v3315_v57 = vld [vmem:[%s4794_s0 + $0x34c] ss:$20 sps:$4 sm:$0xff]  }
  0x6e   :  { %1711 = vmatpush2.bf16.msra.mxu1 %v3217_v58  ;;  %v3317_v58 = vld [vmem:[%s4794_s0 + $0x214] ss:$20 sps:$4 sm:$0xff]  }
  0x6f   :  { %1712 = vmatprep.subr.bf16.mxu1 %v3414_v0 }
  0x71   :  { %1480 = vmatmul.mubr.bf16.gmra.mxu0 %v3222_v59  ;;  %1672 = vmatmul.mubr.bf16.gmra.mxu1 %v3223_v60  ;;  %v3319_v59 = vld [vmem:[%s4794_s0 + $0x348] ss:$20 sps:$4 sm:$0xff]   ;;  %v3320_v60 = vld [vmem:[%s4794_s0 + $0x210] ss:$20 sps:$4 sm:$0xff]  }
  0x72   :  { %1713 = vmatpush2.bf16.msra.mxu1 %v3225_v61  ;;  %1487 = vmatprep.mubr.bf16.mxu0 %v3227_v62  ;;  %v3321_v61 = vld [vmem:[%s4794_s0 + $0x374] ss:$20 sps:$4 sm:$0xff]   ;;  %v3323_v62 = vld [vmem:[%s4794_s0 + $0x23c] ss:$20 sps:$4 sm:$0xff]  }
  0x73   :  { %1714 = vmatprep.subr.bf16.mxu1 %v3414_v0  ;;  %1679 = vmatprep.mubr.bf16.mxu1 %v3229_v63  ;;  %v3325_v63 = vld [vmem:[%s4794_s0 + $0x370] ss:$20 sps:$4 sm:$0xff]  }
  0x76   :  { %1715 = vmatpush2.bf16.msra.mxu1 %v3226_v1  ;;  %v3326_v1 = vld [vmem:[%s4794_s0 + $0x238] ss:$20 sps:$4 sm:$0xff]  }
  0x77   :  { %1716 = vmatprep.subr.bf16.mxu1 %v3414_v0 }
  0x79   :  { %1488 = vmatmul.mubr.bf16.gmra.mxu0 %v3231_v2  ;;  %1680 = vmatmul.mubr.bf16.gmra.mxu1 %v3232_v3  ;;  %v3327_v2 = vld [vmem:[%s4794_s0 + $0x39c] ss:$20 sps:$4 sm:$0xff]   ;;  %v3329_v3 = vld [vmem:[%s4794_s0 + $0x264] ss:$20 sps:$4 sm:$0xff]  }
  0x7a   :  { %1717 = vmatpush2.bf16.msra.mxu1 %v3233_v4  ;;  %1495 = vmatprep.mubr.bf16.mxu0 %v3235_v5  ;;  %v3331_v4 = vld [vmem:[%s4794_s0 + $0x398] ss:$20 sps:$4 sm:$0xff]   ;;  %v3332_v5 = vld [vmem:[%s4794_s0 + $0x260] ss:$20 sps:$4 sm:$0xff]  }
  0x7b   :  { %1718 = vmatprep.subr.bf16.mxu1 %v3414_v0  ;;  %1720 = vmatprep.mubr.bf16.mxu1 %v3239_v6  ;;  %v3245_v0 = vld [vmem:[%s4794_s0 + $0x168] ss:$20 sps:$4 sm:$0xff]   ;;  %v3333_v6 = vld [vmem:[%s4794_s0 + $0x28c] ss:$20 sps:$4 sm:$0xff]  }
  0x7e   :  { %1719 = vmatpush2.bf16.msra.mxu1 %v3234_v7  ;;  %v3335_v7 = vld [vmem:[%s4794_s0 + $0x10] ss:$20 sps:$4 sm:$0xff]  }
  0x81   :  { %1496 = vmatmul.mubr.bf16.gmra.mxu0 %v3240_v9  ;;  %1721 = vmatmul.mubr.bf16.vlgmr.msra.gmra.mxu1 %v3237_v8  ;;  %v3336_v8 = vld [vmem:[%s4794_s0 + $0x288] ss:$20 sps:$4 sm:$0xff]   ;;  %v3337_v9 = vld [vmem:[%s4794_s0 + $0x38] ss:$20 sps:$4 sm:$0xff]  }
  0x82   :  { %1503 = vmatprep.mubr.bf16.mxu0 %v3241_v10  ;;  %1728 = vmatprep.mubr.bf16.mxu1 %v3243_v11  ;;  %v3338_v10 = vld [vmem:[%s4794_s0 + $0x2b4] ss:$20 sps:$4 sm:$0xff]  }
  0x83   :  { %v3340_v11 = vld [vmem:[%s4794_s0 + $0x60] ss:$20 sps:$4 sm:$0xff]  }
  0x89   :  { %1504 = vmatmul.mubr.bf16.gmra.mxu0 %v3245_v0  ;;  %1729 = vmatmul.mubr.bf16.gmra.mxu1 %v3246_v12 }
  0x8a   :  { %1511 = vmatprep.mubr.bf16.mxu0 %v3247_v13  ;;  %1736 = vmatprep.mubr.bf16.mxu1 %v3249_v14 }
  0x91   :  { %1512 = vmatmul.mubr.bf16.gmra.mxu0 %v3251_v15  ;;  %1737 = vmatmul.mubr.bf16.gmra.mxu1 %v3252_v16 }
  0x92   :  { %1519 = vmatprep.mubr.bf16.mxu0 %v3253_v17  ;;  %1744 = vmatprep.mubr.bf16.mxu1 %v3255_v18  ;;  %v3341_v17 = vld [vmem:[%s4794_s0 + $0x2b0] ss:$20 sps:$4 sm:$0xff]   ;;  %v3342_v18 = vld [vmem:[%s4794_s0 + $0x88] ss:$20 sps:$4 sm:$0xff]  }
  0x99   :  { %1520 = vmatmul.mubr.bf16.gmra.mxu0 %v3257_v19  ;;  %1745 = vmatmul.mubr.bf16.gmra.mxu1 %v3258_v20  ;;  %v3343_v19 = vld [vmem:[%s4794_s0 + $0x2dc] ss:$20 sps:$4 sm:$0xff]  }
  0x9a   :  { %1527 = vmatprep.mubr.bf16.mxu0 %v3259_v21  ;;  %1752 = vmatprep.mubr.bf16.mxu1 %v3261_v22  ;;  %v3345_v20 = vld [vmem:[%s4794_s0 + $0xb0] ss:$20 sps:$4 sm:$0xff]  }
  0xa1   :  { %1528 = vmatmul.mubr.bf16.gmra.mxu0 %v3263_v23  ;;  %1753 = vmatmul.mubr.bf16.gmra.mxu1 %v3264_v24 }
  0xa2   :  { %1535 = vmatprep.mubr.bf16.mxu0 %v3266_v25  ;;  %1760 = vmatprep.mubr.bf16.mxu1 %v3268_v26 }
  0xa9   :  { %1536 = vmatmul.mubr.bf16.gmra.mxu0 %v3270_v27  ;;  %1761 = vmatmul.mubr.bf16.gmra.mxu1 %v3271_v28 }
  0xaa   :  { %1543 = vmatprep.mubr.bf16.mxu0 %v3272_v29  ;;  %1768 = vmatprep.mubr.bf16.mxu1 %v3274_v30  ;;  %v3346_v29 = vld [vmem:[%s4794_s0 + $0x2d8] ss:$20 sps:$4 sm:$0xff]  }
  0xab   :  { %v3347_v30 = vld [vmem:[%s4794_s0 + $0xd8] ss:$20 sps:$4 sm:$0xff]  }
  0xb1   :  { %1544 = vmatmul.mubr.bf16.gmra.mxu0 %v3276_v31  ;;  %1769 = vmatmul.mubr.bf16.gmra.mxu1 %v3277_v32  ;;  %v3348_v31 = vld [vmem:[%s4794_s0 + $0x304] ss:$20 sps:$4 sm:$0xff]   ;;  %v3350_v32 = vld [vmem:[%s4794_s0 + $0x100] ss:$20 sps:$4 sm:$0xff]  }
  0xb2   :  { %1551 = vmatprep.mubr.bf16.mxu0 %v3278_v33  ;;  %1776 = vmatprep.mubr.bf16.mxu1 %v3280_v34 }
  0xb9   :  { %1552 = vmatmul.mubr.bf16.gmra.mxu0 %v3282_v35  ;;  %1777 = vmatmul.mubr.bf16.gmra.mxu1 %v3283_v36 }
  0xba   :  { %1559 = vmatprep.mubr.bf16.mxu0 %v3284_v37  ;;  %1784 = vmatprep.mubr.bf16.mxu1 %v3286_v38 }
  0xc1   :  { %1560 = vmatmul.mubr.bf16.gmra.mxu0 %v3288_v39  ;;  %1785 = vmatmul.mubr.bf16.gmra.mxu1 %v3289_v40 }
  0xc2   :  { %1567 = vmatprep.mubr.bf16.mxu0 %v3290_v41  ;;  %1792 = vmatprep.mubr.bf16.mxu1 %v3292_v42  ;;  %v3351_v41 = vld [vmem:[%s4794_s0 + $0x300] ss:$20 sps:$4 sm:$0xff]   ;;  %v3352_v42 = vld [vmem:[%s4794_s0 + $0x128] ss:$20 sps:$4 sm:$0xff]  }
  0xc9   :  { %1568 = vmatmul.mubr.bf16.gmra.mxu0 %v3294_v43  ;;  %1793 = vmatmul.mubr.bf16.gmra.mxu1 %v3295_v44  ;;  %v3355_v43 = vld [vmem:[%s4794_s0 + $0x32c] ss:$20 sps:$4 sm:$0xff]   ;;  %v3356_v44 = vld [vmem:[%s4794_s0 + $0x150] ss:$20 sps:$4 sm:$0xff]  }
  0xca   :  { %1575 = vmatprep.mubr.bf16.mxu0 %v3296_v45  ;;  %1800 = vmatprep.mubr.bf16.mxu1 %v3298_v46 }
  0xd1   :  { %1576 = vmatmul.mubr.bf16.gmra.mxu0 %v3300_v47  ;;  %1801 = vmatmul.mubr.bf16.gmra.mxu1 %v3301_v48 }
  0xd2   :  { %1583 = vmatprep.mubr.bf16.mxu0 %v3303_v49  ;;  %1808 = vmatprep.mubr.bf16.mxu1 %v3305_v50 }
  0xd9   :  { %1584 = vmatmul.mubr.bf16.gmra.mxu0 %v3307_v51  ;;  %1809 = vmatmul.mubr.bf16.gmra.mxu1 %v3308_v52 }
  0xda   :  { %1591 = vmatprep.mubr.bf16.mxu0 %v3309_v53  ;;  %1816 = vmatprep.mubr.bf16.mxu1 %v3311_v54  ;;  %v3353_v53 = vld [vmem:[%s4794_s0 + $0x328] ss:$20 sps:$4 sm:$0xff]   ;;  %v3357_v54 = vld [vmem:[%s4794_s0 + $0x178] ss:$20 sps:$4 sm:$0xff]  }
  0xe1   :  { %1592 = vmatmul.mubr.bf16.gmra.mxu0 %v3313_v55  ;;  %1817 = vmatmul.mubr.bf16.gmra.mxu1 %v3314_v56  ;;  %v3360_v55 = vld [vmem:[%s4794_s0 + $0x354] ss:$20 sps:$4 sm:$0xff]  }
  0xe2   :  { %1599 = vmatprep.mubr.bf16.mxu0 %v3315_v57  ;;  %1824 = vmatprep.mubr.bf16.mxu1 %v3317_v58  ;;  %v3361_v56 = vld [vmem:[%s4794_s0 + $0x1a0] ss:$20 sps:$4 sm:$0xff]  }
  0xe9   :  { %1600 = vmatmul.mubr.bf16.gmra.mxu0 %v3319_v59  ;;  %1825 = vmatmul.mubr.bf16.gmra.mxu1 %v3320_v60 }
  0xea   :  { %1607 = vmatprep.mubr.bf16.mxu0 %v3321_v61  ;;  %1832 = vmatprep.mubr.bf16.mxu1 %v3323_v62 }
  0xf1   :  { %1608 = vmatmul.mubr.bf16.gmra.mxu0 %v3325_v63  ;;  %1833 = vmatmul.mubr.bf16.gmra.mxu1 %v3326_v1 }
  0xf2   :  { %1615 = vmatprep.mubr.bf16.mxu0 %v3327_v2  ;;  %1840 = vmatprep.mubr.bf16.mxu1 %v3329_v3  ;;  %v3358_v2 = vld [vmem:[%s4794_s0 + $0x350] ss:$20 sps:$4 sm:$0xff]   ;;  %v3362_v3 = vld [vmem:[%s4794_s0 + $0x1c8] ss:$20 sps:$4 sm:$0xff]  }
  0xf9   :  { %1616 = vmatmul.mubr.bf16.gmra.mxu0 %v3331_v4  ;;  %1841 = vmatmul.mubr.bf16.gmra.mxu1 %v3332_v5  ;;  %v3365_v4 = vld [vmem:[%s4794_s0 + $0x37c] ss:$20 sps:$4 sm:$0xff]  }
  0xfa   :  { %1848 = vmatprep.mubr.bf16.mxu1 %v3333_v6  ;;  %3056 = vmatprep.mubr.msk.bf16.mxu0 %vm1302_vm0, %v3335_v7  ;;  %v3366_v5 = vld [vmem:[%s4794_s0 + $0x1f0] ss:$20 sps:$4 sm:$0xff]  }
 0x101   :  { %v3898_v0 = vpop.f32.mrf.mxu0  ;;  %v3900_v12 = vpop.f32.mrf.mxu1  ;;  %1849 = vmatmul.mubr.bf16.gmra.mxu1 %v3336_v8  ;;  %3057 = vmatmul.mubr.msk.bf16.vlgmr.msra.gmra.mxu0 %vm1302_vm0, %v3337_v9 }
 0x102   :  { %4797 = vst [vmem:[#allocation2_spill] sm:$0xff] %v3900_v12  ;;  %1856 = vmatprep.mubr.bf16.mxu1 %v3338_v10  ;;  %3060 = vmatprep.mubr.msk.bf16.mxu0 %vm1302_vm0, %v3340_v11 }
 0x103   :  { %v1435_v13 = vpop.f32.mrf.mxu0  ;;  %v1627_v14 = vpop.f32.mrf.mxu1 }
 0x105   :  { %v3904_v15 = vpop.f32.mrf.mxu0  ;;  %v3906_v16 = vpop.f32.mrf.mxu1 }
 0x106   :  { %4798 = vst [vmem:[#allocation3_spill] sm:$0xff] %v3906_v16 }
 0x107   :  { %v1438_v21 = vpop.f32.mrf.mxu0  ;;  %v1630_v22 = vpop.f32.mrf.mxu1 }
 0x109   :  { %v3920_v23 = vpop.f32.mrf.mxu0  ;;  %v3922_v24 = vpop.f32.mrf.mxu1  ;;  %1857 = vmatmul.mubr.bf16.gmra.mxu1 %v3341_v17  ;;  %3061 = vmatmul.mubr.msk.bf16.gmra.mxu0 %vm1302_vm0, %v3342_v18  ;;  %v3363_v17 = vld [vmem:[%s4794_s0 + $0x378] ss:$20 sps:$4 sm:$0xff]  }
 0x10a   :  { %4799 = vst [vmem:[#allocation4_spill] sm:$0xff] %v3922_v24  ;;  %1864 = vmatprep.mubr.bf16.mxu1 %v3343_v19  ;;  %3064 = vmatprep.mubr.msk.bf16.mxu0 %vm1302_vm0, %v3345_v20  ;;  %v3367_v18 = vld [vmem:[%s4794_s0 + $0x218] ss:$20 sps:$4 sm:$0xff]   ;;  %v3371_v20 = vld [vmem:[%s4794_s0 + $0x240] ss:$20 sps:$4 sm:$0xff]  }
 0x10b   :  { %v1443_v25 = vpop.f32.mrf.mxu0  ;;  %v1635_v26 = vpop.f32.mrf.mxu1  ;;  %v3370_v19 = vld [vmem:[%s4794_s0 + $0x3a4] ss:$20 sps:$4 sm:$0xff]  }
 0x10d   :  { %v3926_v27 = vpop.f32.mrf.mxu0  ;;  %v3928_v28 = vpop.f32.mrf.mxu1 }
 0x10e   :  { %4800 = vst [vmem:[#allocation5_spill] sm:$0xff] %v3928_v28 }
 0x10f   :  { %v1446_v33 = vpop.f32.mrf.mxu0  ;;  %v1638_v34 = vpop.f32.mrf.mxu1 }
 0x110   :  { %v3368_v33 = vld [vmem:[%s4794_s0 + $0x3a0] ss:$20 sps:$4 sm:$0xff]   ;;  %v3372_v34 = vld [vmem:[%s4794_s0 + $0x268] ss:$20 sps:$4 sm:$0xff]  }
 0x111   :  { %v3942_v35 = vpop.f32.mrf.mxu0  ;;  %v3944_v36 = vpop.f32.mrf.mxu1  ;;  %1865 = vmatmul.mubr.bf16.gmra.mxu1 %v3346_v29  ;;  %3065 = vmatmul.mubr.msk.bf16.gmra.mxu0 %vm1302_vm0, %v3347_v30 }
 0x112   :  { %4801 = vst [vmem:[#allocation6_spill] sm:$0xff] %v3944_v36  ;;  %1872 = vmatprep.mubr.bf16.mxu1 %v3348_v31  ;;  %3068 = vmatprep.mubr.msk.bf16.mxu0 %vm1302_vm0, %v3350_v32 }
 0x113   :  { %v1451_v37 = vpop.f32.mrf.mxu0  ;;  %v1643_v38 = vpop.f32.mrf.mxu1 }
 0x114   :  { %v3375_v37 = vld [vmem:[%s4794_s0 + $0x3cc] ss:$20 sps:$4 sm:$0xff]   ;;  %v3376_v38 = vld [vmem:[%s4794_s0 + $0x290] ss:$20 sps:$4 sm:$0xff]  }
 0x115   :  { %v3948_v39 = vpop.f32.mrf.mxu0  ;;  %v3950_v40 = vpop.f32.mrf.mxu1 }
 0x116   :  { %4802 = vst [vmem:[#allocation7_spill] sm:$0xff] %v3950_v40 }
 0x117   :  { %v1454_v45 = vpop.f32.mrf.mxu0  ;;  %v1646_v46 = vpop.f32.mrf.mxu1 }
 0x119   :  { %v3964_v47 = vpop.f32.mrf.mxu0  ;;  %v3966_v48 = vpop.f32.mrf.mxu1  ;;  %1873 = vmatmul.mubr.bf16.gmra.mxu1 %v3351_v41  ;;  %3069 = vmatmul.mubr.msk.bf16.gmra.mxu0 %vm1302_vm0, %v3352_v42 }
 0x11a   :  { %4803 = vst [vmem:[#allocation8_spill] sm:$0xff] %v3966_v48  ;;  %1880 = vmatprep.mubr.bf16.mxu1 %v3355_v43  ;;  %3072 = vmatprep.mubr.msk.bf16.mxu0 %vm1302_vm0, %v3356_v44 }
 0x11b   :  { %v1459_v49 = vpop.f32.mrf.mxu0  ;;  %v1651_v50 = vpop.f32.mrf.mxu1 }
 0x11c   :  { %v4061_v49 = vld [vmem:[%s4795_s2] ss:$0 sm:$0xff] }
 0x11d   :  { %v3970_v51 = vpop.f32.mrf.mxu0  ;;  %v3972_v52 = vpop.f32.mrf.mxu1 }
 0x11e   :  { %4804 = vst [vmem:[#allocation9_spill] sm:$0xff] %v3972_v52 }
 0x11f   :  { %v1462_v57 = vpop.f32.mrf.mxu0  ;;  %v1654_v58 = vpop.f32.mrf.mxu1 }
 0x120   :  { %v3381_v57 = vld [vmem:[%s4794_s0 + $0x2e0] ss:$20 sps:$4 sm:$0xff]  }
 0x121   :  { %v3986_v59 = vpop.f32.mrf.mxu0  ;;  %v3988_v60 = vpop.f32.mrf.mxu1  ;;  %1881 = vmatmul.mubr.bf16.gmra.mxu1 %v3353_v53  ;;  %3073 = vmatmul.mubr.msk.bf16.gmra.mxu0 %vm1302_vm0, %v3357_v54  ;;  %v3373_v54 = vld [vmem:[%s4794_s0 + $0x3c8] ss:$20 sps:$4 sm:$0xff]  }
 0x122   :  { %4805 = vst [vmem:[#allocation10_spill] sm:$0xff] %v3988_v60  ;;  %1888 = vmatprep.mubr.bf16.mxu1 %v3360_v55  ;;  %3076 = vmatprep.mubr.msk.bf16.mxu0 %vm1302_vm0, %v3361_v56  ;;  %v3377_v55 = vld [vmem:[%s4794_s0 + $0x2b8] ss:$20 sps:$4 sm:$0xff]   ;;  %v3380_v56 = vld [vmem:[%s4794_s0 + $0x3f4] ss:$20 sps:$4 sm:$0xff]  }
 0x123   :  { %v1467_v61 = vpop.f32.mrf.mxu0  ;;  %v1659_v62 = vpop.f32.mrf.mxu1 }
 0x124   :  { %v1434_v62 = vadd.f32 %v4061_v49, %v3898_v0  ;;  %v3378_v0 = vld [vmem:[%s4794_s0 + $0x3f0] ss:$20 sps:$4 sm:$0xff]  }
 0x125   :  { %v3992_v63 = vpop.f32.mrf.mxu0  ;;  %v3994_v1 = vpop.f32.mrf.mxu1 }
 0x126   :  { %4806 = vst [vmem:[#allocation11_spill] sm:$0xff] %v3994_v1 }
 0x127   :  { %v1470_v6 = vpop.f32.mrf.mxu0  ;;  %v1662_v7 = vpop.f32.mrf.mxu1 }
 0x128   :  { %v1437_v7 = vadd.f32 %v4061_v49, %v3904_v15  ;;  %v3386_v15 = vld [vmem:[%s4794_s0 + $0x330] ss:$20 sps:$4 sm:$0xff]  }
 0x129   :  { %v4008_v8 = vpop.f32.mrf.mxu0  ;;  %v4010_v9 = vpop.f32.mrf.mxu1  ;;  %1889 = vmatmul.mubr.bf16.gmra.mxu1 %v3358_v2  ;;  %3077 = vmatmul.mubr.msk.bf16.gmra.mxu0 %vm1302_vm0, %v3362_v3 }
 0x12a   :  { %4807 = vst [vmem:[#allocation12_spill] sm:$0xff] %v4010_v9  ;;  %1896 = vmatprep.mubr.bf16.mxu1 %v3365_v4  ;;  %3080 = vmatprep.mubr.msk.bf16.mxu0 %vm1302_vm0, %v3366_v5 }
 0x12b   :  { %v1475_v10 = vpop.f32.mrf.mxu0  ;;  %v1667_v11 = vpop.f32.mrf.mxu1 }
 0x12d   :  { %v4014_v13 = vpop.f32.mrf.mxu0  ;;  %v4016_v14 = vpop.f32.mrf.mxu1 }
 0x12e   :  { %4808 = vst [vmem:[#allocation13_spill] sm:$0xff] %v4016_v14 }
 0x12f   :  { %v1478_v21 = vpop.f32.mrf.mxu0  ;;  %v1670_v22 = vpop.f32.mrf.mxu1 }
 0x130   :  { %v1442_v22 = vadd.f32 %v4061_v49, %v3920_v23  ;;  %v3383_v23 = vld [vmem:[%s4794_s0 + $0x418] ss:$20 sps:$4 sm:$0xff]  }
 0x131   :  { %v4030_v25 = vpop.f32.mrf.mxu0  ;;  %v4032_v26 = vpop.f32.mrf.mxu1  ;;  %1897 = vmatmul.mubr.bf16.gmra.mxu1 %v3363_v17  ;;  %3081 = vmatmul.mubr.msk.bf16.gmra.mxu0 %vm1302_vm0, %v3367_v18  ;;  %v3382_v17 = vld [vmem:[%s4794_s0 + $0x308] ss:$20 sps:$4 sm:$0xff]  }
 0x132   :  { %4809 = vst [vmem:[#allocation14_spill] sm:$0xff] %v4032_v26  ;;  %1904 = vmatprep.mubr.bf16.mxu1 %v3370_v19  ;;  %3084 = vmatprep.mubr.msk.bf16.mxu0 %vm1302_vm0, %v3371_v20  ;;  %v3385_v19 = vld [vmem:[%s4794_s0 + $0x41c] ss:$20 sps:$4 sm:$0xff]  }
 0x133   :  { %v1483_v29 = vpop.f32.mrf.mxu0  ;;  %v1675_v30 = vpop.f32.mrf.mxu1 }
 0x135   :  { %v4036_v31 = vpop.f32.mrf.mxu0  ;;  %v4038_v32 = vpop.f32.mrf.mxu1 }
 0x136   :  { %4810 = vst [vmem:[#allocation15_spill] sm:$0xff] %v4038_v32 }
 0x137   :  { %v1486_v41 = vpop.f32.mrf.mxu0  ;;  %v1678_v42 = vpop.f32.mrf.mxu1 }
 0x139   :  { %v4052_v43 = vpop.f32.mrf.mxu0  ;;  %v4054_v44 = vpop.f32.mrf.mxu1  ;;  %1905 = vmatmul.mubr.bf16.gmra.mxu1 %v3368_v33  ;;  %3085 = vmatmul.mubr.msk.bf16.gmra.mxu0 %vm1302_vm0, %v3372_v34 }
 0x13a   :  { %4811 = vst [vmem:[#allocation16_spill] sm:$0xff] %v4054_v44  ;;  %1912 = vmatprep.mubr.bf16.mxu1 %v3375_v37  ;;  %3088 = vmatprep.mubr.msk.bf16.mxu0 %vm1302_vm0, %v3376_v38  ;;  %v1445_v38 = vadd.f32 %v4061_v49, %v3926_v27  ;;  %v3391_v27 = vld [vmem:[%s4794_s0 + $0x380] ss:$20 sps:$4 sm:$0xff]  }
 0x13b   :  { %v1491_v45 = vpop.f32.mrf.mxu0  ;;  %v1683_v46 = vpop.f32.mrf.mxu1 }
 0x13c   :  { %v3387_v45 = vld [vmem:[%s4794_s0 + $0x358] ss:$20 sps:$4 sm:$0xff]  }
 0x13d   :  { %v4063_v50 = vpop.f32.mrf.mxu0  ;;  %v4065_v53 = vpop.f32.mrf.mxu1 }
 0x13e   :  { %4812 = vst [vmem:[#allocation17_spill] sm:$0xff] %v4065_v53 }
 0x13f   :  { %v1494_v58 = vpop.f32.mrf.mxu0  ;;  %v1686_v61 = vpop.f32.mrf.mxu1 }
 0x141   :  { %v4081_v2 = vpop.f32.mrf.mxu0  ;;  %v1722_v3 = vpop.f32.mrf.mxu1  ;;  %1913 = vmatmul.mubr.bf16.gmra.mxu1 %v3373_v54  ;;  %3089 = vmatmul.mubr.msk.bf16.gmra.mxu0 %vm1302_vm0, %v3377_v55  ;;  %v3390_v54 = vld [vmem:[%s4794_s0 + $0x444] ss:$20 sps:$4 sm:$0xff]  }
 0x142   :  { %v4084_v4 = vadd.f32 %v1722_v3, %v1434_v62  ;;  %1920 = vmatprep.mubr.bf16.mxu1 %v3380_v56  ;;  %3092 = vmatprep.mubr.msk.bf16.mxu0 %vm1302_vm0, %v3381_v57  ;;  %v1450_v57 = vadd.f32 %v4061_v49, %v3942_v35  ;;  %v3388_v35 = vld [vmem:[%s4794_s0 + $0x440] ss:$20 sps:$4 sm:$0xff]  }
 0x143   :  { %v1499_v5 = vpop.f32.mrf.mxu0  ;;  %v1724_v6 = vpop.f32.mrf.mxu1 }
 0x144   :  { %v1453_v6 = vadd.f32 %v4061_v49, %v3948_v39  ;;  %v3396_v39 = vld [vmem:[%s4794_s0 + $0x3d0] ss:$20 sps:$4 sm:$0xff]  }
 0x145   :  { %v4089_v10 = vpop.f32.mrf.mxu0  ;;  %v1725_v11 = vpop.f32.mrf.mxu1 }
 0x146   :  { %v4097_v18 = vadd.f32 %v1725_v11, %v1437_v7 }
 0x147   :  { %v1502_v20 = vpop.f32.mrf.mxu0  ;;  %v1727_v21 = vpop.f32.mrf.mxu1 }
 0x148   :  { %v1458_v21 = vadd.f32 %v4061_v49, %v3964_v47  ;;  %v3393_v47 = vld [vmem:[%s4794_s0 + $0x468] ss:$20 sps:$4 sm:$0xff]  }
 0x149   :  { %v4107_v29 = vpop.f32.mrf.mxu0  ;;  %v1730_v30 = vpop.f32.mrf.mxu1  ;;  %1921 = vmatmul.mubr.bf16.gmra.mxu1 %v3378_v0  ;;  %3093 = vmatmul.mubr.msk.bf16.gmra.mxu0 %vm1302_vm0, %v3382_v17  ;;  %v3392_v0 = vld [vmem:[%s4794_s0 + $0x3a8] ss:$20 sps:$4 sm:$0xff]  }
 0x14a   :  { %v4110_v33 = vadd.f32 %v1730_v30, %v1442_v22  ;;  %1928 = vmatprep.mubr.bf16.mxu1 %v3385_v19  ;;  %3096 = vmatprep.mubr.msk.bf16.mxu0 %vm1302_vm0, %v3386_v15  ;;  %v3395_v19 = vld [vmem:[%s4794_s0 + $0x46c] ss:$20 sps:$4 sm:$0xff]  }
 0x14b   :  { %v1507_v34 = vpop.f32.mrf.mxu0  ;;  %v1732_v37 = vpop.f32.mrf.mxu1 }
 0x14d   :  { %v4115_v41 = vpop.f32.mrf.mxu0  ;;  %v1733_v42 = vpop.f32.mrf.mxu1 }
 0x14e   :  { %v4123_v46 = vadd.f32 %v1733_v42, %v1445_v38  ;;  %v1461_v42 = vadd.f32 %v4061_v49, %v3970_v51  ;;  %v3401_v51 = vld [vmem:[%s4794_s0 + $0x420] ss:$20 sps:$4 sm:$0xff]  }
 0x14f   :  { %v1510_v55 = vpop.f32.mrf.mxu0  ;;  %v1735_v56 = vpop.f32.mrf.mxu1 }
 0x150   :  { %v3400_v55 = vld [vmem:[%s4794_s0 + $0x494] ss:$20 sps:$4 sm:$0xff]  }
 0x151   :  { %v4133_v58 = vpop.f32.mrf.mxu0  ;;  %v1738_v61 = vpop.f32.mrf.mxu1  ;;  %1929 = vmatmul.mubr.bf16.gmra.mxu1 %v3383_v23  ;;  %3097 = vmatmul.mubr.msk.bf16.gmra.mxu0 %vm1302_vm0, %v3387_v45 }
 0x152   :  { %v4136_v62 = vadd.f32 %v1738_v61, %v1450_v57  ;;  %1936 = vmatprep.mubr.bf16.mxu1 %v3390_v54  ;;  %3100 = vmatprep.mubr.msk.bf16.mxu0 %vm1302_vm0, %v3391_v27  ;;  %v3397_v54 = vld [vmem:[%s4794_s0 + $0x3f8] ss:$20 sps:$4 sm:$0xff]   ;;  %v1466_v61 = vadd.f32 %v4061_v49, %v3986_v59  ;;  %v3398_v59 = vld [vmem:[%s4794_s0 + $0x490] ss:$20 sps:$4 sm:$0xff]  }
 0x153   :  { %v1515_v3 = vpop.f32.mrf.mxu0  ;;  %v1740_v5 = vpop.f32.mrf.mxu1 }
 0x155   :  { %v4141_v7 = vpop.f32.mrf.mxu0  ;;  %v1741_v11 = vpop.f32.mrf.mxu1 }
 0x156   :  { %v4149_v17 = vadd.f32 %v1741_v11, %v1453_v6 }
 0x157   :  { %v1518_v15 = vpop.f32.mrf.mxu0  ;;  %v1743_v20 = vpop.f32.mrf.mxu1 }
 0x158   :  { %v3402_v15 = vld [vmem:[%s4794_s0 + $0x448] ss:$20 sps:$4 sm:$0xff]  }
 0x159   :  { %v4159_v22 = vpop.f32.mrf.mxu0  ;;  %v1746_v30 = vpop.f32.mrf.mxu1  ;;  %1937 = vmatmul.mubr.bf16.gmra.mxu1 %v3388_v35  ;;  %3101 = vmatmul.mubr.msk.bf16.gmra.mxu0 %vm1302_vm0, %v3392_v0  ;;  %v1469_v0 = vadd.f32 %v4061_v49, %v3992_v63  ;;  %v3406_v63 = vld [vmem:[%s4794_s0 + $0x470] ss:$20 sps:$4 sm:$0xff]  }
 0x15a   :  { %v4162_v34 = vadd.f32 %v1746_v30, %v1458_v21  ;;  %1944 = vmatprep.mubr.bf16.mxu1 %v3395_v19  ;;  %3104 = vmatprep.mubr.msk.bf16.mxu0 %vm1302_vm0, %v3396_v39  ;;  %v3405_v21 = vld [vmem:[%s4794_s0 + $0x4bc] ss:$20 sps:$4 sm:$0xff]  }
 0x15b   :  { %v1523_v37 = vpop.f32.mrf.mxu0  ;;  %v1748_v38 = vpop.f32.mrf.mxu1 }
 0x15c   :  { %v1474_v38 = vadd.f32 %v4061_v49, %v4008_v8  ;;  %v3403_v8 = vld [vmem:[%s4794_s0 + $0x4b8] ss:$20 sps:$4 sm:$0xff]  }
 0x15d   :  { %v4167_v23 = vpop.f32.mrf.mxu0  ;;  %v1749_v45 = vpop.f32.mrf.mxu1 }
 0x15e   :  { %v4175_v27 = vadd.f32 %v1749_v45, %v1461_v42 }
 0x15f   :  { %v1526_v56 = vpop.f32.mrf.mxu0  ;;  %v1751_v57 = vpop.f32.mrf.mxu1 }
 0x161   :  { %v4185_v3 = vpop.f32.mrf.mxu0  ;;  %v1754_v5 = vpop.f32.mrf.mxu1  ;;  %1945 = vmatmul.mubr.bf16.gmra.mxu1 %v3393_v47  ;;  %3105 = vmatmul.mubr.msk.bf16.gmra.mxu0 %vm1302_vm0, %v3397_v54 }
 0x162   :  { %v4188_v6 = vadd.f32 %v1754_v5, %v1466_v61  ;;  %1952 = vmatprep.mubr.bf16.mxu1 %v3400_v55  ;;  %3108 = vmatprep.mubr.msk.bf16.mxu0 %vm1302_vm0, %v3401_v51  ;;  %v1477_v51 = vadd.f32 %v4061_v49, %v4014_v13  ;;  %v3407_v61 = vld [vmem:[%s4794_s0 + $0x498] ss:$20 sps:$4 sm:$0xff]   ;;  %v3411_v13 = vld [vmem:[%s4794_s0 + $0x4c0] ss:$20 sps:$4 sm:$0xff]  }
 0x163   :  { %v1531_v11 = vpop.f32.mrf.mxu0  ;;  %v1756_v35 = vpop.f32.mrf.mxu1 }
 0x164   :  { %v3410_v11 = vld [vmem:[%s4794_s0 + $0x4e4] ss:$20 sps:$4 sm:$0xff]  }
 0x165   :  { %v4193_v19 = vpop.f32.mrf.mxu0  ;;  %v1757_v39 = vpop.f32.mrf.mxu1 }
 0x166   :  { %v4201_v20 = vadd.f32 %v1757_v39, %v1469_v0  ;;  %v1482_v39 = vadd.f32 %v4061_v49, %v4030_v25  ;;  %v3408_v25 = vld [vmem:[%s4794_s0 + $0x4e0] ss:$20 sps:$4 sm:$0xff]  }
 0x167   :  { %v1534_v30 = vpop.f32.mrf.mxu0  ;;  %v1759_v37 = vpop.f32.mrf.mxu1 }
 0x168   :  { %v1485_v37 = vadd.f32 %v4061_v49, %v4036_v31 }
 0x169   :  { %v4211_v42 = vpop.f32.mrf.mxu0  ;;  %v1762_v45 = vpop.f32.mrf.mxu1  ;;  %1953 = vmatmul.mubr.bf16.gmra.mxu1 %v3398_v59  ;;  %3109 = vmatmul.mubr.msk.bf16.gmra.mxu0 %vm1302_vm0, %v3402_v15 }
 0x16a   :  { %v4214_v47 = vadd.f32 %v1762_v45, %v1474_v38  ;;  %1960 = vmatprep.mubr.bf16.mxu1 %v3405_v21  ;;  %3112 = vmatprep.mubr.msk.bf16.mxu0 %vm1302_vm0, %v3406_v63 }
 0x16b   :  { %v1539_v54 = vpop.f32.mrf.mxu0  ;;  %v1764_v55 = vpop.f32.mrf.mxu1 }
 0x16c   :  { %v3412_v54 = vld [vmem:[%s4794_s0 + $0x4e8] ss:$20 sps:$4 sm:$0xff]  }
 0x16d   :  { %v4219_v56 = vpop.f32.mrf.mxu0  ;;  %v1765_v57 = vpop.f32.mrf.mxu1 }
 0x16e   :  { %v4227_v5 = vadd.f32 %v1765_v57, %v1477_v51 }
 0x16f   :  { %v1542_v35 = vpop.f32.mrf.mxu0  ;;  %v1767_v0 = vpop.f32.mrf.mxu1 }
 0x170   :  { %v1493_v0 = vadd.f32 %v4061_v49, %v4063_v50  ;;  %v1501_v50 = vadd.f32 %v4061_v49, %v4089_v10  ;;  %v1509_v10 = vadd.f32 %v4061_v49, %v4115_v41  ;;  %v1517_v41 = vadd.f32 %v4061_v49, %v4141_v7 }
 0x171   :  { %v4237_v59 = vpop.f32.mrf.mxu0  ;;  %v1770_v15 = vpop.f32.mrf.mxu1  ;;  %1961 = vmatmul.mubr.bf16.gmra.mxu1 %v3403_v8  ;;  %3113 = vmatmul.mubr.msk.bf16.gmra.mxu0 %vm1302_vm0, %v3407_v61  ;;  %v1490_v8 = vadd.f32 %v4061_v49, %v4052_v43  ;;  %v1525_v7 = vadd.f32 %v4061_v49, %v4167_v23  ;;  %v1533_v23 = vadd.f32 %v4061_v49, %v4193_v19 }
 0x172   :  { %v4240_v21 = vadd.f32 %v1770_v15, %v1482_v39  ;;  %1968 = vmatprep.mubr.bf16.mxu1 %v3410_v11  ;;  %3116 = vmatprep.mubr.msk.bf16.mxu0 %vm1302_vm0, %v3411_v13  ;;  %v1541_v19 = vadd.f32 %v4061_v49, %v4219_v56 }
 0x173   :  { %v1547_v63 = vpop.f32.mrf.mxu0  ;;  %v1772_v30 = vpop.f32.mrf.mxu1 }
 0x175   :  { %v4245_v38 = vpop.f32.mrf.mxu0  ;;  %v1773_v45 = vpop.f32.mrf.mxu1 }
 0x176   :  { %v4253_v55 = vadd.f32 %v1773_v45, %v1485_v37  ;;  %v1498_v37 = vadd.f32 %v4061_v49, %v4081_v2  ;;  %v1506_v2 = vadd.f32 %v4061_v49, %v4107_v29  ;;  %v1514_v29 = vadd.f32 %v4061_v49, %v4133_v58 }
 0x177   :  { %v1550_v51 = vpop.f32.mrf.mxu0  ;;  %v1775_v57 = vpop.f32.mrf.mxu1  ;;  %v1522_v58 = vadd.f32 %v4061_v49, %v4159_v22  ;;  %v1530_v22 = vadd.f32 %v4061_v49, %v4185_v3  ;;  %v1538_v3 = vadd.f32 %v4061_v49, %v4211_v42  ;;  %v1546_v42 = vadd.f32 %v4061_v49, %v4237_v59 }
 0x178   :  { %v1549_v56 = vadd.f32 %v4061_v49, %v4245_v38 }
 0x179   :  { %v4257_v61 = vpop.f32.mrf.mxu0  ;;  %v1778_v31 = vpop.f32.mrf.mxu1  ;;  %1969 = vmatmul.mubr.bf16.gmra.mxu1 %v3408_v25  ;;  %3117 = vmatmul.mubr.msk.bf16.gmra.mxu0 %vm1302_vm0, %v3412_v54 }
 0x17a   :  { %v4260_v11 = vadd.f32 %v1778_v31, %v1490_v8 }
 0x17b   :  { %v1555_v13 = vpop.f32.mrf.mxu0  ;;  %v1780_v35 = vpop.f32.mrf.mxu1 }
 0x17d   :  { %v4264_v39 = vpop.f32.mrf.mxu0  ;;  %v1781_v15 = vpop.f32.mrf.mxu1 }
 0x17e   :  { %v4266_v63 = vadd.f32 %v1781_v15, %v1493_v0 }
 0x17f   :  { %v1558_v30 = vpop.f32.mrf.mxu0  ;;  %v1783_v43 = vpop.f32.mrf.mxu1 }
 0x181   :  { %v4270_v45 = vpop.f32.mrf.mxu0  ;;  %v1786_v25 = vpop.f32.mrf.mxu1 }
 0x182   :  { %v4272_v54 = vadd.f32 %v1786_v25, %v1498_v37  ;;  %v1562_v38 = vadd.f32 %v4061_v49, %v4270_v45 }
 0x183   :  { %v1563_v51 = vpop.f32.mrf.mxu0  ;;  %v1788_v57 = vpop.f32.mrf.mxu1 }
 0x185   :  { %v4276_v8 = vpop.f32.mrf.mxu0  ;;  %v1789_v31 = vpop.f32.mrf.mxu1 }
 0x186   :  { %v4278_v13 = vadd.f32 %v1789_v31, %v1501_v50 }
 0x187   :  { %v1566_v35 = vpop.f32.mrf.mxu0  ;;  %v1791_v0 = vpop.f32.mrf.mxu1 }
 0x189   :  { %v4282_v15 = vpop.f32.mrf.mxu0  ;;  %v1794_v30 = vpop.f32.mrf.mxu1 }
 0x18a   :  { %v4284_v43 = vadd.f32 %v1794_v30, %v1506_v2 }
 0x18b   :  { %v1571_v37 = vpop.f32.mrf.mxu0  ;;  %v1796_v25 = vpop.f32.mrf.mxu1 }
 0x18d   :  { %v4288_v51 = vpop.f32.mrf.mxu0  ;;  %v1797_v57 = vpop.f32.mrf.mxu1 }
 0x18e   :  { %v4290_v50 = vadd.f32 %v1797_v57, %v1509_v10 }
 0x18f   :  { %v1574_v31 = vpop.f32.mrf.mxu0  ;;  %v1799_v35 = vpop.f32.mrf.mxu1 }
 0x191   :  { %v4294_v0 = vpop.f32.mrf.mxu0  ;;  %v1802_v53 = vpop.f32.mrf.mxu1 }
 0x192   :  { %v4296_v2 = vadd.f32 %v1802_v53, %v1514_v29 }
 0x193   :  { %v1579_v30 = vpop.f32.mrf.mxu0  ;;  %v1804_v37 = vpop.f32.mrf.mxu1 }
 0x195   :  { %v4300_v25 = vpop.f32.mrf.mxu0  ;;  %v1805_v32 = vpop.f32.mrf.mxu1 }
 0x196   :  { %v4302_v10 = vadd.f32 %v1805_v32, %v1517_v41 }
 0x197   :  { %v1582_v57 = vpop.f32.mrf.mxu0  ;;  %v1807_v31 = vpop.f32.mrf.mxu1 }
 0x199   :  { %v4306_v35 = vpop.f32.mrf.mxu0  ;;  %v1810_v44 = vpop.f32.mrf.mxu1 }
 0x19a   :  { %v4308_v53 = vadd.f32 %v1810_v44, %v1522_v58 }
 0x19b   :  { %v1587_v29 = vpop.f32.mrf.mxu0  ;;  %v1812_v30 = vpop.f32.mrf.mxu1 }
 0x19d   :  { %v4312_v37 = vpop.f32.mrf.mxu0  ;;  %v1813_v26 = vpop.f32.mrf.mxu1 }
 0x19e   :  { %v4314_v32 = vadd.f32 %v1813_v26, %v1525_v7 }
 0x19f   :  { %v1590_v41 = vpop.f32.mrf.mxu0  ;;  %v1815_v57 = vpop.f32.mrf.mxu1 }
 0x1a1   :  { %v4318_v31 = vpop.f32.mrf.mxu0  ;;  %v1818_v1 = vpop.f32.mrf.mxu1 }
 0x1a2   :  { %v4320_v44 = vadd.f32 %v1818_v1, %v1530_v22 }
 0x1a3   :  { %v1595_v58 = vpop.f32.mrf.mxu0  ;;  %v1820_v29 = vpop.f32.mrf.mxu1 }
 0x1a5   :  { %v4324_v30 = vpop.f32.mrf.mxu0  ;;  %v1821_v14 = vpop.f32.mrf.mxu1 }
 0x1a6   :  { %v4326_v26 = vadd.f32 %v1821_v14, %v1533_v23 }
 0x1a7   :  { %v1598_v7 = vpop.f32.mrf.mxu0  ;;  %v1823_v41 = vpop.f32.mrf.mxu1 }
 0x1a9   :  { %v4330_v57 = vpop.f32.mrf.mxu0  ;;  %v1826_v60 = vpop.f32.mrf.mxu1 }
 0x1aa   :  { %v4332_v1 = vadd.f32 %v1826_v60, %v1538_v3 }
 0x1ab   :  { %v1603_v22 = vpop.f32.mrf.mxu0  ;;  %v1828_v58 = vpop.f32.mrf.mxu1 }
 0x1ad   :  { %v4336_v29 = vpop.f32.mrf.mxu0  ;;  %v1829_v9 = vpop.f32.mrf.mxu1 }
 0x1ae   :  { %v4338_v14 = vadd.f32 %v1829_v9, %v1541_v19 }
 0x1af   :  { %v1606_v23 = vpop.f32.mrf.mxu0  ;;  %v1831_v7 = vpop.f32.mrf.mxu1 }
 0x1b1   :  { %v4342_v41 = vpop.f32.mrf.mxu0  ;;  %v1834_v40 = vpop.f32.mrf.mxu1 }
 0x1b2   :  { %v4344_v60 = vadd.f32 %v1834_v40, %v1546_v42 }
 0x1b3   :  { %v1611_v3 = vpop.f32.mrf.mxu0  ;;  %v1836_v22 = vpop.f32.mrf.mxu1 }
 0x1b5   :  { %v4348_v58 = vpop.f32.mrf.mxu0  ;;  %v1837_v52 = vpop.f32.mrf.mxu1 }
 0x1b6   :  { %4813 = vst [vmem:[#allocation18_spill] sm:$0xff] %v4348_v58  ;;  %v4350_v9 = vadd.f32 %v1837_v52, %v1549_v56 }
 0x1b7   :  { %v1614_v19 = vpop.f32.mrf.mxu0  ;;  %v1839_v23 = vpop.f32.mrf.mxu1 }
 0x1b9   :  { %v4352_v7 = vpop.f32.mrf.mxu0  ;;  %v4354_v59 = vpop.f32.mrf.mxu1 }
 0x1bb   :  { %v1619_v36 = vpop.f32.mrf.mxu0  ;;  %v1844_v48 = vpop.f32.mrf.mxu1 }
 0x1bc   :  { %v1565_v36 = vadd.f32 %v4061_v49, %v4276_v8 }
 0x1bd   :  { %v4356_v40 = vpop.f32.mrf.mxu0  ;;  %v4358_v42 = vpop.f32.mrf.mxu1 }
 0x1be   :  { %4814 = vst [vmem:[#allocation19_spill] sm:$0xff] %v4356_v40 }
 0x1bf   :  { %v1622_v3 = vpop.f32.mrf.mxu0  ;;  %v1847_v22 = vpop.f32.mrf.mxu1 }
 0x1c1   :  { %v1850_v16 = vpop.f32.mrf.mxu1  ;;  %v3058_v52 = vpop.f32.mrf.mxu0 }
 0x1c2   :  { %v4362_v56 = vadd.f32 %v1850_v16, %v1562_v38  ;;  %v2020_v19 = vadd.f32 %v3058_v52, %v4110_v33 }
 0x1c3   :  { %v1852_v23 = vpop.f32.mrf.mxu1  ;;  %v2011_v28 = vpop.f32.mrf.mxu0 }
 0x1c4   :  { %v2268_v48 = vmax.f32 %v2020_v19, 0.0  ;;  %v2012_v12 = vadd.f32 %v2011_v28, %v4084_v4 }
 0x1c5   :  { %v1853_v3 = vpop.f32.mrf.mxu1  ;;  %v3059_v22 = vpop.f32.mrf.mxu0 }
 0x1c6   :  { %v2950_v24 = vpack.c.bf16 %v2268_v48, %v2268_v48  ;;  %v2266_v58 = vmax.f32 %v2012_v12, 0.0  ;;  %v4368_v45 = vadd.f32 %v1853_v3, %v1565_v36  ;;  %v2023_v16 = vadd.f32 %v3059_v22, %v4123_v46 }
 0x1c7   :  { %v1855_v38 = vpop.f32.mrf.mxu1  ;;  %v2014_v40 = vpop.f32.mrf.mxu0 }
 0x1c8   :  { %2589 = vst.msk [vmem:[%s4796_s3 + $0x8] sm:$0xf] %vm2586_vm1, %v2950_v24  ;;  %v2948_v33 = vpack.c.bf16 %v2266_v58, %v2266_v58  ;;  %v2269_v8 = vmax.f32 %v2023_v16, 0.0  ;;  %v2015_v28 = vadd.f32 %v2014_v40, %v4097_v18 }
 0x1c9   :  { %v4376_v4 = vpop.f32.mrf.mxu1  ;;  %v3062_v52 = vpop.f32.mrf.mxu0 }
 0x1ca   :  { %2587 = vst.msk [vmem:[%s4796_s3] sm:$0xf] %vm2586_vm1, %v2948_v33  ;;  %v2951_v12 = vpack.c.bf16 %v2269_v8, %v2269_v8  ;;  %v2267_v46 = vmax.f32 %v2015_v28, 0.0  ;;  %v2036_v19 = vadd.f32 %v3062_v52, %v4162_v34 }
 0x1cb   :  { %v1860_v23 = vpop.f32.mrf.mxu1  ;;  %v2027_v36 = vpop.f32.mrf.mxu0 }
 0x1cc   :  { %2590 = vst.msk [vmem:[%s4796_s3 + $0xc] sm:$0xf] %vm2586_vm1, %v2951_v12  ;;  %v2949_v24 = vpack.c.bf16 %v2267_v46, %v2267_v46  ;;  %v2272_v18 = vmax.f32 %v2036_v19, 0.0  ;;  %v2028_v58 = vadd.f32 %v2027_v36, %v4136_v62 }
 0x1cd   :  { %v4388_v40 = vpop.f32.mrf.mxu1  ;;  %v3063_v48 = vpop.f32.mrf.mxu0 }
 0x1ce   :  { %2588 = vst.msk [vmem:[%s4796_s3 + $0x4] sm:$0xf] %vm2586_vm1, %v2949_v24  ;;  %v2954_v34 = vpack.c.bf16 %v2272_v18, %v2272_v18  ;;  %v2270_v3 = vmax.f32 %v2028_v58, 0.0  ;;  %v2039_v22 = vadd.f32 %v3063_v48, %v4175_v27 }
 0x1cf   :  { %v1863_v16 = vpop.f32.mrf.mxu1  ;;  %v2030_v38 = vpop.f32.mrf.mxu0 }
 0x1d0   :  { %2593 = vst.msk [vmem:[%s4796_s3 + $0x18] sm:$0xf] %vm2586_vm1, %v2954_v34  ;;  %v2952_v62 = vpack.c.bf16 %v2270_v3, %v2270_v3  ;;  %v2273_v33 = vmax.f32 %v2039_v22, 0.0  ;;  %v2031_v8 = vadd.f32 %v2030_v38, %v4149_v17 }
 0x1d1   :  { %v4400_v28 = vpop.f32.mrf.mxu1  ;;  %v3066_v52 = vpop.f32.mrf.mxu0 }
 0x1d2   :  { %2591 = vst.msk [vmem:[%s4796_s3 + $0x10] sm:$0xf] %vm2586_vm1, %v2952_v62  ;;  %v2955_v27 = vpack.c.bf16 %v2273_v33, %v2273_v33  ;;  %v2271_v12 = vmax.f32 %v2031_v8, 0.0  ;;  %v2052_v46 = vadd.f32 %v3066_v52, %v4214_v47 }
 0x1d3   :  { %v1868_v19 = vpop.f32.mrf.mxu1  ;;  %v2043_v23 = vpop.f32.mrf.mxu0 }
 0x1d4   :  { %2594 = vst.msk [vmem:[%s4796_s3 + $0x1c] sm:$0xf] %vm2586_vm1, %v2955_v27  ;;  %v2953_v17 = vpack.c.bf16 %v2271_v12, %v2271_v12  ;;  %v2276_v36 = vmax.f32 %v2052_v46, 0.0  ;;  %v2044_v24 = vadd.f32 %v2043_v23, %v4188_v6 }
 0x1d5   :  { %v4412_v18 = vpop.f32.mrf.mxu1  ;;  %v3067_v58 = vpop.f32.mrf.mxu0 }
 0x1d6   :  { %2592 = vst.msk [vmem:[%s4796_s3 + $0x14] sm:$0xf] %vm2586_vm1, %v2953_v17  ;;  %v2958_v47 = vpack.c.bf16 %v2276_v36, %v2276_v36  ;;  %v2274_v48 = vmax.f32 %v2044_v24, 0.0  ;;  %v2055_v34 = vadd.f32 %v3067_v58, %v4227_v5 }
 0x1d7   :  { %v1871_v3 = vpop.f32.mrf.mxu1  ;;  %v2046_v22 = vpop.f32.mrf.mxu0 }
 0x1d8   :  { %2597 = vst.msk [vmem:[%s4796_s3 + $0x28] sm:$0xf] %vm2586_vm1, %v2958_v47  ;;  %v2956_v6 = vpack.c.bf16 %v2274_v48, %v2274_v48  ;;  %v2277_v16 = vmax.f32 %v2055_v34, 0.0  ;;  %v2047_v38 = vadd.f32 %v2046_v22, %v4201_v20 }
 0x1d9   :  { %v4424_v62 = vpop.f32.mrf.mxu1  ;;  %v3070_v33 = vpop.f32.mrf.mxu0 }
 0x1da   :  { %2595 = vst.msk [vmem:[%s4796_s3 + $0x20] sm:$0xf] %vm2586_vm1, %v2956_v6  ;;  %v2959_v5 = vpack.c.bf16 %v2277_v16, %v2277_v16  ;;  %v2275_v8 = vmax.f32 %v2047_v38, 0.0  ;;  %v2068_v52 = vadd.f32 %v3070_v33, %v4260_v11 }
 0x1db   :  { %v1876_v27 = vpop.f32.mrf.mxu1  ;;  %v2059_v12 = vpop.f32.mrf.mxu0 }
 0x1dc   :  { %2598 = vst.msk [vmem:[%s4796_s3 + $0x2c] sm:$0xf] %vm2586_vm1, %v2959_v5  ;;  %v2957_v20 = vpack.c.bf16 %v2275_v8, %v2275_v8  ;;  %v2280_v46 = vmax.f32 %v2068_v52, 0.0  ;;  %v2060_v19 = vadd.f32 %v2059_v12, %v4240_v21 }
 0x1dd   :  { %v4436_v23 = vpop.f32.mrf.mxu1  ;;  %v3071_v17 = vpop.f32.mrf.mxu0 }
 0x1de   :  { %2596 = vst.msk [vmem:[%s4796_s3 + $0x24] sm:$0xf] %vm2586_vm1, %v2957_v20  ;;  %v2962_v11 = vpack.c.bf16 %v2280_v46, %v2280_v46  ;;  %v2278_v36 = vmax.f32 %v2060_v19, 0.0  ;;  %v2071_v24 = vadd.f32 %v3071_v17, %v4266_v63 }
 0x1df   :  { %v1879_v58 = vpop.f32.mrf.mxu1  ;;  %v2062_v47 = vpop.f32.mrf.mxu0 }
 0x1e0   :  { %2601 = vst.msk [vmem:[%s4796_s3 + $0x38] sm:$0xf] %vm2586_vm1, %v2962_v11  ;;  %v2960_v21 = vpack.c.bf16 %v2278_v36, %v2278_v36  ;;  %v2281_v48 = vmax.f32 %v2071_v24, 0.0  ;;  %v2063_v34 = vadd.f32 %v2062_v47, %v4253_v55 }
 0x1e1   :  { %v4448_v3 = vpop.f32.mrf.mxu1  ;;  %v3074_v22 = vpop.f32.mrf.mxu0 }
 0x1e2   :  { %2599 = vst.msk [vmem:[%s4796_s3 + $0x30] sm:$0xf] %vm2586_vm1, %v2960_v21  ;;  %v2963_v63 = vpack.c.bf16 %v2281_v48, %v2281_v48  ;;  %v2279_v6 = vmax.f32 %v2063_v34, 0.0  ;;  %v2084_v16 = vadd.f32 %v3074_v22, %v4284_v43 }
 0x1e3   :  { %v1884_v38 = vpop.f32.mrf.mxu1  ;;  %v2075_v33 = vpop.f32.mrf.mxu0 }
 0x1e4   :  { %2602 = vst.msk [vmem:[%s4796_s3 + $0x3c] sm:$0xf] %vm2586_vm1, %v2963_v63  ;;  %v2961_v55 = vpack.c.bf16 %v2279_v6, %v2279_v6  ;;  %v2284_v5 = vmax.f32 %v2084_v16, 0.0  ;;  %v2076_v8 = vadd.f32 %v2075_v33, %v4272_v54 }
 0x1e5   :  { %v4460_v52 = vpop.f32.mrf.mxu1  ;;  %v3075_v27 = vpop.f32.mrf.mxu0 }
 0x1e6   :  { %2600 = vst.msk [vmem:[%s4796_s3 + $0x34] sm:$0xf] %vm2586_vm1, %v2961_v55  ;;  %v2966_v43 = vpack.c.bf16 %v2284_v5, %v2284_v5  ;;  %v2282_v12 = vmax.f32 %v2076_v8, 0.0  ;;  %v2087_v20 = vadd.f32 %v3075_v27, %v4290_v50 }
 0x1e7   :  { %v1887_v46 = vpop.f32.mrf.mxu1  ;;  %v2078_v19 = vpop.f32.mrf.mxu0 }
 0x1e8   :  { %2605 = vst.msk [vmem:[%s4796_s3 + $0x48] sm:$0xf] %vm2586_vm1, %v2966_v43  ;;  %v2964_v54 = vpack.c.bf16 %v2282_v12, %v2282_v12  ;;  %v2285_v17 = vmax.f32 %v2087_v20, 0.0  ;;  %v2079_v11 = vadd.f32 %v2078_v19, %v4278_v13 }
 0x1e9   :  { %v4472_v36 = vpop.f32.mrf.mxu1  ;;  %v3078_v24 = vpop.f32.mrf.mxu0 }
 0x1ea   :  { %2603 = vst.msk [vmem:[%s4796_s3 + $0x40] sm:$0xf] %vm2586_vm1, %v2964_v54  ;;  %v2967_v50 = vpack.c.bf16 %v2285_v17, %v2285_v17  ;;  %v2283_v58 = vmax.f32 %v2079_v11, 0.0  ;;  %v2100_v47 = vadd.f32 %v3078_v24, %v4308_v53 }
 0x1eb   :  { %v1892_v21 = vpop.f32.mrf.mxu1  ;;  %v2091_v48 = vpop.f32.mrf.mxu0 }
 0x1ec   :  { %2606 = vst.msk [vmem:[%s4796_s3 + $0x4c] sm:$0xf] %vm2586_vm1, %v2967_v50  ;;  %v2965_v13 = vpack.c.bf16 %v2283_v58, %v2283_v58  ;;  %v2288_v34 = vmax.f32 %v2100_v47, 0.0  ;;  %v2092_v22 = vadd.f32 %v2091_v48, %v4296_v2  ;;  %v1554_v50 = vadd.f32 %v4061_v49, %v4257_v61 }
 0x1ed   :  { %v4484_v63 = vpop.f32.mrf.mxu1  ;;  %v3079_v6 = vpop.f32.mrf.mxu0 }
 0x1ee   :  { %2604 = vst.msk [vmem:[%s4796_s3 + $0x44] sm:$0xf] %vm2586_vm1, %v2965_v13  ;;  %v2970_v53 = vpack.c.bf16 %v2288_v34, %v2288_v34  ;;  %v2286_v16 = vmax.f32 %v2092_v22, 0.0  ;;  %v2103_v38 = vadd.f32 %v3079_v6, %v4314_v32  ;;  %v1843_v13 = vadd.f32 %v4354_v59, %v1554_v50 }
 0x1ef   :  { %v1895_v33 = vpop.f32.mrf.mxu1  ;;  %v2094_v55 = vpop.f32.mrf.mxu0 }
 0x1f0   :  { %2609 = vst.msk [vmem:[%s4796_s3 + $0x58] sm:$0xf] %vm2586_vm1, %v2970_v53  ;;  %v2968_v2 = vpack.c.bf16 %v2286_v16, %v2286_v16  ;;  %v2289_v5 = vmax.f32 %v2103_v38, 0.0  ;;  %v2095_v8 = vadd.f32 %v2094_v55, %v4302_v10  ;;  %v1557_v53 = vadd.f32 %v4061_v49, %v4264_v39 }
 0x1f1   :  { %v4496_v27 = vpop.f32.mrf.mxu1  ;;  %v3082_v43 = vpop.f32.mrf.mxu0 }
 0x1f2   :  { %2607 = vst.msk [vmem:[%s4796_s3 + $0x50] sm:$0xf] %vm2586_vm1, %v2968_v2  ;;  %v2971_v32 = vpack.c.bf16 %v2289_v5, %v2289_v5  ;;  %v2287_v12 = vmax.f32 %v2095_v8, 0.0  ;;  %v2116_v20 = vadd.f32 %v3082_v43, %v4332_v1  ;;  %v1846_v55 = vadd.f32 %v4358_v42, %v1557_v53 }
 0x1f3   :  { %v1900_v46 = vpop.f32.mrf.mxu1  ;;  %v2107_v19 = vpop.f32.mrf.mxu0  ;;  %v1570_v43 = vadd.f32 %v4061_v49, %v4282_v15  ;;  %v1578_v53 = vadd.f32 %v4061_v49, %v4294_v0 }
 0x1f4   :  { %2610 = vst.msk [vmem:[%s4796_s3 + $0x5c] sm:$0xf] %vm2586_vm1, %v2971_v32  ;;  %v2969_v10 = vpack.c.bf16 %v2287_v12, %v2287_v12  ;;  %v2292_v54 = vmax.f32 %v2116_v20, 0.0  ;;  %v2108_v17 = vadd.f32 %v2107_v19, %v4320_v44 }
 0x1f5   :  { %v4508_v11 = vpop.f32.mrf.mxu1  ;;  %v3083_v24 = vpop.f32.mrf.mxu0  ;;  %v1859_v19 = vadd.f32 %v4376_v4, %v1570_v43  ;;  %v1867_v0 = vadd.f32 %v4400_v28, %v1578_v53 }
 0x1f6   :  { %2608 = vst.msk [vmem:[%s4796_s3 + $0x54] sm:$0xf] %vm2586_vm1, %v2969_v10  ;;  %v2974_v1 = vpack.c.bf16 %v2292_v54, %v2292_v54  ;;  %v2290_v58 = vmax.f32 %v2108_v17, 0.0  ;;  %v2119_v47 = vadd.f32 %v3083_v24, %v4338_v14  ;;  %v1573_v24 = vadd.f32 %v4061_v49, %v4288_v51 }
 0x1f7   :  { %v1903_v21 = vpop.f32.mrf.mxu1  ;;  %v2110_v48 = vpop.f32.mrf.mxu0 }
 0x1f8   :  { %2613 = vst.msk [vmem:[%s4796_s3 + $0x68] sm:$0xf] %vm2586_vm1, %v2974_v1  ;;  %v2972_v44 = vpack.c.bf16 %v2290_v58, %v2290_v58  ;;  %v2293_v61 = vmax.f32 %v2119_v47, 0.0  ;;  %v2111_v34 = vadd.f32 %v2110_v48, %v4326_v26  ;;  %v1862_v21 = vadd.f32 %v4388_v40, %v1573_v24 }
 0x1f9   :  { %v4523_v22 = vpop.f32.mrf.mxu1  ;;  %v3086_v6 = vpop.f32.mrf.mxu0 }
 0x1fa   :  { %2611 = vst.msk [vmem:[%s4796_s3 + $0x60] sm:$0xf] %vm2586_vm1, %v2972_v44  ;;  %v2975_v14 = vpack.c.bf16 %v2293_v61, %v2293_v61  ;;  %v2291_v59 = vmax.f32 %v2111_v34, 0.0  ;;  %v2132_v16 = vadd.f32 %v3086_v6, %v1843_v13  ;;  %v1586_v61 = vadd.f32 %v4061_v49, %v4306_v35 }
 0x1fb   :  { %v1908_v38 = vpop.f32.mrf.mxu1  ;;  %v2123_v33 = vpop.f32.mrf.mxu0 }
 0x1fc   :  { %2614 = vst.msk [vmem:[%s4796_s3 + $0x6c] sm:$0xf] %vm2586_vm1, %v2975_v14  ;;  %v2973_v26 = vpack.c.bf16 %v2291_v59, %v2291_v59  ;;  %v2296_v2 = vmax.f32 %v2132_v16, 0.0  ;;  %v2124_v39 = vadd.f32 %v2123_v33, %v4344_v60  ;;  %v1589_v33 = vadd.f32 %v4061_v49, %v4312_v37 }
 0x1fd   :  { %v4537_v5 = vpop.f32.mrf.mxu1  ;;  %v3087_v8 = vpop.f32.mrf.mxu0 }
 0x1fe   :  { %2612 = vst.msk [vmem:[%s4796_s3 + $0x64] sm:$0xf] %vm2586_vm1, %v2973_v26  ;;  %v2978_v42 = vpack.c.bf16 %v2296_v2, %v2296_v2  ;;  %v2294_v32 = vmax.f32 %v2124_v39, 0.0  ;;  %v2135_v12 = vadd.f32 %v3087_v8, %v1846_v55  ;;  %v1581_v8 = vadd.f32 %v4061_v49, %v4300_v25 }
 0x1ff   :  { %v1911_v20 = vpop.f32.mrf.mxu1  ;;  %v2126_v46 = vpop.f32.mrf.mxu0  ;;  %v1878_v37 = vadd.f32 %v4436_v23, %v1589_v33  ;;  %v4815_v33 = vld [vmem:[#allocation19_spill] sm:$0xff] }
 0x200   :  { %2617 = vst.msk [vmem:[%s4796_s3 + $0x78] sm:$0xf] %vm2586_vm1, %v2978_v42  ;;  %v2976_v60 = vpack.c.bf16 %v2294_v32, %v2294_v32  ;;  %v2297_v10 = vmax.f32 %v2135_v12, 0.0  ;;  %v2127_v15 = vadd.f32 %v2126_v46, %v4350_v9  ;;  %v1602_v12 = vadd.f32 %v4061_v49, %v4330_v57 }
 0x201   :  { %v4551_v54 = vpop.f32.mrf.mxu1  ;;  %v3090_v17 = vpop.f32.mrf.mxu0  ;;  %v1870_v25 = vadd.f32 %v4412_v18, %v1581_v8  ;;  %v4816_v8 = vld [vmem:[#allocation18_spill] sm:$0xff] }
 0x202   :  { %2615 = vst.msk [vmem:[%s4796_s3 + $0x70] sm:$0xf] %vm2586_vm1, %v2976_v60  ;;  %v2979_v4 = vpack.c.bf16 %v2297_v10, %v2297_v10  ;;  %v2295_v50 = vmax.f32 %v2127_v15, 0.0  ;;  %v2148_v1 = vadd.f32 %v3090_v17, %v1859_v19  ;;  %v1594_v10 = vadd.f32 %v4061_v49, %v4318_v31 }
 0x203   :  { %v1916_v58 = vpop.f32.mrf.mxu1  ;;  %v2139_v47 = vpop.f32.mrf.mxu0  ;;  %v1891_v57 = vadd.f32 %v4472_v36, %v1602_v12  ;;  %v4817_v12 = vld [vmem:[#allocation4_spill] sm:$0xff] }
 0x204   :  { %2618 = vst.msk [vmem:[%s4796_s3 + $0x7c] sm:$0xf] %vm2586_vm1, %v2979_v4  ;;  %v2977_v9 = vpack.c.bf16 %v2295_v50, %v2295_v50  ;;  %v2300_v48 = vmax.f32 %v2148_v1, 0.0  ;;  %v2140_v51 = vadd.f32 %v2139_v47, %v4362_v56  ;;  %v1875_v56 = vadd.f32 %v4424_v62, %v1586_v61  ;;  %v4616_v50 = vld [vmem:[%s4795_s2] ss:$0 sm:$0xff] }
 0x205   :  { %v4565_v13 = vpop.f32.mrf.mxu1  ;;  %v3091_v44 = vpop.f32.mrf.mxu0  ;;  %v1605_v49 = vadd.f32 %v4616_v50, %v4336_v29  ;;  %v1883_v36 = vadd.f32 %v4448_v3, %v1594_v10 }
 0x206   :  { %2616 = vst.msk [vmem:[%s4796_s3 + $0x74] sm:$0xf] %vm2586_vm1, %v2977_v9  ;;  %v2982_v40 = vpack.c.bf16 %v2300_v48, %v2300_v48  ;;  %v2298_v34 = vmax.f32 %v2140_v51, 0.0  ;;  %v2151_v6 = vadd.f32 %v3091_v44, %v1862_v21  ;;  %v1597_v9 = vadd.f32 %v4616_v50, %v4324_v30 }
 0x207   :  { %v1919_v14 = vpop.f32.mrf.mxu1  ;;  %v2142_v59 = vpop.f32.mrf.mxu0  ;;  %v1894_v29 = vadd.f32 %v4484_v63, %v1605_v49 }
 0x208   :  { %2621 = vst.msk [vmem:[%s4796_s3 + $0x88] sm:$0xf] %vm2586_vm1, %v2982_v40  ;;  %v2980_v35 = vpack.c.bf16 %v2298_v34, %v2298_v34  ;;  %v2301_v16 = vmax.f32 %v2151_v6, 0.0  ;;  %v2143_v38 = vadd.f32 %v2142_v59, %v4368_v45  ;;  %v1618_v40 = vadd.f32 %v4616_v50, %v4352_v7 }
 0x209   :  { %v4583_v55 = vpop.f32.mrf.mxu1  ;;  %v3094_v26 = vpop.f32.mrf.mxu0  ;;  %v1886_v30 = vadd.f32 %v4460_v52, %v1597_v9  ;;  %v1610_v59 = vadd.f32 %v4616_v50, %v4342_v41 }
 0x20a   :  { %2619 = vst.msk [vmem:[%s4796_s3 + $0x80] sm:$0xf] %vm2586_vm1, %v2980_v35  ;;  %v2983_v62 = vpack.c.bf16 %v2301_v16, %v2301_v16  ;;  %v2299_v2 = vmax.f32 %v2143_v38, 0.0  ;;  %v2164_v39 = vadd.f32 %v3094_v26, %v1875_v56  ;;  %v1907_v7 = vadd.f32 %v4523_v22, %v1618_v40 }
 0x20b   :  { %v1924_v45 = vpop.f32.mrf.mxu1  ;;  %v2155_v43 = vpop.f32.mrf.mxu0  ;;  %v1621_v26 = vadd.f32 %v4616_v50, %v4815_v33 }
 0x20c   :  { %2622 = vst.msk [vmem:[%s4796_s3 + $0x8c] sm:$0xf] %vm2586_vm1, %v2983_v62  ;;  %v2981_v28 = vpack.c.bf16 %v2299_v2, %v2299_v2  ;;  %v2304_v42 = vmax.f32 %v2164_v39, 0.0  ;;  %v2156_v32 = vadd.f32 %v2155_v43, %v1867_v0  ;;  %v1899_v2 = vadd.f32 %v4496_v27, %v1610_v59 }
 0x20d   :  { %v4599_v20 = vpop.f32.mrf.mxu1  ;;  %v3095_v46 = vpop.f32.mrf.mxu0  ;;  %v1613_v45 = vadd.f32 %v4616_v50, %v4816_v8 }
 0x20e   :  { %2620 = vst.msk [vmem:[%s4796_s3 + $0x84] sm:$0xf] %vm2586_vm1, %v2981_v28  ;;  %v2986_v23 = vpack.c.bf16 %v2304_v42, %v2304_v42  ;;  %v2302_v19 = vmax.f32 %v2156_v32, 0.0  ;;  %v2167_v60 = vadd.f32 %v3095_v46, %v1878_v37  ;;  %v1910_v28 = vadd.f32 %v4537_v5, %v1621_v26 }
 0x20f   :  { %v1927_v15 = vpop.f32.mrf.mxu1  ;;  %v2158_v17 = vpop.f32.mrf.mxu0  ;;  %v1634_v46 = vadd.f32 %v4616_v50, %v4817_v12 }
 0x210   :  { %2625 = vst.msk [vmem:[%s4796_s3 + $0x98] sm:$0xf] %vm2586_vm1, %v2986_v23  ;;  %v2984_v18 = vpack.c.bf16 %v2302_v19, %v2302_v19  ;;  %v2305_v24 = vmax.f32 %v2167_v60, 0.0  ;;  %v2159_v4 = vadd.f32 %v2158_v17, %v1870_v25  ;;  %v1902_v19 = vadd.f32 %v4508_v11, %v1613_v45  ;;  %v4818_v15 = vld [vmem:[#allocation2_spill] sm:$0xff] }
 0x211   :  { %v4620_v31 = vpop.f32.mrf.mxu1  ;;  %v3098_v1 = vpop.f32.mrf.mxu0  ;;  %v1626_v17 = vadd.f32 %v4616_v50, %v4818_v15 }
 0x212   :  { %2623 = vst.msk [vmem:[%s4796_s3 + $0x90] sm:$0xf] %vm2586_vm1, %v2984_v18  ;;  %v2987_v58 = vpack.c.bf16 %v2305_v24, %v2305_v24  ;;  %v2303_v47 = vmax.f32 %v2159_v4, 0.0  ;;  %v2180_v21 = vadd.f32 %v3098_v1, %v1891_v57  ;;  %v1923_v24 = vadd.f32 %v4583_v55, %v1634_v46  ;;  %v4819_v1 = vld [vmem:[#allocation5_spill] sm:$0xff] }
 0x213   :  { %v1932_v48 = vpop.f32.mrf.mxu1  ;;  %v2171_v51 = vpop.f32.mrf.mxu0 }
 0x214   :  { %2626 = vst.msk [vmem:[%s4796_s3 + $0x9c] sm:$0xf] %vm2586_vm1, %v2987_v58  ;;  %v2985_v3 = vpack.c.bf16 %v2303_v47, %v2303_v47  ;;  %v2308_v44 = vmax.f32 %v2180_v21, 0.0  ;;  %v2172_v61 = vadd.f32 %v2171_v51, %v1883_v36  ;;  %v1637_v36 = vadd.f32 %v4616_v50, %v4819_v1  ;;  %v4820_v51 = vld [vmem:[#allocation3_spill] sm:$0xff] }
 0x215   :  { %v4636_v34 = vpop.f32.mrf.mxu1  ;;  %v3099_v6 = vpop.f32.mrf.mxu0  ;;  %v1915_v21 = vadd.f32 %v4551_v54, %v1626_v17 }
 0x216   :  { %2624 = vst.msk [vmem:[%s4796_s3 + $0x94] sm:$0xf] %vm2586_vm1, %v2985_v3  ;;  %v2990_v63 = vpack.c.bf16 %v2308_v44, %v2308_v44  ;;  %v2306_v53 = vmax.f32 %v2172_v61, 0.0  ;;  %v2183_v14 = vadd.f32 %v3099_v6, %v1894_v29  ;;  %v1629_v29 = vadd.f32 %v4616_v50, %v4820_v51 }
 0x217   :  { %v1935_v56 = vpop.f32.mrf.mxu1  ;;  %v2174_v35 = vpop.f32.mrf.mxu0  ;;  %v1926_v61 = vadd.f32 %v4599_v20, %v1637_v36  ;;  %v4827_v36 = vld [vmem:[#allocation13_spill] sm:$0xff] }
 0x218   :  { %2629 = vst.msk [vmem:[%s4796_s3 + $0xa8] sm:$0xf] %vm2586_vm1, %v2990_v63  ;;  %v2988_v52 = vpack.c.bf16 %v2306_v53, %v2306_v53  ;;  %v2309_v16 = vmax.f32 %v2183_v14, 0.0  ;;  %v2175_v38 = vadd.f32 %v2174_v35, %v1886_v30  ;;  %v4821_v30 = vld [vmem:[#allocation8_spill] sm:$0xff]  ;;  %v1918_v59 = vadd.f32 %v4565_v13, %v1629_v29 }
 0x219   :  { %v1938_v0 = vpop.f32.mrf.mxu1  ;;  %v3102_v62 = vpop.f32.mrf.mxu0  ;;  %v1650_v63 = vadd.f32 %v4616_v50, %v4821_v30 }
 0x21a   :  { %2627 = vst.msk [vmem:[%s4796_s3 + $0xa0] sm:$0xf] %vm2586_vm1, %v2988_v52  ;;  %v2991_v41 = vpack.c.bf16 %v2309_v16, %v2309_v16  ;;  %v2307_v22 = vmax.f32 %v2175_v38, 0.0  ;;  %v2196_v39 = vadd.f32 %v3102_v62, %v1907_v7  ;;  %v4822_v7 = vld [vmem:[#allocation6_spill] sm:$0xff] }
 0x21b   :  { %v1940_v43 = vpop.f32.mrf.mxu1  ;;  %v2187_v37 = vpop.f32.mrf.mxu0  ;;  %v1642_v52 = vadd.f32 %v4616_v50, %v4822_v7  ;;  %v1939_v33 = vadd.f32 %v1938_v0, %v1650_v63  ;;  %v4829_v7 = vld [vmem:[#allocation14_spill] sm:$0xff] }
 0x21c   :  { %2630 = vst.msk [vmem:[%s4796_s3 + $0xac] sm:$0xf] %vm2586_vm1, %v2991_v41  ;;  %v2989_v27 = vpack.c.bf16 %v2307_v22, %v2307_v22  ;;  %v2312_v42 = vmax.f32 %v2196_v39, 0.0  ;;  %v2188_v32 = vadd.f32 %v2187_v37, %v1899_v2  ;;  %v4823_v2 = vld [vmem:[#allocation9_spill] sm:$0xff]  ;;  %v4824_v37 = vld [vmem:[#allocation7_spill] sm:$0xff] }
 0x21d   :  { %v1941_v25 = vpop.f32.mrf.mxu1  ;;  %v3103_v23 = vpop.f32.mrf.mxu0  ;;  %v1653_v41 = vadd.f32 %v4616_v50, %v4823_v2  ;;  %v1931_v8 = vadd.f32 %v4620_v31, %v1642_v52  ;;  %v1674_v52 = vadd.f32 %v4616_v50, %v4829_v7 }
 0x21e   :  { %2628 = vst.msk [vmem:[%s4796_s3 + $0xa4] sm:$0xf] %vm2586_vm1, %v2989_v27  ;;  %v2994_v5 = vpack.c.bf16 %v2312_v42, %v2312_v42  ;;  %v2310_v60 = vmax.f32 %v2188_v32, 0.0  ;;  %v2199_v10 = vadd.f32 %v3103_v23, %v1910_v28  ;;  %v1645_v28 = vadd.f32 %v4616_v50, %v4824_v37  ;;  %v4825_v23 = vld [vmem:[#allocation12_spill] sm:$0xff] }
 0x21f   :  { %v1943_v57 = vpop.f32.mrf.mxu1  ;;  %v2190_v18 = vpop.f32.mrf.mxu0  ;;  %v1942_v32 = vadd.f32 %v1941_v25, %v1653_v41 }
 0x220   :  { %2633 = vst.msk [vmem:[%s4796_s3 + $0xb8] sm:$0xf] %vm2586_vm1, %v2994_v5  ;;  %v2992_v11 = vpack.c.bf16 %v2310_v60, %v2310_v60  ;;  %v2313_v4 = vmax.f32 %v2199_v10, 0.0  ;;  %v2191_v49 = vadd.f32 %v2190_v18, %v1902_v19  ;;  %v1666_v19 = vadd.f32 %v4616_v50, %v4825_v23  ;;  %v4826_v57 = vld [vmem:[#allocation10_spill] sm:$0xff] }
 0x221   :  { %v4680_v58 = vpop.f32.mrf.mxu1  ;;  %v3106_v47 = vpop.f32.mrf.mxu0  ;;  %v1934_v10 = vadd.f32 %v4636_v34, %v1645_v28  ;;  %v1658_v18 = vadd.f32 %v4616_v50, %v4826_v57 }
 0x222   :  { %2631 = vst.msk [vmem:[%s4796_s3 + $0xb0] sm:$0xf] %vm2586_vm1, %v2992_v11  ;;  %v2995_v55 = vpack.c.bf16 %v2313_v4, %v2313_v4  ;;  %v2311_v9 = vmax.f32 %v2191_v49, 0.0  ;;  %v2212_v48 = vadd.f32 %v3106_v47, %v1923_v24  ;;  %v1669_v47 = vadd.f32 %v4616_v50, %v4827_v36 }
 0x223   :  { %v1948_v3 = vpop.f32.mrf.mxu1  ;;  %v2203_v44 = vpop.f32.mrf.mxu0 }
 0x224   :  { %2634 = vst.msk [vmem:[%s4796_s3 + $0xbc] sm:$0xf] %vm2586_vm1, %v2995_v55  ;;  %v2993_v54 = vpack.c.bf16 %v2311_v9, %v2311_v9  ;;  %v2316_v40 = vmax.f32 %v2212_v48, 0.0  ;;  %v2204_v6 = vadd.f32 %v2203_v44, %v1915_v21  ;;  %v1947_v9 = vadd.f32 %v4680_v58, %v1658_v18  ;;  %v4828_v3 = vld [vmem:[#allocation11_spill] sm:$0xff] }
 0x225   :  { %v4696_v53 = vpop.f32.mrf.mxu1  ;;  %v3107_v14 = vpop.f32.mrf.mxu0  ;;  %v1661_v44 = vadd.f32 %v4616_v50, %v4828_v3 }
 0x226   :  { %2632 = vst.msk [vmem:[%s4796_s3 + $0xb4] sm:$0xf] %vm2586_vm1, %v2993_v54  ;;  %v2998_v20 = vpack.c.bf16 %v2316_v40, %v2316_v40  ;;  %v2314_v56 = vmax.f32 %v2204_v6, 0.0  ;;  %v2215_v35 = vadd.f32 %v3107_v14, %v1926_v61 }
 0x227   :  { %v1951_v16 = vpop.f32.mrf.mxu1  ;;  %v2206_v38 = vpop.f32.mrf.mxu0 }
 0x228   :  { %2637 = vst.msk [vmem:[%s4796_s3 + $0xc8] sm:$0xf] %vm2586_vm1, %v2998_v20  ;;  %v2996_v13 = vpack.c.bf16 %v2314_v56, %v2314_v56  ;;  %v2317_v26 = vmax.f32 %v2215_v35, 0.0  ;;  %v2207_v62 = vadd.f32 %v2206_v38, %v1918_v59  ;;  %v1950_v59 = vadd.f32 %v4696_v53, %v1661_v44 }
 0x229   :  { %v1954_v22 = vpop.f32.mrf.mxu1  ;;  %v3110_v39 = vpop.f32.mrf.mxu0 }
 0x22a   :  { %2635 = vst.msk [vmem:[%s4796_s3 + $0xc0] sm:$0xf] %vm2586_vm1, %v2996_v13  ;;  %v2999_v0 = vpack.c.bf16 %v2317_v26, %v2317_v26  ;;  %v2315_v45 = vmax.f32 %v2207_v62, 0.0  ;;  %v2228_v43 = vadd.f32 %v3110_v39, %v1939_v33  ;;  %v1955_v4 = vadd.f32 %v1954_v22, %v1666_v19  ;;  %v4830_v33 = vld [vmem:[#allocation16_spill] sm:$0xff] }
 0x22b   :  { %v1956_v27 = vpop.f32.mrf.mxu1  ;;  %v2219_v42 = vpop.f32.mrf.mxu0  ;;  %v1682_v13 = vadd.f32 %v4616_v50, %v4830_v33 }
 0x22c   :  { %2638 = vst.msk [vmem:[%s4796_s3 + $0xcc] sm:$0xf] %vm2586_vm1, %v2999_v0  ;;  %v2997_v31 = vpack.c.bf16 %v2315_v45, %v2315_v45  ;;  %v2320_v12 = vmax.f32 %v2228_v43, 0.0  ;;  %v2220_v46 = vadd.f32 %v2219_v42, %v1931_v8  ;;  %v4831_v45 = vld [vmem:[#allocation15_spill] sm:$0xff]  ;;  %v4832_v27 = vld [vmem:[#allocation17_spill] sm:$0xff] }
 0x22d   :  { %v1957_v5 = vpop.f32.mrf.mxu1  ;;  %v3111_v60 = vpop.f32.mrf.mxu0  ;;  %v1677_v43 = vadd.f32 %v4616_v50, %v4831_v45  ;;  %v1685_v42 = vadd.f32 %v4616_v50, %v4832_v27 }
 0x22e   :  { %2636 = vst.msk [vmem:[%s4796_s3 + $0xc4] sm:$0xf] %vm2586_vm1, %v2997_v31  ;;  %v3002_v25 = vpack.c.bf16 %v2320_v12, %v2320_v12  ;;  %v2318_v15 = vmax.f32 %v2220_v46, 0.0  ;;  %v2231_v17 = vadd.f32 %v3111_v60, %v1942_v32  ;;  %v1958_v40 = vadd.f32 %v1957_v5, %v1669_v47 }
 0x22f   :  { %v1959_v24 = vpop.f32.mrf.mxu1  ;;  %v2222_v11 = vpop.f32.mrf.mxu0 }
 0x230   :  { %2641 = vst.msk [vmem:[%s4796_s3 + $0xd8] sm:$0xf] %vm2586_vm1, %v3002_v25  ;;  %v3000_v34 = vpack.c.bf16 %v2318_v15, %v2318_v15  ;;  %v2321_v49 = vmax.f32 %v2231_v17, 0.0  ;;  %v2223_v1 = vadd.f32 %v2222_v11, %v1934_v10 }
 0x231   :  { %v1962_v21 = vpop.f32.mrf.mxu1  ;;  %v3114_v55 = vpop.f32.mrf.mxu0 }
 0x232   :  { %2639 = vst.msk [vmem:[%s4796_s3 + $0xd0] sm:$0xf] %vm2586_vm1, %v3000_v34  ;;  %v3003_v48 = vpack.c.bf16 %v2321_v49, %v2321_v49  ;;  %v2319_v51 = vmax.f32 %v2223_v1, 0.0  ;;  %v2244_v29 = vadd.f32 %v3114_v55, %v1955_v4  ;;  %v1963_v22 = vadd.f32 %v1962_v21, %v1674_v52 }
 0x233   :  { %v1964_v61 = vpop.f32.mrf.mxu1  ;;  %v2235_v54 = vpop.f32.mrf.mxu0 }
 0x234   :  { %2642 = vst.msk [vmem:[%s4796_s3 + $0xdc] sm:$0xf] %vm2586_vm1, %v3003_v48  ;;  %v3001_v58 = vpack.c.bf16 %v2319_v51, %v2319_v51  ;;  %v2324_v6 = vmax.f32 %v2244_v29, 0.0  ;;  %v2236_v30 = vadd.f32 %v2235_v54, %v1947_v9 }
 0x235   :  { %v1965_v63 = vpop.f32.mrf.mxu1  ;;  %v3115_v14 = vpop.f32.mrf.mxu0 }
 0x236   :  { %2640 = vst.msk [vmem:[%s4796_s3 + $0xd4] sm:$0xf] %vm2586_vm1, %v3001_v58  ;;  %v3006_v20 = vpack.c.bf16 %v2324_v6, %v2324_v6  ;;  %v2322_v56 = vmax.f32 %v2236_v30, 0.0  ;;  %v2247_v35 = vadd.f32 %v3115_v14, %v1958_v40  ;;  %v1966_v19 = vadd.f32 %v1965_v63, %v1677_v43 }
 0x237   :  { %v1967_v16 = vpop.f32.mrf.mxu1  ;;  %v2238_v38 = vpop.f32.mrf.mxu0 }
 0x238   :  { %2645 = vst.msk [vmem:[%s4796_s3 + $0xe8] sm:$0xf] %vm2586_vm1, %v3006_v20  ;;  %v3004_v53 = vpack.c.bf16 %v2322_v56, %v2322_v56  ;;  %v2325_v26 = vmax.f32 %v2247_v35, 0.0  ;;  %v2239_v62 = vadd.f32 %v2238_v38, %v1950_v59 }
 0x239   :  { %v1970_v2 = vpop.f32.mrf.mxu1  ;;  %v3118_v41 = vpop.f32.mrf.mxu0 }
 0x23a   :  { %2643 = vst.msk [vmem:[%s4796_s3 + $0xe0] sm:$0xf] %vm2586_vm1, %v3004_v53  ;;  %v3007_v39 = vpack.c.bf16 %v2325_v26, %v2325_v26  ;;  %v2323_v8 = vmax.f32 %v2239_v62, 0.0  ;;  %v1971_v0 = vadd.f32 %v1970_v2, %v1682_v13 }
 0x23b   :  { %v1972_v37 = vpop.f32.mrf.mxu1  ;;  %v2251_v28 = vpop.f32.mrf.mxu0 }
 0x23c   :  { %2646 = vst.msk [vmem:[%s4796_s3 + $0xec] sm:$0xf] %vm2586_vm1, %v3007_v39  ;;  %v3005_v32 = vpack.c.bf16 %v2323_v8, %v2323_v8  ;;  %v2260_v31 = vadd.f32 %v3118_v41, %v1971_v0  ;;  %v2252_v12 = vadd.f32 %v2251_v28, %v1963_v22 }
 0x23d   :  { %v1973_v46 = vpop.f32.mrf.mxu1  ;;  %v3119_v23 = vpop.f32.mrf.mxu0 }
 0x23e   :  { %2644 = vst.msk [vmem:[%s4796_s3 + $0xe4] sm:$0xf] %vm2586_vm1, %v3005_v32  ;;  %v2328_v5 = vmax.f32 %v2260_v31, 0.0  ;;  %v2326_v60 = vmax.f32 %v2252_v12, 0.0  ;;  %v1974_v10 = vadd.f32 %v1973_v46, %v1685_v42 }
 0x23f   :  { %v1975_v50 = vpop.f32.mrf.mxu1  ;;  %v2254_v25 = vpop.f32.mrf.mxu0 }
 0x240   :  { %v3010_v15 = vpack.c.bf16 %v2328_v5, %v2328_v5  ;;  %v3008_v17 = vpack.c.bf16 %v2326_v60, %v2326_v60  ;;  %v2263_v57 = vadd.f32 %v3119_v23, %v1974_v10  ;;  %v2255_v18 = vadd.f32 %v2254_v25, %v1966_v19 }
 0x242   :  { %2649 = vst.msk [vmem:[%s4796_s3 + $0xf8] sm:$0xf] %vm2586_vm1, %v3010_v15  ;;  %2647 = vst.msk [vmem:[%s4796_s3 + $0xf0] sm:$0xf] %vm2586_vm1, %v3008_v17  ;;  %v2329_v24 = vmax.f32 %v2263_v57, 0.0  ;;  %v2327_v11 = vmax.f32 %v2255_v18, 0.0 }
 0x244   :  { %v3011_v4 = vpack.c.bf16 %v2329_v24, %v2329_v24  ;;  %v3009_v34 = vpack.c.bf16 %v2327_v11, %v2327_v11 }
 0x246   :  { %2650 = vst.msk [vmem:[%s4796_s3 + $0xfc] sm:$0xf] %vm2586_vm1, %v3011_v4  ;;  %2648 = vst.msk [vmem:[%s4796_s3 + $0xf4] sm:$0xf] %vm2586_vm1, %v3009_v34 }

// kernel: perceptual_loss.12
= control target key start
LH: loop header
LB: loop body
LE: loop exit
PB: predicated region body
PF: predicated region fallthrough
CT: control target
= control target key end

     0   :  { %vm3337_vm0 = vcmask 1041409   ;;  %vm3340_vm1 = vcmask 1042434   ;;  %vm3343_vm2 = vcmask 1043459   ;;  %vm3346_vm3 = vcmask 1044484   ;;  %s7284_s0 = inlined_call_operand.vmem [shape: bf16[16,2,8,2,64], index: 0, kind: input, shape index: {}]   ;;  %s7285_s1 = inlined_call_operand.vmem [shape: bf16[16,8,64], index: 1, kind: output, shape index: {}]  }
   0x1   :  { %v8_v0 = vld [vmem:[%s7284_s0] sm:$0x1]  ;;  %v9_v1 = vld [vmem:[%s7284_s0 + $0x1] sm:$0x1]  ;;  %v16_v2 = vld [vmem:[%s7284_s0 + $0x8] sm:$0x1] }
   0x2   :  { %v17_v3 = vld [vmem:[%s7284_s0 + $0x9] sm:$0x1]  ;;  %v10_v4 = vld [vmem:[%s7284_s0 + $0x2] sm:$0x1]  ;;  %v11_v5 = vld [vmem:[%s7284_s0 + $0x3] sm:$0x1]  ;;  %v3900_v44 = vmax.bf16 %v16_v2, %v8_v0 }
   0x3   :  { %v12_v6 = vld [vmem:[%s7284_s0 + $0x4] sm:$0x1]  ;;  %v13_v7 = vld [vmem:[%s7284_s0 + $0x5] sm:$0x1]  ;;  %v18_v8 = vld [vmem:[%s7284_s0 + $0xa] sm:$0x1]  ;;  %v3902_v45 = vmax.bf16 %v17_v3, %v9_v1 }
   0x4   :  { %v19_v9 = vld [vmem:[%s7284_s0 + $0xb] sm:$0x1]  ;;  %v20_v10 = vld [vmem:[%s7284_s0 + $0xc] sm:$0x1]  ;;  %v21_v11 = vld [vmem:[%s7284_s0 + $0xd] sm:$0x1]  ;;  %v3940_v54 = vmax.bf16 %v18_v8, %v10_v4 }
   0x5   :  { %v14_v12 = vld [vmem:[%s7284_s0 + $0x6] sm:$0x1]  ;;  %v15_v13 = vld [vmem:[%s7284_s0 + $0x7] sm:$0x1]  ;;  %v22_v14 = vld [vmem:[%s7284_s0 + $0xe] sm:$0x1]  ;;  %v3942_v55 = vmax.bf16 %v19_v9, %v11_v5  ;;  %v3944_v56 = vmax.bf16 %v20_v10, %v12_v6  ;;  %v3946_v57 = vmax.bf16 %v21_v11, %v13_v7 }
   0x6   :  { %v23_v15 = vld [vmem:[%s7284_s0 + $0xf] sm:$0x1]  ;;  %v24_v16 = vld [vmem:[%s7284_s0 + $0x10] sm:$0x1]  ;;  %v25_v17 = vld [vmem:[%s7284_s0 + $0x11] sm:$0x1]  ;;  %v3980_v2 = vmax.bf16 %v22_v14, %v14_v12 }
   0x7   :  { %v32_v18 = vld [vmem:[%s7284_s0 + $0x18] sm:$0x1]  ;;  %v33_v19 = vld [vmem:[%s7284_s0 + $0x19] sm:$0x1]  ;;  %v26_v20 = vld [vmem:[%s7284_s0 + $0x12] sm:$0x1]  ;;  %v3982_v3 = vmax.bf16 %v23_v15, %v15_v13 }
   0x8   :  { %v27_v21 = vld [vmem:[%s7284_s0 + $0x13] sm:$0x1]  ;;  %v28_v22 = vld [vmem:[%s7284_s0 + $0x14] sm:$0x1]  ;;  %v29_v23 = vld [vmem:[%s7284_s0 + $0x15] sm:$0x1]  ;;  %v3984_v4 = vmax.bf16 %v32_v18, %v24_v16  ;;  %v3986_v5 = vmax.bf16 %v33_v19, %v25_v17 }
   0x9   :  { %v34_v24 = vld [vmem:[%s7284_s0 + $0x1a] sm:$0x1]  ;;  %v35_v25 = vld [vmem:[%s7284_s0 + $0x1b] sm:$0x1]  ;;  %v36_v26 = vld [vmem:[%s7284_s0 + $0x1c] sm:$0x1] }
   0xa   :  { %v37_v27 = vld [vmem:[%s7284_s0 + $0x1d] sm:$0x1]  ;;  %v30_v28 = vld [vmem:[%s7284_s0 + $0x16] sm:$0x1]  ;;  %v31_v29 = vld [vmem:[%s7284_s0 + $0x17] sm:$0x1]  ;;  %v4018_v12 = vmax.bf16 %v34_v24, %v26_v20  ;;  %v4020_v13 = vmax.bf16 %v35_v25, %v27_v21  ;;  %v4022_v14 = vmax.bf16 %v36_v26, %v28_v22 }
   0xb   :  { %v38_v30 = vld [vmem:[%s7284_s0 + $0x1e] sm:$0x1]  ;;  %v39_v31 = vld [vmem:[%s7284_s0 + $0x1f] sm:$0x1]  ;;  %v40_v32 = vld [vmem:[%s7284_s0 + $0x20] sm:$0x1]  ;;  %v4024_v15 = vmax.bf16 %v37_v27, %v29_v23 }
   0xc   :  { %v41_v33 = vld [vmem:[%s7284_s0 + $0x21] sm:$0x1]  ;;  %v48_v34 = vld [vmem:[%s7284_s0 + $0x28] sm:$0x1]  ;;  %v49_v35 = vld [vmem:[%s7284_s0 + $0x29] sm:$0x1]  ;;  %v4066_v24 = vmax.bf16 %v38_v30, %v30_v28  ;;  %v4068_v25 = vmax.bf16 %v39_v31, %v31_v29 }
   0xd   :  { %v3871_v36 = vld [vmem:[%s7284_s0 + $0x22] sm:$0x1]  ;;  %v3876_v37 = vld [vmem:[%s7284_s0 + $0x23] sm:$0x1]  ;;  %v3881_v38 = vld [vmem:[%s7284_s0 + $0x24] sm:$0x1]  ;;  %v4070_v26 = vmax.bf16 %v48_v34, %v40_v32  ;;  %v4072_v27 = vmax.bf16 %v49_v35, %v41_v33 }
   0xe   :  { %v3886_v39 = vld [vmem:[%s7284_s0 + $0x25] sm:$0x1]  ;;  %v50_v40 = vld [vmem:[%s7284_s0 + $0x2a] sm:$0x1]  ;;  %v51_v41 = vld [vmem:[%s7284_s0 + $0x2b] sm:$0x1] }
   0xf   :  { %v52_v42 = vld [vmem:[%s7284_s0 + $0x2c] sm:$0x1]  ;;  %v53_v43 = vld [vmem:[%s7284_s0 + $0x2d] sm:$0x1]  ;;  %v3907_v46 = vld [vmem:[%s7284_s0 + $0x26] sm:$0x1]  ;;  %v4115_v34 = vmax.bf16 %v50_v40, %v3871_v36  ;;  %v4118_v35 = vmax.bf16 %v51_v41, %v3876_v37 }
  0x10   :  { %v3912_v47 = vld [vmem:[%s7284_s0 + $0x27] sm:$0x1]  ;;  %v3917_v48 = vld [vmem:[%s7284_s0 + $0x2e] sm:$0x1]  ;;  %v3922_v49 = vld [vmem:[%s7284_s0 + $0x2f] sm:$0x1] }
  0x11   :  { %v3927_v50 = vld [vmem:[%s7284_s0 + $0x30] sm:$0x1]  ;;  %v3932_v51 = vld [vmem:[%s7284_s0 + $0x31] sm:$0x1]  ;;  %v64_v52 = vld [vmem:[%s7284_s0 + $0x38] sm:$0x1] }
  0x12   :  { %v65_v53 = vld [vmem:[%s7284_s0 + $0x39] sm:$0x1]  ;;  %v3951_v58 = vld [vmem:[%s7284_s0 + $0x32] sm:$0x1]  ;;  %v3956_v59 = vld [vmem:[%s7284_s0 + $0x33] sm:$0x1] }
  0x13   :  { %v3961_v60 = vld [vmem:[%s7284_s0 + $0x34] sm:$0x1]  ;;  %v3966_v61 = vld [vmem:[%s7284_s0 + $0x35] sm:$0x1]  ;;  %v66_v62 = vld [vmem:[%s7284_s0 + $0x3a] sm:$0x1] }
  0x14   :  { %v67_v63 = vld [vmem:[%s7284_s0 + $0x3b] sm:$0x1]  ;;  %v68_v0 = vld [vmem:[%s7284_s0 + $0x3c] sm:$0x1]  ;;  %v69_v1 = vld [vmem:[%s7284_s0 + $0x3d] sm:$0x1] }
  0x15   :  { %v3991_v6 = vld [vmem:[%s7284_s0 + $0x36] sm:$0x1]  ;;  %v3996_v7 = vld [vmem:[%s7284_s0 + $0x37] sm:$0x1]  ;;  %v4001_v8 = vld [vmem:[%s7284_s0 + $0x3e] sm:$0x1] }
  0x16   :  { %v4006_v9 = vld [vmem:[%s7284_s0 + $0x3f] sm:$0x1]  ;;  %v4011_v10 = vld [vmem:[%s7284_s0 + $0x40] sm:$0x1]  ;;  %v4016_v11 = vld [vmem:[%s7284_s0 + $0x48] sm:$0x1] }
  0x17   :  { %7486 = vst [vmem:[#allocation2_spill] sm:$0xff] %v4020_v13  ;;  %7487 = vst [vmem:[#allocation3_spill] sm:$0xff] %v4022_v14  ;;  %v4029_v16 = vld [vmem:[%s7284_s0 + $0x41] sm:$0x1]  ;;  %v4034_v17 = vld [vmem:[%s7284_s0 + $0x42] sm:$0x1] }
  0x18   :  { %7488 = vst [vmem:[#allocation4_spill] sm:$0xff] %v4024_v15  ;;  %v4039_v18 = vld [vmem:[%s7284_s0 + $0x43] sm:$0x1]  ;;  %v4044_v19 = vld [vmem:[%s7284_s0 + $0x44] sm:$0x1]  ;;  %7489 = vst [vmem:[#allocation5_spill] sm:$0xff] %v4066_v24 }
  0x19   :  { %v4049_v20 = vld [vmem:[%s7284_s0 + $0x49] sm:$0x1]  ;;  %v4054_v21 = vld [vmem:[%s7284_s0 + $0x4a] sm:$0x1]  ;;  %v4059_v22 = vld [vmem:[%s7284_s0 + $0x4b] sm:$0x1] }
  0x1a   :  { %v4064_v23 = vld [vmem:[%s7284_s0 + $0x4c] sm:$0x1]  ;;  %7490 = vst [vmem:[#allocation6_spill] sm:$0xff] %v4068_v25  ;;  %7491 = vst [vmem:[#allocation7_spill] sm:$0xff] %v4070_v26  ;;  %v4077_v15 = vld [vmem:[%s7284_s0 + $0x45] sm:$0x1]  ;;  %v4124_v26 = vmax.bf16 %v53_v43, %v3886_v39  ;;  %v4172_v43 = vmax.bf16 %v3922_v49, %v3912_v47 }
  0x1b   :  { %7492 = vst [vmem:[#allocation8_spill] sm:$0xff] %v4072_v27  ;;  %v4082_v14 = vld [vmem:[%s7284_s0 + $0x46] sm:$0x1]  ;;  %v4087_v28 = vld [vmem:[%s7284_s0 + $0x47] sm:$0x1]  ;;  %7493 = vst [vmem:[#allocation9_spill] sm:$0xff] %v4115_v34  ;;  %v4121_v27 = vmax.bf16 %v52_v42, %v3881_v38  ;;  %v4168_v42 = vmax.bf16 %v3917_v48, %v3907_v46 }
  0x1c   :  { %v4092_v29 = vld [vmem:[%s7284_s0 + $0x4d] sm:$0x1]  ;;  %v4097_v30 = vld [vmem:[%s7284_s0 + $0x4e] sm:$0x1]  ;;  %v4102_v31 = vld [vmem:[%s7284_s0 + $0x4f] sm:$0x1] }
  0x1d   :  { %v4107_v32 = vld [vmem:[%s7284_s0 + $0x50] sm:$0x1]  ;;  %v4112_v33 = vld [vmem:[%s7284_s0 + $0x58] sm:$0x1]  ;;  %7494 = vst [vmem:[#allocation10_spill] sm:$0xff] %v4118_v35  ;;  %7495 = vst [vmem:[#allocation11_spill] sm:$0xff] %v4121_v27  ;;  %v4178_v27 = vmax.bf16 %v65_v53, %v3932_v51  ;;  %v4221_v53 = vmax.bf16 %v66_v62, %v3951_v58 }
  0x1e   :  { %7496 = vst [vmem:[#allocation12_spill] sm:$0xff] %v4124_v26  ;;  %v4129_v25 = vld [vmem:[%s7284_s0 + $0x51] sm:$0x1]  ;;  %v4134_v24 = vld [vmem:[%s7284_s0 + $0x52] sm:$0x1]  ;;  %7497 = vst [vmem:[#allocation13_spill] sm:$0xff] %v4168_v42  ;;  %v4175_v26 = vmax.bf16 %v64_v52, %v3927_v50 }
  0x1f   :  { %v4139_v36 = vld [vmem:[%s7284_s0 + $0x53] sm:$0x1]  ;;  %v4144_v37 = vld [vmem:[%s7284_s0 + $0x54] sm:$0x1]  ;;  %v4149_v38 = vld [vmem:[%s7284_s0 + $0x59] sm:$0x1] }
  0x20   :  { %v4154_v39 = vld [vmem:[%s7284_s0 + $0x5a] sm:$0x1]  ;;  %v4159_v40 = vld [vmem:[%s7284_s0 + $0x5b] sm:$0x1]  ;;  %v4164_v41 = vld [vmem:[%s7284_s0 + $0x5c] sm:$0x1] }
  0x21   :  { %7498 = vst [vmem:[#allocation14_spill] sm:$0xff] %v4172_v43  ;;  %7499 = vst [vmem:[#allocation15_spill] sm:$0xff] %v4175_v26  ;;  %v4183_v35 = vld [vmem:[%s7284_s0 + $0x55] sm:$0x1]  ;;  %v4188_v46 = vld [vmem:[%s7284_s0 + $0x56] sm:$0x1]  ;;  %v4227_v26 = vmax.bf16 %v68_v0, %v3961_v60  ;;  %v4230_v43 = vmax.bf16 %v69_v1, %v3966_v61  ;;  %v4274_v0 = vmax.bf16 %v4001_v8, %v3991_v6 }
  0x22   :  { %7500 = vst [vmem:[#allocation16_spill] sm:$0xff] %v4178_v27  ;;  %v4193_v47 = vld [vmem:[%s7284_s0 + $0x57] sm:$0x1]  ;;  %v4198_v48 = vld [vmem:[%s7284_s0 + $0x5d] sm:$0x1]  ;;  %7501 = vst [vmem:[#allocation17_spill] sm:$0xff] %v4221_v53  ;;  %v4224_v27 = vmax.bf16 %v67_v63, %v3956_v59  ;;  %v4278_v1 = vmax.bf16 %v4006_v9, %v3996_v7 }
  0x23   :  { %v4203_v49 = vld [vmem:[%s7284_s0 + $0x5e] sm:$0x1]  ;;  %v4208_v50 = vld [vmem:[%s7284_s0 + $0x5f] sm:$0x1]  ;;  %v4213_v51 = vld [vmem:[%s7284_s0 + $0x60] sm:$0x1] }
  0x24   :  { %v4218_v52 = vld [vmem:[%s7284_s0 + $0x68] sm:$0x1]  ;;  %7502 = vst [vmem:[#allocation18_spill] sm:$0xff] %v4224_v27  ;;  %7503 = vst [vmem:[#allocation19_spill] sm:$0xff] %v4227_v26  ;;  %v4235_v42 = vld [vmem:[%s7284_s0 + $0x61] sm:$0x1]  ;;  %v4326_v26 = vmax.bf16 %v4049_v20, %v4029_v16 }
  0x25   :  { %7504 = vst [vmem:[#allocation20_spill] sm:$0xff] %v4230_v43  ;;  %v4240_v34 = vld [vmem:[%s7284_s0 + $0x62] sm:$0x1]  ;;  %v4245_v58 = vld [vmem:[%s7284_s0 + $0x63] sm:$0x1]  ;;  %7505 = vst [vmem:[#allocation21_spill] sm:$0xff] %v4274_v0  ;;  %v4282_v43 = vmax.bf16 %v4016_v11, %v4011_v10  ;;  %v4338_v0 = vmax.bf16 %v4064_v23, %v4044_v19  ;;  %v4382_v23 = vmax.bf16 %v4092_v29, %v4077_v15 }
  0x26   :  { %v4250_v59 = vld [vmem:[%s7284_s0 + $0x64] sm:$0x1]  ;;  %v4255_v60 = vld [vmem:[%s7284_s0 + $0x69] sm:$0x1]  ;;  %v4260_v61 = vld [vmem:[%s7284_s0 + $0x6a] sm:$0x1] }
  0x27   :  { %v4265_v62 = vld [vmem:[%s7284_s0 + $0x6b] sm:$0x1]  ;;  %v4270_v63 = vld [vmem:[%s7284_s0 + $0x6c] sm:$0x1]  ;;  %7506 = vst [vmem:[#allocation22_spill] sm:$0xff] %v4278_v1  ;;  %7507 = vst [vmem:[#allocation23_spill] sm:$0xff] %v4282_v43  ;;  %v4330_v43 = vmax.bf16 %v4054_v21, %v4034_v17  ;;  %v4334_v1 = vmax.bf16 %v4059_v22, %v4039_v18 }
  0x28   :  { %v4287_v27 = vld [vmem:[%s7284_s0 + $0x65] sm:$0x1]  ;;  %v4292_v53 = vld [vmem:[%s7284_s0 + $0x66] sm:$0x1]  ;;  %v4297_v6 = vld [vmem:[%s7284_s0 + $0x67] sm:$0x1] }
  0x29   :  { %v4302_v7 = vld [vmem:[%s7284_s0 + $0x6d] sm:$0x1]  ;;  %v4307_v8 = vld [vmem:[%s7284_s0 + $0x6e] sm:$0x1]  ;;  %v4312_v9 = vld [vmem:[%s7284_s0 + $0x6f] sm:$0x1] }
  0x2a   :  { %v4317_v10 = vld [vmem:[%s7284_s0 + $0x70] sm:$0x1]  ;;  %v4322_v11 = vld [vmem:[%s7284_s0 + $0x78] sm:$0x1]  ;;  %7508 = vst [vmem:[#allocation24_spill] sm:$0xff] %v4326_v26  ;;  %7509 = vst [vmem:[#allocation25_spill] sm:$0xff] %v4330_v43  ;;  %v4394_v43 = vmax.bf16 %v4112_v33, %v4107_v32  ;;  %v4438_v33 = vmax.bf16 %v4149_v38, %v4129_v25 }
  0x2b   :  { %7510 = vst [vmem:[#allocation26_spill] sm:$0xff] %v4334_v1  ;;  %7511 = vst [vmem:[#allocation27_spill] sm:$0xff] %v4338_v0  ;;  %v4343_v13 = vld [vmem:[%s7284_s0 + $0x71] sm:$0x1]  ;;  %v4348_v16 = vld [vmem:[%s7284_s0 + $0x72] sm:$0x1]  ;;  %v4386_v0 = vmax.bf16 %v4097_v30, %v4082_v14  ;;  %v4390_v1 = vmax.bf16 %v4102_v31, %v4087_v28 }
  0x2c   :  { %v4353_v17 = vld [vmem:[%s7284_s0 + $0x73] sm:$0x1]  ;;  %v4358_v18 = vld [vmem:[%s7284_s0 + $0x74] sm:$0x1]  ;;  %v4363_v19 = vld [vmem:[%s7284_s0 + $0x79] sm:$0x1] }
  0x2d   :  { %v4368_v20 = vld [vmem:[%s7284_s0 + $0x7a] sm:$0x1]  ;;  %v4373_v21 = vld [vmem:[%s7284_s0 + $0x7b] sm:$0x1]  ;;  %v4378_v22 = vld [vmem:[%s7284_s0 + $0x7c] sm:$0x1] }
  0x2e   :  { %7512 = vst [vmem:[#allocation28_spill] sm:$0xff] %v4382_v23  ;;  %7513 = vst [vmem:[#allocation29_spill] sm:$0xff] %v4386_v0  ;;  %v4399_v26 = vld [vmem:[%s7284_s0 + $0x75] sm:$0x1]  ;;  %v4404_v15 = vld [vmem:[%s7284_s0 + $0x76] sm:$0x1]  ;;  %v4450_v0 = vmax.bf16 %v4164_v41, %v4144_v37  ;;  %v4494_v41 = vmax.bf16 %v4198_v48, %v4183_v35 }
  0x2f   :  { %7514 = vst [vmem:[#allocation30_spill] sm:$0xff] %v4390_v1  ;;  %7515 = vst [vmem:[#allocation31_spill] sm:$0xff] %v4394_v43  ;;  %v4409_v14 = vld [vmem:[%s7284_s0 + $0x77] sm:$0x1]  ;;  %v4414_v28 = vld [vmem:[%s7284_s0 + $0x7d] sm:$0x1]  ;;  %v4442_v43 = vmax.bf16 %v4154_v39, %v4134_v24  ;;  %v4446_v1 = vmax.bf16 %v4159_v40, %v4139_v36 }
  0x30   :  { %v4419_v29 = vld [vmem:[%s7284_s0 + $0x7e] sm:$0x1]  ;;  %v4424_v30 = vld [vmem:[%s7284_s0 + $0x7f] sm:$0x1]  ;;  %v4429_v31 = vld [vmem:[%s7284_s0 + $0x80] sm:$0x1] }
  0x31   :  { %v4434_v32 = vld [vmem:[%s7284_s0 + $0x88] sm:$0x1]  ;;  %7516 = vst [vmem:[#allocation32_spill] sm:$0xff] %v4438_v33  ;;  %7517 = vst [vmem:[#allocation33_spill] sm:$0xff] %v4442_v43  ;;  %v4455_v23 = vld [vmem:[%s7284_s0 + $0x81] sm:$0x1]  ;;  %v4506_v43 = vmax.bf16 %v4218_v52, %v4213_v51  ;;  %v4550_v52 = vmax.bf16 %v4255_v60, %v4235_v42 }
  0x32   :  { %7518 = vst [vmem:[#allocation34_spill] sm:$0xff] %v4446_v1  ;;  %7519 = vst [vmem:[#allocation35_spill] sm:$0xff] %v4450_v0  ;;  %v4460_v25 = vld [vmem:[%s7284_s0 + $0x82] sm:$0x1]  ;;  %v4465_v24 = vld [vmem:[%s7284_s0 + $0x83] sm:$0x1]  ;;  %v4498_v0 = vmax.bf16 %v4203_v49, %v4188_v46  ;;  %v4502_v1 = vmax.bf16 %v4208_v50, %v4193_v47 }
  0x33   :  { %v4470_v36 = vld [vmem:[%s7284_s0 + $0x84] sm:$0x1]  ;;  %v4475_v37 = vld [vmem:[%s7284_s0 + $0x89] sm:$0x1]  ;;  %v4480_v38 = vld [vmem:[%s7284_s0 + $0x8a] sm:$0x1] }
  0x34   :  { %v4485_v39 = vld [vmem:[%s7284_s0 + $0x8b] sm:$0x1]  ;;  %v4490_v40 = vld [vmem:[%s7284_s0 + $0x8c] sm:$0x1]  ;;  %7520 = vst [vmem:[#allocation36_spill] sm:$0xff] %v4494_v41  ;;  %7521 = vst [vmem:[#allocation37_spill] sm:$0xff] %v4498_v0  ;;  %v4562_v0 = vmax.bf16 %v4270_v63, %v4250_v59  ;;  %v4606_v63 = vmax.bf16 %v4302_v7, %v4287_v27 }
  0x35   :  { %7522 = vst [vmem:[#allocation38_spill] sm:$0xff] %v4502_v1  ;;  %7523 = vst [vmem:[#allocation39_spill] sm:$0xff] %v4506_v43  ;;  %v4511_v33 = vld [vmem:[%s7284_s0 + $0x85] sm:$0x1]  ;;  %v4516_v35 = vld [vmem:[%s7284_s0 + $0x86] sm:$0x1]  ;;  %v4554_v43 = vmax.bf16 %v4260_v61, %v4240_v34  ;;  %v4558_v1 = vmax.bf16 %v4265_v62, %v4245_v58 }
  0x36   :  { %v4521_v46 = vld [vmem:[%s7284_s0 + $0x87] sm:$0x1]  ;;  %v4526_v47 = vld [vmem:[%s7284_s0 + $0x8d] sm:$0x1]  ;;  %v4531_v48 = vld [vmem:[%s7284_s0 + $0x8e] sm:$0x1] }
  0x37   :  { %v4536_v49 = vld [vmem:[%s7284_s0 + $0x8f] sm:$0x1]  ;;  %v4541_v50 = vld [vmem:[%s7284_s0 + $0x90] sm:$0x1]  ;;  %v4546_v51 = vld [vmem:[%s7284_s0 + $0x98] sm:$0x1] }
  0x38   :  { %7524 = vst [vmem:[#allocation40_spill] sm:$0xff] %v4550_v52  ;;  %7525 = vst [vmem:[#allocation41_spill] sm:$0xff] %v4554_v43  ;;  %v4567_v41 = vld [vmem:[%s7284_s0 + $0x91] sm:$0x1]  ;;  %v4572_v42 = vld [vmem:[%s7284_s0 + $0x92] sm:$0x1]  ;;  %v4618_v43 = vmax.bf16 %v4322_v11, %v4317_v10  ;;  %v4662_v11 = vmax.bf16 %v4363_v19, %v4343_v13 }
  0x39   :  { %7526 = vst [vmem:[#allocation42_spill] sm:$0xff] %v4558_v1  ;;  %7527 = vst [vmem:[#allocation43_spill] sm:$0xff] %v4562_v0  ;;  %v4577_v34 = vld [vmem:[%s7284_s0 + $0x93] sm:$0x1]  ;;  %v4582_v58 = vld [vmem:[%s7284_s0 + $0x94] sm:$0x1]  ;;  %v4610_v0 = vmax.bf16 %v4307_v8, %v4292_v53  ;;  %v4614_v1 = vmax.bf16 %v4312_v9, %v4297_v6 }
  0x3a   :  { %v4587_v59 = vld [vmem:[%s7284_s0 + $0x99] sm:$0x1]  ;;  %v4592_v60 = vld [vmem:[%s7284_s0 + $0x9a] sm:$0x1]  ;;  %v4597_v61 = vld [vmem:[%s7284_s0 + $0x9b] sm:$0x1] }
  0x3b   :  { %v4602_v62 = vld [vmem:[%s7284_s0 + $0x9c] sm:$0x1]  ;;  %7528 = vst [vmem:[#allocation44_spill] sm:$0xff] %v4606_v63  ;;  %7529 = vst [vmem:[#allocation45_spill] sm:$0xff] %v4610_v0  ;;  %v4623_v52 = vld [vmem:[%s7284_s0 + $0x95] sm:$0x1]  ;;  %v4674_v0 = vmax.bf16 %v4378_v22, %v4358_v18  ;;  %v4718_v22 = vmax.bf16 %v4414_v28, %v4399_v26 }
  0x3c   :  { %7530 = vst [vmem:[#allocation46_spill] sm:$0xff] %v4614_v1  ;;  %7531 = vst [vmem:[#allocation47_spill] sm:$0xff] %v4618_v43  ;;  %v4628_v27 = vld [vmem:[%s7284_s0 + $0x96] sm:$0x1]  ;;  %v4633_v53 = vld [vmem:[%s7284_s0 + $0x97] sm:$0x1]  ;;  %v4666_v43 = vmax.bf16 %v4368_v20, %v4348_v16  ;;  %v4670_v1 = vmax.bf16 %v4373_v21, %v4353_v17 }
  0x3d   :  { %v4638_v6 = vld [vmem:[%s7284_s0 + $0x9d] sm:$0x1]  ;;  %v4643_v7 = vld [vmem:[%s7284_s0 + $0x9e] sm:$0x1]  ;;  %v4648_v8 = vld [vmem:[%s7284_s0 + $0x9f] sm:$0x1] }
  0x3e   :  { %v4653_v9 = vld [vmem:[%s7284_s0 + $0xa0] sm:$0x1]  ;;  %v4658_v10 = vld [vmem:[%s7284_s0 + $0xa8] sm:$0x1]  ;;  %7532 = vst [vmem:[#allocation48_spill] sm:$0xff] %v4662_v11  ;;  %7533 = vst [vmem:[#allocation49_spill] sm:$0xff] %v4666_v43  ;;  %v4730_v43 = vmax.bf16 %v4434_v32, %v4429_v31  ;;  %v4774_v32 = vmax.bf16 %v4475_v37, %v4455_v23 }
  0x3f   :  { %7534 = vst [vmem:[#allocation50_spill] sm:$0xff] %v4670_v1  ;;  %7535 = vst [vmem:[#allocation51_spill] sm:$0xff] %v4674_v0  ;;  %v4679_v63 = vld [vmem:[%s7284_s0 + $0xa1] sm:$0x1]  ;;  %v4684_v13 = vld [vmem:[%s7284_s0 + $0xa2] sm:$0x1]  ;;  %v4722_v0 = vmax.bf16 %v4419_v29, %v4404_v15  ;;  %v4726_v1 = vmax.bf16 %v4424_v30, %v4409_v14 }
  0x40   :  { %v4689_v16 = vld [vmem:[%s7284_s0 + $0xa3] sm:$0x1]  ;;  %v4694_v17 = vld [vmem:[%s7284_s0 + $0xa4] sm:$0x1]  ;;  %v4699_v18 = vld [vmem:[%s7284_s0 + $0xa9] sm:$0x1] }
  0x41   :  { %v4704_v19 = vld [vmem:[%s7284_s0 + $0xaa] sm:$0x1]  ;;  %v4709_v20 = vld [vmem:[%s7284_s0 + $0xab] sm:$0x1]  ;;  %v4714_v21 = vld [vmem:[%s7284_s0 + $0xac] sm:$0x1] }
  0x42   :  { %7536 = vst [vmem:[#allocation52_spill] sm:$0xff] %v4718_v22  ;;  %7537 = vst [vmem:[#allocation53_spill] sm:$0xff] %v4722_v0  ;;  %v4735_v11 = vld [vmem:[%s7284_s0 + $0xa5] sm:$0x1]  ;;  %v4740_v26 = vld [vmem:[%s7284_s0 + $0xa6] sm:$0x1]  ;;  %v4786_v0 = vmax.bf16 %v4490_v40, %v4470_v36  ;;  %v4830_v40 = vmax.bf16 %v4526_v47, %v4511_v33 }
  0x43   :  { %7538 = vst [vmem:[#allocation54_spill] sm:$0xff] %v4726_v1  ;;  %7539 = vst [vmem:[#allocation55_spill] sm:$0xff] %v4730_v43  ;;  %v4745_v15 = vld [vmem:[%s7284_s0 + $0xa7] sm:$0x1]  ;;  %v4750_v14 = vld [vmem:[%s7284_s0 + $0xad] sm:$0x1]  ;;  %v4778_v43 = vmax.bf16 %v4480_v38, %v4460_v25  ;;  %v4782_v1 = vmax.bf16 %v4485_v39, %v4465_v24 }
  0x44   :  { %v4755_v28 = vld [vmem:[%s7284_s0 + $0xae] sm:$0x1]  ;;  %v4760_v29 = vld [vmem:[%s7284_s0 + $0xaf] sm:$0x1]  ;;  %v4765_v30 = vld [vmem:[%s7284_s0 + $0xb0] sm:$0x1] }
  0x45   :  { %v4770_v31 = vld [vmem:[%s7284_s0 + $0xb8] sm:$0x1]  ;;  %7540 = vst [vmem:[#allocation56_spill] sm:$0xff] %v4774_v32  ;;  %7541 = vst [vmem:[#allocation57_spill] sm:$0xff] %v4778_v43  ;;  %v4791_v22 = vld [vmem:[%s7284_s0 + $0xb1] sm:$0x1]  ;;  %v4842_v43 = vmax.bf16 %v4546_v51, %v4541_v50  ;;  %v4886_v51 = vmax.bf16 %v4587_v59, %v4567_v41 }
  0x46   :  { %7542 = vst [vmem:[#allocation58_spill] sm:$0xff] %v4782_v1  ;;  %7543 = vst [vmem:[#allocation59_spill] sm:$0xff] %v4786_v0  ;;  %v4796_v23 = vld [vmem:[%s7284_s0 + $0xb2] sm:$0x1]  ;;  %v4801_v25 = vld [vmem:[%s7284_s0 + $0xb3] sm:$0x1]  ;;  %v4834_v0 = vmax.bf16 %v4531_v48, %v4516_v35  ;;  %v4838_v1 = vmax.bf16 %v4536_v49, %v4521_v46 }
  0x47   :  { %v4806_v24 = vld [vmem:[%s7284_s0 + $0xb4] sm:$0x1]  ;;  %v4811_v36 = vld [vmem:[%s7284_s0 + $0xb9] sm:$0x1]  ;;  %v4816_v37 = vld [vmem:[%s7284_s0 + $0xba] sm:$0x1] }
  0x48   :  { %v4821_v38 = vld [vmem:[%s7284_s0 + $0xbb] sm:$0x1]  ;;  %v4826_v39 = vld [vmem:[%s7284_s0 + $0xbc] sm:$0x1]  ;;  %7544 = vst [vmem:[#allocation60_spill] sm:$0xff] %v4830_v40  ;;  %7545 = vst [vmem:[#allocation61_spill] sm:$0xff] %v4834_v0  ;;  %v4898_v0 = vmax.bf16 %v4602_v62, %v4582_v58  ;;  %v4942_v62 = vmax.bf16 %v4638_v6, %v4623_v52 }
  0x49   :  { %7546 = vst [vmem:[#allocation62_spill] sm:$0xff] %v4838_v1  ;;  %7547 = vst [vmem:[#allocation63_spill] sm:$0xff] %v4842_v43  ;;  %v4847_v32 = vld [vmem:[%s7284_s0 + $0xb5] sm:$0x1]  ;;  %v4852_v33 = vld [vmem:[%s7284_s0 + $0xb6] sm:$0x1]  ;;  %v4890_v43 = vmax.bf16 %v4592_v60, %v4572_v42  ;;  %v4894_v1 = vmax.bf16 %v4597_v61, %v4577_v34 }
  0x4a   :  { %v4857_v35 = vld [vmem:[%s7284_s0 + $0xb7] sm:$0x1]  ;;  %v4862_v46 = vld [vmem:[%s7284_s0 + $0xbd] sm:$0x1]  ;;  %v4867_v47 = vld [vmem:[%s7284_s0 + $0xbe] sm:$0x1] }
  0x4b   :  { %v4872_v48 = vld [vmem:[%s7284_s0 + $0xbf] sm:$0x1]  ;;  %v4877_v49 = vld [vmem:[%s7284_s0 + $0xc0] sm:$0x1]  ;;  %v4882_v50 = vld [vmem:[%s7284_s0 + $0xc8] sm:$0x1] }
  0x4c   :  { %7548 = vst [vmem:[#allocation64_spill] sm:$0xff] %v4886_v51  ;;  %7549 = vst [vmem:[#allocation65_spill] sm:$0xff] %v4890_v43  ;;  %v4903_v40 = vld [vmem:[%s7284_s0 + $0xc1] sm:$0x1]  ;;  %v4908_v41 = vld [vmem:[%s7284_s0 + $0xc2] sm:$0x1]  ;;  %v4954_v43 = vmax.bf16 %v4658_v10, %v4653_v9  ;;  %v4988_v10 = vmax.bf16 %v4699_v18, %v4679_v63 }
  0x4d   :  { %7550 = vst [vmem:[#allocation66_spill] sm:$0xff] %v4894_v1  ;;  %7551 = vst [vmem:[#allocation67_spill] sm:$0xff] %v4898_v0  ;;  %v4913_v42 = vld [vmem:[%s7284_s0 + $0xc3] sm:$0x1]  ;;  %v4918_v34 = vld [vmem:[%s7284_s0 + $0xc4] sm:$0x1]  ;;  %v4946_v0 = vmax.bf16 %v4643_v7, %v4628_v27  ;;  %v4950_v1 = vmax.bf16 %v4648_v8, %v4633_v53 }
  0x4e   :  { %v4923_v58 = vld [vmem:[%s7284_s0 + $0xc9] sm:$0x1]  ;;  %v4928_v59 = vld [vmem:[%s7284_s0 + $0xca] sm:$0x1]  ;;  %v4933_v60 = vld [vmem:[%s7284_s0 + $0xcb] sm:$0x1] }
  0x4f   :  { %v4938_v61 = vld [vmem:[%s7284_s0 + $0xcc] sm:$0x1]  ;;  %7552 = vst [vmem:[#allocation68_spill] sm:$0xff] %v4942_v62  ;;  %7553 = vst [vmem:[#allocation69_spill] sm:$0xff] %v4946_v0  ;;  %v4959_v51 = vld [vmem:[%s7284_s0 + $0xc5] sm:$0x1]  ;;  %v5000_v0 = vmax.bf16 %v4714_v21, %v4694_v17  ;;  %v5028_v21 = vmax.bf16 %v4750_v14, %v4735_v11 }
  0x50   :  { %7554 = vst [vmem:[#allocation70_spill] sm:$0xff] %v4950_v1  ;;  %7555 = vst [vmem:[#allocation71_spill] sm:$0xff] %v4954_v43  ;;  %v4964_v52 = vld [vmem:[%s7284_s0 + $0xc6] sm:$0x1]  ;;  %v4969_v27 = vld [vmem:[%s7284_s0 + $0xc7] sm:$0x1]  ;;  %v4992_v43 = vmax.bf16 %v4704_v19, %v4684_v13  ;;  %v4996_v1 = vmax.bf16 %v4709_v20, %v4689_v16 }
  0x51   :  { %v213_v53 = vld [vmem:[%s7284_s0 + $0xcd] sm:$0x1]  ;;  %v214_v6 = vld [vmem:[%s7284_s0 + $0xce] sm:$0x1]  ;;  %v215_v7 = vld [vmem:[%s7284_s0 + $0xcf] sm:$0x1] }
  0x52   :  { %v216_v8 = vld [vmem:[%s7284_s0 + $0xd0] sm:$0x1]  ;;  %v224_v9 = vld [vmem:[%s7284_s0 + $0xd8] sm:$0x1]  ;;  %7556 = vst [vmem:[#allocation72_spill] sm:$0xff] %v4988_v10  ;;  %7557 = vst [vmem:[#allocation73_spill] sm:$0xff] %v4992_v43  ;;  %v5040_v43 = vmax.bf16 %v4770_v31, %v4765_v30  ;;  %v5068_v31 = vmax.bf16 %v4811_v36, %v4791_v22 }
  0x53   :  { %7558 = vst [vmem:[#allocation74_spill] sm:$0xff] %v4996_v1  ;;  %7559 = vst [vmem:[#allocation75_spill] sm:$0xff] %v5000_v0  ;;  %v217_v62 = vld [vmem:[%s7284_s0 + $0xd1] sm:$0x1]  ;;  %v218_v63 = vld [vmem:[%s7284_s0 + $0xd2] sm:$0x1]  ;;  %v5032_v0 = vmax.bf16 %v4755_v28, %v4740_v26  ;;  %v5036_v1 = vmax.bf16 %v4760_v29, %v4745_v15 }
  0x54   :  { %v219_v13 = vld [vmem:[%s7284_s0 + $0xd3] sm:$0x1]  ;;  %v220_v16 = vld [vmem:[%s7284_s0 + $0xd4] sm:$0x1]  ;;  %v225_v17 = vld [vmem:[%s7284_s0 + $0xd9] sm:$0x1] }
  0x55   :  { %v226_v18 = vld [vmem:[%s7284_s0 + $0xda] sm:$0x1]  ;;  %v227_v19 = vld [vmem:[%s7284_s0 + $0xdb] sm:$0x1]  ;;  %v228_v20 = vld [vmem:[%s7284_s0 + $0xdc] sm:$0x1] }
  0x56   :  { %7560 = vst [vmem:[#allocation76_spill] sm:$0xff] %v5028_v21  ;;  %7561 = vst [vmem:[#allocation77_spill] sm:$0xff] %v5032_v0  ;;  %v221_v10 = vld [vmem:[%s7284_s0 + $0xd5] sm:$0x1]  ;;  %v222_v11 = vld [vmem:[%s7284_s0 + $0xd6] sm:$0x1]  ;;  %v5080_v0 = vmax.bf16 %v4826_v39, %v4806_v24  ;;  %v5108_v39 = vmax.bf16 %v4862_v46, %v4847_v32 }
  0x57   :  { %7562 = vst [vmem:[#allocation78_spill] sm:$0xff] %v5036_v1  ;;  %7563 = vst [vmem:[#allocation79_spill] sm:$0xff] %v5040_v43  ;;  %v223_v26 = vld [vmem:[%s7284_s0 + $0xd7] sm:$0x1]  ;;  %v229_v15 = vld [vmem:[%s7284_s0 + $0xdd] sm:$0x1]  ;;  %v5072_v43 = vmax.bf16 %v4816_v37, %v4796_v23  ;;  %v5076_v1 = vmax.bf16 %v4821_v38, %v4801_v25 }
  0x58   :  { %v230_v14 = vld [vmem:[%s7284_s0 + $0xde] sm:$0x1]  ;;  %v231_v28 = vld [vmem:[%s7284_s0 + $0xdf] sm:$0x1]  ;;  %v232_v29 = vld [vmem:[%s7284_s0 + $0xe0] sm:$0x1] }
  0x59   :  { %v240_v30 = vld [vmem:[%s7284_s0 + $0xe8] sm:$0x1]  ;;  %7564 = vst [vmem:[#allocation80_spill] sm:$0xff] %v5068_v31  ;;  %7565 = vst [vmem:[#allocation81_spill] sm:$0xff] %v5072_v43  ;;  %v233_v21 = vld [vmem:[%s7284_s0 + $0xe1] sm:$0x1]  ;;  %v5120_v43 = vmax.bf16 %v4882_v50, %v4877_v49  ;;  %v5145_v49 = vmax.bf16 %v4923_v58, %v4903_v40  ;;  %v5149_v50 = vmax.bf16 %v4928_v59, %v4908_v41 }
  0x5a   :  { %7566 = vst [vmem:[#allocation82_spill] sm:$0xff] %v5076_v1  ;;  %7567 = vst [vmem:[#allocation83_spill] sm:$0xff] %v5080_v0  ;;  %v234_v22 = vld [vmem:[%s7284_s0 + $0xe2] sm:$0x1]  ;;  %v235_v23 = vld [vmem:[%s7284_s0 + $0xe3] sm:$0x1]  ;;  %v5112_v0 = vmax.bf16 %v4867_v47, %v4852_v33  ;;  %v5116_v1 = vmax.bf16 %v4872_v48, %v4857_v35  ;;  %v5172_v58 = vmax.bf16 %v213_v53, %v4959_v51 }
  0x5b   :  { %v236_v25 = vld [vmem:[%s7284_s0 + $0xe4] sm:$0x1]  ;;  %v241_v24 = vld [vmem:[%s7284_s0 + $0xe9] sm:$0x1]  ;;  %v242_v36 = vld [vmem:[%s7284_s0 + $0xea] sm:$0x1]  ;;  %v5178_v59 = vmax.bf16 %v215_v7, %v4969_v27  ;;  %v5197_v53 = vmax.bf16 %v225_v17, %v217_v62  ;;  %v5201_v7 = vmax.bf16 %v227_v19, %v219_v13  ;;  %v5214_v62 = vmax.bf16 %v229_v15, %v221_v10 }
  0x5c   :  { %v243_v37 = vld [vmem:[%s7284_s0 + $0xeb] sm:$0x1]  ;;  %v244_v38 = vld [vmem:[%s7284_s0 + $0xec] sm:$0x1]  ;;  %7568 = vst [vmem:[#allocation84_spill] sm:$0xff] %v5108_v39  ;;  %7569 = vst [vmem:[#allocation85_spill] sm:$0xff] %v5112_v0  ;;  %v5218_v13 = vmax.bf16 %v231_v28, %v223_v26  ;;  %v5231_v10 = vmax.bf16 %v241_v24, %v233_v21 }
  0x5d   :  { %7570 = vst [vmem:[#allocation86_spill] sm:$0xff] %v5116_v1  ;;  %7571 = vst [vmem:[#allocation87_spill] sm:$0xff] %v5120_v43  ;;  %v237_v31 = vld [vmem:[%s7284_s0 + $0xe5] sm:$0x1]  ;;  %v238_v32 = vld [vmem:[%s7284_s0 + $0xe6] sm:$0x1]  ;;  %v5153_v43 = vmax.bf16 %v4933_v60, %v4913_v42  ;;  %v5157_v1 = vmax.bf16 %v4938_v61, %v4918_v34  ;;  %v5175_v34 = vmax.bf16 %v214_v6, %v4964_v52 }
  0x5e   :  { %v239_v33 = vld [vmem:[%s7284_s0 + $0xe7] sm:$0x1]  ;;  %v245_v35 = vld [vmem:[%s7284_s0 + $0xed] sm:$0x1]  ;;  %v246_v46 = vld [vmem:[%s7284_s0 + $0xee] sm:$0x1]  ;;  %v5180_v60 = vmax.bf16 %v224_v9, %v216_v8  ;;  %v5199_v6 = vmax.bf16 %v226_v18, %v218_v63  ;;  %v5203_v8 = vmax.bf16 %v228_v20, %v220_v16  ;;  %v5216_v63 = vmax.bf16 %v230_v14, %v222_v11 }
  0x5f   :  { %v247_v47 = vld [vmem:[%s7284_s0 + $0xef] sm:$0x1]  ;;  %v248_v48 = vld [vmem:[%s7284_s0 + $0xf0] sm:$0x1]  ;;  %7572 = vst [vmem:[#allocation88_spill] sm:$0xff] %v5157_v1  ;;  %7573 = vst [vmem:[#allocation89_spill] sm:$0xff] %v5172_v58  ;;  %v5220_v16 = vmax.bf16 %v240_v30, %v232_v29  ;;  %v5233_v20 = vmax.bf16 %v242_v36, %v234_v22  ;;  %v5235_v11 = vmax.bf16 %v243_v37, %v235_v23 }
  0x60   :  { %v249_v0 = vld [vmem:[%s7284_s0 + $0xf1] sm:$0x1]  ;;  %v250_v40 = vld [vmem:[%s7284_s0 + $0xf2] sm:$0x1]  ;;  %v251_v41 = vld [vmem:[%s7284_s0 + $0xf3] sm:$0x1]  ;;  %v5237_v26 = vmax.bf16 %v244_v38, %v236_v25  ;;  %v5239_v15 = vmax.bf16 %v245_v35, %v237_v31  ;;  %v5241_v14 = vmax.bf16 %v246_v46, %v238_v32  ;;  %v5243_v28 = vmax.bf16 %v247_v47, %v239_v33 }
  0x61   :  { %v252_v42 = vld [vmem:[%s7284_s0 + $0xf4] sm:$0x1]  ;;  %7574 = vst [vmem:[#allocation90_spill] sm:$0xff] %v5178_v59  ;;  %7575 = vst [vmem:[#allocation91_spill] sm:$0xff] %v5180_v60  ;;  %v253_v61 = vld [vmem:[%s7284_s0 + $0xf5] sm:$0x1] }
  0x62   :  { %v254_v1 = vld [vmem:[%s7284_s0 + $0xf6] sm:$0x1]  ;;  %v255_v51 = vld [vmem:[%s7284_s0 + $0xf7] sm:$0x1]  ;;  %v256_v52 = vld [vmem:[%s7284_s0 + $0xf8] sm:$0x1] }
  0x63   :  { %v257_v27 = vld [vmem:[%s7284_s0 + $0xf9] sm:$0x1]  ;;  %v258_v9 = vld [vmem:[%s7284_s0 + $0xfa] sm:$0x1]  ;;  %v259_v60 = vld [vmem:[%s7284_s0 + $0xfb] sm:$0x1]  ;;  %v5245_v29 = vmax.bf16 %v256_v52, %v248_v48 }
  0x64   :  { %v260_v59 = vld [vmem:[%s7284_s0 + $0xfc] sm:$0x1]  ;;  %7576 = vst [vmem:[#allocation92_spill] sm:$0xff] %v5220_v16  ;;  %v261_v17 = vld [vmem:[%s7284_s0 + $0xfd] sm:$0x1]  ;;  %v5247_v30 = vmax.bf16 %v257_v27, %v249_v0  ;;  %v5249_v16 = vmax.bf16 %v258_v9, %v250_v40  ;;  %v5251_v21 = vmax.bf16 %v259_v60, %v251_v41  ;;  %v7577_v48 = vld [vmem:[#allocation2_spill] sm:$0xff] }
  0x65   :  { %v262_v18 = vld [vmem:[%s7284_s0 + $0xfe] sm:$0x1]  ;;  %v263_v19 = vld [vmem:[%s7284_s0 + $0xff] sm:$0x1]  ;;  %v5253_v22 = vmax.bf16 %v260_v59, %v252_v42  ;;  %v5255_v23 = vmax.bf16 %v261_v17, %v253_v61  ;;  %v7578_v41 = vld [vmem:[#allocation3_spill] sm:$0xff]  ;;  %v7667_v40 = vshrl.u32 %v3902_v45, 16 }
  0x66   :  { %v5257_v25 = vmax.bf16 %v262_v18, %v254_v1  ;;  %v5259_v31 = vmax.bf16 %v263_v19, %v255_v51  ;;  %v7579_v59 = vld [vmem:[#allocation4_spill] sm:$0xff]  ;;  %v7580_v61 = vld [vmem:[#allocation5_spill] sm:$0xff]  ;;  %v7653_v38 = vld [vmem:[#allocation78_spill] sm:$0xff]  ;;  %v7666_v1 = vshrl.u32 %v3900_v44, 16  ;;  %v7668_v60 = vshrl.u32 %v3940_v54, 16 }
  0x67   :  { %v7648_v9 = vld [vmem:[#allocation73_spill] sm:$0xff]  ;;  %v7654_v0 = vld [vmem:[#allocation79_spill] sm:$0xff]  ;;  %v7657_v24 = vld [vmem:[#allocation82_spill] sm:$0xff]  ;;  %v5397_v47 = vmax.bf16 %v7667_v40, %v3902_v45  ;;  %v7669_v17 = vshrl.u32 %v3942_v55, 16  ;;  %v7670_v19 = vshrl.u32 %v3944_v56, 16  ;;  %v7672_v40 = vshrl.u32 %v3980_v2, 16 }
  0x68   :  { %v7652_v32 = vld [vmem:[#allocation77_spill] sm:$0xff]  ;;  %v7660_v35 = vld [vmem:[#allocation86_spill] sm:$0xff]  ;;  %v7661_v33 = vld [vmem:[#allocation87_spill] sm:$0xff]  ;;  %v5392_v46 = vmax.bf16 %v7666_v1, %v3900_v44  ;;  %v5402_v51 = vmax.bf16 %v7668_v60, %v3940_v54  ;;  %v7671_v1 = vshrl.u32 %v3946_v57, 16  ;;  %v7673_v60 = vshrl.u32 %v3982_v3, 16 }
  0x69   :  { %v7656_v36 = vld [vmem:[#allocation81_spill] sm:$0xff]  ;;  %v7662_v37 = vld [vmem:[#allocation88_spill] sm:$0xff]  ;;  %v7663_v52 = vld [vmem:[#allocation90_spill] sm:$0xff]  ;;  %v5407_v27 = vmax.bf16 %v7669_v17, %v3942_v55  ;;  %v5412_v44 = vmax.bf16 %v7670_v19, %v3944_v56  ;;  %v5422_v54 = vmax.bf16 %v7672_v40, %v3980_v2  ;;  %v7674_v17 = vshrl.u32 %v3984_v4, 16 }
  0x6a   :  { %v7659_v18 = vld [vmem:[#allocation85_spill] sm:$0xff]  ;;  %v7664_v39 = vld [vmem:[#allocation91_spill] sm:$0xff]  ;;  %v5417_v45 = vmax.bf16 %v7671_v1, %v3946_v57  ;;  %v5427_v55 = vmax.bf16 %v7673_v60, %v3982_v3  ;;  %v7675_v19 = vshrl.u32 %v3986_v5, 16  ;;  %v7676_v1 = vshrl.u32 %v4018_v12, 16 }
  0x6b   :  { %v7665_v58 = vld [vmem:[#allocation92_spill] sm:$0xff]  ;;  %v5432_v56 = vmax.bf16 %v7674_v17, %v3984_v4  ;;  %v7677_v40 = vshrl.u32 %v7577_v48, 16  ;;  %v7679_v60 = vshrl.u32 %v7578_v41, 16  ;;  %v7681_v17 = vshrl.u32 %v7579_v59, 16 }
  0x6c   :  { %v5437_v57 = vmax.bf16 %v7675_v19, %v3986_v5  ;;  %v5442_v2 = vmax.bf16 %v7676_v1, %v4018_v12  ;;  %v7683_v19 = vshrl.u32 %v7580_v61, 16  ;;  %v7685_v1 = vld [vmem:[#allocation6_spill] sm:$0xff]  ;;  %vm3349_vm4 = vcmask 1045509  }
  0x6d   :  { %v5447_v3 = vmax.bf16 %v7677_v40, %v7577_v48  ;;  %v5452_v4 = vmax.bf16 %v7679_v60, %v7578_v41  ;;  %v5457_v5 = vmax.bf16 %v7681_v17, %v7579_v59  ;;  %v7686_v42 = vshrl.u32 %v7685_v1, 16  ;;  %v7688_v40 = vld [vmem:[#allocation7_spill] sm:$0xff]  ;;  %v7691_v60 = vld [vmem:[#allocation8_spill] sm:$0xff]  ;;  %v7694_v17 = vld [vmem:[#allocation9_spill] sm:$0xff] }
  0x6e   :  { %v5462_v12 = vmax.bf16 %v7683_v19, %v7580_v61  ;;  %v7697_v19 = vld [vmem:[#allocation10_spill] sm:$0xff]  ;;  %vm3352_vm5 = vcmask 1046534   ;;  %vm3355_vm6 = vcmask 1047559   ;;  %vm3599_vm7 = vcmask 519168  }
  0x6f   :  { %7678 = vst [vmem:[#allocation2_spill] sm:$0xff] %v5447_v3  ;;  %7680 = vst [vmem:[#allocation3_spill] sm:$0xff] %v5452_v4  ;;  %v5467_v48 = vmax.bf16 %v7686_v42, %v7685_v1  ;;  %v7689_v3 = vshrl.u32 %v7688_v40, 16  ;;  %v7692_v4 = vshrl.u32 %v7691_v60, 16  ;;  %v7700_v1 = vld [vmem:[#allocation11_spill] sm:$0xff] }
  0x70   :  { %7682 = vst [vmem:[#allocation4_spill] sm:$0xff] %v5457_v5  ;;  %7684 = vst [vmem:[#allocation5_spill] sm:$0xff] %v5462_v12  ;;  %v7695_v5 = vshrl.u32 %v7694_v17, 16  ;;  %v7698_v12 = vshrl.u32 %v7697_v19, 16 }
  0x71   :  { %7687 = vst [vmem:[#allocation73_spill] sm:$0xff] %v5467_v48  ;;  %v5472_v41 = vmax.bf16 %v7689_v3, %v7688_v40  ;;  %v5477_v59 = vmax.bf16 %v7692_v4, %v7691_v60  ;;  %v7701_v48 = vshrl.u32 %v7700_v1, 16  ;;  %v7703_v40 = vld [vmem:[#allocation12_spill] sm:$0xff]  ;;  %v7706_v60 = vld [vmem:[#allocation13_spill] sm:$0xff] }
  0x72   :  { %v5482_v61 = vmax.bf16 %v7695_v5, %v7694_v17  ;;  %v5487_v42 = vmax.bf16 %v7698_v12, %v7697_v19  ;;  %v7709_v17 = vld [vmem:[#allocation14_spill] sm:$0xff]  ;;  %v7712_v19 = vld [vmem:[#allocation15_spill] sm:$0xff] }
  0x73   :  { %7690 = vst [vmem:[#allocation77_spill] sm:$0xff] %v5472_v41  ;;  %7693 = vst [vmem:[#allocation78_spill] sm:$0xff] %v5477_v59  ;;  %v5492_v3 = vmax.bf16 %v7701_v48, %v7700_v1  ;;  %v7704_v41 = vshrl.u32 %v7703_v40, 16  ;;  %v7707_v59 = vshrl.u32 %v7706_v60, 16  ;;  %v7715_v1 = vld [vmem:[#allocation16_spill] sm:$0xff] }
  0x74   :  { %7696 = vst [vmem:[#allocation79_spill] sm:$0xff] %v5482_v61  ;;  %7699 = vst [vmem:[#allocation81_spill] sm:$0xff] %v5487_v42  ;;  %v7710_v61 = vshrl.u32 %v7709_v17, 16  ;;  %v7713_v42 = vshrl.u32 %v7712_v19, 16 }
  0x75   :  { %7702 = vst [vmem:[#allocation82_spill] sm:$0xff] %v5492_v3  ;;  %v5497_v4 = vmax.bf16 %v7704_v41, %v7703_v40  ;;  %v5502_v5 = vmax.bf16 %v7707_v59, %v7706_v60  ;;  %v7716_v3 = vshrl.u32 %v7715_v1, 16  ;;  %v7718_v40 = vld [vmem:[#allocation17_spill] sm:$0xff]  ;;  %v7721_v60 = vld [vmem:[#allocation18_spill] sm:$0xff] }
  0x76   :  { %v5507_v12 = vmax.bf16 %v7710_v61, %v7709_v17  ;;  %v5512_v48 = vmax.bf16 %v7713_v42, %v7712_v19  ;;  %v7724_v17 = vld [vmem:[#allocation19_spill] sm:$0xff]  ;;  %v7727_v19 = vld [vmem:[#allocation20_spill] sm:$0xff] }
  0x77   :  { %7705 = vst [vmem:[#allocation85_spill] sm:$0xff] %v5497_v4  ;;  %7708 = vst [vmem:[#allocation86_spill] sm:$0xff] %v5502_v5  ;;  %v5517_v41 = vmax.bf16 %v7716_v3, %v7715_v1  ;;  %v7719_v4 = vshrl.u32 %v7718_v40, 16  ;;  %v7722_v5 = vshrl.u32 %v7721_v60, 16  ;;  %v7730_v1 = vld [vmem:[#allocation21_spill] sm:$0xff] }
  0x78   :  { %7711 = vst [vmem:[#allocation87_spill] sm:$0xff] %v5507_v12  ;;  %7714 = vst [vmem:[#allocation88_spill] sm:$0xff] %v5512_v48  ;;  %v7725_v12 = vshrl.u32 %v7724_v17, 16  ;;  %v7728_v48 = vshrl.u32 %v7727_v19, 16 }
  0x79   :  { %7717 = vst [vmem:[#allocation90_spill] sm:$0xff] %v5517_v41  ;;  %v5522_v59 = vmax.bf16 %v7719_v4, %v7718_v40  ;;  %v5527_v61 = vmax.bf16 %v7722_v5, %v7721_v60  ;;  %v7731_v41 = vshrl.u32 %v7730_v1, 16  ;;  %v7733_v40 = vld [vmem:[#allocation22_spill] sm:$0xff]  ;;  %v7736_v60 = vld [vmem:[#allocation23_spill] sm:$0xff] }
  0x7a   :  { %v5532_v42 = vmax.bf16 %v7725_v12, %v7724_v17  ;;  %v5537_v3 = vmax.bf16 %v7728_v48, %v7727_v19  ;;  %v7739_v17 = vld [vmem:[#allocation24_spill] sm:$0xff]  ;;  %v7742_v19 = vld [vmem:[#allocation25_spill] sm:$0xff] }
  0x7b   :  { %7720 = vst [vmem:[#allocation91_spill] sm:$0xff] %v5522_v59  ;;  %7723 = vst [vmem:[#allocation92_spill] sm:$0xff] %v5527_v61  ;;  %v5542_v4 = vmax.bf16 %v7731_v41, %v7730_v1  ;;  %v7734_v59 = vshrl.u32 %v7733_v40, 16  ;;  %v7737_v61 = vshrl.u32 %v7736_v60, 16  ;;  %v7745_v1 = vld [vmem:[#allocation26_spill] sm:$0xff] }
  0x7c   :  { %7726 = vst [vmem:[#allocation6_spill] sm:$0xff] %v5532_v42  ;;  %7729 = vst [vmem:[#allocation7_spill] sm:$0xff] %v5537_v3  ;;  %v7740_v42 = vshrl.u32 %v7739_v17, 16  ;;  %v7743_v3 = vshrl.u32 %v7742_v19, 16 }
  0x7d   :  { %7732 = vst [vmem:[#allocation8_spill] sm:$0xff] %v5542_v4  ;;  %v5547_v5 = vmax.bf16 %v7734_v59, %v7733_v40  ;;  %v5552_v12 = vmax.bf16 %v7737_v61, %v7736_v60  ;;  %v7746_v4 = vshrl.u32 %v7745_v1, 16  ;;  %v7748_v40 = vld [vmem:[#allocation27_spill] sm:$0xff]  ;;  %v7751_v60 = vld [vmem:[#allocation28_spill] sm:$0xff] }
  0x7e   :  { %v5557_v48 = vmax.bf16 %v7740_v42, %v7739_v17  ;;  %v5562_v41 = vmax.bf16 %v7743_v3, %v7742_v19  ;;  %v7754_v17 = vld [vmem:[#allocation29_spill] sm:$0xff]  ;;  %v7757_v19 = vld [vmem:[#allocation30_spill] sm:$0xff] }
  0x7f   :  { %7735 = vst [vmem:[#allocation9_spill] sm:$0xff] %v5547_v5  ;;  %7738 = vst [vmem:[#allocation10_spill] sm:$0xff] %v5552_v12  ;;  %v5567_v59 = vmax.bf16 %v7746_v4, %v7745_v1  ;;  %v7749_v5 = vshrl.u32 %v7748_v40, 16  ;;  %v7752_v12 = vshrl.u32 %v7751_v60, 16  ;;  %v7760_v1 = vld [vmem:[#allocation31_spill] sm:$0xff] }
  0x80   :  { %7741 = vst [vmem:[#allocation11_spill] sm:$0xff] %v5557_v48  ;;  %7744 = vst [vmem:[#allocation12_spill] sm:$0xff] %v5562_v41  ;;  %v7755_v48 = vshrl.u32 %v7754_v17, 16  ;;  %v7758_v41 = vshrl.u32 %v7757_v19, 16 }
  0x81   :  { %7747 = vst [vmem:[#allocation13_spill] sm:$0xff] %v5567_v59  ;;  %v5572_v61 = vmax.bf16 %v7749_v5, %v7748_v40  ;;  %v5577_v42 = vmax.bf16 %v7752_v12, %v7751_v60  ;;  %v7761_v59 = vshrl.u32 %v7760_v1, 16  ;;  %v7763_v40 = vld [vmem:[#allocation32_spill] sm:$0xff]  ;;  %v7766_v60 = vld [vmem:[#allocation33_spill] sm:$0xff] }
  0x82   :  { %v5582_v3 = vmax.bf16 %v7755_v48, %v7754_v17  ;;  %v5587_v4 = vmax.bf16 %v7758_v41, %v7757_v19  ;;  %v7769_v17 = vld [vmem:[#allocation34_spill] sm:$0xff]  ;;  %v7772_v19 = vld [vmem:[#allocation35_spill] sm:$0xff] }
  0x83   :  { %7750 = vst [vmem:[#allocation14_spill] sm:$0xff] %v5572_v61  ;;  %7753 = vst [vmem:[#allocation15_spill] sm:$0xff] %v5577_v42  ;;  %v5592_v5 = vmax.bf16 %v7761_v59, %v7760_v1  ;;  %v7764_v61 = vshrl.u32 %v7763_v40, 16  ;;  %v7767_v42 = vshrl.u32 %v7766_v60, 16  ;;  %v7775_v1 = vld [vmem:[#allocation36_spill] sm:$0xff] }
  0x84   :  { %7756 = vst [vmem:[#allocation16_spill] sm:$0xff] %v5582_v3  ;;  %7759 = vst [vmem:[#allocation17_spill] sm:$0xff] %v5587_v4  ;;  %v7770_v3 = vshrl.u32 %v7769_v17, 16  ;;  %v7773_v4 = vshrl.u32 %v7772_v19, 16 }
  0x85   :  { %7762 = vst [vmem:[#allocation18_spill] sm:$0xff] %v5592_v5  ;;  %v5597_v12 = vmax.bf16 %v7764_v61, %v7763_v40  ;;  %v5602_v48 = vmax.bf16 %v7767_v42, %v7766_v60  ;;  %v7776_v5 = vshrl.u32 %v7775_v1, 16  ;;  %v7778_v40 = vld [vmem:[#allocation37_spill] sm:$0xff]  ;;  %v7781_v60 = vld [vmem:[#allocation38_spill] sm:$0xff] }
  0x86   :  { %v5607_v41 = vmax.bf16 %v7770_v3, %v7769_v17  ;;  %v5612_v59 = vmax.bf16 %v7773_v4, %v7772_v19  ;;  %v7784_v17 = vld [vmem:[#allocation39_spill] sm:$0xff]  ;;  %v7787_v19 = vld [vmem:[#allocation40_spill] sm:$0xff] }
  0x87   :  { %7765 = vst [vmem:[#allocation19_spill] sm:$0xff] %v5597_v12  ;;  %7768 = vst [vmem:[#allocation20_spill] sm:$0xff] %v5602_v48  ;;  %v5617_v61 = vmax.bf16 %v7776_v5, %v7775_v1  ;;  %v7779_v12 = vshrl.u32 %v7778_v40, 16  ;;  %v7782_v48 = vshrl.u32 %v7781_v60, 16  ;;  %v7790_v1 = vld [vmem:[#allocation41_spill] sm:$0xff] }
  0x88   :  { %7771 = vst [vmem:[#allocation21_spill] sm:$0xff] %v5607_v41  ;;  %7774 = vst [vmem:[#allocation22_spill] sm:$0xff] %v5612_v59  ;;  %v7785_v41 = vshrl.u32 %v7784_v17, 16  ;;  %v7788_v59 = vshrl.u32 %v7787_v19, 16 }
  0x89   :  { %7777 = vst [vmem:[#allocation23_spill] sm:$0xff] %v5617_v61  ;;  %v5622_v42 = vmax.bf16 %v7779_v12, %v7778_v40  ;;  %v5627_v3 = vmax.bf16 %v7782_v48, %v7781_v60  ;;  %v7791_v61 = vshrl.u32 %v7790_v1, 16  ;;  %v7793_v40 = vld [vmem:[#allocation42_spill] sm:$0xff]  ;;  %v7796_v60 = vld [vmem:[#allocation43_spill] sm:$0xff] }
  0x8a   :  { %v5632_v4 = vmax.bf16 %v7785_v41, %v7784_v17  ;;  %v5637_v5 = vmax.bf16 %v7788_v59, %v7787_v19  ;;  %v7799_v17 = vld [vmem:[#allocation44_spill] sm:$0xff]  ;;  %v7802_v19 = vld [vmem:[#allocation45_spill] sm:$0xff] }
  0x8b   :  { %7780 = vst [vmem:[#allocation24_spill] sm:$0xff] %v5622_v42  ;;  %7783 = vst [vmem:[#allocation25_spill] sm:$0xff] %v5627_v3  ;;  %v5642_v12 = vmax.bf16 %v7791_v61, %v7790_v1  ;;  %v7794_v42 = vshrl.u32 %v7793_v40, 16  ;;  %v7797_v3 = vshrl.u32 %v7796_v60, 16  ;;  %v7805_v1 = vld [vmem:[#allocation46_spill] sm:$0xff] }
  0x8c   :  { %7786 = vst [vmem:[#allocation26_spill] sm:$0xff] %v5632_v4  ;;  %7789 = vst [vmem:[#allocation27_spill] sm:$0xff] %v5637_v5  ;;  %v7800_v4 = vshrl.u32 %v7799_v17, 16  ;;  %v7803_v5 = vshrl.u32 %v7802_v19, 16 }
  0x8d   :  { %7792 = vst [vmem:[#allocation28_spill] sm:$0xff] %v5642_v12  ;;  %v5647_v48 = vmax.bf16 %v7794_v42, %v7793_v40  ;;  %v5652_v41 = vmax.bf16 %v7797_v3, %v7796_v60  ;;  %v7806_v12 = vshrl.u32 %v7805_v1, 16  ;;  %v7808_v40 = vld [vmem:[#allocation47_spill] sm:$0xff]  ;;  %v7811_v60 = vld [vmem:[#allocation48_spill] sm:$0xff] }
  0x8e   :  { %v5657_v59 = vmax.bf16 %v7800_v4, %v7799_v17  ;;  %v5662_v61 = vmax.bf16 %v7803_v5, %v7802_v19  ;;  %v7814_v17 = vld [vmem:[#allocation49_spill] sm:$0xff]  ;;  %v7817_v19 = vld [vmem:[#allocation50_spill] sm:$0xff] }
  0x8f   :  { %7795 = vst [vmem:[#allocation29_spill] sm:$0xff] %v5647_v48  ;;  %7798 = vst [vmem:[#allocation30_spill] sm:$0xff] %v5652_v41  ;;  %v5667_v42 = vmax.bf16 %v7806_v12, %v7805_v1  ;;  %v7809_v48 = vshrl.u32 %v7808_v40, 16  ;;  %v7812_v41 = vshrl.u32 %v7811_v60, 16  ;;  %v7820_v1 = vld [vmem:[#allocation51_spill] sm:$0xff] }
  0x90   :  { %7801 = vst [vmem:[#allocation31_spill] sm:$0xff] %v5657_v59  ;;  %7804 = vst [vmem:[#allocation32_spill] sm:$0xff] %v5662_v61  ;;  %v7815_v59 = vshrl.u32 %v7814_v17, 16  ;;  %v7818_v61 = vshrl.u32 %v7817_v19, 16 }
  0x91   :  { %7807 = vst [vmem:[#allocation33_spill] sm:$0xff] %v5667_v42  ;;  %v5672_v3 = vmax.bf16 %v7809_v48, %v7808_v40  ;;  %v5677_v4 = vmax.bf16 %v7812_v41, %v7811_v60  ;;  %v7821_v42 = vshrl.u32 %v7820_v1, 16  ;;  %v7823_v40 = vld [vmem:[#allocation52_spill] sm:$0xff]  ;;  %v7826_v60 = vld [vmem:[#allocation53_spill] sm:$0xff] }
  0x92   :  { %v5682_v5 = vmax.bf16 %v7815_v59, %v7814_v17  ;;  %v5687_v12 = vmax.bf16 %v7818_v61, %v7817_v19  ;;  %v7829_v17 = vld [vmem:[#allocation54_spill] sm:$0xff]  ;;  %v7832_v19 = vld [vmem:[#allocation55_spill] sm:$0xff] }
  0x93   :  { %7810 = vst [vmem:[#allocation34_spill] sm:$0xff] %v5672_v3  ;;  %7813 = vst [vmem:[#allocation35_spill] sm:$0xff] %v5677_v4  ;;  %v5692_v48 = vmax.bf16 %v7821_v42, %v7820_v1  ;;  %v7824_v3 = vshrl.u32 %v7823_v40, 16  ;;  %v7827_v4 = vshrl.u32 %v7826_v60, 16  ;;  %v7835_v1 = vld [vmem:[#allocation56_spill] sm:$0xff] }
  0x94   :  { %7816 = vst [vmem:[#allocation36_spill] sm:$0xff] %v5682_v5  ;;  %7819 = vst [vmem:[#allocation37_spill] sm:$0xff] %v5687_v12  ;;  %v7830_v5 = vshrl.u32 %v7829_v17, 16  ;;  %v7833_v12 = vshrl.u32 %v7832_v19, 16 }
  0x95   :  { %7822 = vst [vmem:[#allocation38_spill] sm:$0xff] %v5692_v48  ;;  %v5697_v41 = vmax.bf16 %v7824_v3, %v7823_v40  ;;  %v5702_v59 = vmax.bf16 %v7827_v4, %v7826_v60  ;;  %v7836_v48 = vshrl.u32 %v7835_v1, 16  ;;  %v7838_v40 = vld [vmem:[#allocation57_spill] sm:$0xff]  ;;  %v7841_v60 = vld [vmem:[#allocation58_spill] sm:$0xff] }
  0x96   :  { %v5707_v61 = vmax.bf16 %v7830_v5, %v7829_v17  ;;  %v5712_v42 = vmax.bf16 %v7833_v12, %v7832_v19  ;;  %v7844_v17 = vld [vmem:[#allocation59_spill] sm:$0xff]  ;;  %v7847_v19 = vld [vmem:[#allocation60_spill] sm:$0xff] }
  0x97   :  { %7825 = vst [vmem:[#allocation39_spill] sm:$0xff] %v5697_v41  ;;  %7828 = vst [vmem:[#allocation40_spill] sm:$0xff] %v5702_v59  ;;  %v5717_v3 = vmax.bf16 %v7836_v48, %v7835_v1  ;;  %v7839_v41 = vshrl.u32 %v7838_v40, 16  ;;  %v7842_v59 = vshrl.u32 %v7841_v60, 16  ;;  %v7850_v1 = vld [vmem:[#allocation61_spill] sm:$0xff] }
  0x98   :  { %7831 = vst [vmem:[#allocation41_spill] sm:$0xff] %v5707_v61  ;;  %7834 = vst [vmem:[#allocation42_spill] sm:$0xff] %v5712_v42  ;;  %v7845_v61 = vshrl.u32 %v7844_v17, 16  ;;  %v7848_v42 = vshrl.u32 %v7847_v19, 16 }
  0x99   :  { %7837 = vst [vmem:[#allocation43_spill] sm:$0xff] %v5717_v3  ;;  %v5722_v4 = vmax.bf16 %v7839_v41, %v7838_v40  ;;  %v5727_v5 = vmax.bf16 %v7842_v59, %v7841_v60  ;;  %v7851_v3 = vshrl.u32 %v7850_v1, 16  ;;  %v7853_v40 = vld [vmem:[#allocation62_spill] sm:$0xff]  ;;  %v7856_v60 = vld [vmem:[#allocation63_spill] sm:$0xff] }
  0x9a   :  { %v5732_v12 = vmax.bf16 %v7845_v61, %v7844_v17  ;;  %v5737_v48 = vmax.bf16 %v7848_v42, %v7847_v19  ;;  %v7859_v17 = vld [vmem:[#allocation64_spill] sm:$0xff]  ;;  %v7862_v19 = vld [vmem:[#allocation65_spill] sm:$0xff] }
  0x9b   :  { %7840 = vst [vmem:[#allocation44_spill] sm:$0xff] %v5722_v4  ;;  %7843 = vst [vmem:[#allocation45_spill] sm:$0xff] %v5727_v5  ;;  %v5742_v41 = vmax.bf16 %v7851_v3, %v7850_v1  ;;  %v7854_v4 = vshrl.u32 %v7853_v40, 16  ;;  %v7857_v5 = vshrl.u32 %v7856_v60, 16  ;;  %v7865_v1 = vld [vmem:[#allocation66_spill] sm:$0xff] }
  0x9c   :  { %7846 = vst [vmem:[#allocation46_spill] sm:$0xff] %v5732_v12  ;;  %7849 = vst [vmem:[#allocation47_spill] sm:$0xff] %v5737_v48  ;;  %v7860_v12 = vshrl.u32 %v7859_v17, 16  ;;  %v7863_v48 = vshrl.u32 %v7862_v19, 16 }
  0x9d   :  { %7852 = vst [vmem:[#allocation48_spill] sm:$0xff] %v5742_v41  ;;  %v5747_v59 = vmax.bf16 %v7854_v4, %v7853_v40  ;;  %v5752_v61 = vmax.bf16 %v7857_v5, %v7856_v60  ;;  %v7866_v41 = vshrl.u32 %v7865_v1, 16  ;;  %v7868_v40 = vld [vmem:[#allocation67_spill] sm:$0xff]  ;;  %v7871_v60 = vld [vmem:[#allocation68_spill] sm:$0xff] }
  0x9e   :  { %v5757_v42 = vmax.bf16 %v7860_v12, %v7859_v17  ;;  %v5762_v3 = vmax.bf16 %v7863_v48, %v7862_v19  ;;  %v7873_v17 = vld [vmem:[#allocation69_spill] sm:$0xff]  ;;  %v7876_v19 = vld [vmem:[#allocation70_spill] sm:$0xff] }
  0x9f   :  { %7855 = vst [vmem:[#allocation49_spill] sm:$0xff] %v5747_v59  ;;  %7858 = vst [vmem:[#allocation50_spill] sm:$0xff] %v5752_v61  ;;  %v5767_v4 = vmax.bf16 %v7866_v41, %v7865_v1  ;;  %v7869_v59 = vshrl.u32 %v7868_v40, 16  ;;  %v7872_v61 = vshrl.u32 %v7871_v60, 16  ;;  %v7879_v1 = vld [vmem:[#allocation71_spill] sm:$0xff] }
  0xa0   :  { %7861 = vst [vmem:[#allocation51_spill] sm:$0xff] %v5757_v42  ;;  %7864 = vst [vmem:[#allocation52_spill] sm:$0xff] %v5762_v3  ;;  %v7874_v42 = vshrl.u32 %v7873_v17, 16  ;;  %v7877_v3 = vshrl.u32 %v7876_v19, 16 }
  0xa1   :  { %7867 = vst [vmem:[#allocation53_spill] sm:$0xff] %v5767_v4  ;;  %v5772_v5 = vmax.bf16 %v7869_v59, %v7868_v40  ;;  %v5777_v12 = vmax.bf16 %v7872_v61, %v7871_v60  ;;  %v7880_v4 = vshrl.u32 %v7879_v1, 16  ;;  %v7882_v40 = vld [vmem:[#allocation72_spill] sm:$0xff]  ;;  %v7884_v60 = vshrl.u32 %v7648_v9, 16 }
  0xa2   :  { %v5782_v48 = vmax.bf16 %v7874_v42, %v7873_v17  ;;  %v5787_v41 = vmax.bf16 %v7877_v3, %v7876_v19  ;;  %v7885_v17 = vld [vmem:[#allocation74_spill] sm:$0xff]  ;;  %v7887_v19 = vld [vmem:[#allocation75_spill] sm:$0xff] }
  0xa3   :  { %7870 = vst [vmem:[#allocation54_spill] sm:$0xff] %v5772_v5  ;;  %v5792_v59 = vmax.bf16 %v7880_v4, %v7879_v1  ;;  %v7883_v5 = vshrl.u32 %v7882_v40, 16  ;;  %v5802_v42 = vmax.bf16 %v7884_v60, %v7648_v9  ;;  %v7890_v1 = vld [vmem:[#allocation76_spill] sm:$0xff]  ;;  %v7893_v60 = vshrl.u32 %v7653_v38, 16 }
  0xa4   :  { %7875 = vst [vmem:[#allocation55_spill] sm:$0xff] %v5782_v48  ;;  %7878 = vst [vmem:[#allocation56_spill] sm:$0xff] %v5787_v41  ;;  %v7886_v48 = vshrl.u32 %v7885_v17, 16  ;;  %v7888_v41 = vshrl.u32 %v7887_v19, 16 }
  0xa5   :  { %7881 = vst [vmem:[#allocation57_spill] sm:$0xff] %v5792_v59  ;;  %v5797_v61 = vmax.bf16 %v7883_v5, %v7882_v40  ;;  %v7891_v59 = vshrl.u32 %v7890_v1, 16  ;;  %v7892_v40 = vshrl.u32 %v7652_v32, 16 }
  0xa6   :  { %v5807_v3 = vmax.bf16 %v7886_v48, %v7885_v17  ;;  %v5812_v4 = vmax.bf16 %v7888_v41, %v7887_v19  ;;  %v5827_v48 = vmax.bf16 %v7893_v60, %v7653_v38  ;;  %v7895_v17 = vshrl.u32 %v7654_v0, 16  ;;  %v7897_v19 = vld [vmem:[#allocation80_spill] sm:$0xff]  ;;  %v7901_v60 = vld [vmem:[#allocation83_spill] sm:$0xff] }
  0xa7   :  { %v5817_v5 = vmax.bf16 %v7891_v59, %v7890_v1  ;;  %v5822_v9 = vmax.bf16 %v7892_v40, %v7652_v32  ;;  %v7899_v1 = vshrl.u32 %v7656_v36, 16  ;;  %v7900_v40 = vshrl.u32 %v7657_v24, 16 }
  0xa8   :  { %7889 = vst [vmem:[#allocation58_spill] sm:$0xff] %v5812_v4  ;;  %7894 = vst [vmem:[#allocation59_spill] sm:$0xff] %v5827_v48  ;;  %v5832_v41 = vmax.bf16 %v7895_v17, %v7654_v0  ;;  %v7898_v4 = vshrl.u32 %v7897_v19, 16  ;;  %v7902_v48 = vshrl.u32 %v7901_v60, 16  ;;  %v7903_v17 = vld [vmem:[#allocation84_spill] sm:$0xff] }
  0xa9   :  { %v5842_v32 = vmax.bf16 %v7899_v1, %v7656_v36  ;;  %v5847_v38 = vmax.bf16 %v7900_v40, %v7657_v24  ;;  %v7906_v1 = vshrl.u32 %v7660_v35, 16  ;;  %v7907_v40 = vshrl.u32 %v7661_v33, 16 }
  0xaa   :  { %7896 = vst [vmem:[#allocation60_spill] sm:$0xff] %v5832_v41  ;;  %v5837_v59 = vmax.bf16 %v7898_v4, %v7897_v19  ;;  %v5852_v0 = vmax.bf16 %v7902_v48, %v7901_v60  ;;  %v7904_v41 = vshrl.u32 %v7903_v17, 16  ;;  %v7905_v19 = vshrl.u32 %v7659_v18, 16 }
  0xab   :  { %v5867_v24 = vmax.bf16 %v7906_v1, %v7660_v35  ;;  %v5872_v48 = vmax.bf16 %v7907_v40, %v7661_v33  ;;  %v7909_v60 = vshrl.u32 %v5145_v49, 16  ;;  %v7912_v1 = vshrl.u32 %v7662_v37, 16  ;;  %v7913_v40 = vld [vmem:[#allocation89_spill] sm:$0xff] }
  0xac   :  { %v5857_v4 = vmax.bf16 %v7904_v41, %v7903_v17  ;;  %v5862_v36 = vmax.bf16 %v7905_v19, %v7659_v18  ;;  %v7910_v17 = vshrl.u32 %v5149_v50, 16  ;;  %v7911_v19 = vshrl.u32 %v5153_v43, 16 }
  0xad   :  { %7908 = vst [vmem:[#allocation61_spill] sm:$0xff] %v5872_v48  ;;  %v5877_v41 = vmax.bf16 %v7909_v60, %v5145_v49  ;;  %v5892_v33 = vmax.bf16 %v7912_v1, %v7662_v37  ;;  %v7914_v48 = vshrl.u32 %v7913_v40, 16  ;;  %v7915_v60 = vshrl.u32 %v5175_v34, 16 }
  0xae   :  { %v5882_v18 = vmax.bf16 %v7910_v17, %v5149_v50  ;;  %v5887_v35 = vmax.bf16 %v7911_v19, %v5153_v43  ;;  %v7916_v17 = vshrl.u32 %v7663_v52, 16  ;;  %v7917_v19 = vshrl.u32 %v7664_v39, 16 }
  0xaf   :  { %v5897_v49 = vmax.bf16 %v7914_v48, %v7913_v40  ;;  %v5902_v50 = vmax.bf16 %v7915_v60, %v5175_v34  ;;  %v7919_v1 = vshrl.u32 %v5197_v53, 16  ;;  %v7921_v40 = vshrl.u32 %v5199_v6, 16 }
  0xb0   :  { %v5907_v43 = vmax.bf16 %v7916_v17, %v7663_v52  ;;  %v5912_v37 = vmax.bf16 %v7917_v19, %v7664_v39  ;;  %v7923_v60 = vshrl.u32 %v5201_v7, 16  ;;  %v7924_v17 = vshrl.u32 %v5203_v8, 16 }
  0xb1   :  { %v5917_v48 = vmax.bf16 %v7919_v1, %v5197_v53  ;;  %v5922_v34 = vmax.bf16 %v7921_v40, %v5199_v6  ;;  %v7925_v19 = vshrl.u32 %v5214_v62, 16  ;;  %v3749_v1 = vmov 1935823168  }
  0xb2   :  { %7918 = vst [vmem:[#allocation62_spill] sm:$0xff] %v5912_v37  ;;  %v5927_v52 = vmax.bf16 %v7923_v60, %v5201_v7  ;;  %v5932_v39 = vmax.bf16 %v7924_v17, %v5203_v8  ;;  %v7926_v37 = vlaneseq  ;;  %v7927_v40 = vshrl.u32 %v5216_v63, 16 }
  0xb3   :  { %7920 = vst [vmem:[#allocation63_spill] sm:$0xff] %v5917_v48  ;;  %7922 = vst [vmem:[#allocation64_spill] sm:$0xff] %v5922_v34  ;;  %v5937_v53 = vmax.bf16 %v7925_v19, %v5214_v62  ;;  %v1417_v48 = vunpack.c.l.s4 %v3749_v1  ;;  %v7928_v7 = vshrl.u32 %v5218_v13, 16  ;;  %v7929_v8 = vshrl.u32 %v7665_v58, 16 }
  0xb4   :  { %v1420_v6 = vshrl.u32 %v7926_v37, 7  ;;  %v5943_v34 = vmax.bf16 %v7927_v40, %v5216_v63  ;;  %v7930_v62 = vshrl.u32 %v5231_v10, 16  ;;  %v7931_v37 = vshrl.u32 %v5233_v20, 16 }
  0xb5   :  { %v5948_v60 = vmax.bf16 %v7928_v7, %v5218_v13  ;;  %v5953_v17 = vmax.bf16 %v7929_v8, %v7665_v58  ;;  %v7932_v1 = vshrl.u32 %v5235_v11, 16  ;;  %v7933_v40 = vshrl.u32 %v5237_v26, 16 }
  0xb6   :  { %v5958_v19 = vmax.bf16 %v7930_v62, %v5231_v10  ;;  %v5963_v63 = vmax.bf16 %v7931_v37, %v5233_v20  ;;  %v1418_v7 = vunpack.c.0.s8 %v1417_v48  ;;  %v7934_v10 = vshrl.u32 %v5239_v15, 16 }
  0xb7   :  { %v5968_v13 = vmax.bf16 %v7932_v1, %v5235_v11  ;;  %v5973_v58 = vmax.bf16 %v7933_v40, %v5237_v26  ;;  %v7935_v20 = vshrl.u32 %v5241_v14, 16  ;;  %v7936_v11 = vshrl.u32 %v5243_v28, 16 }
  0xb8   :  { %v5978_v8 = vmax.bf16 %v7934_v10, %v5239_v15  ;;  %v7937_v26 = vshrl.u32 %v5245_v29, 16  ;;  %v7938_v48 = vshrl.u32 %v5247_v30, 16  ;;  %v7939_v40 = vshrl.u32 %v5249_v16, 16 }
  0xb9   :  { %v5983_v62 = vmax.bf16 %v7935_v20, %v5241_v14  ;;  %v5988_v37 = vmax.bf16 %v7936_v11, %v5243_v28  ;;  %v7940_v10 = vshrl.u32 %v5251_v21, 16  ;;  %v6010_v20 = vsub.s32 %v1418_v7, %v1420_v6 }
  0xba   :  { %v5993_v1 = vmax.bf16 %v7937_v26, %v5245_v29  ;;  %v5998_v15 = vmax.bf16 %v7938_v48, %v5247_v30  ;;  %v6003_v14 = vmax.bf16 %v7939_v40, %v5249_v16  ;;  %v7941_v29 = vshrl.u32 %v5253_v22, 16 }
  0xbb   :  { %v6008_v28 = vmax.bf16 %v7940_v10, %v5251_v21  ;;  %v7942_v30 = vshrl.u32 %v5255_v23, 16  ;;  %v7943_v16 = vshrl.u32 %v5257_v25, 16  ;;  %v7944_v21 = vshrl.u32 %v5259_v31, 16 }
  0xbc   :  { %v6015_v11 = vmax.bf16 %v7941_v29, %v5253_v22  ;;  %v1422_v7 = vrot.slane %v5392_v46, %v6010_v20  ;;  %v1436_v22 = vrot.slane %v5397_v47, %v6010_v20  ;;  %v1464_v40 = vrot.slane %v5407_v27, %v6010_v20 }
  0xbd   :  { %v6020_v26 = vmax.bf16 %v7942_v30, %v5255_v23  ;;  %v6025_v48 = vmax.bf16 %v7943_v16, %v5257_v25  ;;  %v6030_v6 = vmax.bf16 %v7944_v21, %v5259_v31  ;;  %v1450_v23 = vrot.slane %v5402_v51, %v6010_v20 }
  0xbe   :  { %v1478_v25 = vrot.slane %v5412_v44, %v6010_v20  ;;  %v1492_v10 = vrot.slane %v5417_v45, %v6010_v20  ;;  %v1506_v31 = vrot.slane %v5422_v54, %v6010_v20  ;;  %v1520_v46 = vrot.slane %v5427_v55, %v6010_v20 }
  0xbf   :  { %v6049_v47 = vrot.slane %v1422_v7, %v6010_v20  ;;  %v6052_v51 = vrot.slane %v1436_v22, %v6010_v20  ;;  %v6055_v27 = vrot.slane %v1450_v23, %v6010_v20  ;;  %v6058_v44 = vrot.slane %v1464_v40, %v6010_v20  ;;  %v7953_v7 = vld [vmem:[#allocation2_spill] sm:$0xff]  ;;  %v7954_v23 = vld [vmem:[#allocation3_spill] sm:$0xff] }
  0xc0   :  { %v6061_v45 = vrot.slane %v1478_v25, %v6010_v20  ;;  %v6064_v54 = vrot.slane %v1492_v10, %v6010_v20  ;;  %v6067_v55 = vrot.slane %v1506_v31, %v6010_v20  ;;  %v6070_v29 = vrot.slane %v1520_v46, %v6010_v20  ;;  %v7955_v25 = vld [vmem:[#allocation4_spill] sm:$0xff]  ;;  %v7956_v31 = vld [vmem:[#allocation5_spill] sm:$0xff] }
  0xc1   :  { %7945 = vst [vmem:[#allocation65_spill] sm:$0xff] %v6049_v47  ;;  %7946 = vst [vmem:[#allocation66_spill] sm:$0xff] %v6052_v51  ;;  %v1534_v30 = vrot.slane %v5432_v56, %v6010_v20  ;;  %v1548_v16 = vrot.slane %v5437_v57, %v6010_v20  ;;  %v1562_v21 = vrot.slane %v5442_v2, %v6010_v20  ;;  %v7957_v56 = vld [vmem:[#allocation73_spill] sm:$0xff] }
  0xc2   :  { %7947 = vst [vmem:[#allocation67_spill] sm:$0xff] %v6055_v27  ;;  %7948 = vst [vmem:[#allocation68_spill] sm:$0xff] %v6058_v44  ;;  %v1576_v22 = vrot.slane %v7953_v7, %v6010_v20  ;;  %v1590_v40 = vrot.slane %v7954_v23, %v6010_v20  ;;  %v1604_v10 = vrot.slane %v7955_v25, %v6010_v20 }
  0xc3   :  { %7949 = vst [vmem:[#allocation69_spill] sm:$0xff] %v6061_v45  ;;  %7950 = vst [vmem:[#allocation70_spill] sm:$0xff] %v6064_v54  ;;  %v1618_v46 = vrot.slane %v7956_v31, %v6010_v20  ;;  %v6089_v57 = vrot.slane %v1534_v30, %v6010_v20  ;;  %v6092_v2 = vrot.slane %v1548_v16, %v6010_v20  ;;  %v7966_v16 = vld [vmem:[#allocation77_spill] sm:$0xff] }
  0xc4   :  { %7951 = vst [vmem:[#allocation71_spill] sm:$0xff] %v6067_v55  ;;  %7952 = vst [vmem:[#allocation72_spill] sm:$0xff] %v6070_v29  ;;  %v1632_v29 = vrot.slane %v7957_v56, %v6010_v20  ;;  %v6095_v7 = vrot.slane %v1562_v21, %v6010_v20  ;;  %v6098_v23 = vrot.slane %v1576_v22, %v6010_v20  ;;  %v7967_v21 = vld [vmem:[#allocation78_spill] sm:$0xff]  ;;  %v7968_v22 = vld [vmem:[#allocation79_spill] sm:$0xff] }
  0xc5   :  { %7958 = vst [vmem:[#allocation74_spill] sm:$0xff] %v6089_v57  ;;  %7959 = vst [vmem:[#allocation75_spill] sm:$0xff] %v6092_v2  ;;  %v6101_v25 = vrot.slane %v1590_v40, %v6010_v20  ;;  %v6104_v31 = vrot.slane %v1604_v10, %v6010_v20  ;;  %v6107_v56 = vrot.slane %v1618_v46, %v6010_v20  ;;  %v7969_v40 = vld [vmem:[#allocation81_spill] sm:$0xff]  ;;  %v7970_v10 = vld [vmem:[#allocation82_spill] sm:$0xff] }
  0xc6   :  { %7960 = vst [vmem:[#allocation76_spill] sm:$0xff] %v6095_v7  ;;  %7961 = vst [vmem:[#allocation80_spill] sm:$0xff] %v6098_v23  ;;  %v6110_v30 = vrot.slane %v1632_v29, %v6010_v20  ;;  %v1646_v2 = vrot.slane %v7966_v16, %v6010_v20  ;;  %v1660_v7 = vrot.slane %v7967_v21, %v6010_v20  ;;  %v7971_v46 = vld [vmem:[#allocation85_spill] sm:$0xff]  ;;  %v7972_v29 = vld [vmem:[#allocation86_spill] sm:$0xff] }
  0xc7   :  { %7962 = vst [vmem:[#allocation83_spill] sm:$0xff] %v6101_v25  ;;  %7963 = vst [vmem:[#allocation84_spill] sm:$0xff] %v6104_v31  ;;  %v1674_v23 = vrot.slane %v7968_v22, %v6010_v20  ;;  %v1688_v25 = vrot.slane %v7969_v40, %v6010_v20  ;;  %v1702_v31 = vrot.slane %v7970_v10, %v6010_v20  ;;  %v7973_v16 = vld [vmem:[#allocation87_spill] sm:$0xff] }
  0xc8   :  { %7964 = vst [vmem:[#allocation89_spill] sm:$0xff] %v6107_v56  ;;  %7965 = vst [vmem:[#allocation2_spill] sm:$0xff] %v6110_v30  ;;  %v1716_v56 = vrot.slane %v7971_v46, %v6010_v20  ;;  %v1730_v30 = vrot.slane %v7972_v29, %v6010_v20  ;;  %v1744_v57 = vrot.slane %v7973_v16, %v6010_v20 }
  0xc9   :  { %v6129_v21 = vrot.slane %v1646_v2, %v6010_v20  ;;  %v6132_v22 = vrot.slane %v1660_v7, %v6010_v20  ;;  %v6135_v40 = vrot.slane %v1674_v23, %v6010_v20  ;;  %v6138_v10 = vrot.slane %v1688_v25, %v6010_v20  ;;  %v7982_v7 = vld [vmem:[#allocation88_spill] sm:$0xff]  ;;  %v7983_v23 = vld [vmem:[#allocation90_spill] sm:$0xff]  ;;  %v7984_v25 = vld [vmem:[#allocation91_spill] sm:$0xff] }
  0xca   :  { %v6141_v46 = vrot.slane %v1702_v31, %v6010_v20  ;;  %v6144_v29 = vrot.slane %v1716_v56, %v6010_v20  ;;  %v6147_v16 = vrot.slane %v1730_v30, %v6010_v20  ;;  %v6150_v2 = vrot.slane %v1744_v57, %v6010_v20  ;;  %v7985_v31 = vld [vmem:[#allocation92_spill] sm:$0xff]  ;;  %v7986_v56 = vld [vmem:[#allocation6_spill] sm:$0xff]  ;;  %v7987_v30 = vld [vmem:[#allocation7_spill] sm:$0xff] }
  0xcb   :  { %7974 = vst [vmem:[#allocation3_spill] sm:$0xff] %v6129_v21  ;;  %7975 = vst [vmem:[#allocation4_spill] sm:$0xff] %v6132_v22  ;;  %v1758_v22 = vrot.slane %v7982_v7, %v6010_v20  ;;  %v7988_v57 = vld [vmem:[#allocation8_spill] sm:$0xff]  ;;  %v7989_v7 = vld [vmem:[#allocation9_spill] sm:$0xff] }
  0xcc   :  { %7976 = vst [vmem:[#allocation5_spill] sm:$0xff] %v6135_v40  ;;  %7977 = vst [vmem:[#allocation73_spill] sm:$0xff] %v6138_v10  ;;  %v1772_v40 = vrot.slane %v7983_v23, %v6010_v20  ;;  %v1786_v10 = vrot.slane %v7984_v25, %v6010_v20  ;;  %v1856_v21 = vrot.slane %v7989_v7, %v6010_v20 }
  0xcd   :  { %7978 = vst [vmem:[#allocation77_spill] sm:$0xff] %v6141_v46  ;;  %7979 = vst [vmem:[#allocation78_spill] sm:$0xff] %v6144_v29  ;;  %v1800_v46 = vrot.slane %v7985_v31, %v6010_v20  ;;  %v1814_v29 = vrot.slane %v7986_v56, %v6010_v20  ;;  %v6169_v23 = vrot.slane %v1758_v22, %v6010_v20 }
  0xce   :  { %7980 = vst [vmem:[#allocation79_spill] sm:$0xff] %v6147_v16  ;;  %7981 = vst [vmem:[#allocation81_spill] sm:$0xff] %v6150_v2  ;;  %v1828_v16 = vrot.slane %v7987_v30, %v6010_v20  ;;  %v1842_v2 = vrot.slane %v7988_v57, %v6010_v20  ;;  %v6172_v25 = vrot.slane %v1772_v40, %v6010_v20  ;;  %v7998_v40 = vld [vmem:[#allocation10_spill] sm:$0xff] }
  0xcf   :  { %7990 = vst [vmem:[#allocation82_spill] sm:$0xff] %v6169_v23  ;;  %v6175_v31 = vrot.slane %v1786_v10, %v6010_v20  ;;  %v6178_v56 = vrot.slane %v1800_v46, %v6010_v20  ;;  %v6181_v30 = vrot.slane %v1814_v29, %v6010_v20  ;;  %v6190_v22 = vrot.slane %v1856_v21, %v6010_v20  ;;  %v7999_v10 = vld [vmem:[#allocation11_spill] sm:$0xff]  ;;  %v8000_v46 = vld [vmem:[#allocation12_spill] sm:$0xff]  ;;  %v8001_v29 = vld [vmem:[#allocation13_spill] sm:$0xff] }
  0xd0   :  { %7991 = vst [vmem:[#allocation85_spill] sm:$0xff] %v6172_v25  ;;  %v6184_v57 = vrot.slane %v1828_v16, %v6010_v20  ;;  %v6187_v7 = vrot.slane %v1842_v2, %v6010_v20  ;;  %v1870_v25 = vrot.slane %v7998_v40, %v6010_v20  ;;  %v8002_v16 = vld [vmem:[#allocation14_spill] sm:$0xff]  ;;  %v8003_v2 = vld [vmem:[#allocation15_spill] sm:$0xff]  ;;  %v8004_v21 = vld [vmem:[#allocation16_spill] sm:$0xff] }
  0xd1   :  { %7992 = vst [vmem:[#allocation86_spill] sm:$0xff] %v6175_v31  ;;  %7993 = vst [vmem:[#allocation87_spill] sm:$0xff] %v6178_v56  ;;  %v1884_v31 = vrot.slane %v7999_v10, %v6010_v20  ;;  %v1898_v56 = vrot.slane %v8000_v46, %v6010_v20  ;;  %v8005_v40 = vld [vmem:[#allocation17_spill] sm:$0xff] }
  0xd2   :  { %7994 = vst [vmem:[#allocation88_spill] sm:$0xff] %v6181_v30  ;;  %7995 = vst [vmem:[#allocation90_spill] sm:$0xff] %v6184_v57  ;;  %v1912_v30 = vrot.slane %v8001_v29, %v6010_v20  ;;  %v1926_v57 = vrot.slane %v8002_v16, %v6010_v20  ;;  %v1968_v23 = vrot.slane %v8005_v40, %v6010_v20 }
  0xd3   :  { %7996 = vst [vmem:[#allocation91_spill] sm:$0xff] %v6187_v7  ;;  %7997 = vst [vmem:[#allocation92_spill] sm:$0xff] %v6190_v22  ;;  %v1940_v7 = vrot.slane %v8003_v2, %v6010_v20  ;;  %v1954_v22 = vrot.slane %v8004_v21, %v6010_v20  ;;  %v6209_v10 = vrot.slane %v1870_v25, %v6010_v20 }
  0xd4   :  { %v6212_v46 = vrot.slane %v1884_v31, %v6010_v20  ;;  %v6215_v29 = vrot.slane %v1898_v56, %v6010_v20  ;;  %v6218_v16 = vrot.slane %v1912_v30, %v6010_v20  ;;  %v6221_v2 = vrot.slane %v1926_v57, %v6010_v20  ;;  %v8014_v31 = vld [vmem:[#allocation18_spill] sm:$0xff]  ;;  %v8015_v56 = vld [vmem:[#allocation19_spill] sm:$0xff]  ;;  %v8016_v30 = vld [vmem:[#allocation20_spill] sm:$0xff] }
  0xd5   :  { %8006 = vst [vmem:[#allocation6_spill] sm:$0xff] %v6209_v10  ;;  %v6224_v21 = vrot.slane %v1940_v7, %v6010_v20  ;;  %v6227_v40 = vrot.slane %v1954_v22, %v6010_v20  ;;  %v6230_v25 = vrot.slane %v1968_v23, %v6010_v20  ;;  %v8017_v57 = vld [vmem:[#allocation21_spill] sm:$0xff]  ;;  %v8018_v7 = vld [vmem:[#allocation22_spill] sm:$0xff]  ;;  %v8019_v22 = vld [vmem:[#allocation23_spill] sm:$0xff] }
  0xd6   :  { %8007 = vst [vmem:[#allocation7_spill] sm:$0xff] %v6212_v46  ;;  %8008 = vst [vmem:[#allocation8_spill] sm:$0xff] %v6215_v29  ;;  %v1982_v46 = vrot.slane %v8014_v31, %v6010_v20  ;;  %v1996_v29 = vrot.slane %v8015_v56, %v6010_v20  ;;  %v8020_v23 = vld [vmem:[#allocation24_spill] sm:$0xff]  ;;  %v8021_v31 = vld [vmem:[#allocation25_spill] sm:$0xff] }
  0xd7   :  { %8009 = vst [vmem:[#allocation9_spill] sm:$0xff] %v6218_v16  ;;  %8010 = vst [vmem:[#allocation10_spill] sm:$0xff] %v6221_v2  ;;  %v2010_v16 = vrot.slane %v8016_v30, %v6010_v20  ;;  %v2024_v2 = vrot.slane %v8017_v57, %v6010_v20  ;;  %v2080_v10 = vrot.slane %v8021_v31, %v6010_v20 }
  0xd8   :  { %8011 = vst [vmem:[#allocation11_spill] sm:$0xff] %v6224_v21  ;;  %8012 = vst [vmem:[#allocation12_spill] sm:$0xff] %v6227_v40  ;;  %v2038_v21 = vrot.slane %v8018_v7, %v6010_v20  ;;  %v2052_v40 = vrot.slane %v8019_v22, %v6010_v20  ;;  %v6249_v56 = vrot.slane %v1982_v46, %v6010_v20 }
  0xd9   :  { %8013 = vst [vmem:[#allocation13_spill] sm:$0xff] %v6230_v25  ;;  %v2066_v25 = vrot.slane %v8020_v23, %v6010_v20  ;;  %v6252_v30 = vrot.slane %v1996_v29, %v6010_v20  ;;  %v6255_v57 = vrot.slane %v2010_v16, %v6010_v20  ;;  %v6258_v7 = vrot.slane %v2024_v2, %v6010_v20  ;;  %v8030_v29 = vld [vmem:[#allocation26_spill] sm:$0xff]  ;;  %v8031_v16 = vld [vmem:[#allocation27_spill] sm:$0xff]  ;;  %v8032_v2 = vld [vmem:[#allocation28_spill] sm:$0xff] }
  0xda   :  { %8022 = vst [vmem:[#allocation14_spill] sm:$0xff] %v6249_v56  ;;  %v6261_v22 = vrot.slane %v2038_v21, %v6010_v20  ;;  %v6264_v23 = vrot.slane %v2052_v40, %v6010_v20  ;;  %v6270_v46 = vrot.slane %v2080_v10, %v6010_v20  ;;  %v8033_v21 = vld [vmem:[#allocation29_spill] sm:$0xff]  ;;  %v8034_v40 = vld [vmem:[#allocation30_spill] sm:$0xff]  ;;  %v8036_v10 = vld [vmem:[#allocation32_spill] sm:$0xff] }
  0xdb   :  { %8023 = vst [vmem:[#allocation15_spill] sm:$0xff] %v6252_v30  ;;  %8024 = vst [vmem:[#allocation16_spill] sm:$0xff] %v6255_v57  ;;  %v6267_v31 = vrot.slane %v2066_v25, %v6010_v20  ;;  %v2094_v30 = vrot.slane %v8030_v29, %v6010_v20  ;;  %v2108_v57 = vrot.slane %v8031_v16, %v6010_v20  ;;  %v8035_v25 = vld [vmem:[#allocation31_spill] sm:$0xff]  ;;  %v8037_v29 = vld [vmem:[#allocation33_spill] sm:$0xff] }
  0xdc   :  { %8025 = vst [vmem:[#allocation17_spill] sm:$0xff] %v6258_v7  ;;  %8026 = vst [vmem:[#allocation18_spill] sm:$0xff] %v6261_v22  ;;  %v2122_v7 = vrot.slane %v8032_v2, %v6010_v20  ;;  %v2136_v22 = vrot.slane %v8033_v21, %v6010_v20  ;;  %v2192_v56 = vrot.slane %v8037_v29, %v6010_v20 }
  0xdd   :  { %8027 = vst [vmem:[#allocation19_spill] sm:$0xff] %v6264_v23  ;;  %8028 = vst [vmem:[#allocation20_spill] sm:$0xff] %v6267_v31  ;;  %v2150_v23 = vrot.slane %v8034_v40, %v6010_v20  ;;  %v2164_v31 = vrot.slane %v8035_v25, %v6010_v20  ;;  %v6289_v16 = vrot.slane %v2094_v30, %v6010_v20 }
  0xde   :  { %8029 = vst [vmem:[#allocation21_spill] sm:$0xff] %v6270_v46  ;;  %v2178_v46 = vrot.slane %v8036_v10, %v6010_v20  ;;  %v6292_v2 = vrot.slane %v2108_v57, %v6010_v20  ;;  %v6295_v21 = vrot.slane %v2122_v7, %v6010_v20  ;;  %v6298_v40 = vrot.slane %v2136_v22, %v6010_v20  ;;  %v8046_v57 = vld [vmem:[#allocation34_spill] sm:$0xff]  ;;  %v8047_v7 = vld [vmem:[#allocation35_spill] sm:$0xff]  ;;  %v8048_v22 = vld [vmem:[#allocation36_spill] sm:$0xff] }
  0xdf   :  { %8038 = vst [vmem:[#allocation22_spill] sm:$0xff] %v6289_v16  ;;  %v6301_v25 = vrot.slane %v2150_v23, %v6010_v20  ;;  %v6304_v10 = vrot.slane %v2164_v31, %v6010_v20  ;;  %v6310_v30 = vrot.slane %v2192_v56, %v6010_v20  ;;  %v8049_v23 = vld [vmem:[#allocation37_spill] sm:$0xff]  ;;  %v8050_v31 = vld [vmem:[#allocation38_spill] sm:$0xff]  ;;  %v8052_v56 = vld [vmem:[#allocation40_spill] sm:$0xff] }
  0xe0   :  { %8039 = vst [vmem:[#allocation23_spill] sm:$0xff] %v6292_v2  ;;  %8040 = vst [vmem:[#allocation24_spill] sm:$0xff] %v6295_v21  ;;  %v6307_v29 = vrot.slane %v2178_v46, %v6010_v20  ;;  %v2206_v2 = vrot.slane %v8046_v57, %v6010_v20  ;;  %v2220_v21 = vrot.slane %v8047_v7, %v6010_v20  ;;  %v8051_v46 = vld [vmem:[#allocation39_spill] sm:$0xff]  ;;  %v8053_v57 = vld [vmem:[#allocation41_spill] sm:$0xff] }
  0xe1   :  { %8041 = vst [vmem:[#allocation25_spill] sm:$0xff] %v6298_v40  ;;  %8042 = vst [vmem:[#allocation26_spill] sm:$0xff] %v6301_v25  ;;  %v2234_v40 = vrot.slane %v8048_v22, %v6010_v20  ;;  %v2248_v25 = vrot.slane %v8049_v23, %v6010_v20  ;;  %v2304_v16 = vrot.slane %v8053_v57, %v6010_v20 }
  0xe2   :  { %8043 = vst [vmem:[#allocation27_spill] sm:$0xff] %v6304_v10  ;;  %8044 = vst [vmem:[#allocation28_spill] sm:$0xff] %v6307_v29  ;;  %v2262_v10 = vrot.slane %v8050_v31, %v6010_v20  ;;  %v2276_v29 = vrot.slane %v8051_v46, %v6010_v20  ;;  %v6329_v7 = vrot.slane %v2206_v2, %v6010_v20 }
  0xe3   :  { %8045 = vst [vmem:[#allocation29_spill] sm:$0xff] %v6310_v30  ;;  %v2290_v30 = vrot.slane %v8052_v56, %v6010_v20  ;;  %v6332_v22 = vrot.slane %v2220_v21, %v6010_v20  ;;  %v6335_v23 = vrot.slane %v2234_v40, %v6010_v20  ;;  %v6338_v31 = vrot.slane %v2248_v25, %v6010_v20  ;;  %v8062_v21 = vld [vmem:[#allocation42_spill] sm:$0xff]  ;;  %v8063_v40 = vld [vmem:[#allocation43_spill] sm:$0xff]  ;;  %v8064_v25 = vld [vmem:[#allocation44_spill] sm:$0xff] }
  0xe4   :  { %8054 = vst [vmem:[#allocation30_spill] sm:$0xff] %v6329_v7  ;;  %v6341_v46 = vrot.slane %v2262_v10, %v6010_v20  ;;  %v6344_v56 = vrot.slane %v2276_v29, %v6010_v20  ;;  %v6350_v2 = vrot.slane %v2304_v16, %v6010_v20  ;;  %v8065_v10 = vld [vmem:[#allocation45_spill] sm:$0xff]  ;;  %v8066_v29 = vld [vmem:[#allocation46_spill] sm:$0xff]  ;;  %v8068_v16 = vld [vmem:[#allocation48_spill] sm:$0xff] }
  0xe5   :  { %8055 = vst [vmem:[#allocation31_spill] sm:$0xff] %v6332_v22  ;;  %8056 = vst [vmem:[#allocation32_spill] sm:$0xff] %v6335_v23  ;;  %v6347_v57 = vrot.slane %v2290_v30, %v6010_v20  ;;  %v2318_v22 = vrot.slane %v8062_v21, %v6010_v20  ;;  %v2332_v23 = vrot.slane %v8063_v40, %v6010_v20  ;;  %v8067_v30 = vld [vmem:[#allocation47_spill] sm:$0xff]  ;;  %v8069_v21 = vld [vmem:[#allocation49_spill] sm:$0xff] }
  0xe6   :  { %8057 = vst [vmem:[#allocation33_spill] sm:$0xff] %v6338_v31  ;;  %8058 = vst [vmem:[#allocation34_spill] sm:$0xff] %v6341_v46  ;;  %v2346_v31 = vrot.slane %v8064_v25, %v6010_v20  ;;  %v2360_v46 = vrot.slane %v8065_v10, %v6010_v20  ;;  %v2416_v7 = vrot.slane %v8069_v21, %v6010_v20 }
  0xe7   :  { %8059 = vst [vmem:[#allocation35_spill] sm:$0xff] %v6344_v56  ;;  %8060 = vst [vmem:[#allocation36_spill] sm:$0xff] %v6347_v57  ;;  %v2374_v56 = vrot.slane %v8066_v29, %v6010_v20  ;;  %v2388_v57 = vrot.slane %v8067_v30, %v6010_v20  ;;  %v6369_v40 = vrot.slane %v2318_v22, %v6010_v20 }
  0xe8   :  { %8061 = vst [vmem:[#allocation37_spill] sm:$0xff] %v6350_v2  ;;  %v2402_v2 = vrot.slane %v8068_v16, %v6010_v20  ;;  %v6372_v25 = vrot.slane %v2332_v23, %v6010_v20  ;;  %v6375_v10 = vrot.slane %v2346_v31, %v6010_v20  ;;  %v6378_v29 = vrot.slane %v2360_v46, %v6010_v20  ;;  %v8078_v23 = vld [vmem:[#allocation50_spill] sm:$0xff]  ;;  %v8079_v31 = vld [vmem:[#allocation51_spill] sm:$0xff]  ;;  %v8080_v46 = vld [vmem:[#allocation52_spill] sm:$0xff] }
  0xe9   :  { %8070 = vst [vmem:[#allocation38_spill] sm:$0xff] %v6369_v40  ;;  %v6381_v30 = vrot.slane %v2374_v56, %v6010_v20  ;;  %v6384_v16 = vrot.slane %v2388_v57, %v6010_v20  ;;  %v6390_v22 = vrot.slane %v2416_v7, %v6010_v20  ;;  %v8081_v56 = vld [vmem:[#allocation53_spill] sm:$0xff]  ;;  %v8082_v57 = vld [vmem:[#allocation54_spill] sm:$0xff]  ;;  %v8083_v7 = vld [vmem:[#allocation55_spill] sm:$0xff] }
  0xea   :  { %8071 = vst [vmem:[#allocation39_spill] sm:$0xff] %v6372_v25  ;;  %8072 = vst [vmem:[#allocation40_spill] sm:$0xff] %v6375_v10  ;;  %v6387_v21 = vrot.slane %v2402_v2, %v6010_v20  ;;  %v2430_v25 = vrot.slane %v8078_v23, %v6010_v20  ;;  %v2444_v10 = vrot.slane %v8079_v31, %v6010_v20  ;;  %v8084_v23 = vld [vmem:[#allocation56_spill] sm:$0xff] }
  0xeb   :  { %8073 = vst [vmem:[#allocation41_spill] sm:$0xff] %v6378_v29  ;;  %8074 = vst [vmem:[#allocation42_spill] sm:$0xff] %v6381_v30  ;;  %v2458_v29 = vrot.slane %v8080_v46, %v6010_v20  ;;  %v2472_v30 = vrot.slane %v8081_v56, %v6010_v20  ;;  %v2500_v2 = vrot.slane %v5777_v12, %v6010_v20 }
  0xec   :  { %8075 = vst [vmem:[#allocation43_spill] sm:$0xff] %v6384_v16  ;;  %8076 = vst [vmem:[#allocation44_spill] sm:$0xff] %v6387_v21  ;;  %v2486_v16 = vrot.slane %v8082_v57, %v6010_v20  ;;  %v2528_v21 = vrot.slane %v8084_v23, %v6010_v20  ;;  %v6409_v31 = vrot.slane %v2430_v25, %v6010_v20 }
  0xed   :  { %8077 = vst [vmem:[#allocation45_spill] sm:$0xff] %v6390_v22  ;;  %v2514_v22 = vrot.slane %v8083_v7, %v6010_v20  ;;  %v6412_v46 = vrot.slane %v2444_v10, %v6010_v20  ;;  %v6415_v56 = vrot.slane %v2458_v29, %v6010_v20  ;;  %v6418_v57 = vrot.slane %v2472_v30, %v6010_v20  ;;  %v8089_v10 = vld [vmem:[#allocation57_spill] sm:$0xff] }
  0xee   :  { %v6421_v12 = vrot.slane %v2486_v16, %v6010_v20  ;;  %v6424_v7 = vrot.slane %v2500_v2, %v6010_v20  ;;  %v6430_v25 = vrot.slane %v2528_v21, %v6010_v20  ;;  %v2556_v29 = vrot.slane %v5797_v61, %v6010_v20  ;;  %v8090_v2 = vld [vmem:[#allocation58_spill] sm:$0xff]  ;;  %v8182_v55 = vld [vmem:[#allocation35_spill] sm:$0xff] }
  0xef   :  { %8085 = vst [vmem:[#allocation46_spill] sm:$0xff] %v6412_v46  ;;  %v6427_v23 = vrot.slane %v2514_v22, %v6010_v20  ;;  %v2542_v46 = vrot.slane %v8089_v10, %v6010_v20  ;;  %v2570_v30 = vrot.slane %v5802_v42, %v6010_v20  ;;  %v2584_v16 = vrot.slane %v5807_v3, %v6010_v20  ;;  %v8091_v10 = vld [vmem:[#allocation59_spill] sm:$0xff] }
  0xf0   :  { %8086 = vst [vmem:[#allocation47_spill] sm:$0xff] %v6424_v7  ;;  %8088 = vst [vmem:[#allocation49_spill] sm:$0xff] %v6430_v25  ;;  %v2598_v7 = vrot.slane %v8090_v2, %v6010_v20  ;;  %v2612_v22 = vrot.slane %v5817_v5, %v6010_v20  ;;  %v2626_v21 = vrot.slane %v5822_v9, %v6010_v20 }
  0xf1   :  { %8087 = vst [vmem:[#allocation48_spill] sm:$0xff] %v6427_v23  ;;  %v2640_v25 = vrot.slane %v8091_v10, %v6010_v20  ;;  %v6449_v61 = vrot.slane %v2542_v46, %v6010_v20  ;;  %v6452_v42 = vrot.slane %v2556_v29, %v6010_v20  ;;  %v6455_v3 = vrot.slane %v2570_v30, %v6010_v20  ;;  %v8094_v29 = vld [vmem:[#allocation60_spill] sm:$0xff] }
  0xf2   :  { %v6458_v2 = vrot.slane %v2584_v16, %v6010_v20  ;;  %v6461_v5 = vrot.slane %v2598_v7, %v6010_v20  ;;  %v6464_v9 = vrot.slane %v2612_v22, %v6010_v20  ;;  %v6467_v10 = vrot.slane %v2626_v21, %v6010_v20  ;;  %v8186_v47 = vld [vmem:[#allocation40_spill] sm:$0xff]  ;;  %v8187_v51 = vld [vmem:[#allocation41_spill] sm:$0xff] }
  0xf3   :  { %8092 = vst [vmem:[#allocation50_spill] sm:$0xff] %v6452_v42  ;;  %v6470_v46 = vrot.slane %v2640_v25, %v6010_v20  ;;  %v2654_v42 = vrot.slane %v8094_v29, %v6010_v20  ;;  %v2668_v30 = vrot.slane %v5837_v59, %v6010_v20  ;;  %v2682_v16 = vrot.slane %v5842_v32, %v6010_v20  ;;  %v8189_v44 = vld [vmem:[#allocation43_spill] sm:$0xff] }
  0xf4   :  { %v2696_v7 = vrot.slane %v5847_v38, %v6010_v20  ;;  %v2710_v22 = vrot.slane %v5852_v0, %v6010_v20  ;;  %v2724_v21 = vrot.slane %v5857_v4, %v6010_v20  ;;  %v2738_v25 = vrot.slane %v5862_v36, %v6010_v20  ;;  %v8191_v54 = vld [vmem:[#allocation45_spill] sm:$0xff] }
  0xf5   :  { %8093 = vst [vmem:[#allocation51_spill] sm:$0xff] %v6470_v46  ;;  %v2752_v29 = vrot.slane %v5867_v24, %v6010_v20  ;;  %v6489_v59 = vrot.slane %v2654_v42, %v6010_v20  ;;  %v6492_v32 = vrot.slane %v2668_v30, %v6010_v20  ;;  %v6495_v38 = vrot.slane %v2682_v16, %v6010_v20  ;;  %v8097_v30 = vld [vmem:[#allocation61_spill] sm:$0xff] }
  0xf6   :  { %v6498_v0 = vrot.slane %v2696_v7, %v6010_v20  ;;  %v6501_v4 = vrot.slane %v2710_v22, %v6010_v20  ;;  %v6504_v36 = vrot.slane %v2724_v21, %v6010_v20  ;;  %v6507_v24 = vrot.slane %v2738_v25, %v6010_v20 }
  0xf7   :  { %8095 = vst [vmem:[#allocation52_spill] sm:$0xff] %v6489_v59  ;;  %8096 = vst [vmem:[#allocation53_spill] sm:$0xff] %v6492_v32  ;;  %v6510_v42 = vrot.slane %v2752_v29, %v6010_v20  ;;  %v2766_v32 = vrot.slane %v8097_v30, %v6010_v20  ;;  %v2780_v16 = vrot.slane %v5877_v41, %v6010_v20  ;;  %v8193_v40 = vld [vmem:[#allocation47_spill] sm:$0xff]  ;;  %v8194_v27 = vld [vmem:[#allocation49_spill] sm:$0xff] }
  0xf8   :  { %v2794_v7 = vrot.slane %v5882_v18, %v6010_v20  ;;  %v2808_v22 = vrot.slane %v5887_v35, %v6010_v20  ;;  %v2822_v21 = vrot.slane %v5892_v33, %v6010_v20  ;;  %v2836_v25 = vrot.slane %v5897_v49, %v6010_v20  ;;  %v8218_v59 = vld [vmem:[#allocation72_spill] sm:$0xff] }
  0xf9   :  { %v2850_v29 = vrot.slane %v5902_v50, %v6010_v20  ;;  %v2864_v30 = vrot.slane %v5907_v43, %v6010_v20  ;;  %v6529_v41 = vrot.slane %v2766_v32, %v6010_v20  ;;  %v6532_v18 = vrot.slane %v2780_v16, %v6010_v20  ;;  %v8101_v16 = vld [vmem:[#allocation62_spill] sm:$0xff] }
  0xfa   :  { %v6535_v35 = vrot.slane %v2794_v7, %v6010_v20  ;;  %v6538_v33 = vrot.slane %v2808_v22, %v6010_v20  ;;  %v6541_v49 = vrot.slane %v2822_v21, %v6010_v20  ;;  %v6544_v50 = vrot.slane %v2836_v25, %v6010_v20  ;;  %v8102_v7 = vld [vmem:[#allocation63_spill] sm:$0xff]  ;;  %v8103_v22 = vld [vmem:[#allocation64_spill] sm:$0xff]  ;;  %v8195_v45 = vld [vmem:[#allocation50_spill] sm:$0xff] }
  0xfb   :  { %8098 = vst [vmem:[#allocation54_spill] sm:$0xff] %v6532_v18  ;;  %v6547_v43 = vrot.slane %v2850_v29, %v6010_v20  ;;  %v6550_v32 = vrot.slane %v2864_v30, %v6010_v20  ;;  %v2878_v18 = vrot.slane %v8101_v16, %v6010_v20  ;;  %v2920_v21 = vrot.slane %v5927_v52, %v6010_v20 }
  0xfc   :  { %8099 = vst [vmem:[#allocation55_spill] sm:$0xff] %v6535_v35  ;;  %8100 = vst [vmem:[#allocation56_spill] sm:$0xff] %v6538_v33  ;;  %v2892_v35 = vrot.slane %v8102_v7, %v6010_v20  ;;  %v2906_v33 = vrot.slane %v8103_v22, %v6010_v20  ;;  %v2934_v25 = vrot.slane %v5932_v39, %v6010_v20 }
  0xfd   :  { %v2948_v29 = vrot.slane %v5937_v53, %v6010_v20  ;;  %v2962_v30 = vrot.slane %v5943_v34, %v6010_v20  ;;  %v2976_v16 = vrot.slane %v5948_v60, %v6010_v20  ;;  %v6569_v7 = vrot.slane %v2878_v18, %v6010_v20 }
  0xfe   :  { %v6572_v22 = vrot.slane %v2892_v35, %v6010_v20  ;;  %v6575_v52 = vrot.slane %v2906_v33, %v6010_v20  ;;  %v6578_v39 = vrot.slane %v2920_v21, %v6010_v20  ;;  %v6581_v53 = vrot.slane %v2934_v25, %v6010_v20 }
  0xff   :  { %8104 = vst [vmem:[#allocation57_spill] sm:$0xff] %v6569_v7  ;;  %v6584_v34 = vrot.slane %v2948_v29, %v6010_v20  ;;  %v6587_v60 = vrot.slane %v2962_v30, %v6010_v20  ;;  %v6590_v18 = vrot.slane %v2976_v16, %v6010_v20  ;;  %v2990_v35 = vrot.slane %v5953_v17, %v6010_v20 }
 0x100   :  { %8105 = vst [vmem:[#allocation58_spill] sm:$0xff] %v6572_v22  ;;  %8106 = vst [vmem:[#allocation59_spill] sm:$0xff] %v6575_v52  ;;  %v3004_v33 = vrot.slane %v5958_v19, %v6010_v20  ;;  %v3018_v21 = vrot.slane %v5963_v63, %v6010_v20  ;;  %v3032_v25 = vrot.slane %v5968_v13, %v6010_v20  ;;  %v8234_v52 = vld [vmem:[#allocation89_spill] sm:$0xff] }
 0x101   :  { %8107 = vst [vmem:[#allocation60_spill] sm:$0xff] %v6578_v39  ;;  %8108 = vst [vmem:[#allocation61_spill] sm:$0xff] %v6581_v53  ;;  %v3046_v29 = vrot.slane %v5973_v58, %v6010_v20  ;;  %v3060_v30 = vrot.slane %v5978_v8, %v6010_v20  ;;  %v3074_v16 = vrot.slane %v5983_v62, %v6010_v20 }
 0x102   :  { %8109 = vst [vmem:[#allocation62_spill] sm:$0xff] %v6584_v34  ;;  %8110 = vst [vmem:[#allocation63_spill] sm:$0xff] %v6587_v60  ;;  %v3088_v17 = vrot.slane %v5988_v37, %v6010_v20  ;;  %v6609_v19 = vrot.slane %v2990_v35, %v6010_v20  ;;  %v6612_v63 = vrot.slane %v3004_v33, %v6010_v20 }
 0x103   :  { %8111 = vst [vmem:[#allocation64_spill] sm:$0xff] %v6590_v18  ;;  %v6615_v13 = vrot.slane %v3018_v21, %v6010_v20  ;;  %v6618_v58 = vrot.slane %v3032_v25, %v6010_v20  ;;  %v6621_v8 = vrot.slane %v3046_v29, %v6010_v20  ;;  %v6624_v62 = vrot.slane %v3060_v30, %v6010_v20 }
 0x104   :  { %8112 = vst [vmem:[#allocation93_spill] sm:$0xff] %v6609_v19  ;;  %8113 = vst [vmem:[#allocation94_spill] sm:$0xff] %v6612_v63  ;;  %v6627_v37 = vrot.slane %v3074_v16, %v6010_v20  ;;  %v6630_v35 = vrot.slane %v3088_v17, %v6010_v20  ;;  %v3102_v33 = vrot.slane %v5993_v1, %v6010_v20  ;;  %v8214_v19 = vld [vmem:[#allocation70_spill] sm:$0xff]  ;;  %v8216_v63 = vld [vmem:[#allocation71_spill] sm:$0xff] }
 0x105   :  { %8114 = vst [vmem:[#allocation95_spill] sm:$0xff] %v6615_v13  ;;  %8115 = vst [vmem:[#allocation96_spill] sm:$0xff] %v6618_v58  ;;  %v3116_v21 = vrot.slane %v5998_v15, %v6010_v20  ;;  %v3130_v25 = vrot.slane %v6003_v14, %v6010_v20  ;;  %v3144_v29 = vrot.slane %v6008_v28, %v6010_v20  ;;  %v8215_v46 = vunpack.c.l.b16 %v8214_v19 }
 0x106   :  { %8116 = vst [vmem:[#allocation97_spill] sm:$0xff] %v6621_v8  ;;  %8117 = vst [vmem:[#allocation98_spill] sm:$0xff] %v6624_v62  ;;  %v3158_v30 = vrot.slane %v6015_v11, %v6010_v20  ;;  %v3172_v16 = vrot.slane %v6020_v26, %v6010_v20  ;;  %v3186_v17 = vrot.slane %v6025_v48, %v6010_v20  ;;  %v8217_v58 = vunpack.c.l.b16 %v8216_v63 }
 0x107   :  { %8118 = vst [vmem:[#allocation99_spill] sm:$0xff] %v6627_v37  ;;  %8119 = vst [vmem:[#allocation100_spill] sm:$0xff] %v6630_v35  ;;  %v3200_v1 = vrot.slane %v6030_v6, %v6010_v20  ;;  %v6649_v15 = vrot.slane %v3102_v33, %v6010_v20  ;;  %v6652_v14 = vrot.slane %v3116_v21, %v6010_v20  ;;  %v8208_v35 = vld [vmem:[#allocation67_spill] sm:$0xff]  ;;  %v3348_v13 = vrot.slane %v8215_v46, 3 }
 0x108   :  { %v6655_v28 = vrot.slane %v3130_v25, %v6010_v20  ;;  %v6658_v11 = vrot.slane %v3144_v29, %v6010_v20  ;;  %v6661_v26 = vrot.slane %v3158_v30, %v6010_v20  ;;  %v6664_v48 = vrot.slane %v3172_v16, %v6010_v20  ;;  %v8206_v25 = vld [vmem:[#allocation66_spill] sm:$0xff]  ;;  %v8228_v46 = vld [vmem:[#allocation83_spill] sm:$0xff] }
 0x109   :  { %8120 = vst [vmem:[#allocation101_spill] sm:$0xff] %v6649_v15  ;;  %8121 = vst [vmem:[#allocation102_spill] sm:$0xff] %v6652_v14  ;;  %v6667_v6 = vrot.slane %v3186_v17, %v6010_v20  ;;  %v6670_v33 = vrot.slane %v3200_v1, %v6010_v20  ;;  %v8174_v20 = vld [vmem:[#allocation27_spill] sm:$0xff]  ;;  %v8197_v17 = vld [vmem:[#allocation54_spill] sm:$0xff]  ;;  %v8207_v37 = vunpack.c.l.b16 %v8206_v25  ;;  %v8209_v18 = vunpack.c.l.b16 %v8208_v35 }
 0x10a   :  { %8122 = vst [vmem:[#allocation103_spill] sm:$0xff] %v6655_v28  ;;  %8123 = vst [vmem:[#allocation104_spill] sm:$0xff] %v6658_v11  ;;  %v8198_v11 = vld [vmem:[#allocation55_spill] sm:$0xff]  ;;  %v8199_v1 = vld [vmem:[#allocation56_spill] sm:$0xff]  ;;  %v3351_v8 = vrot.slane %v8217_v58, 2  ;;  %v8219_v62 = vunpack.c.l.b16 %v8218_v59  ;;  %v8229_v7 = vunpack.c.l.b16 %v8228_v46 }
 0x10b   :  { %8124 = vst [vmem:[#allocation105_spill] sm:$0xff] %v6661_v26  ;;  %8125 = vst [vmem:[#allocation106_spill] sm:$0xff] %v6664_v48  ;;  %v8192_v48 = vld [vmem:[#allocation46_spill] sm:$0xff]  ;;  %v3336_v28 = vrot.slane %v8207_v37, 7  ;;  %v3339_v29 = vrot.slane %v8209_v18, 6  ;;  %v8210_v15 = vld [vmem:[#allocation68_spill] sm:$0xff] }
 0x10c   :  { %8126 = vst [vmem:[#allocation107_spill] sm:$0xff] %v6667_v6  ;;  %8127 = vst [vmem:[#allocation108_spill] sm:$0xff] %v6670_v33  ;;  %v8184_v6 = vld [vmem:[#allocation37_spill] sm:$0xff]  ;;  %v8185_v33 = vld [vmem:[#allocation39_spill] sm:$0xff]  ;;  %v8211_v30 = vunpack.c.l.b16 %v8210_v15  ;;  %v3354_v23 = vrot.slane %v8219_v62, 1  ;;  %v3363_v63 = vrot.slane %v8229_v7, 4 }
 0x10d   :  { %v8212_v26 = vld [vmem:[#allocation69_spill] sm:$0xff]  ;;  %v8220_v25 = vld [vmem:[#allocation75_spill] sm:$0xff]  ;;  %v8230_v59 = vld [vmem:[#allocation74_spill] sm:$0xff] }
 0x10e   :  { %v3342_v14 = vrot.slane %v8211_v30, 5  ;;  %v8213_v21 = vunpack.c.l.b16 %v8212_v26  ;;  %v8221_v37 = vunpack.c.l.b16 %v8220_v25  ;;  %v8222_v35 = vld [vmem:[#allocation65_spill] sm:$0xff]  ;;  %v8224_v30 = vld [vmem:[#allocation76_spill] sm:$0xff]  ;;  %v8231_v62 = vunpack.c.l.b16 %v8230_v59 }
 0x10f   :  { %v8223_v18 = vunpack.c.l.b16 %v8222_v35  ;;  %v8225_v34 = vunpack.c.l.b16 %v8224_v30  ;;  %v8238_v7 = vld [vmem:[#allocation4_spill] sm:$0xff]  ;;  %v8240_v59 = vld [vmem:[#allocation5_spill] sm:$0xff] }
 0x110   :  { %v3345_v16 = vrot.slane %v8213_v21, 4  ;;  %v3357_v60 = vrot.slane %v8221_v37, 7  ;;  %v8226_v21 = vld [vmem:[#allocation80_spill] sm:$0xff]  ;;  %v8239_v22 = vunpack.c.l.b16 %v8238_v7 }
 0x111   :  { %v3338_v15 = vsel %vm3337_vm0, %v3336_v28, %v8223_v18  ;;  %v3359_v26 = vrot.slane %v8225_v34, 6  ;;  %v8227_v53 = vunpack.c.l.b16 %v8226_v21  ;;  %v8232_v37 = vld [vmem:[#allocation84_spill] sm:$0xff]  ;;  %v8235_v28 = vunpack.c.l.b16 %v8234_v52 }
 0x112   :  { %v3341_v58 = vsel %vm3340_vm1, %v3339_v29, %v3338_v15  ;;  %v3358_v25 = vsel %vm3337_vm0, %v3357_v60, %v8231_v62  ;;  %v8233_v39 = vunpack.c.l.b16 %v8232_v37  ;;  %v3371_v29 = vrot.slane %v8239_v22, 7  ;;  %v8242_v37 = vld [vmem:[#allocation73_spill] sm:$0xff] }
 0x113   :  { %v3361_v19 = vrot.slane %v8227_v53, 5  ;;  %v3367_v18 = vrot.slane %v8235_v28, 2  ;;  %v3344_v34 = vsel %vm3343_vm2, %v3342_v14, %v3341_v58  ;;  %v3360_v30 = vsel %vm3340_vm1, %v3359_v26, %v3358_v25  ;;  %v8236_v53 = vld [vmem:[#allocation2_spill] sm:$0xff]  ;;  %v8244_v58 = vld [vmem:[#allocation3_spill] sm:$0xff] }
 0x114   :  { %v3365_v35 = vrot.slane %v8233_v39, 3  ;;  %v8237_v21 = vunpack.c.l.b16 %v8236_v53  ;;  %v3347_v15 = vsel %vm3346_vm3, %v3345_v16, %v3344_v34  ;;  %v8241_v62 = vunpack.c.l.b16 %v8240_v59 }
 0x115   :  { %v3362_v60 = vsel %vm3343_vm2, %v3361_v19, %v3360_v30  ;;  %v8243_v52 = vunpack.c.l.b16 %v8242_v37  ;;  %v3350_v14 = vsel %vm3349_vm4, %v3348_v13, %v3347_v15  ;;  %v8245_v25 = vunpack.c.l.b16 %v8244_v58  ;;  %v8248_v30 = vld [vmem:[#allocation78_spill] sm:$0xff] }
 0x116   :  { %v3369_v46 = vrot.slane %v8237_v21, 1  ;;  %v3373_v39 = vrot.slane %v8241_v62, 6  ;;  %v3364_v26 = vsel %vm3346_vm3, %v3363_v63, %v3362_v60  ;;  %v8246_v21 = vld [vmem:[#allocation77_spill] sm:$0xff]  ;;  %v3353_v16 = vsel %vm3352_vm5, %v3351_v8, %v3350_v14 }
 0x117   :  { %v3375_v28 = vrot.slane %v8243_v52, 5  ;;  %v3372_v53 = vsel %vm3337_vm0, %v3371_v29, %v8245_v25  ;;  %v8247_v22 = vunpack.c.l.b16 %v8246_v21  ;;  %v3366_v19 = vsel %vm3349_vm4, %v3365_v35, %v3364_v26  ;;  %v8250_v29 = vld [vmem:[#allocation79_spill] sm:$0xff]  ;;  %v8252_v35 = vld [vmem:[#allocation81_spill] sm:$0xff] }
 0x118   :  { %v3374_v34 = vsel %vm3340_vm1, %v3373_v39, %v3372_v53  ;;  %v8249_v59 = vunpack.c.l.b16 %v8248_v30  ;;  %v6858_v13 = vsel %vm3355_vm6, %v3354_v23, %v3353_v16  ;;  %v3368_v63 = vsel %vm3352_vm5, %v3367_v18, %v3366_v19  ;;  %v8254_v26 = vld [vmem:[#allocation85_spill] sm:$0xff]  ;;  %v8256_v53 = vld [vmem:[#allocation86_spill] sm:$0xff]  ;;  %v8260_v19 = vld [vmem:[#allocation88_spill] sm:$0xff] }
 0x119   :  { %v3377_v7 = vrot.slane %v8247_v22, 4  ;;  %v3376_v15 = vsel %vm3343_vm2, %v3375_v28, %v3374_v34  ;;  %v8251_v60 = vunpack.c.l.b16 %v8250_v29  ;;  %v6865_v52 = vsel %vm3355_vm6, %v3369_v46, %v3368_v63  ;;  %v8258_v28 = vld [vmem:[#allocation87_spill] sm:$0xff] }
 0x11a   :  { %v3379_v62 = vrot.slane %v8249_v59, 3  ;;  %v8253_v39 = vunpack.c.l.b16 %v8252_v35  ;;  %v8255_v58 = vunpack.c.l.b16 %v8254_v26  ;;  %v8257_v18 = vunpack.c.l.b16 %v8256_v53  ;;  %v8266_v35 = vld [vmem:[#allocation91_spill] sm:$0xff] }
 0x11b   :  { %v3381_v37 = vrot.slane %v8251_v60, 2  ;;  %v3378_v8 = vsel %vm3346_vm3, %v3377_v7, %v3376_v15  ;;  %v8259_v22 = vunpack.c.l.b16 %v8258_v28  ;;  %v8261_v34 = vunpack.c.l.b16 %v8260_v19  ;;  %v8262_v7 = vld [vmem:[#allocation82_spill] sm:$0xff]  ;;  %v8271_v28 = vld [vmem:[#allocation7_spill] sm:$0xff] }
 0x11c   :  { %v3383_v14 = vrot.slane %v8253_v39, 1  ;;  %v3385_v25 = vrot.slane %v8255_v58, 7  ;;  %v3380_v23 = vsel %vm3349_vm4, %v3379_v62, %v3378_v8  ;;  %v3387_v21 = vrot.slane %v8257_v18, 6  ;;  %v8264_v15 = vld [vmem:[#allocation90_spill] sm:$0xff]  ;;  %v8269_v58 = vld [vmem:[#allocation92_spill] sm:$0xff] }
 0x11d   :  { %v3389_v16 = vrot.slane %v8259_v22, 5  ;;  %v3391_v46 = vrot.slane %v8261_v34, 4  ;;  %v3382_v30 = vsel %vm3352_vm5, %v3381_v37, %v3380_v23  ;;  %v8263_v59 = vunpack.c.l.b16 %v8262_v7  ;;  %v8275_v7 = vld [vmem:[#allocation9_spill] sm:$0xff] }
 0x11e   :  { %v8265_v29 = vunpack.c.l.b16 %v8264_v15  ;;  %v8267_v62 = vunpack.c.l.b16 %v8266_v35  ;;  %v6888_v39 = vsel %vm3355_vm6, %v3383_v14, %v3382_v30  ;;  %v8270_v53 = vunpack.c.l.b16 %v8269_v58  ;;  %v8281_v58 = vld [vmem:[#allocation11_spill] sm:$0xff] }
 0x11f   :  { %v3386_v63 = vsel %vm3337_vm0, %v3385_v25, %v8263_v59  ;;  %8268 = vst [vmem:[#allocation27_spill] sm:$0xff] %v6888_v39  ;;  %v8272_v37 = vunpack.c.l.b16 %v8271_v28  ;;  %v8273_v25 = vld [vmem:[#allocation8_spill] sm:$0xff]  ;;  %v8276_v59 = vunpack.c.l.b16 %v8275_v7  ;;  %v8285_v7 = vld [vmem:[#allocation13_spill] sm:$0xff] }
 0x120   :  { %v3393_v60 = vrot.slane %v8265_v29, 3  ;;  %v3395_v8 = vrot.slane %v8267_v62, 2  ;;  %v3388_v26 = vsel %vm3340_vm1, %v3387_v21, %v3386_v63  ;;  %v3397_v18 = vrot.slane %v8270_v53, 1  ;;  %v8277_v29 = vld [vmem:[#allocation10_spill] sm:$0xff] }
 0x121   :  { %v3399_v23 = vrot.slane %v8272_v37, 7  ;;  %v3390_v22 = vsel %vm3343_vm2, %v3389_v16, %v3388_v26  ;;  %v8274_v19 = vunpack.c.l.b16 %v8273_v25  ;;  %v3403_v15 = vrot.slane %v8276_v59, 5  ;;  %v8279_v21 = vld [vmem:[#allocation6_spill] sm:$0xff]  ;;  %v8283_v37 = vld [vmem:[#allocation12_spill] sm:$0xff] }
 0x122   :  { %v8278_v35 = vunpack.c.l.b16 %v8277_v29  ;;  %v3392_v30 = vsel %vm3346_vm3, %v3391_v46, %v3390_v22  ;;  %v8280_v63 = vunpack.c.l.b16 %v8279_v21  ;;  %v8282_v53 = vunpack.c.l.b16 %v8281_v58  ;;  %v8289_v21 = vld [vmem:[#allocation16_spill] sm:$0xff] }
 0x123   :  { %v3401_v34 = vrot.slane %v8274_v19, 6  ;;  %v8284_v16 = vunpack.c.l.b16 %v8283_v37  ;;  %v3394_v25 = vsel %vm3349_vm4, %v3393_v60, %v3392_v30  ;;  %v8286_v59 = vunpack.c.l.b16 %v8285_v7  ;;  %v8293_v30 = vld [vmem:[#allocation14_spill] sm:$0xff] }
 0x124   :  { %v3405_v14 = vrot.slane %v8278_v35, 4  ;;  %v3400_v62 = vsel %vm3337_vm0, %v3399_v23, %v8280_v63  ;;  %v3407_v28 = vrot.slane %v8282_v53, 3  ;;  %v8287_v35 = vld [vmem:[#allocation15_spill] sm:$0xff]  ;;  %v3396_v22 = vsel %vm3352_vm5, %v3395_v8, %v3394_v25  ;;  %v8291_v53 = vld [vmem:[#allocation17_spill] sm:$0xff] }
 0x125   :  { %v3409_v26 = vrot.slane %v8284_v16, 2  ;;  %v3402_v19 = vsel %vm3340_vm1, %v3401_v34, %v3400_v62  ;;  %v3411_v29 = vrot.slane %v8286_v59, 1  ;;  %v8288_v39 = vunpack.c.l.b16 %v8287_v35 }
 0x126   :  { %v3404_v23 = vsel %vm3343_vm2, %v3403_v15, %v3402_v19  ;;  %v8290_v63 = vunpack.c.l.b16 %v8289_v21  ;;  %v8292_v37 = vunpack.c.l.b16 %v8291_v53  ;;  %v6923_v60 = vsel %vm3355_vm6, %v3397_v18, %v3396_v22  ;;  %v8297_v19 = vld [vmem:[#allocation19_spill] sm:$0xff] }
 0x127   :  { %v3413_v46 = vrot.slane %v8288_v39, 7  ;;  %v3406_v34 = vsel %vm3346_vm3, %v3405_v14, %v3404_v23  ;;  %v8294_v62 = vunpack.c.l.b16 %v8293_v30  ;;  %v8295_v39 = vld [vmem:[#allocation18_spill] sm:$0xff]  ;;  %v8298_v35 = vunpack.c.l.b16 %v8297_v19  ;;  %v8301_v23 = vld [vmem:[#allocation21_spill] sm:$0xff]  ;;  %v8303_v30 = vld [vmem:[#allocation23_spill] sm:$0xff] }
 0x128   :  { %v3415_v58 = vrot.slane %v8290_v63, 6  ;;  %v3417_v16 = vrot.slane %v8292_v37, 5  ;;  %v8296_v59 = vunpack.c.l.b16 %v8295_v39  ;;  %v3408_v15 = vsel %vm3349_vm4, %v3407_v28, %v3406_v34  ;;  %v8299_v63 = vld [vmem:[#allocation20_spill] sm:$0xff]  ;;  %v8307_v19 = vld [vmem:[#allocation25_spill] sm:$0xff] }
 0x129   :  { %v3414_v7 = vsel %vm3337_vm0, %v3413_v46, %v8294_v62  ;;  %v3421_v21 = vrot.slane %v8298_v35, 3  ;;  %v8300_v53 = vunpack.c.l.b16 %v8299_v63  ;;  %v3410_v22 = vsel %vm3352_vm5, %v3409_v26, %v3408_v15  ;;  %v8305_v34 = vld [vmem:[#allocation24_spill] sm:$0xff] }
 0x12a   :  { %v3419_v8 = vrot.slane %v8296_v59, 4  ;;  %v3416_v25 = vsel %vm3340_vm1, %v3415_v58, %v3414_v7  ;;  %v8302_v37 = vunpack.c.l.b16 %v8301_v23  ;;  %v8304_v62 = vunpack.c.l.b16 %v8303_v30  ;;  %v8314_v30 = vld [vmem:[#allocation28_spill] sm:$0xff] }
 0x12b   :  { %v3423_v18 = vrot.slane %v8300_v53, 2  ;;  %v3418_v14 = vsel %vm3343_vm2, %v3417_v16, %v3416_v25  ;;  %v6944_v28 = vsel %vm3355_vm6, %v3411_v29, %v3410_v22  ;;  %v8306_v7 = vunpack.c.l.b16 %v8305_v34  ;;  %v8309_v16 = vld [vmem:[#allocation22_spill] sm:$0xff] }
 0x12c   :  { %v3425_v46 = vrot.slane %v8302_v37, 1  ;;  %v3427_v39 = vrot.slane %v8304_v62, 7  ;;  %v3420_v58 = vsel %vm3346_vm3, %v3419_v8, %v3418_v14  ;;  %v8308_v35 = vunpack.c.l.b16 %v8307_v19  ;;  %v8311_v53 = vld [vmem:[#allocation26_spill] sm:$0xff] }
 0x12d   :  { %v3429_v59 = vrot.slane %v8306_v7, 6  ;;  %v3422_v26 = vsel %vm3349_vm4, %v3421_v21, %v3420_v58  ;;  %v8310_v15 = vunpack.c.l.b16 %v8309_v16  ;;  %v8312_v23 = vunpack.c.l.b16 %v8311_v53  ;;  %v8316_v7 = vld [vmem:[#allocation29_spill] sm:$0xff] }
 0x12e   :  { %v3431_v63 = vrot.slane %v8308_v35, 5  ;;  %v8313_v29 = vunpack.c.l.b16 %v8174_v20  ;;  %v3424_v8 = vsel %vm3352_vm5, %v3423_v18, %v3422_v26  ;;  %v8315_v62 = vunpack.c.l.b16 %v8314_v30  ;;  %v8318_v35 = vld [vmem:[#allocation31_spill] sm:$0xff]  ;;  %v8320_v20 = vld [vmem:[#allocation32_spill] sm:$0xff] }
 0x12f   :  { %v3428_v25 = vsel %vm3337_vm0, %v3427_v39, %v8310_v15  ;;  %v3433_v37 = vrot.slane %v8312_v23, 4  ;;  %v8317_v19 = vunpack.c.l.b16 %v8316_v7  ;;  %v6966_v58 = vsel %vm3355_vm6, %v3425_v46, %v3424_v8 }
 0x130   :  { %v3435_v22 = vrot.slane %v8313_v29, 3  ;;  %v3430_v14 = vsel %vm3340_vm1, %v3429_v59, %v3428_v25  ;;  %v3437_v34 = vrot.slane %v8315_v62, 2  ;;  %v8319_v16 = vunpack.c.l.b16 %v8318_v35  ;;  %v8322_v59 = vld [vmem:[#allocation33_spill] sm:$0xff]  ;;  %v8324_v29 = vld [vmem:[#allocation34_spill] sm:$0xff]  ;;  %v8329_v35 = vld [vmem:[#allocation36_spill] sm:$0xff] }
 0x131   :  { %v3439_v21 = vrot.slane %v8317_v19, 1  ;;  %v3432_v39 = vsel %vm3343_vm2, %v3431_v63, %v3430_v14  ;;  %v8321_v53 = vunpack.c.l.b16 %v8320_v20  ;;  %v8323_v26 = vunpack.c.l.b16 %v8322_v59  ;;  %v8327_v63 = vld [vmem:[#allocation30_spill] sm:$0xff] }
 0x132   :  { %v3441_v15 = vrot.slane %v8319_v16, 7  ;;  %v3434_v18 = vsel %vm3346_vm3, %v3433_v37, %v3432_v39  ;;  %v8325_v30 = vunpack.c.l.b16 %v8324_v29  ;;  %v8326_v7 = vunpack.c.l.b16 %v8182_v55 }
 0x133   :  { %v3443_v23 = vrot.slane %v8321_v53, 6  ;;  %v3445_v25 = vrot.slane %v8323_v26, 5  ;;  %v3436_v8 = vsel %vm3349_vm4, %v3435_v22, %v3434_v18  ;;  %v8328_v14 = vunpack.c.l.b16 %v8327_v63 }
 0x134   :  { %v3447_v62 = vrot.slane %v8325_v30, 4  ;;  %v3449_v46 = vrot.slane %v8326_v7, 3  ;;  %v8330_v16 = vunpack.c.l.b16 %v8329_v35  ;;  %v8331_v37 = vunpack.c.l.b16 %v8184_v6  ;;  %v8335_v6 = vld [vmem:[#allocation42_spill] sm:$0xff]  ;;  %v8340_v35 = vld [vmem:[#allocation44_spill] sm:$0xff] }
 0x135   :  { %v3442_v19 = vsel %vm3337_vm0, %v3441_v15, %v8328_v14  ;;  %v3438_v53 = vsel %vm3352_vm5, %v3437_v34, %v3436_v8  ;;  %v8332_v26 = vunpack.c.l.b16 %v8185_v33  ;;  %v8333_v29 = vunpack.c.l.b16 %v8186_v47 }
 0x136   :  { %v3451_v20 = vrot.slane %v8330_v16, 2  ;;  %v3453_v39 = vrot.slane %v8331_v37, 1  ;;  %v3444_v59 = vsel %vm3340_vm1, %v3443_v23, %v3442_v19  ;;  %v6995_v18 = vsel %vm3355_vm6, %v3439_v21, %v3438_v53  ;;  %v8337_v23 = vld [vmem:[#allocation38_spill] sm:$0xff] }
 0x137   :  { %v3455_v55 = vrot.slane %v8332_v26, 7  ;;  %v3457_v22 = vrot.slane %v8333_v29, 6  ;;  %v3446_v15 = vsel %vm3343_vm2, %v3445_v25, %v3444_v59  ;;  %v8334_v30 = vunpack.c.l.b16 %v8187_v51 }
 0x138   :  { %v8336_v63 = vunpack.c.l.b16 %v8335_v6  ;;  %v3448_v34 = vsel %vm3346_vm3, %v3447_v62, %v3446_v15  ;;  %v8338_v8 = vunpack.c.l.b16 %v8337_v23  ;;  %v8339_v47 = vunpack.c.l.b16 %v8189_v44 }
 0x139   :  { %v3459_v7 = vrot.slane %v8334_v30, 5  ;;  %v8341_v21 = vunpack.c.l.b16 %v8340_v35  ;;  %v3450_v25 = vsel %vm3349_vm4, %v3449_v46, %v3448_v34  ;;  %v8342_v37 = vunpack.c.l.b16 %v8191_v54  ;;  %v8349_v34 = vld [vmem:[#allocation48_spill] sm:$0xff] }
 0x13a   :  { %v3461_v14 = vrot.slane %v8336_v63, 4  ;;  %v3456_v33 = vsel %vm3337_vm0, %v3455_v55, %v8338_v8  ;;  %v3463_v19 = vrot.slane %v8339_v47, 3  ;;  %v8343_v59 = vunpack.c.l.b16 %v8192_v48 }
 0x13b   :  { %v3465_v16 = vrot.slane %v8341_v21, 2  ;;  %v3458_v51 = vsel %vm3340_vm1, %v3457_v22, %v3456_v33  ;;  %v3467_v53 = vrot.slane %v8342_v37, 1  ;;  %v3452_v26 = vsel %vm3352_vm5, %v3451_v20, %v3450_v25 }
 0x13c   :  { %v3469_v62 = vrot.slane %v8343_v59, 7  ;;  %v3460_v55 = vsel %vm3343_vm2, %v3459_v7, %v3458_v51  ;;  %v8344_v44 = vunpack.c.l.b16 %v6415_v56  ;;  %v8345_v15 = vunpack.c.l.b16 %v6418_v57 }
 0x13d   :  { %v7023_v46 = vsel %vm3355_vm6, %v3453_v39, %v3452_v26  ;;  %v3462_v22 = vsel %vm3346_vm3, %v3461_v14, %v3460_v55  ;;  %v8346_v54 = vunpack.c.l.b16 %v6409_v31  ;;  %v8347_v6 = vunpack.c.l.b16 %v6421_v12 }
 0x13e   :  { %v3471_v29 = vrot.slane %v8344_v44, 6  ;;  %v3473_v30 = vrot.slane %v8345_v15, 5  ;;  %v3464_v7 = vsel %vm3349_vm4, %v3463_v19, %v3462_v22  ;;  %v8348_v63 = vunpack.c.l.b16 %v8193_v40  ;;  %v8359_v44 = vld [vmem:[#allocation51_spill] sm:$0xff] }
 0x13f   :  { %v3470_v48 = vsel %vm3337_vm0, %v3469_v62, %v8346_v54  ;;  %v3475_v20 = vrot.slane %v8347_v6, 4  ;;  %v8350_v23 = vunpack.c.l.b16 %v8349_v34  ;;  %v3466_v8 = vsel %vm3352_vm5, %v3465_v16, %v3464_v7 }
 0x140   :  { %v3472_v56 = vsel %vm3340_vm1, %v3471_v29, %v3470_v48  ;;  %v3477_v57 = vrot.slane %v8348_v63, 3  ;;  %v8351_v31 = vunpack.c.l.b16 %v8194_v27  ;;  %v8352_v12 = vunpack.c.l.b16 %v8195_v45 }
 0x141   :  { %v3479_v39 = vrot.slane %v8350_v23, 2  ;;  %v3474_v14 = vsel %vm3343_vm2, %v3473_v30, %v3472_v56  ;;  %v7044_v19 = vsel %vm3355_vm6, %v3467_v53, %v3466_v8  ;;  %v8353_v40 = vunpack.c.l.b16 %v6455_v3  ;;  %v8367_v23 = vld [vmem:[#allocation52_spill] sm:$0xff] }
 0x142   :  { %v3481_v33 = vrot.slane %v8351_v31, 1  ;;  %v3483_v47 = vrot.slane %v8352_v12, 7  ;;  %v3476_v35 = vsel %vm3346_vm3, %v3475_v20, %v3474_v14  ;;  %v8354_v25 = vunpack.c.l.b16 %v6458_v2 }
 0x143   :  { %v3485_v21 = vrot.slane %v8353_v40, 6  ;;  %v3478_v16 = vsel %vm3349_vm4, %v3477_v57, %v3476_v35  ;;  %v8355_v37 = vunpack.c.l.b16 %v6449_v61  ;;  %v8356_v45 = vunpack.c.l.b16 %v6461_v5  ;;  %v8361_v5 = vld [vmem:[#allocation53_spill] sm:$0xff] }
 0x144   :  { %v3487_v51 = vrot.slane %v8354_v25, 5  ;;  %v8357_v53 = vunpack.c.l.b16 %v6464_v9  ;;  %v3480_v26 = vsel %vm3352_vm5, %v3479_v39, %v3478_v16  ;;  %v8358_v55 = vunpack.c.l.b16 %v6467_v10 }
 0x145   :  { %v3484_v27 = vsel %vm3337_vm0, %v3483_v47, %v8355_v37  ;;  %v3489_v59 = vrot.slane %v8356_v45, 4  ;;  %v8360_v29 = vunpack.c.l.b16 %v8359_v44  ;;  %v7066_v61 = vsel %vm3355_vm6, %v3481_v33, %v3480_v26  ;;  %v8379_v26 = vld [vmem:[#allocation58_spill] sm:$0xff]  ;;  %v8381_v44 = vld [vmem:[#allocation59_spill] sm:$0xff] }
 0x146   :  { %v3491_v62 = vrot.slane %v8357_v53, 3  ;;  %v3486_v3 = vsel %vm3340_vm1, %v3485_v21, %v3484_v27  ;;  %v3493_v2 = vrot.slane %v8358_v55, 2  ;;  %v8362_v22 = vunpack.c.l.b16 %v8361_v5 }
 0x147   :  { %v3495_v15 = vrot.slane %v8360_v29, 1  ;;  %v3488_v30 = vsel %vm3343_vm2, %v3487_v51, %v3486_v3  ;;  %v8363_v9 = vunpack.c.l.b16 %v6495_v38  ;;  %v8364_v20 = vunpack.c.l.b16 %v6498_v0 }
 0x148   :  { %v3497_v54 = vrot.slane %v8362_v22, 7  ;;  %v3490_v6 = vsel %vm3346_vm3, %v3489_v59, %v3488_v30  ;;  %v8365_v7 = vunpack.c.l.b16 %v6501_v4  ;;  %v8366_v63 = vunpack.c.l.b16 %v6504_v36 }
 0x149   :  { %v3499_v48 = vrot.slane %v8363_v9, 6  ;;  %v3501_v10 = vrot.slane %v8364_v20, 5  ;;  %v3492_v34 = vsel %vm3349_vm4, %v3491_v62, %v3490_v6  ;;  %v8368_v39 = vunpack.c.l.b16 %v8367_v23 }
 0x14a   :  { %v3503_v56 = vrot.slane %v8365_v7, 4  ;;  %v3505_v57 = vrot.slane %v8366_v63, 3  ;;  %v8369_v38 = vunpack.c.l.b16 %v6507_v24  ;;  %v8370_v31 = vunpack.c.l.b16 %v6510_v42 }
 0x14b   :  { %v3498_v8 = vsel %vm3337_vm0, %v3497_v54, %v8368_v39  ;;  %v3494_v0 = vsel %vm3352_vm5, %v3493_v2, %v3492_v34  ;;  %v8371_v12 = vunpack.c.l.b16 %v8197_v17  ;;  %v8372_v47 = vunpack.c.l.b16 %v8198_v11  ;;  %v8391_v34 = vld [vmem:[#allocation63_spill] sm:$0xff] }
 0x14c   :  { %v3507_v14 = vrot.slane %v8369_v38, 2  ;;  %v3509_v33 = vrot.slane %v8370_v31, 1  ;;  %v3500_v4 = vsel %vm3340_vm1, %v3499_v48, %v3498_v8  ;;  %v7095_v40 = vsel %vm3355_vm6, %v3495_v15, %v3494_v0  ;;  %v8383_v15 = vld [vmem:[#allocation60_spill] sm:$0xff]  ;;  %v8387_v48 = vld [vmem:[#allocation61_spill] sm:$0xff]  ;;  %v8395_v0 = vld [vmem:[#allocation94_spill] sm:$0xff] }
 0x14d   :  { %v3511_v36 = vrot.slane %v8371_v12, 7  ;;  %v3513_v35 = vrot.slane %v8372_v47, 6  ;;  %v3502_v21 = vsel %vm3343_vm2, %v3501_v10, %v3500_v4  ;;  %v8373_v24 = vunpack.c.l.b16 %v8199_v1 }
 0x14e   :  { %v8374_v42 = vunpack.c.l.b16 %v6541_v49  ;;  %v3504_v16 = vsel %vm3346_vm3, %v3503_v56, %v3502_v21  ;;  %v8375_v37 = vunpack.c.l.b16 %v6529_v41  ;;  %v8376_v11 = vunpack.c.l.b16 %v6544_v50  ;;  %v8389_v56 = vld [vmem:[#allocation62_spill] sm:$0xff] }
 0x14f   :  { %v3515_v25 = vrot.slane %v8373_v24, 5  ;;  %v8377_v45 = vunpack.c.l.b16 %v6547_v43  ;;  %v3506_v53 = vsel %vm3349_vm4, %v3505_v57, %v3504_v16  ;;  %v8378_v62 = vunpack.c.l.b16 %v6550_v32  ;;  %v8385_v32 = vld [vmem:[#allocation57_spill] sm:$0xff] }
 0x150   :  { %v3517_v51 = vrot.slane %v8374_v42, 4  ;;  %v3512_v17 = vsel %vm3337_vm0, %v3511_v36, %v8375_v37  ;;  %v3519_v27 = vrot.slane %v8376_v11, 3  ;;  %v8380_v3 = vunpack.c.l.b16 %v8379_v26  ;;  %v8401_v37 = vld [vmem:[#allocation93_spill] sm:$0xff] }
 0x151   :  { %v3521_v59 = vrot.slane %v8377_v45, 2  ;;  %v3514_v1 = vsel %vm3340_vm1, %v3513_v35, %v3512_v17  ;;  %v3523_v49 = vrot.slane %v8378_v62, 1  ;;  %v3508_v41 = vsel %vm3352_vm5, %v3507_v14, %v3506_v53  ;;  %v8393_v14 = vld [vmem:[#allocation64_spill] sm:$0xff]  ;;  %v8397_v35 = vld [vmem:[#allocation95_spill] sm:$0xff]  ;;  %v8405_v53 = vld [vmem:[#allocation98_spill] sm:$0xff] }
 0x152   :  { %v3525_v55 = vrot.slane %v8380_v3, 7  ;;  %v3516_v2 = vsel %vm3343_vm2, %v3515_v25, %v3514_v1  ;;  %v8382_v50 = vunpack.c.l.b16 %v8381_v44  ;;  %v8384_v43 = vunpack.c.l.b16 %v8383_v15  ;;  %v8399_v25 = vld [vmem:[#allocation96_spill] sm:$0xff]  ;;  %v8407_v3 = vld [vmem:[#allocation99_spill] sm:$0xff] }
 0x153   :  { %v7123_v5 = vsel %vm3355_vm6, %v3509_v33, %v3508_v41  ;;  %v3518_v22 = vsel %vm3346_vm3, %v3517_v51, %v3516_v2  ;;  %v8386_v54 = vunpack.c.l.b16 %v8385_v32  ;;  %v8388_v6 = vunpack.c.l.b16 %v8387_v48  ;;  %v8409_v2 = vld [vmem:[#allocation100_spill] sm:$0xff]  ;;  %v8413_v32 = vld [vmem:[#allocation103_spill] sm:$0xff] }
 0x154   :  { %v3527_v29 = vrot.slane %v8382_v50, 6  ;;  %v3529_v30 = vrot.slane %v8384_v43, 5  ;;  %v3520_v10 = vsel %vm3349_vm4, %v3519_v27, %v3518_v22  ;;  %v8390_v63 = vunpack.c.l.b16 %v8389_v56  ;;  %v8403_v27 = vld [vmem:[#allocation97_spill] sm:$0xff]  ;;  %v8411_v43 = vld [vmem:[#allocation102_spill] sm:$0xff] }
 0x155   :  { %v3526_v9 = vsel %vm3337_vm0, %v3525_v55, %v8386_v54  ;;  %v3531_v20 = vrot.slane %v8388_v6, 4  ;;  %v8392_v23 = vunpack.c.l.b16 %v8391_v34  ;;  %v3522_v8 = vsel %vm3352_vm5, %v3521_v59, %v3520_v10  ;;  %v8415_v6 = vld [vmem:[#allocation104_spill] sm:$0xff] }
 0x156   :  { %v3528_v7 = vsel %vm3340_vm1, %v3527_v29, %v3526_v9  ;;  %v3533_v57 = vrot.slane %v8390_v63, 3  ;;  %v8394_v31 = vunpack.c.l.b16 %v8393_v14  ;;  %v8396_v4 = vunpack.c.l.b16 %v8395_v0 }
 0x157   :  { %v3535_v39 = vrot.slane %v8392_v23, 2  ;;  %v3530_v38 = vsel %vm3343_vm2, %v3529_v30, %v3528_v7  ;;  %v7144_v36 = vsel %vm3355_vm6, %v3523_v49, %v3522_v8  ;;  %v8398_v21 = vunpack.c.l.b16 %v8397_v35  ;;  %v8417_v7 = vld [vmem:[#allocation105_spill] sm:$0xff] }
 0x158   :  { %v3537_v33 = vrot.slane %v8394_v31, 1  ;;  %v3539_v12 = vrot.slane %v8396_v4, 7  ;;  %v3532_v47 = vsel %vm3346_vm3, %v3531_v20, %v3530_v38  ;;  %v8400_v42 = vunpack.c.l.b16 %v8399_v25  ;;  %v8421_v8 = vld [vmem:[#allocation101_spill] sm:$0xff]  ;;  %v8423_v31 = vld [vmem:[#allocation107_spill] sm:$0xff]  ;;  %v8425_v4 = vld [vmem:[#allocation108_spill] sm:$0xff] }
 0x159   :  { %v3541_v24 = vrot.slane %v8398_v21, 6  ;;  %v3534_v16 = vsel %vm3349_vm4, %v3533_v57, %v3532_v47  ;;  %v8402_v17 = vunpack.c.l.b16 %v8401_v37  ;;  %v8404_v45 = vunpack.c.l.b16 %v8403_v27  ;;  %v8419_v57 = vld [vmem:[#allocation106_spill] sm:$0xff] }
 0x15a   :  { %v3543_v51 = vrot.slane %v8400_v42, 5  ;;  %v8406_v1 = vunpack.c.l.b16 %v8405_v53  ;;  %v3536_v49 = vsel %vm3352_vm5, %v3535_v39, %v3534_v16  ;;  %v8408_v55 = vunpack.c.l.b16 %v8407_v3  ;;  %v8427_v16 = vld [vmem:[#allocation27_spill] sm:$0xff] }
 0x15b   :  { %v3540_v11 = vsel %vm3337_vm0, %v3539_v12, %v8402_v17  ;;  %v3545_v59 = vrot.slane %v8404_v45, 4  ;;  %v8410_v44 = vunpack.c.l.b16 %v8409_v2  ;;  %v3538_v29 = vsel %vm3355_vm6, %v3537_v33, %v3536_v49 }
 0x15c   :  { %v3547_v62 = vrot.slane %v8406_v1, 3  ;;  %v3542_v26 = vsel %vm3340_vm1, %v3541_v24, %v3540_v11  ;;  %v3549_v41 = vrot.slane %v8408_v55, 2  ;;  %v8412_v30 = vunpack.c.l.b16 %v8411_v43 }
 0x15d   :  { %v3551_v50 = vrot.slane %v8410_v44, 1  ;;  %v3544_v15 = vsel %vm3343_vm2, %v3543_v51, %v3542_v26  ;;  %v8414_v54 = vunpack.c.l.b16 %v8413_v32  ;;  %v8416_v20 = vunpack.c.l.b16 %v8415_v6 }
 0x15e   :  { %v3553_v22 = vrot.slane %v8412_v30, 7  ;;  %v3546_v48 = vsel %vm3346_vm3, %v3545_v59, %v3544_v15  ;;  %v8418_v56 = vunpack.c.l.b16 %v8417_v7  ;;  %v8420_v34 = vunpack.c.l.b16 %v8419_v57 }
 0x15f   :  { %v3555_v9 = vrot.slane %v8414_v54, 6  ;;  %v3557_v10 = vrot.slane %v8416_v20, 5  ;;  %v3548_v39 = vsel %vm3349_vm4, %v3547_v62, %v3546_v48  ;;  %v8422_v38 = vunpack.c.l.b16 %v8421_v8 }
 0x160   :  { %v3559_v63 = vrot.slane %v8418_v56, 4  ;;  %v3561_v23 = vrot.slane %v8420_v34, 3  ;;  %v8424_v33 = vunpack.c.l.b16 %v8423_v31  ;;  %v8426_v12 = vunpack.c.l.b16 %v8425_v4 }
 0x161   :  { %v3554_v14 = vsel %vm3337_vm0, %v3553_v22, %v8422_v38  ;;  %v3550_v35 = vsel %vm3352_vm5, %v3549_v41, %v3548_v39  ;;  %v3567_v24 = vpack.c.b16 %v6858_v13, %v6858_v13  ;;  %v3568_v25 = vpack.c.b16 %v6865_v52, %v6865_v52 }
 0x162   :  { %v3563_v0 = vrot.slane %v8424_v33, 2  ;;  %v3565_v47 = vrot.slane %v8426_v12, 1  ;;  %v3556_v21 = vsel %vm3340_vm1, %v3555_v9, %v3554_v14  ;;  %v3552_v42 = vsel %vm3355_vm6, %v3551_v50, %v3550_v35 }
 0x163   :  { %v3558_v51 = vsel %vm3343_vm2, %v3557_v10, %v3556_v21  ;;  %v3569_v37 = vpack.c.b16 %v8427_v16, %v8427_v16  ;;  %v3570_v17 = vpack.c.b16 %v6923_v60, %v6923_v60  ;;  %v3571_v27 = vpack.c.b16 %v6944_v28, %v6944_v28  ;;  %3600 = vst.msk [vmem:[%s7285_s1] sm:$0xf] %vm3599_vm7, %v3567_v24 }
 0x164   :  { %v3560_v11 = vsel %vm3346_vm3, %v3559_v63, %v3558_v51  ;;  %v3572_v13 = vpack.c.b16 %v6966_v58, %v6966_v58  ;;  %v3573_v52 = vpack.c.b16 %v6995_v18, %v6995_v18  ;;  %v3574_v59 = vpack.c.b16 %v7023_v46, %v7023_v46  ;;  %3601 = vst.msk [vmem:[%s7285_s1 + $0x4] sm:$0xf] %vm3599_vm7, %v3568_v25 }
 0x165   :  { %v3562_v45 = vsel %vm3349_vm4, %v3561_v23, %v3560_v11  ;;  %v3575_v53 = vpack.c.b16 %v7044_v19, %v7044_v19  ;;  %v3576_v60 = vpack.c.b16 %v7066_v61, %v7066_v61  ;;  %v3577_v28 = vpack.c.b16 %v7095_v40, %v7095_v40  ;;  %3602 = vst.msk [vmem:[%s7285_s1 + $0x8] sm:$0xf] %vm3599_vm7, %v3569_v37 }
 0x166   :  { %v3564_v1 = vsel %vm3352_vm5, %v3563_v0, %v3562_v45  ;;  %v3578_v58 = vpack.c.b16 %v7123_v5, %v7123_v5  ;;  %v3579_v18 = vpack.c.b16 %v7144_v36, %v7144_v36  ;;  %v3580_v46 = vpack.c.b16 %v3538_v29, %v3538_v29  ;;  %3603 = vst.msk [vmem:[%s7285_s1 + $0xc] sm:$0xf] %vm3599_vm7, %v3570_v17 }
 0x167   :  { %v3566_v62 = vsel %vm3355_vm6, %v3565_v47, %v3564_v1  ;;  %v3581_v49 = vpack.c.b16 %v3552_v42, %v3552_v42  ;;  %3604 = vst.msk [vmem:[%s7285_s1 + $0x10] sm:$0xf] %vm3599_vm7, %v3571_v27  ;;  %3605 = vst.msk [vmem:[%s7285_s1 + $0x14] sm:$0xf] %vm3599_vm7, %v3572_v13 }
 0x168   :  { %v3582_v19 = vpack.c.b16 %v3566_v62, %v3566_v62  ;;  %3606 = vst.msk [vmem:[%s7285_s1 + $0x18] sm:$0xf] %vm3599_vm7, %v3573_v52  ;;  %3607 = vst.msk [vmem:[%s7285_s1 + $0x1c] sm:$0xf] %vm3599_vm7, %v3574_v59 }
 0x169   :  { %3608 = vst.msk [vmem:[%s7285_s1 + $0x20] sm:$0xf] %vm3599_vm7, %v3575_v53  ;;  %3609 = vst.msk [vmem:[%s7285_s1 + $0x24] sm:$0xf] %vm3599_vm7, %v3576_v60 }
 0x16a   :  { %3610 = vst.msk [vmem:[%s7285_s1 + $0x28] sm:$0xf] %vm3599_vm7, %v3577_v28  ;;  %3611 = vst.msk [vmem:[%s7285_s1 + $0x2c] sm:$0xf] %vm3599_vm7, %v3578_v58 }
 0x16b   :  { %3612 = vst.msk [vmem:[%s7285_s1 + $0x30] sm:$0xf] %vm3599_vm7, %v3579_v18  ;;  %3613 = vst.msk [vmem:[%s7285_s1 + $0x34] sm:$0xf] %vm3599_vm7, %v3580_v46 }
 0x16c   :  { %3614 = vst.msk [vmem:[%s7285_s1 + $0x38] sm:$0xf] %vm3599_vm7, %v3581_v49  ;;  %3615 = vst.msk [vmem:[%s7285_s1 + $0x3c] sm:$0xf] %vm3599_vm7, %v3582_v19 }

// kernel: perceptual_loss.13
= control target key start
LH: loop header
LB: loop body
LE: loop exit
PB: predicated region body
PF: predicated region fallthrough
CT: control target
= control target key end

     0   :  { %vm558_vm0 = vcmask 523264   ;;  %s1757_s1 = inlined_call_operand.vmem [shape: bf16[576,128], index: 1, kind: input, shape index: {}]   ;;  %s1758_s0 = inlined_call_operand.vmem [shape: bf16[128,576], index: 0, kind: input, shape index: {}]   ;;  %s1759_s2 = inlined_call_operand.vmem [shape: f32[1,128], index: 2, kind: input, shape index: {}]   ;;  %s1760_s3 = inlined_call_operand.vmem [shape: bf16[128,128], index: 3, kind: output, shape index: {}]  }
   0x1   :  { %v1310_v0 = vld [vmem:[%s1757_s1 + $0x78] sm:$0xff]   ;;  %v1314_v4 = vld [vmem:[%s1757_s1 + $0x70] sm:$0xff]   ;;  %v1318_v8 = vld [vmem:[%s1757_s1 + $0x68] sm:$0xff]  }
   0x2   :  { %v1311_v1 = vld [vmem:[%s1757_s1 + $0xf8] sm:$0xff]   ;;  %1138 = vmatprep.subr.bf16.mxu0 %v1310_v0  ;;  %v1315_v5 = vld [vmem:[%s1757_s1 + $0xf0] sm:$0xff]   ;;  %v1319_v9 = vld [vmem:[%s1757_s1 + $0xe8] sm:$0xff]  }
   0x3   :  { %v1312_v2 = vld [vmem:[%s1757_s1 + $0x38] sm:$0xff]   ;;  %1202 = vmatprep.subr.bf16.mxu1 %v1311_v1  ;;  %v1316_v6 = vld [vmem:[%s1757_s1 + $0x30] sm:$0xff]   ;;  %v1320_v10 = vld [vmem:[%s1757_s1 + $0x28] sm:$0xff]  }
   0x4   :  { %v1313_v3 = vld [vmem:[%s1757_s1 + $0xb8] sm:$0xff]   ;;  %1139 = vmatpush3.bf16.msra.mxu0 %v1312_v2  ;;  %v1317_v7 = vld [vmem:[%s1757_s1 + $0xb0] sm:$0xff]   ;;  %v1321_v11 = vld [vmem:[%s1757_s1 + $0xa8] sm:$0xff]  }
   0x5   :  { %1203 = vmatpush3.bf16.msra.mxu1 %v1313_v3  ;;  %1140 = vmatprep.subr.bf16.mxu0 %v1314_v4  ;;  %v1322_v12 = vld [vmem:[%s1757_s1 + $0x60] sm:$0xff]   ;;  %v1326_v16 = vld [vmem:[%s1757_s1 + $0x58] sm:$0xff]   ;;  %v1330_v20 = vld [vmem:[%s1757_s1 + $0x50] sm:$0xff]  }
   0x6   :  { %1204 = vmatprep.subr.bf16.mxu1 %v1315_v5  ;;  %v1323_v13 = vld [vmem:[%s1757_s1 + $0xe0] sm:$0xff]   ;;  %v1327_v17 = vld [vmem:[%s1757_s1 + $0xd8] sm:$0xff]   ;;  %v1331_v21 = vld [vmem:[%s1757_s1 + $0xd0] sm:$0xff]  }
   0x7   :  { %v1324_v14 = vld [vmem:[%s1757_s1 + $0x20] sm:$0xff]   ;;  %v1328_v18 = vld [vmem:[%s1757_s1 + $0x18] sm:$0xff]   ;;  %v1332_v22 = vld [vmem:[%s1757_s1 + $0x10] sm:$0xff]  }
   0x8   :  { %1141 = vmatpush3.bf16.msra.mxu0 %v1316_v6  ;;  %v1325_v15 = vld [vmem:[%s1757_s1 + $0xa0] sm:$0xff]   ;;  %v1329_v19 = vld [vmem:[%s1757_s1 + $0x98] sm:$0xff]   ;;  %v1333_v23 = vld [vmem:[%s1757_s1 + $0x90] sm:$0xff]  }
   0x9   :  { %1205 = vmatpush3.bf16.msra.mxu1 %v1317_v7  ;;  %1142 = vmatprep.subr.bf16.mxu0 %v1318_v8  ;;  %v1334_v24 = vld [vmem:[%s1757_s1 + $0x48] sm:$0xff]   ;;  %v1338_v28 = vld [vmem:[%s1757_s1 + $0x40] sm:$0xff]   ;;  %v1348_v36 = vld [vmem:[%s1757_s1 + $0x118] sm:$0xff]  }
   0xa   :  { %1206 = vmatprep.subr.bf16.mxu1 %v1319_v9  ;;  %v1335_v25 = vld [vmem:[%s1757_s1 + $0xc8] sm:$0xff]   ;;  %v1339_v29 = vld [vmem:[%s1757_s1 + $0xc0] sm:$0xff]   ;;  %v1361_v42 = vld [vmem:[%s1757_s1 + $0x110] sm:$0xff]  }
   0xb   :  { %v1336_v26 = vld [vmem:[%s1757_s1 + $0x8] sm:$0xff]   ;;  %v1340_v30 = vld [vmem:[%s1757_s1] sm:$0xff]   ;;  %v1357_v43 = vld [vmem:[%s1758_s0 + $0x5c] ss:$20 sps:$4 sm:$0xff]  }
   0xc   :  { %1143 = vmatpush3.bf16.msra.mxu0 %v1320_v10  ;;  %v1337_v27 = vld [vmem:[%s1757_s1 + $0x88] sm:$0xff]   ;;  %v1341_v31 = vld [vmem:[%s1757_s1 + $0x80] sm:$0xff]   ;;  %v1362_v47 = vld [vmem:[%s1758_s0 + $0x7c] ss:$20 sps:$4 sm:$0xff]  }
   0xd   :  { %1207 = vmatpush3.bf16.msra.mxu1 %v1321_v11  ;;  %1144 = vmatprep.subr.bf16.mxu0 %v1322_v12  ;;  %v1342_v32 = vld [vmem:[%s1758_s0] ss:$20 sps:$4 sm:$0xff]   ;;  %v1344_v33 = vld [vmem:[%s1758_s0 + $0x4] ss:$20 sps:$4 sm:$0xff]   ;;  %v1345_v34 = vld [vmem:[%s1758_s0 + $0x8] ss:$20 sps:$4 sm:$0xff]  }
   0xe   :  { %1208 = vmatprep.subr.bf16.mxu1 %v1323_v13  ;;  %v1347_v35 = vld [vmem:[%s1758_s0 + $0xc] ss:$20 sps:$4 sm:$0xff]   ;;  %615 = vmatprep.mubr.bf16.mxu0 %v1344_v33  ;;  %v1351_v38 = vld [vmem:[%s1758_s0 + $0x34] ss:$20 sps:$4 sm:$0xff]   ;;  %v1354_v40 = vld [vmem:[%s1758_s0 + $0x30] ss:$20 sps:$4 sm:$0xff]  }
   0xf   :  { %712 = vmatprep.mubr.bf16.mxu1 %v1347_v35  ;;  %v1349_v37 = vld [vmem:[%s1758_s0 + $0x2c] ss:$20 sps:$4 sm:$0xff]   ;;  %v1353_v39 = vld [vmem:[%s1758_s0 + $0x28] ss:$20 sps:$4 sm:$0xff]   ;;  %v1359_v44 = vld [vmem:[%s1758_s0 + $0x50] ss:$20 sps:$4 sm:$0xff]  }
  0x10   :  { %1145 = vmatpush3.bf16.msra.mxu0 %v1324_v14  ;;  %v1355_v41 = vld [vmem:[%s1758_s0 + $0x54] ss:$20 sps:$4 sm:$0xff]   ;;  %v1360_v45 = vld [vmem:[%s1758_s0 + $0x58] ss:$20 sps:$4 sm:$0xff]   ;;  %v1387_v49 = vld [vmem:[%s1757_s1 + $0x100] sm:$0xff]  }
  0x11   :  { %1209 = vmatpush3.bf16.msra.mxu1 %v1325_v15  ;;  %1146 = vmatprep.subr.bf16.mxu0 %v1326_v16  ;;  %v1374_v46 = vld [vmem:[%s1757_s1 + $0x108] sm:$0xff]   ;;  %v1364_v48 = vld [vmem:[%s1758_s0 + $0x84] ss:$20 sps:$4 sm:$0xff]   ;;  %v1367_v51 = vld [vmem:[%s1758_s0 + $0x80] ss:$20 sps:$4 sm:$0xff]  }
  0x12   :  { %1210 = vmatprep.subr.bf16.mxu1 %v1327_v17  ;;  %v1366_v50 = vld [vmem:[%s1758_s0 + $0x78] ss:$20 sps:$4 sm:$0xff]   ;;  %v1372_v54 = vld [vmem:[%s1758_s0 + $0xa0] ss:$20 sps:$4 sm:$0xff]   ;;  %v1373_v55 = vld [vmem:[%s1758_s0 + $0xa8] ss:$20 sps:$4 sm:$0xff]  }
  0x13   :  { %v1368_v52 = vld [vmem:[%s1758_s0 + $0xa4] ss:$20 sps:$4 sm:$0xff]   ;;  %v1370_v53 = vld [vmem:[%s1758_s0 + $0xac] ss:$20 sps:$4 sm:$0xff]   ;;  %v1377_v57 = vld [vmem:[%s1758_s0 + $0xd4] ss:$20 sps:$4 sm:$0xff]  }
  0x14   :  { %1147 = vmatpush3.bf16.msra.mxu0 %v1328_v18  ;;  %v1375_v56 = vld [vmem:[%s1758_s0 + $0xcc] ss:$20 sps:$4 sm:$0xff]   ;;  %v1379_v58 = vld [vmem:[%s1758_s0 + $0xc8] ss:$20 sps:$4 sm:$0xff]   ;;  %v1380_v59 = vld [vmem:[%s1758_s0 + $0xd0] ss:$20 sps:$4 sm:$0xff]  }
  0x15   :  { %1211 = vmatpush3.bf16.msra.mxu1 %v1329_v19  ;;  %1148 = vmatprep.subr.bf16.mxu0 %v1330_v20  ;;  %v1381_v60 = vld [vmem:[%s1758_s0 + $0xf4] ss:$20 sps:$4 sm:$0xff]   ;;  %v1383_v61 = vld [vmem:[%s1758_s0 + $0xfc] ss:$20 sps:$4 sm:$0xff]   ;;  %v1386_v63 = vld [vmem:[%s1758_s0 + $0xf8] ss:$20 sps:$4 sm:$0xff]  }
  0x16   :  { %1212 = vmatprep.subr.bf16.mxu1 %v1331_v21  ;;  %v1385_v62 = vld [vmem:[%s1758_s0 + $0xf0] ss:$20 sps:$4 sm:$0xff]   ;;  %v1392_v2 = vld [vmem:[%s1758_s0 + $0x118] ss:$20 sps:$4 sm:$0xff]   ;;  %v1393_v3 = vld [vmem:[%s1758_s0 + $0x120] ss:$20 sps:$4 sm:$0xff]  }
  0x17   :  { %v1388_v0 = vld [vmem:[%s1758_s0 + $0x11c] ss:$20 sps:$4 sm:$0xff]   ;;  %v1390_v1 = vld [vmem:[%s1758_s0 + $0x124] ss:$20 sps:$4 sm:$0xff]   ;;  %v1398_v8 = vld [vmem:[%s1758_s0 + $0x60] ss:$20 sps:$4 sm:$0xff]  }
  0x18   :  { %1149 = vmatpush3.bf16.msra.mxu0 %v1332_v22  ;;  %v1394_v4 = vld [vmem:[%s1758_s0 + $0x10] ss:$20 sps:$4 sm:$0xff]   ;;  %v1396_v6 = vld [vmem:[%s1758_s0 + $0x38] ss:$20 sps:$4 sm:$0xff]   ;;  %v1399_v9 = vld [vmem:[%s1758_s0 + $0x100] ss:$20 sps:$4 sm:$0xff]  }
  0x19   :  { %1213 = vmatpush3.bf16.msra.mxu1 %v1333_v23  ;;  %1150 = vmatprep.subr.bf16.mxu0 %v1334_v24  ;;  %v1395_v5 = vld [vmem:[%s1758_s0 + $0xb0] ss:$20 sps:$4 sm:$0xff]   ;;  %v1397_v7 = vld [vmem:[%s1758_s0 + $0xd8] ss:$20 sps:$4 sm:$0xff]   ;;  %v1400_v10 = vld [vmem:[%s1758_s0 + $0x88] ss:$20 sps:$4 sm:$0xff]  }
  0x1a   :  { %1214 = vmatprep.subr.bf16.mxu1 %v1335_v25  ;;  %v1401_v11 = vld [vmem:[%s1758_s0 + $0x128] ss:$20 sps:$4 sm:$0xff]   ;;  %v1661_v14 = vld [vmem:[%s1759_s2] ss:$0 sm:$0xff] }
  0x1c   :  { %1151 = vmatpush3.bf16.msra.mxu0 %v1336_v26 }
  0x1d   :  { %1215 = vmatpush3.bf16.msra.mxu1 %v1337_v27  ;;  %1152 = vmatprep.subr.bf16.mxu0 %v1338_v28 }
  0x1e   :  { %1216 = vmatprep.subr.bf16.mxu1 %v1339_v29 }
  0x20   :  { %1153 = vmatpush3.bf16.msra.mxu0 %v1340_v30 }
  0x21   :  { %1217 = vmatpush3.bf16.msra.mxu1 %v1341_v31  ;;  %1278 = vmatprep.subr.bf16.mxu0 %v1348_v36 }
  0x22   :  { %1302 = vmatprep.subr.bf16.mxu1 %v1348_v36 }
  0x23   :  { %616 = vmatmul.mubr.bf16.vlgmr.msra.gmra.mxu0 %v1342_v32 }
  0x24   :  { %713 = vmatmul.mubr.bf16.vlgmr.msra.gmra.mxu1 %v1345_v34  ;;  %1279 = vmatpush3.bf16.msra.mxu0 %v1348_v36 }
  0x25   :  { %1306 = vmatpush3.bf16.msra.mxu1 %v1348_v36  ;;  %623 = vmatprep.mubr.bf16.mxu0 %v1349_v37 }
  0x26   :  { %720 = vmatprep.mubr.bf16.mxu1 %v1351_v38  ;;  %1280 = vmatprep.subr.bf16.mxu0 %v1361_v42 }
  0x27   :  { %1303 = vmatprep.subr.bf16.mxu1 %v1361_v42 }
  0x28   :  { %1281 = vmatpush3.bf16.msra.mxu0 %v1361_v42 }
  0x29   :  { %1307 = vmatpush3.bf16.msra.mxu1 %v1361_v42  ;;  %1282 = vmatprep.subr.bf16.mxu0 %v1374_v46 }
  0x2a   :  { %1304 = vmatprep.subr.bf16.mxu1 %v1374_v46 }
  0x2b   :  { %624 = vmatmul.mubr.bf16.gmra.mxu0 %v1353_v39 }
  0x2c   :  { %721 = vmatmul.mubr.bf16.gmra.mxu1 %v1354_v40  ;;  %631 = vmatprep.mubr.bf16.mxu0 %v1355_v41 }
  0x2d   :  { %728 = vmatprep.mubr.bf16.mxu1 %v1357_v43  ;;  %1283 = vmatpush3.bf16.msra.mxu0 %v1374_v46 }
  0x2e   :  { %1308 = vmatpush3.bf16.msra.mxu1 %v1374_v46  ;;  %1284 = vmatprep.subr.bf16.mxu0 %v1387_v49 }
  0x2f   :  { %1305 = vmatprep.subr.bf16.mxu1 %v1387_v49 }
  0x31   :  { %1285 = vmatpush3.bf16.msra.mxu0 %v1387_v49 }
  0x32   :  { %1309 = vmatpush3.bf16.msra.mxu1 %v1387_v49 }
  0x33   :  { %632 = vmatmul.mubr.bf16.gmra.mxu0 %v1359_v44 }
  0x34   :  { %729 = vmatmul.mubr.bf16.gmra.mxu1 %v1360_v45  ;;  %639 = vmatprep.mubr.bf16.mxu0 %v1362_v47 }
  0x35   :  { %736 = vmatprep.mubr.bf16.mxu1 %v1364_v48 }
  0x3b   :  { %640 = vmatmul.mubr.bf16.gmra.mxu0 %v1366_v50 }
  0x3c   :  { %737 = vmatmul.mubr.bf16.gmra.mxu1 %v1367_v51  ;;  %647 = vmatprep.mubr.bf16.mxu0 %v1368_v52 }
  0x3d   :  { %744 = vmatprep.mubr.bf16.mxu1 %v1370_v53 }
  0x43   :  { %648 = vmatmul.mubr.bf16.gmra.mxu0 %v1372_v54 }
  0x44   :  { %745 = vmatmul.mubr.bf16.gmra.mxu1 %v1373_v55  ;;  %655 = vmatprep.mubr.bf16.mxu0 %v1375_v56 }
  0x45   :  { %752 = vmatprep.mubr.bf16.mxu1 %v1377_v57 }
  0x4b   :  { %656 = vmatmul.mubr.bf16.gmra.mxu0 %v1379_v58 }
  0x4c   :  { %753 = vmatmul.mubr.bf16.gmra.mxu1 %v1380_v59  ;;  %663 = vmatprep.mubr.bf16.mxu0 %v1381_v60 }
  0x4d   :  { %760 = vmatprep.mubr.bf16.mxu1 %v1383_v61 }
  0x53   :  { %664 = vmatmul.mubr.bf16.gmra.mxu0 %v1385_v62 }
  0x54   :  { %761 = vmatmul.mubr.bf16.gmra.mxu1 %v1386_v63  ;;  %671 = vmatprep.mubr.bf16.mxu0 %v1388_v0 }
  0x55   :  { %768 = vmatprep.mubr.bf16.mxu1 %v1390_v1 }
  0x5b   :  { %672 = vmatmul.mubr.bf16.gmra.mxu0 %v1392_v2 }
  0x5c   :  { %769 = vmatmul.mubr.bf16.gmra.mxu1 %v1393_v3  ;;  %1286 = vmatprep.mubr.msk.bf16.mxu0 %vm558_vm0, %v1394_v4 }
  0x5d   :  { %1294 = vmatprep.mubr.msk.bf16.mxu1 %vm558_vm0, %v1395_v5 }
  0x63   :  { %1287 = vmatmul.mubr.msk.bf16.vlgmr.msra.gmra.mxu0 %vm558_vm0, %v1396_v6 }
  0x64   :  { %1295 = vmatmul.mubr.msk.bf16.vlgmr.msra.gmra.mxu1 %vm558_vm0, %v1397_v7  ;;  %1290 = vmatprep.mubr.msk.bf16.mxu0 %vm558_vm0, %v1398_v8 }
  0x65   :  { %1298 = vmatprep.mubr.msk.bf16.mxu1 %vm558_vm0, %v1399_v9 }
  0x6b   :  { %1291 = vmatmul.mubr.msk.bf16.gmra.mxu0 %vm558_vm0, %v1400_v10 }
  0x6c   :  { %1299 = vmatmul.mubr.msk.bf16.gmra.mxu1 %vm558_vm0, %v1401_v11 }
  0xe3   :  { %v1154_v12 = vpop.f32.mrf.mxu0 }
  0xe4   :  { %v1218_v13 = vpop.f32.mrf.mxu1 }
  0xe5   :  { %v1155_v15 = vpop.f32.mrf.mxu0 }
  0xe6   :  { %v1156_v16 = vadd.f32 %v1155_v15, %v1154_v12  ;;  %v1219_v17 = vpop.f32.mrf.mxu1 }
  0xe7   :  { %v1157_v18 = vpop.f32.mrf.mxu0  ;;  %v1220_v20 = vadd.f32 %v1219_v17, %v1218_v13 }
  0xe8   :  { %v618_v19 = vadd.f32 %v1156_v16, %v1661_v14  ;;  %v1664_v21 = vpop.f32.mrf.mxu1 }
  0xe9   :  { %v1158_v22 = vpop.f32.mrf.mxu0 }
  0xea   :  { %v1666_v23 = vpop.f32.mrf.mxu1  ;;  %v1668_v24 = vadd.f32 %v1220_v20, %v618_v19  ;;  %v1159_v6 = vadd.f32 %v1158_v22, %v1157_v18 }
  0xeb   :  { %v1160_v25 = vpop.f32.mrf.mxu0 }
  0xec   :  { %1761 = vst [vmem:[#allocation2_spill] sm:$0xff] %v1668_v24  ;;  %v1224_v26 = vpop.f32.mrf.mxu1  ;;  %v621_v15 = vadd.f32 %v1159_v6, %v1661_v14 }
  0xed   :  { %v1161_v27 = vpop.f32.mrf.mxu0 }
  0xee   :  { %v1225_v28 = vpop.f32.mrf.mxu1  ;;  %v1162_v8 = vadd.f32 %v1161_v27, %v1160_v25  ;;  %v1223_v25 = vadd.f32 %v1666_v23, %v1664_v21 }
  0xef   :  { %v1163_v29 = vpop.f32.mrf.mxu0  ;;  %v1226_v27 = vadd.f32 %v1225_v28, %v1224_v26 }
  0xf0   :  { %v1227_v30 = vpop.f32.mrf.mxu1  ;;  %v626_v19 = vadd.f32 %v1162_v8, %v1661_v14 }
  0xf1   :  { %v1164_v31 = vpop.f32.mrf.mxu0 }
  0xf2   :  { %v1228_v32 = vpop.f32.mrf.mxu1  ;;  %v1165_v9 = vadd.f32 %v1164_v31, %v1163_v29 }
  0xf3   :  { %v1166_v33 = vpop.f32.mrf.mxu0  ;;  %v1229_v29 = vadd.f32 %v1228_v32, %v1227_v30 }
  0xf4   :  { %v1230_v34 = vpop.f32.mrf.mxu1  ;;  %v629_v20 = vadd.f32 %v1165_v9, %v1661_v14  ;;  %v718_v9 = vadd.f32 %v1223_v25, %v621_v15 }
  0xf5   :  { %v1167_v35 = vpop.f32.mrf.mxu0 }
  0xf6   :  { %v1231_v36 = vpop.f32.mrf.mxu1  ;;  %v1168_v10 = vadd.f32 %v1167_v35, %v1166_v33  ;;  %v726_v24 = vadd.f32 %v1229_v29, %v629_v20 }
  0xf7   :  { %v1169_v37 = vpop.f32.mrf.mxu0  ;;  %v1232_v35 = vadd.f32 %v1231_v36, %v1230_v34 }
  0xf8   :  { %v1670_v38 = vpop.f32.mrf.mxu1  ;;  %v634_v18 = vadd.f32 %v1168_v10, %v1661_v14  ;;  %v723_v10 = vadd.f32 %v1226_v27, %v626_v19 }
  0xf9   :  { %v1170_v39 = vpop.f32.mrf.mxu0 }
  0xfa   :  { %v1672_v40 = vpop.f32.mrf.mxu1  ;;  %v1171_v6 = vadd.f32 %v1170_v39, %v1169_v37  ;;  %v1702_v21 = vadd.f32 %v1232_v35, %v634_v18 }
  0xfb   :  { %v1172_v41 = vpop.f32.mrf.mxu0  ;;  %v1706_v23 = vadd.f32 %v1672_v40, %v1670_v38 }
  0xfc   :  { %v1674_v42 = vpop.f32.mrf.mxu1  ;;  %v1711_v34 = vadd.f32 %v1171_v6, %v1661_v14 }
  0xfd   :  { %v1173_v43 = vpop.f32.mrf.mxu0 }
  0xfe   :  { %v1237_v44 = vpop.f32.mrf.mxu1  ;;  %v1174_v16 = vadd.f32 %v1173_v43, %v1172_v41 }
  0xff   :  { %v1175_v45 = vpop.f32.mrf.mxu0  ;;  %v1238_v26 = vadd.f32 %v1237_v44, %v1674_v42 }
 0x100   :  { %v1676_v46 = vpop.f32.mrf.mxu1  ;;  %v642_v8 = vadd.f32 %v1174_v16, %v1661_v14 }
 0x101   :  { %v1176_v47 = vpop.f32.mrf.mxu0 }
 0x102   :  { %v1678_v48 = vpop.f32.mrf.mxu1  ;;  %v1177_v28 = vadd.f32 %v1176_v47, %v1175_v45 }
 0x103   :  { %v1178_v49 = vpop.f32.mrf.mxu0  ;;  %v1241_v15 = vadd.f32 %v1678_v48, %v1676_v46 }
 0x104   :  { %v1680_v50 = vpop.f32.mrf.mxu1 }
 0x105   :  { %v1179_v51 = vpop.f32.mrf.mxu0 }
 0x106   :  { %v1243_v52 = vpop.f32.mrf.mxu1  ;;  %v1180_v31 = vadd.f32 %v1179_v51, %v1178_v49 }
 0x107   :  { %v1181_v53 = vpop.f32.mrf.mxu0  ;;  %v1244_v51 = vadd.f32 %v1243_v52, %v1680_v50 }
 0x108   :  { %v1245_v54 = vpop.f32.mrf.mxu1  ;;  %v650_v30 = vadd.f32 %v1180_v31, %v1661_v14 }
 0x109   :  { %v1182_v55 = vpop.f32.mrf.mxu0 }
 0x10a   :  { %v1246_v56 = vpop.f32.mrf.mxu1  ;;  %v1183_v41 = vadd.f32 %v1182_v55, %v1181_v53  ;;  %v739_v55 = vadd.f32 %v1238_v26, %v642_v8 }
 0x10b   :  { %v1184_v57 = vpop.f32.mrf.mxu0  ;;  %v1247_v53 = vadd.f32 %v1246_v56, %v1245_v54 }
 0x10c   :  { %v1248_v58 = vpop.f32.mrf.mxu1  ;;  %v653_v36 = vadd.f32 %v1183_v41, %v1661_v14 }
 0x10d   :  { %v1185_v59 = vpop.f32.mrf.mxu0 }
 0x10e   :  { %v1249_v60 = vpop.f32.mrf.mxu1  ;;  %v1186_v22 = vadd.f32 %v1185_v59, %v1184_v57  ;;  %v750_v54 = vadd.f32 %v1247_v53, %v653_v36 }
 0x10f   :  { %v1187_v61 = vpop.f32.mrf.mxu0  ;;  %v1250_v37 = vadd.f32 %v1249_v60, %v1248_v58  ;;  %v747_v60 = vadd.f32 %v1244_v51, %v650_v30 }
 0x110   :  { %v1251_v62 = vpop.f32.mrf.mxu1  ;;  %v658_v57 = vadd.f32 %v1186_v22, %v1661_v14 }
 0x111   :  { %v1188_v63 = vpop.f32.mrf.mxu0 }
 0x112   :  { %v1252_v0 = vpop.f32.mrf.mxu1  ;;  %v1189_v43 = vadd.f32 %v1188_v63, %v1187_v61  ;;  %v755_v47 = vadd.f32 %v1250_v37, %v658_v57  ;;  %v645_v63 = vadd.f32 %v1177_v28, %v1661_v14 }
 0x113   :  { %v1190_v1 = vpop.f32.mrf.mxu0  ;;  %v1253_v42 = vadd.f32 %v1252_v0, %v1251_v62  ;;  %v1765_v0 = vld [vmem:[#allocation2_spill] sm:$0xff] }
 0x114   :  { %v1682_v2 = vpop.f32.mrf.mxu1  ;;  %v661_v39 = vadd.f32 %v1189_v43, %v1661_v14  ;;  %v742_v37 = vadd.f32 %v1241_v15, %v645_v63 }
 0x115   :  { %v1191_v3 = vpop.f32.mrf.mxu0 }
 0x116   :  { %v1684_v4 = vpop.f32.mrf.mxu1  ;;  %v1192_v44 = vadd.f32 %v1191_v3, %v1190_v1  ;;  %v758_v52 = vadd.f32 %v1253_v42, %v661_v39 }
 0x117   :  { %v1193_v5 = vpop.f32.mrf.mxu0  ;;  %v1256_v56 = vadd.f32 %v1684_v4, %v1682_v2 }
 0x118   :  { %v1686_v7 = vpop.f32.mrf.mxu1 }
 0x119   :  { %1762 = vst [vmem:[#allocation3_spill] sm:$0xff] %v1686_v7  ;;  %v1194_v11 = vpop.f32.mrf.mxu0 }
 0x11a   :  { %v1688_v12 = vpop.f32.mrf.mxu1  ;;  %v1195_v45 = vadd.f32 %v1194_v11, %v1193_v5 }
 0x11b   :  { %1763 = vst [vmem:[#allocation4_spill] sm:$0xff] %v1688_v12  ;;  %v1196_v13 = vpop.f32.mrf.mxu0 }
 0x11c   :  { %v1691_v17 = vpop.f32.mrf.mxu1  ;;  %v669_v46 = vadd.f32 %v1195_v45, %v1661_v14 }
 0x11d   :  { %1764 = vst [vmem:[#allocation5_spill] sm:$0xff] %v1691_v17  ;;  %v1197_v7 = vpop.f32.mrf.mxu0 }
 0x11e   :  { %v1261_v33 = vpop.f32.mrf.mxu1  ;;  %v1198_v38 = vadd.f32 %v1197_v7, %v1196_v13  ;;  %v666_v7 = vadd.f32 %v1192_v44, %v1661_v14  ;;  %v734_v44 = vadd.f32 %v1706_v23, %v1711_v34 }
 0x11f   :  { %v1199_v12 = vpop.f32.mrf.mxu0 }
 0x120   :  { %v1699_v17 = vpop.f32.mrf.mxu1  ;;  %v674_v62 = vadd.f32 %v1198_v38, %v1661_v14  ;;  %v763_v30 = vadd.f32 %v1256_v56, %v666_v7  ;;  %v1767_v39 = vld [vmem:[#allocation3_spill] sm:$0xff] }
 0x121   :  { %v1200_v59 = vpop.f32.mrf.mxu0 }
 0x122   :  { %v1264_v32 = vpop.f32.mrf.mxu1  ;;  %v1201_v19 = vadd.f32 %v1200_v59, %v1199_v12 }
 0x123   :  { %v1288_v49 = vpop.f32.mrf.mxu0  ;;  %v1265_v59 = vadd.f32 %v1264_v32, %v1699_v17 }
 0x124   :  { %v1296_v40 = vpop.f32.mrf.mxu1  ;;  %v820_v58 = vadd.f32 %v1288_v49, %v723_v10  ;;  %v1766_v13 = vld [vmem:[#allocation5_spill] sm:$0xff]  ;;  %v677_v2 = vadd.f32 %v1201_v19, %v1661_v14  ;;  %v1768_v49 = vld [vmem:[#allocation4_spill] sm:$0xff] }
 0x125   :  { %v811_v61 = vpop.f32.mrf.mxu0  ;;  %v852_v20 = vadd.f32 %v1296_v40, %v755_v47  ;;  %v1262_v18 = vadd.f32 %v1261_v33, %v1766_v13  ;;  %v1259_v51 = vadd.f32 %v1768_v49, %v1767_v39 }
 0x126   :  { %v843_v16 = vpop.f32.mrf.mxu1  ;;  %v812_v1 = vadd.f32 %v811_v61, %v1765_v0  ;;  %v876_v22 = vmax.f32 %v820_v58, 0.0  ;;  %v774_v38 = vadd.f32 %v1265_v59, %v677_v2 }
 0x127   :  { %v1289_v50 = vpop.f32.mrf.mxu0  ;;  %v844_v48 = vadd.f32 %v843_v16, %v747_v60  ;;  %v884_v4 = vmax.f32 %v852_v20, 0.0  ;;  %v771_v8 = vadd.f32 %v1262_v18, %v674_v62  ;;  %v766_v63 = vadd.f32 %v1259_v51, %v669_v46 }
 0x128   :  { %v823_v3 = vadd.f32 %v1289_v50, %v726_v24  ;;  %v1297_v5 = vpop.f32.mrf.mxu1  ;;  %v874_v6 = vmax.f32 %v812_v1, 0.0 }
 0x129   :  { %v855_v11 = vadd.f32 %v1297_v5, %v758_v52  ;;  %v814_v12 = vpop.f32.mrf.mxu0  ;;  %v882_v10 = vmax.f32 %v844_v48, 0.0 }
 0x12a   :  { %v877_v25 = vmax.f32 %v823_v3, 0.0  ;;  %v815_v27 = vadd.f32 %v814_v12, %v718_v9  ;;  %v846_v29 = vpop.f32.mrf.mxu1 }
 0x12b   :  { %v885_v31 = vmax.f32 %v855_v11, 0.0  ;;  %v847_v35 = vadd.f32 %v846_v29, %v750_v54  ;;  %v1292_v24 = vpop.f32.mrf.mxu0 }
 0x12c   :  { %v1099_v41 = vpack.c.bf16 %v877_v25, %v876_v22  ;;  %v875_v43 = vmax.f32 %v815_v27, 0.0  ;;  %v1300_v57 = vpop.f32.mrf.mxu1  ;;  %v836_v9 = vadd.f32 %v1292_v24, %v739_v55 }
 0x12d   :  { %v1119_v26 = vpack.c.bf16 %v885_v31, %v884_v4  ;;  %v883_v33 = vmax.f32 %v847_v35, 0.0  ;;  %v827_v28 = vpop.f32.mrf.mxu0  ;;  %v868_v32 = vadd.f32 %v1300_v57, %v771_v8 }
 0x12e   :  { %1131 = vst [vmem:[%s1760_s3 + $0x8] sm:$0xff] %v1099_v41   ;;  %v1094_v14 = vpack.c.bf16 %v875_v43, %v874_v6  ;;  %v859_v36 = vpop.f32.mrf.mxu1  ;;  %v828_v40 = vadd.f32 %v827_v28, %v1702_v21  ;;  %v880_v15 = vmax.f32 %v836_v9, 0.0 }
 0x12f   :  { %1135 = vst [vmem:[%s1760_s3 + $0x28] sm:$0xff] %v1119_v26   ;;  %v1114_v17 = vpack.c.bf16 %v883_v33, %v882_v10  ;;  %v1293_v53 = vpop.f32.mrf.mxu0  ;;  %v860_v45 = vadd.f32 %v859_v36, %v763_v30  ;;  %v888_v19 = vmax.f32 %v868_v32, 0.0 }
 0x130   :  { %1095 = vst [vmem:[%s1760_s3] sm:$0xff] %v1094_v14   ;;  %v839_v55 = vadd.f32 %v1293_v53, %v742_v37  ;;  %v1301_v42 = vpop.f32.mrf.mxu1  ;;  %v878_v50 = vmax.f32 %v828_v40, 0.0 }
 0x131   :  { %1134 = vst [vmem:[%s1760_s3 + $0x20] sm:$0xff] %v1114_v17   ;;  %v871_v47 = vadd.f32 %v1301_v42, %v774_v38  ;;  %v830_v61 = vpop.f32.mrf.mxu0  ;;  %v886_v56 = vmax.f32 %v860_v45, 0.0 }
 0x132   :  { %v881_v58 = vmax.f32 %v839_v55, 0.0  ;;  %v831_v60 = vadd.f32 %v830_v61, %v734_v44  ;;  %v862_v16 = vpop.f32.mrf.mxu1 }
 0x133   :  { %v889_v20 = vmax.f32 %v871_v47, 0.0  ;;  %v863_v21 = vadd.f32 %v862_v16, %v766_v63 }
 0x134   :  { %v1109_v52 = vpack.c.bf16 %v881_v58, %v880_v15  ;;  %v879_v54 = vmax.f32 %v831_v60, 0.0 }
 0x135   :  { %v1129_v23 = vpack.c.bf16 %v889_v20, %v888_v19  ;;  %v887_v34 = vmax.f32 %v863_v21, 0.0 }
 0x136   :  { %1133 = vst [vmem:[%s1760_s3 + $0x18] sm:$0xff] %v1109_v52   ;;  %v1104_v62 = vpack.c.bf16 %v879_v54, %v878_v50 }
 0x137   :  { %1137 = vst [vmem:[%s1760_s3 + $0x38] sm:$0xff] %v1129_v23   ;;  %v1124_v0 = vpack.c.bf16 %v887_v34, %v886_v56 }
 0x138   :  { %1132 = vst [vmem:[%s1760_s3 + $0x10] sm:$0xff] %v1104_v62  }
 0x139   :  { %1136 = vst [vmem:[%s1760_s3 + $0x30] sm:$0xff] %v1124_v0  }

// kernel: perceptual_loss.15
= control target key start
LH: loop header
LB: loop body
LE: loop exit
PB: predicated region body
PF: predicated region fallthrough
CT: control target
= control target key end

     0   :  { %v363_v0 = vlaneseq  ;;  %v1017_v4 = vmov 1935823168   ;;  %v1018_v6 = vmov 1983009808   ;;  %vm841_vm0 = vcmask 1041409   ;;  %s1337_s0 = inlined_call_operand.vmem [shape: bf16[8,2,4,2,128], index: 0, kind: input, shape index: {}]   ;;  %s1338_s1 = inlined_call_operand.vmem [shape: bf16[8,4,128], index: 1, kind: output, shape index: {}]  }
   0x1   :  { %v8_v1 = vld [vmem:[%s1337_s0] sm:$0x1]  ;;  %v9_v2 = vld [vmem:[%s1337_s0 + $0x1] sm:$0x1]  ;;  %v10_v3 = vld [vmem:[%s1337_s0 + $0x2] sm:$0x1]  ;;  %v361_v5 = vunpack.c.l.s4 %v1017_v4  ;;  %v585_v7 = vunpack.c.l.s4 %v1018_v6 }
   0x2   :  { %v11_v8 = vld [vmem:[%s1337_s0 + $0x3] sm:$0x1]  ;;  %v12_v9 = vld [vmem:[%s1337_s0 + $0x4] sm:$0x1]  ;;  %v13_v10 = vld [vmem:[%s1337_s0 + $0x5] sm:$0x1] }
   0x3   :  { %v14_v11 = vld [vmem:[%s1337_s0 + $0x6] sm:$0x1]  ;;  %v15_v12 = vld [vmem:[%s1337_s0 + $0x7] sm:$0x1]  ;;  %v72_v13 = vmax.bf16 %v12_v9, %v8_v1  ;;  %v73_v14 = vmax.bf16 %v13_v10, %v9_v2  ;;  %v362_v15 = vunpack.c.0.s8 %v361_v5  ;;  %v364_v16 = vshrl.u32 %v363_v0, 7 }
   0x4   :  { %v74_v17 = vmax.bf16 %v14_v11, %v10_v3  ;;  %v75_v18 = vmax.bf16 %v15_v12, %v11_v8  ;;  %v586_v19 = vunpack.c.0.s8 %v585_v7  ;;  %v16_v20 = vld [vmem:[%s1337_s0 + $0x8] sm:$0x1]  ;;  %v17_v24 = vld [vmem:[%s1337_s0 + $0x9] sm:$0x1]  ;;  %v18_v25 = vld [vmem:[%s1337_s0 + $0xa] sm:$0x1] }
   0x5   :  { %v105_v21 = vshrl.u32 %v72_v13, 16  ;;  %v110_v22 = vshrl.u32 %v73_v14, 16  ;;  %v1056_v23 = vsub.s32 %v362_v15, %v364_v16  ;;  %v19_v28 = vld [vmem:[%s1337_s0 + $0xb] sm:$0x1]  ;;  %v20_v29 = vld [vmem:[%s1337_s0 + $0xc] sm:$0x1] }
   0x6   :  { %v115_v26 = vshrl.u32 %v74_v17, 16  ;;  %v120_v27 = vshrl.u32 %v75_v18, 16  ;;  %v1070_v32 = vsub.s32 %v586_v19, %v364_v16  ;;  %vm844_vm1 = vcmask 1042434   ;;  %v21_v33 = vld [vmem:[%s1337_s0 + $0xd] sm:$0x1] }
   0x7   :  { %v296_v30 = vmax.bf16 %v105_v21, %v72_v13  ;;  %v297_v31 = vmax.bf16 %v110_v22, %v73_v14  ;;  %v22_v34 = vld [vmem:[%s1337_s0 + $0xe] sm:$0x1]  ;;  %v23_v35 = vld [vmem:[%s1337_s0 + $0xf] sm:$0x1]  ;;  %v76_v36 = vmax.bf16 %v20_v29, %v16_v20  ;;  %vm847_vm2 = vcmask 1043459  }
   0x8   :  { %v298_v37 = vmax.bf16 %v115_v26, %v74_v17  ;;  %v299_v38 = vmax.bf16 %v120_v27, %v75_v18  ;;  %v77_v39 = vmax.bf16 %v21_v33, %v17_v24  ;;  %v78_v40 = vmax.bf16 %v22_v34, %v18_v25  ;;  %v24_v57 = vld [vmem:[%s1337_s0 + $0x10] sm:$0x1]  ;;  %v28_v58 = vld [vmem:[%s1337_s0 + $0x14] sm:$0x1]  ;;  %v25_v3 = vld [vmem:[%s1337_s0 + $0x11] sm:$0x1] }
   0x9   :  { %v366_v41 = vrot.slane %v296_v30, %v1056_v23  ;;  %v373_v42 = vrot.slane %v297_v31, %v1056_v23  ;;  %v79_v43 = vmax.bf16 %v23_v35, %v19_v28  ;;  %v125_v44 = vshrl.u32 %v76_v36, 16  ;;  %v29_v4 = vld [vmem:[%s1337_s0 + $0x15] sm:$0x1]  ;;  %v26_v8 = vld [vmem:[%s1337_s0 + $0x12] sm:$0x1] }
   0xa   :  { %v380_v45 = vrot.slane %v298_v37, %v1056_v23  ;;  %v387_v46 = vrot.slane %v299_v38, %v1056_v23  ;;  %v130_v47 = vshrl.u32 %v77_v39, 16  ;;  %v135_v48 = vshrl.u32 %v78_v40, 16  ;;  %v30_v9 = vld [vmem:[%s1337_s0 + $0x16] sm:$0x1]  ;;  %v27_v15 = vld [vmem:[%s1337_s0 + $0x13] sm:$0x1] }
   0xb   :  { %v590_v49 = vrot.slane %v366_v41, %v1070_v32  ;;  %v597_v50 = vrot.slane %v373_v42, %v1070_v32  ;;  %v140_v51 = vshrl.u32 %v79_v43, 16  ;;  %v300_v52 = vmax.bf16 %v125_v44, %v76_v36  ;;  %v31_v16 = vld [vmem:[%s1337_s0 + $0x17] sm:$0x1]  ;;  %v32_v26 = vld [vmem:[%s1337_s0 + $0x18] sm:$0x1] }
   0xc   :  { %v604_v53 = vrot.slane %v380_v45, %v1070_v32  ;;  %v611_v54 = vrot.slane %v387_v46, %v1070_v32  ;;  %v301_v55 = vmax.bf16 %v130_v47, %v77_v39  ;;  %v302_v56 = vmax.bf16 %v135_v48, %v78_v40  ;;  %v33_v27 = vld [vmem:[%s1337_s0 + $0x19] sm:$0x1]  ;;  %v34_v33 = vld [vmem:[%s1337_s0 + $0x1a] sm:$0x1]  ;;  %v35_v34 = vld [vmem:[%s1337_s0 + $0x1b] sm:$0x1] }
   0xd   :  { %v808_v59 = vunpack.c.l.b16 %v590_v49  ;;  %v809_v60 = vunpack.c.l.b16 %v597_v50  ;;  %v303_v61 = vmax.bf16 %v140_v51, %v79_v43  ;;  %v394_v62 = vrot.slane %v300_v52, %v1056_v23  ;;  %v36_v35 = vld [vmem:[%s1337_s0 + $0x1c] sm:$0x1]  ;;  %v37_v36 = vld [vmem:[%s1337_s0 + $0x1d] sm:$0x1]  ;;  %v38_v41 = vld [vmem:[%s1337_s0 + $0x1e] sm:$0x1] }
   0xe   :  { %v810_v63 = vunpack.c.l.b16 %v604_v53  ;;  %v811_v0 = vunpack.c.l.b16 %v611_v54  ;;  %v401_v1 = vrot.slane %v301_v55, %v1056_v23  ;;  %v408_v2 = vrot.slane %v302_v56, %v1056_v23  ;;  %v39_v46 = vld [vmem:[%s1337_s0 + $0x1f] sm:$0x1] }
   0xf   :  { %v840_v5 = vrot.slane %v809_v60, 7  ;;  %v415_v6 = vrot.slane %v303_v61, %v1056_v23  ;;  %v618_v7 = vrot.slane %v394_v62, %v1070_v32  ;;  %v80_v10 = vmax.bf16 %v28_v58, %v24_v57 }
  0x10   :  { %v843_v11 = vrot.slane %v810_v63, 6  ;;  %v846_v12 = vrot.slane %v811_v0, 5  ;;  %v625_v13 = vrot.slane %v401_v1, %v1070_v32  ;;  %v632_v14 = vrot.slane %v408_v2, %v1070_v32  ;;  %v40_v63 = vld [vmem:[%s1337_s0 + $0x20] sm:$0x1] }
  0x11   :  { %v842_v17 = vsel %vm841_vm0, %v840_v5, %v808_v59  ;;  %v639_v18 = vrot.slane %v415_v6, %v1070_v32  ;;  %v812_v19 = vunpack.c.l.b16 %v618_v7  ;;  %v81_v20 = vmax.bf16 %v29_v4, %v25_v3  ;;  %v44_v4 = vld [vmem:[%s1337_s0 + $0x24] sm:$0x1] }
  0x12   :  { %v845_v21 = vsel %vm844_vm1, %v843_v11, %v842_v17  ;;  %v813_v22 = vunpack.c.l.b16 %v625_v13  ;;  %v814_v24 = vunpack.c.l.b16 %v632_v14  ;;  %v82_v25 = vmax.bf16 %v30_v9, %v26_v8  ;;  %v41_v13 = vld [vmem:[%s1337_s0 + $0x21] sm:$0x1]  ;;  %v45_v14 = vld [vmem:[%s1337_s0 + $0x25] sm:$0x1] }
  0x13   :  { %v848_v28 = vsel %vm847_vm2, %v846_v12, %v845_v21  ;;  %v815_v29 = vunpack.c.l.b16 %v639_v18  ;;  %v83_v30 = vmax.bf16 %v31_v16, %v27_v15  ;;  %v145_v31 = vshrl.u32 %v80_v10, 16  ;;  %v42_v18 = vld [vmem:[%s1337_s0 + $0x22] sm:$0x1] }
  0x14   :  { %v891_v37 = vpack.c.b16 %v848_v28, %v848_v28  ;;  %v849_v38 = vrot.slane %v813_v22, 7  ;;  %v851_v39 = vrot.slane %v814_v24, 6  ;;  %v150_v40 = vshrl.u32 %v81_v20, 16 }
  0x15   :  { %v853_v42 = vrot.slane %v815_v29, 5  ;;  %v155_v43 = vshrl.u32 %v82_v25, 16  ;;  %v160_v44 = vshrl.u32 %v83_v30, 16  ;;  %v304_v45 = vmax.bf16 %v145_v31, %v80_v10 }
  0x16   :  { %1007 = vst.sshfl [vmem:[%s1338_s1] sm:$0x3 pattern:$0x76325410] %v891_v37  ;;  %v850_v47 = vsel %vm841_vm0, %v849_v38, %v812_v19  ;;  %v305_v48 = vmax.bf16 %v150_v40, %v81_v20  ;;  %v84_v49 = vmax.bf16 %v36_v35, %v32_v26  ;;  %v85_v50 = vmax.bf16 %v37_v36, %v33_v27  ;;  %v43_v19 = vld [vmem:[%s1337_s0 + $0x23] sm:$0x1] }
  0x17   :  { %v852_v51 = vsel %vm844_vm1, %v851_v39, %v850_v47  ;;  %v306_v52 = vmax.bf16 %v155_v43, %v82_v25  ;;  %v307_v53 = vmax.bf16 %v160_v44, %v83_v30  ;;  %v422_v54 = vrot.slane %v304_v45, %v1056_v23  ;;  %v46_v26 = vld [vmem:[%s1337_s0 + $0x26] sm:$0x1]  ;;  %v47_v27 = vld [vmem:[%s1337_s0 + $0x27] sm:$0x1]  ;;  %v48_v45 = vld [vmem:[%s1337_s0 + $0x28] sm:$0x1] }
  0x18   :  { %v854_v55 = vsel %vm847_vm2, %v853_v42, %v852_v51  ;;  %v429_v56 = vrot.slane %v305_v48, %v1056_v23  ;;  %v86_v57 = vmax.bf16 %v38_v41, %v34_v33  ;;  %v87_v58 = vmax.bf16 %v39_v46, %v35_v34  ;;  %v49_v46 = vld [vmem:[%s1337_s0 + $0x29] sm:$0x1]  ;;  %v52_v47 = vld [vmem:[%s1337_s0 + $0x2c] sm:$0x1] }
  0x19   :  { %v892_v59 = vpack.c.b16 %v854_v55, %v854_v55  ;;  %v436_v60 = vrot.slane %v306_v52, %v1056_v23  ;;  %v443_v61 = vrot.slane %v307_v53, %v1056_v23  ;;  %v646_v62 = vrot.slane %v422_v54, %v1070_v32  ;;  %v50_v52 = vld [vmem:[%s1337_s0 + $0x2a] sm:$0x1]  ;;  %v53_v53 = vld [vmem:[%s1337_s0 + $0x2d] sm:$0x1] }
  0x1a   :  { %v653_v0 = vrot.slane %v429_v56, %v1070_v32  ;;  %v165_v1 = vshrl.u32 %v84_v49, 16  ;;  %v170_v2 = vshrl.u32 %v85_v50, 16  ;;  %v175_v3 = vshrl.u32 %v86_v57, 16 }
  0x1b   :  { %1008 = vst.sshfl [vmem:[%s1338_s1 + $0x2] sm:$0x3 pattern:$0x76325410] %v892_v59  ;;  %v660_v5 = vrot.slane %v436_v60, %v1070_v32  ;;  %v667_v6 = vrot.slane %v443_v61, %v1070_v32  ;;  %v816_v7 = vunpack.c.l.b16 %v646_v62  ;;  %v180_v8 = vshrl.u32 %v87_v58, 16 }
  0x1c   :  { %v817_v9 = vunpack.c.l.b16 %v653_v0  ;;  %v308_v10 = vmax.bf16 %v165_v1, %v84_v49  ;;  %v309_v11 = vmax.bf16 %v170_v2, %v85_v50  ;;  %v310_v12 = vmax.bf16 %v175_v3, %v86_v57  ;;  %v51_v62 = vld [vmem:[%s1337_s0 + $0x2b] sm:$0x1] }
  0x1d   :  { %v818_v15 = vunpack.c.l.b16 %v660_v5  ;;  %v819_v16 = vunpack.c.l.b16 %v667_v6  ;;  %v311_v17 = vmax.bf16 %v180_v8, %v87_v58  ;;  %v88_v20 = vmax.bf16 %v44_v4, %v40_v63  ;;  %v54_v58 = vld [vmem:[%s1337_s0 + $0x2e] sm:$0x1]  ;;  %v55_v63 = vld [vmem:[%s1337_s0 + $0x2f] sm:$0x1] }
  0x1e   :  { %v855_v21 = vrot.slane %v817_v9, 7  ;;  %v450_v22 = vrot.slane %v308_v10, %v1056_v23  ;;  %v457_v24 = vrot.slane %v309_v11, %v1056_v23  ;;  %v464_v25 = vrot.slane %v310_v12, %v1056_v23 }
  0x1f   :  { %v857_v28 = vrot.slane %v818_v15, 6  ;;  %v859_v29 = vrot.slane %v819_v16, 5  ;;  %v471_v30 = vrot.slane %v311_v17, %v1056_v23  ;;  %v89_v31 = vmax.bf16 %v45_v14, %v41_v13 }
  0x20   :  { %v856_v33 = vsel %vm841_vm0, %v855_v21, %v816_v7  ;;  %v674_v34 = vrot.slane %v450_v22, %v1070_v32  ;;  %v681_v35 = vrot.slane %v457_v24, %v1070_v32  ;;  %v688_v36 = vrot.slane %v464_v25, %v1070_v32  ;;  %v56_v21 = vld [vmem:[%s1337_s0 + $0x30] sm:$0x1]  ;;  %v60_v22 = vld [vmem:[%s1337_s0 + $0x34] sm:$0x1] }
  0x21   :  { %v858_v37 = vsel %vm844_vm1, %v857_v28, %v856_v33  ;;  %v695_v38 = vrot.slane %v471_v30, %v1070_v32  ;;  %v90_v39 = vmax.bf16 %v46_v26, %v42_v18  ;;  %v91_v40 = vmax.bf16 %v47_v27, %v43_v19  ;;  %v57_v33 = vld [vmem:[%s1337_s0 + $0x31] sm:$0x1] }
  0x22   :  { %v860_v41 = vsel %vm847_vm2, %v859_v29, %v858_v37  ;;  %v820_v42 = vunpack.c.l.b16 %v674_v34  ;;  %v821_v43 = vunpack.c.l.b16 %v681_v35  ;;  %v822_v44 = vunpack.c.l.b16 %v688_v36  ;;  %v61_v34 = vld [vmem:[%s1337_s0 + $0x35] sm:$0x1] }
  0x23   :  { %v893_v48 = vpack.c.b16 %v860_v41, %v860_v41  ;;  %v823_v49 = vunpack.c.l.b16 %v695_v38  ;;  %v185_v50 = vshrl.u32 %v88_v20, 16  ;;  %v190_v51 = vshrl.u32 %v89_v31, 16  ;;  %v58_v38 = vld [vmem:[%s1337_s0 + $0x32] sm:$0x1] }
  0x24   :  { %v861_v54 = vrot.slane %v821_v43, 7  ;;  %v863_v55 = vrot.slane %v822_v44, 6  ;;  %v195_v56 = vshrl.u32 %v90_v39, 16  ;;  %v200_v57 = vshrl.u32 %v91_v40, 16 }
  0x25   :  { %1009 = vst.sshfl [vmem:[%s1338_s1 + $0x4] sm:$0x3 pattern:$0x76325410] %v893_v48  ;;  %v865_v59 = vrot.slane %v823_v49, 5  ;;  %v312_v60 = vmax.bf16 %v185_v50, %v88_v20  ;;  %v313_v61 = vmax.bf16 %v190_v51, %v89_v31  ;;  %v92_v0 = vmax.bf16 %v52_v47, %v48_v45 }
  0x26   :  { %v862_v1 = vsel %vm841_vm0, %v861_v54, %v820_v42  ;;  %v314_v2 = vmax.bf16 %v195_v56, %v90_v39  ;;  %v315_v3 = vmax.bf16 %v200_v57, %v91_v40  ;;  %v93_v4 = vmax.bf16 %v53_v53, %v49_v46  ;;  %v62_v39 = vld [vmem:[%s1337_s0 + $0x36] sm:$0x1]  ;;  %v59_v45 = vld [vmem:[%s1337_s0 + $0x33] sm:$0x1]  ;;  %v63_v46 = vld [vmem:[%s1337_s0 + $0x37] sm:$0x1] }
  0x27   :  { %v864_v5 = vsel %vm844_vm1, %v863_v55, %v862_v1  ;;  %v478_v6 = vrot.slane %v312_v60, %v1056_v23  ;;  %v485_v7 = vrot.slane %v313_v61, %v1056_v23  ;;  %v94_v8 = vmax.bf16 %v54_v58, %v50_v52  ;;  %v65_v60 = vld [vmem:[%s1337_s0 + $0x39] sm:$0x1]  ;;  %v68_v61 = vld [vmem:[%s1337_s0 + $0x3c] sm:$0x1] }
  0x28   :  { %v866_v9 = vsel %vm847_vm2, %v865_v59, %v864_v5  ;;  %v492_v10 = vrot.slane %v314_v2, %v1056_v23  ;;  %v499_v11 = vrot.slane %v315_v3, %v1056_v23  ;;  %v95_v12 = vmax.bf16 %v55_v63, %v51_v62  ;;  %v64_v59 = vld [vmem:[%s1337_s0 + $0x38] sm:$0x1]  ;;  %v66_v2 = vld [vmem:[%s1337_s0 + $0x3a] sm:$0x1]  ;;  %v69_v3 = vld [vmem:[%s1337_s0 + $0x3d] sm:$0x1] }
  0x29   :  { %v894_v13 = vpack.c.b16 %v866_v9, %v866_v9  ;;  %v702_v14 = vrot.slane %v478_v6, %v1070_v32  ;;  %v709_v15 = vrot.slane %v485_v7, %v1070_v32  ;;  %v205_v16 = vshrl.u32 %v92_v0, 16 }
  0x2a   :  { %v716_v17 = vrot.slane %v492_v10, %v1070_v32  ;;  %v723_v18 = vrot.slane %v499_v11, %v1070_v32  ;;  %v210_v19 = vshrl.u32 %v93_v4, 16  ;;  %v215_v20 = vshrl.u32 %v94_v8, 16 }
  0x2b   :  { %1010 = vst.sshfl [vmem:[%s1338_s1 + $0x6] sm:$0x3 pattern:$0x76325410] %v894_v13  ;;  %v824_v24 = vunpack.c.l.b16 %v702_v14  ;;  %v825_v25 = vunpack.c.l.b16 %v709_v15  ;;  %v220_v26 = vshrl.u32 %v95_v12, 16  ;;  %v316_v27 = vmax.bf16 %v205_v16, %v92_v0 }
  0x2c   :  { %v826_v28 = vunpack.c.l.b16 %v716_v17  ;;  %v827_v29 = vunpack.c.l.b16 %v723_v18  ;;  %v317_v30 = vmax.bf16 %v210_v19, %v93_v4  ;;  %v318_v31 = vmax.bf16 %v215_v20, %v94_v8  ;;  %v70_v8 = vld [vmem:[%s1337_s0 + $0x3e] sm:$0x1]  ;;  %v67_v17 = vld [vmem:[%s1337_s0 + $0x3b] sm:$0x1]  ;;  %v71_v18 = vld [vmem:[%s1337_s0 + $0x3f] sm:$0x1] }
  0x2d   :  { %v867_v35 = vrot.slane %v825_v25, 7  ;;  %v319_v36 = vmax.bf16 %v220_v26, %v95_v12  ;;  %v506_v37 = vrot.slane %v316_v27, %v1056_v23  ;;  %v96_v40 = vmax.bf16 %v60_v22, %v56_v21 }
  0x2e   :  { %v869_v41 = vrot.slane %v826_v28, 6  ;;  %v871_v42 = vrot.slane %v827_v29, 5  ;;  %v513_v43 = vrot.slane %v317_v30, %v1056_v23  ;;  %v520_v44 = vrot.slane %v318_v31, %v1056_v23 }
  0x2f   :  { %v868_v47 = vsel %vm841_vm0, %v867_v35, %v824_v24  ;;  %v527_v48 = vrot.slane %v319_v36, %v1056_v23  ;;  %v730_v49 = vrot.slane %v506_v37, %v1070_v32  ;;  %v97_v50 = vmax.bf16 %v61_v34, %v57_v33 }
  0x30   :  { %v870_v51 = vsel %vm844_vm1, %v869_v41, %v868_v47  ;;  %v737_v52 = vrot.slane %v513_v43, %v1070_v32  ;;  %v744_v53 = vrot.slane %v520_v44, %v1070_v32  ;;  %v98_v54 = vmax.bf16 %v62_v39, %v58_v38 }
  0x31   :  { %v872_v55 = vsel %vm847_vm2, %v871_v42, %v870_v51  ;;  %v751_v56 = vrot.slane %v527_v48, %v1070_v32  ;;  %v828_v57 = vunpack.c.l.b16 %v730_v49  ;;  %v99_v58 = vmax.bf16 %v63_v46, %v59_v45 }
  0x32   :  { %v895_v62 = vpack.c.b16 %v872_v55, %v872_v55  ;;  %v829_v63 = vunpack.c.l.b16 %v737_v52  ;;  %v830_v0 = vunpack.c.l.b16 %v744_v53  ;;  %v225_v1 = vshrl.u32 %v96_v40, 16 }
  0x33   :  { %v831_v4 = vunpack.c.l.b16 %v751_v56  ;;  %v230_v5 = vshrl.u32 %v97_v50, 16  ;;  %v235_v6 = vshrl.u32 %v98_v54, 16  ;;  %v240_v7 = vshrl.u32 %v99_v58, 16 }
  0x34   :  { %1011 = vst.sshfl [vmem:[%s1338_s1 + $0x8] sm:$0x3 pattern:$0x76325410] %v895_v62  ;;  %v873_v9 = vrot.slane %v829_v63, 7  ;;  %v875_v10 = vrot.slane %v830_v0, 6  ;;  %v320_v11 = vmax.bf16 %v225_v1, %v96_v40  ;;  %v100_v12 = vmax.bf16 %v68_v61, %v64_v59 }
  0x35   :  { %v877_v13 = vrot.slane %v831_v4, 5  ;;  %v321_v14 = vmax.bf16 %v230_v5, %v97_v50  ;;  %v322_v15 = vmax.bf16 %v235_v6, %v98_v54  ;;  %v323_v16 = vmax.bf16 %v240_v7, %v99_v58 }
  0x36   :  { %v874_v19 = vsel %vm841_vm0, %v873_v9, %v828_v57  ;;  %v534_v20 = vrot.slane %v320_v11, %v1056_v23  ;;  %v101_v21 = vmax.bf16 %v69_v3, %v65_v60  ;;  %v102_v22 = vmax.bf16 %v70_v8, %v66_v2 }
  0x37   :  { %v876_v24 = vsel %vm844_vm1, %v875_v10, %v874_v19  ;;  %v541_v25 = vrot.slane %v321_v14, %v1056_v23  ;;  %v548_v26 = vrot.slane %v322_v15, %v1056_v23  ;;  %v555_v27 = vrot.slane %v323_v16, %v1056_v23 }
  0x38   :  { %v878_v28 = vsel %vm847_vm2, %v877_v13, %v876_v24  ;;  %v758_v29 = vrot.slane %v534_v20, %v1070_v32  ;;  %v103_v30 = vmax.bf16 %v71_v18, %v67_v17  ;;  %v245_v31 = vshrl.u32 %v100_v12, 16 }
  0x39   :  { %v896_v33 = vpack.c.b16 %v878_v28, %v878_v28  ;;  %v765_v34 = vrot.slane %v541_v25, %v1070_v32  ;;  %v772_v35 = vrot.slane %v548_v26, %v1070_v32  ;;  %v779_v36 = vrot.slane %v555_v27, %v1070_v32 }
  0x3a   :  { %v832_v37 = vunpack.c.l.b16 %v758_v29  ;;  %v250_v38 = vshrl.u32 %v101_v21, 16  ;;  %v255_v39 = vshrl.u32 %v102_v22, 16  ;;  %v260_v40 = vshrl.u32 %v103_v30, 16 }
  0x3b   :  { %1012 = vst.sshfl [vmem:[%s1338_s1 + $0xa] sm:$0x3 pattern:$0x76325410] %v896_v33  ;;  %v833_v41 = vunpack.c.l.b16 %v765_v34  ;;  %v834_v42 = vunpack.c.l.b16 %v772_v35  ;;  %v835_v43 = vunpack.c.l.b16 %v779_v36  ;;  %v324_v44 = vmax.bf16 %v245_v31, %v100_v12 }
  0x3c   :  { %v325_v45 = vmax.bf16 %v250_v38, %v101_v21  ;;  %v326_v46 = vmax.bf16 %v255_v39, %v102_v22  ;;  %v327_v47 = vmax.bf16 %v260_v40, %v103_v30 }
  0x3d   :  { %v879_v48 = vrot.slane %v833_v41, 7  ;;  %v881_v49 = vrot.slane %v834_v42, 6  ;;  %v883_v50 = vrot.slane %v835_v43, 5  ;;  %v562_v51 = vrot.slane %v324_v44, %v1056_v23 }
  0x3e   :  { %v569_v52 = vrot.slane %v325_v45, %v1056_v23  ;;  %v576_v53 = vrot.slane %v326_v46, %v1056_v23  ;;  %v583_v54 = vrot.slane %v327_v47, %v1056_v23 }
  0x3f   :  { %v880_v55 = vsel %vm841_vm0, %v879_v48, %v832_v37  ;;  %v786_v56 = vrot.slane %v562_v51, %v1070_v32 }
  0x40   :  { %v882_v57 = vsel %vm844_vm1, %v881_v49, %v880_v55  ;;  %v793_v58 = vrot.slane %v569_v52, %v1070_v32  ;;  %v800_v59 = vrot.slane %v576_v53, %v1070_v32  ;;  %v807_v60 = vrot.slane %v583_v54, %v1070_v32 }
  0x41   :  { %v884_v61 = vsel %vm847_vm2, %v883_v50, %v882_v57  ;;  %v836_v62 = vunpack.c.l.b16 %v786_v56 }
  0x42   :  { %v897_v63 = vpack.c.b16 %v884_v61, %v884_v61  ;;  %v837_v0 = vunpack.c.l.b16 %v793_v58  ;;  %v838_v1 = vunpack.c.l.b16 %v800_v59  ;;  %v839_v2 = vunpack.c.l.b16 %v807_v60 }
  0x44   :  { %1013 = vst.sshfl [vmem:[%s1338_s1 + $0xc] sm:$0x3 pattern:$0x76325410] %v897_v63  ;;  %v885_v23 = vrot.slane %v837_v0, 7  ;;  %v887_v3 = vrot.slane %v838_v1, 6 }
  0x45   :  { %v889_v4 = vrot.slane %v839_v2, 5 }
  0x46   :  { %v886_v5 = vsel %vm841_vm0, %v885_v23, %v836_v62 }
  0x47   :  { %v888_v6 = vsel %vm844_vm1, %v887_v3, %v886_v5 }
  0x48   :  { %v890_v32 = vsel %vm847_vm2, %v889_v4, %v888_v6 }
  0x49   :  { %v898_v7 = vpack.c.b16 %v890_v32, %v890_v32 }
  0x4b   :  { %1014 = vst.sshfl [vmem:[%s1338_s1 + $0xe] sm:$0x3 pattern:$0x76325410] %v898_v7 }

// kernel: perceptual_loss.14
= control target key start
LH: loop header
LB: loop body
LE: loop exit
PB: predicated region body
PF: predicated region fallthrough
CT: control target
= control target key end

     0   :  { %s2950_s1 = inlined_call_operand.vmem [shape: bf16[1152,128], index: 1, kind: input, shape index: {}]   ;;  %s2951_s0 = inlined_call_operand.vmem [shape: bf16[128,1152], index: 0, kind: input, shape index: {}]   ;;  %s2952_s2 = inlined_call_operand.vmem [shape: f32[1,128], index: 2, kind: input, shape index: {}]   ;;  %s2953_s3 = inlined_call_operand.vmem [shape: bf16[128,128], index: 3, kind: output, shape index: {}]  }
   0x1   :  { %v2175_v0 = vld [vmem:[%s2950_s1 + $0x78] sm:$0xff]   ;;  %v2179_v4 = vld [vmem:[%s2950_s1 + $0x70] sm:$0xff]   ;;  %v2183_v8 = vld [vmem:[%s2950_s1 + $0x68] sm:$0xff]  }
   0x2   :  { %v2176_v1 = vld [vmem:[%s2950_s1 + $0xf8] sm:$0xff]   ;;  %1855 = vmatprep.subr.bf16.mxu0 %v2175_v0  ;;  %v2180_v5 = vld [vmem:[%s2950_s1 + $0xf0] sm:$0xff]   ;;  %v2184_v9 = vld [vmem:[%s2950_s1 + $0xe8] sm:$0xff]  }
   0x3   :  { %v2177_v2 = vld [vmem:[%s2950_s1 + $0x38] sm:$0xff]   ;;  %1919 = vmatprep.subr.bf16.mxu1 %v2176_v1  ;;  %v2181_v6 = vld [vmem:[%s2950_s1 + $0x30] sm:$0xff]   ;;  %v2185_v10 = vld [vmem:[%s2950_s1 + $0x28] sm:$0xff]  }
   0x4   :  { %v2178_v3 = vld [vmem:[%s2950_s1 + $0xb8] sm:$0xff]   ;;  %1856 = vmatpush3.bf16.msra.mxu0 %v2177_v2  ;;  %v2182_v7 = vld [vmem:[%s2950_s1 + $0xb0] sm:$0xff]   ;;  %v2186_v11 = vld [vmem:[%s2950_s1 + $0xa8] sm:$0xff]  }
   0x5   :  { %1920 = vmatpush3.bf16.msra.mxu1 %v2178_v3  ;;  %1857 = vmatprep.subr.bf16.mxu0 %v2179_v4  ;;  %v2187_v12 = vld [vmem:[%s2950_s1 + $0x60] sm:$0xff]   ;;  %v2191_v16 = vld [vmem:[%s2950_s1 + $0x58] sm:$0xff]   ;;  %v2195_v20 = vld [vmem:[%s2950_s1 + $0x50] sm:$0xff]  }
   0x6   :  { %1921 = vmatprep.subr.bf16.mxu1 %v2180_v5  ;;  %v2188_v13 = vld [vmem:[%s2950_s1 + $0xe0] sm:$0xff]   ;;  %v2192_v17 = vld [vmem:[%s2950_s1 + $0xd8] sm:$0xff]   ;;  %v2196_v21 = vld [vmem:[%s2950_s1 + $0xd0] sm:$0xff]  }
   0x7   :  { %v2189_v14 = vld [vmem:[%s2950_s1 + $0x20] sm:$0xff]   ;;  %v2193_v18 = vld [vmem:[%s2950_s1 + $0x18] sm:$0xff]   ;;  %v2197_v22 = vld [vmem:[%s2950_s1 + $0x10] sm:$0xff]  }
   0x8   :  { %1858 = vmatpush3.bf16.msra.mxu0 %v2181_v6  ;;  %v2190_v15 = vld [vmem:[%s2950_s1 + $0xa0] sm:$0xff]   ;;  %v2194_v19 = vld [vmem:[%s2950_s1 + $0x98] sm:$0xff]   ;;  %v2198_v23 = vld [vmem:[%s2950_s1 + $0x90] sm:$0xff]  }
   0x9   :  { %1922 = vmatpush3.bf16.msra.mxu1 %v2182_v7  ;;  %1859 = vmatprep.subr.bf16.mxu0 %v2183_v8  ;;  %v2199_v24 = vld [vmem:[%s2950_s1 + $0x48] sm:$0xff]   ;;  %v2203_v28 = vld [vmem:[%s2950_s1 + $0x40] sm:$0xff]   ;;  %v2213_v36 = vld [vmem:[%s2950_s1 + $0x178] sm:$0xff]  }
   0xa   :  { %1923 = vmatprep.subr.bf16.mxu1 %v2184_v9  ;;  %v2200_v25 = vld [vmem:[%s2950_s1 + $0xc8] sm:$0xff]   ;;  %v2204_v29 = vld [vmem:[%s2950_s1 + $0xc0] sm:$0xff]   ;;  %v2214_v37 = vld [vmem:[%s2950_s1 + $0x1f8] sm:$0xff]  }
   0xb   :  { %v2201_v26 = vld [vmem:[%s2950_s1 + $0x8] sm:$0xff]   ;;  %v2205_v30 = vld [vmem:[%s2950_s1] sm:$0xff]   ;;  %v2215_v38 = vld [vmem:[%s2950_s1 + $0x138] sm:$0xff]  }
   0xc   :  { %1860 = vmatpush3.bf16.msra.mxu0 %v2185_v10  ;;  %v2202_v27 = vld [vmem:[%s2950_s1 + $0x88] sm:$0xff]   ;;  %v2206_v31 = vld [vmem:[%s2950_s1 + $0x80] sm:$0xff]   ;;  %v2216_v39 = vld [vmem:[%s2950_s1 + $0x1b8] sm:$0xff]  }
   0xd   :  { %1924 = vmatpush3.bf16.msra.mxu1 %v2186_v11  ;;  %1861 = vmatprep.subr.bf16.mxu0 %v2187_v12  ;;  %v2207_v32 = vld [vmem:[%s2951_s0] ss:$36 sps:$4 sm:$0xff]   ;;  %v2210_v34 = vld [vmem:[%s2951_s0 + $0x8] ss:$36 sps:$4 sm:$0xff]   ;;  %v2219_v41 = vld [vmem:[%s2951_s0 + $0x54] ss:$36 sps:$4 sm:$0xff]  }
   0xe   :  { %1925 = vmatprep.subr.bf16.mxu1 %v2188_v13  ;;  %v2209_v33 = vld [vmem:[%s2951_s0 + $0x4] ss:$36 sps:$4 sm:$0xff]   ;;  %v2212_v35 = vld [vmem:[%s2951_s0 + $0xc] ss:$36 sps:$4 sm:$0xff]   ;;  %v2227_v48 = vld [vmem:[%s2951_s0 + $0x94] ss:$36 sps:$4 sm:$0xff]  }
   0xf   :  { %1078 = vmatprep.mubr.bf16.mxu0 %v2209_v33  ;;  %1175 = vmatprep.mubr.bf16.mxu1 %v2212_v35  ;;  %v2217_v40 = vld [vmem:[%s2951_s0 + $0x4c] ss:$36 sps:$4 sm:$0xff]   ;;  %v2229_v49 = vld [vmem:[%s2951_s0 + $0x9c] ss:$36 sps:$4 sm:$0xff]   ;;  %v2239_v57 = vld [vmem:[%s2951_s0 + $0xe4] ss:$36 sps:$4 sm:$0xff]  }
  0x10   :  { %1862 = vmatpush3.bf16.msra.mxu0 %v2189_v14  ;;  %v2221_v42 = vld [vmem:[%s2951_s0 + $0x48] ss:$36 sps:$4 sm:$0xff]   ;;  %v2222_v43 = vld [vmem:[%s2951_s0 + $0x50] ss:$36 sps:$4 sm:$0xff]   ;;  %v2232_v51 = vld [vmem:[%s2951_s0 + $0x98] ss:$36 sps:$4 sm:$0xff]  }
  0x11   :  { %1926 = vmatpush3.bf16.msra.mxu1 %v2190_v15  ;;  %1863 = vmatprep.subr.bf16.mxu0 %v2191_v16  ;;  %v2223_v44 = vld [vmem:[%s2950_s1 + $0x170] sm:$0xff]   ;;  %v2233_v52 = vld [vmem:[%s2950_s1 + $0x168] sm:$0xff]   ;;  %v2237_v56 = vld [vmem:[%s2951_s0 + $0xdc] ss:$36 sps:$4 sm:$0xff]  }
  0x12   :  { %1927 = vmatprep.subr.bf16.mxu1 %v2192_v17  ;;  %v2224_v45 = vld [vmem:[%s2950_s1 + $0x1f0] sm:$0xff]   ;;  %v2234_v53 = vld [vmem:[%s2950_s1 + $0x1e8] sm:$0xff]   ;;  %v2241_v58 = vld [vmem:[%s2951_s0 + $0xd8] ss:$36 sps:$4 sm:$0xff]  }
  0x13   :  { %v2225_v46 = vld [vmem:[%s2950_s1 + $0x130] sm:$0xff]   ;;  %v2235_v54 = vld [vmem:[%s2950_s1 + $0x128] sm:$0xff]   ;;  %v2242_v59 = vld [vmem:[%s2951_s0 + $0xe0] ss:$36 sps:$4 sm:$0xff]  }
  0x14   :  { %1864 = vmatpush3.bf16.msra.mxu0 %v2193_v18  ;;  %v2226_v47 = vld [vmem:[%s2950_s1 + $0x1b0] sm:$0xff]   ;;  %v2236_v55 = vld [vmem:[%s2950_s1 + $0x1a8] sm:$0xff]   ;;  %v2243_v60 = vld [vmem:[%s2950_s1 + $0x160] sm:$0xff]  }
  0x15   :  { %1928 = vmatpush3.bf16.msra.mxu1 %v2194_v19  ;;  %1865 = vmatprep.subr.bf16.mxu0 %v2195_v20  ;;  %v2231_v50 = vld [vmem:[%s2951_s0 + $0x90] ss:$36 sps:$4 sm:$0xff]   ;;  %v2244_v61 = vld [vmem:[%s2950_s1 + $0x1e0] sm:$0xff]   ;;  %v2253_v3 = vld [vmem:[%s2950_s1 + $0x158] sm:$0xff]  }
  0x16   :  { %1929 = vmatprep.subr.bf16.mxu1 %v2196_v21  ;;  %v2245_v62 = vld [vmem:[%s2950_s1 + $0x120] sm:$0xff]   ;;  %v2249_v1 = vld [vmem:[%s2951_s0 + $0x12c] ss:$36 sps:$4 sm:$0xff]   ;;  %v2254_v5 = vld [vmem:[%s2950_s1 + $0x1d8] sm:$0xff]  }
  0x17   :  { %v2246_v63 = vld [vmem:[%s2950_s1 + $0x1a0] sm:$0xff]   ;;  %v2252_v4 = vld [vmem:[%s2951_s0 + $0x128] ss:$36 sps:$4 sm:$0xff]   ;;  %v2255_v6 = vld [vmem:[%s2950_s1 + $0x118] sm:$0xff]  }
  0x18   :  { %1866 = vmatpush3.bf16.msra.mxu0 %v2197_v22  ;;  %v2247_v0 = vld [vmem:[%s2951_s0 + $0x124] ss:$36 sps:$4 sm:$0xff]   ;;  %v2256_v7 = vld [vmem:[%s2950_s1 + $0x198] sm:$0xff]   ;;  %v2257_v8 = vld [vmem:[%s2951_s0 + $0x16c] ss:$36 sps:$4 sm:$0xff]  }
  0x19   :  { %1930 = vmatpush3.bf16.msra.mxu1 %v2198_v23  ;;  %1867 = vmatprep.subr.bf16.mxu0 %v2199_v24  ;;  %v2251_v2 = vld [vmem:[%s2951_s0 + $0x120] ss:$36 sps:$4 sm:$0xff]   ;;  %v2259_v9 = vld [vmem:[%s2951_s0 + $0x174] ss:$36 sps:$4 sm:$0xff]   ;;  %v2261_v12 = vld [vmem:[%s2951_s0 + $0x168] ss:$36 sps:$4 sm:$0xff]  }
  0x1a   :  { %1931 = vmatprep.subr.bf16.mxu1 %v2200_v25  ;;  %v2263_v10 = vld [vmem:[%s2950_s1 + $0x150] sm:$0xff]   ;;  %v2269_v17 = vld [vmem:[%s2951_s0 + $0x1bc] ss:$36 sps:$4 sm:$0xff]   ;;  %v2273_v18 = vld [vmem:[%s2950_s1 + $0x148] sm:$0xff]  }
  0x1b   :  { %v2264_v11 = vld [vmem:[%s2950_s1 + $0x1d0] sm:$0xff]   ;;  %v2274_v19 = vld [vmem:[%s2950_s1 + $0x1c8] sm:$0xff]   ;;  %v2272_v23 = vld [vmem:[%s2951_s0 + $0x1b8] ss:$36 sps:$4 sm:$0xff]  }
  0x1c   :  { %1868 = vmatpush3.bf16.msra.mxu0 %v2201_v26  ;;  %v2265_v13 = vld [vmem:[%s2950_s1 + $0x110] sm:$0xff]   ;;  %v2275_v20 = vld [vmem:[%s2950_s1 + $0x108] sm:$0xff]   ;;  %v2277_v24 = vld [vmem:[%s2951_s0 + $0x1fc] ss:$36 sps:$4 sm:$0xff]  }
  0x1d   :  { %1932 = vmatpush3.bf16.msra.mxu1 %v2202_v27  ;;  %1869 = vmatprep.subr.bf16.mxu0 %v2203_v28  ;;  %v2266_v14 = vld [vmem:[%s2950_s1 + $0x190] sm:$0xff]   ;;  %v2276_v21 = vld [vmem:[%s2950_s1 + $0x188] sm:$0xff]   ;;  %v2283_v26 = vld [vmem:[%s2950_s1 + $0x140] sm:$0xff]  }
  0x1e   :  { %1933 = vmatprep.subr.bf16.mxu1 %v2204_v29  ;;  %v2262_v15 = vld [vmem:[%s2951_s0 + $0x170] ss:$36 sps:$4 sm:$0xff]   ;;  %v2279_v25 = vld [vmem:[%s2951_s0 + $0x204] ss:$36 sps:$4 sm:$0xff]  }
  0x1f   :  { %v2267_v16 = vld [vmem:[%s2951_s0 + $0x1b4] ss:$36 sps:$4 sm:$0xff]   ;;  %v2284_v27 = vld [vmem:[%s2950_s1 + $0x1c0] sm:$0xff]  }
  0x20   :  { %1870 = vmatpush3.bf16.msra.mxu0 %v2205_v30  ;;  %v2271_v22 = vld [vmem:[%s2951_s0 + $0x1b0] ss:$36 sps:$4 sm:$0xff]   ;;  %v2285_v28 = vld [vmem:[%s2950_s1 + $0x100] sm:$0xff]   ;;  %v2281_v30 = vld [vmem:[%s2951_s0 + $0x1f8] ss:$36 sps:$4 sm:$0xff]  }
  0x21   :  { %1934 = vmatpush3.bf16.msra.mxu1 %v2206_v31  ;;  %1983 = vmatprep.subr.bf16.mxu0 %v2213_v36  ;;  %v2286_v29 = vld [vmem:[%s2950_s1 + $0x180] sm:$0xff]   ;;  %v2289_v33 = vld [vmem:[%s2951_s0 + $0x14] ss:$36 sps:$4 sm:$0xff]  }
  0x22   :  { %2047 = vmatprep.subr.bf16.mxu1 %v2214_v37  ;;  %v2282_v31 = vld [vmem:[%s2951_s0 + $0x200] ss:$36 sps:$4 sm:$0xff]   ;;  %v2287_v35 = vld [vmem:[%s2951_s0 + $0x10] ss:$36 sps:$4 sm:$0xff]   ;;  %v2290_v36 = vld [vmem:[%s2951_s0 + $0x18] ss:$36 sps:$4 sm:$0xff]  }
  0x23   :  { %1079 = vmatmul.mubr.bf16.vlgmr.msra.gmra.mxu0 %v2207_v32  ;;  %v2293_v32 = vld [vmem:[%s2950_s1 + $0x238] sm:$0xff]  }
  0x24   :  { %1176 = vmatmul.mubr.bf16.vlgmr.msra.gmra.mxu1 %v2210_v34  ;;  %1984 = vmatpush3.bf16.msra.mxu0 %v2215_v38  ;;  %v2292_v34 = vld [vmem:[%s2951_s0 + $0x1c] ss:$36 sps:$4 sm:$0xff]   ;;  %v2296_v38 = vld [vmem:[%s2951_s0 + $0x64] ss:$36 sps:$4 sm:$0xff]  }
  0x25   :  { %2048 = vmatpush3.bf16.msra.mxu1 %v2216_v39  ;;  %1086 = vmatprep.mubr.bf16.mxu0 %v2217_v40  ;;  %v2294_v37 = vld [vmem:[%s2951_s0 + $0x5c] ss:$36 sps:$4 sm:$0xff]   ;;  %v2300_v39 = vld [vmem:[%s2950_s1 + $0x230] sm:$0xff]   ;;  %v2307_v40 = vld [vmem:[%s2950_s1 + $0x228] sm:$0xff]  }
  0x26   :  { %1183 = vmatprep.mubr.bf16.mxu1 %v2219_v41  ;;  %1985 = vmatprep.subr.bf16.mxu0 %v2223_v44  ;;  %v2298_v41 = vld [vmem:[%s2951_s0 + $0x58] ss:$36 sps:$4 sm:$0xff]   ;;  %v2303_v44 = vld [vmem:[%s2951_s0 + $0xac] ss:$36 sps:$4 sm:$0xff]  }
  0x27   :  { %2049 = vmatprep.subr.bf16.mxu1 %v2224_v45  ;;  %v2314_v45 = vld [vmem:[%s2950_s1 + $0x220] sm:$0xff]  }
  0x28   :  { %1986 = vmatpush3.bf16.msra.mxu0 %v2225_v46  ;;  %v2321_v46 = vld [vmem:[%s2950_s1 + $0x218] sm:$0xff]  }
  0x29   :  { %2050 = vmatpush3.bf16.msra.mxu1 %v2226_v47  ;;  %1987 = vmatprep.subr.bf16.mxu0 %v2233_v52  ;;  %v2305_v47 = vld [vmem:[%s2951_s0 + $0xa0] ss:$36 sps:$4 sm:$0xff]   ;;  %v2312_v52 = vld [vmem:[%s2951_s0 + $0xe8] ss:$36 sps:$4 sm:$0xff]  }
  0x2a   :  { %2051 = vmatprep.subr.bf16.mxu1 %v2234_v53  ;;  %v2335_v53 = vld [vmem:[%s2950_s1 + $0x208] sm:$0xff]  }
  0x2b   :  { %1087 = vmatmul.mubr.bf16.gmra.mxu0 %v2221_v42  ;;  %v2299_v42 = vld [vmem:[%s2951_s0 + $0x60] ss:$36 sps:$4 sm:$0xff]  }
  0x2c   :  { %1184 = vmatmul.mubr.bf16.gmra.mxu1 %v2222_v43  ;;  %1094 = vmatprep.mubr.bf16.mxu0 %v2227_v48  ;;  %v2301_v43 = vld [vmem:[%s2951_s0 + $0xa4] ss:$36 sps:$4 sm:$0xff]  }
  0x2d   :  { %1191 = vmatprep.mubr.bf16.mxu1 %v2229_v49  ;;  %1988 = vmatpush3.bf16.msra.mxu0 %v2235_v54  ;;  %v2306_v48 = vld [vmem:[%s2951_s0 + $0xa8] ss:$36 sps:$4 sm:$0xff]   ;;  %v2313_v54 = vld [vmem:[%s2951_s0 + $0xf0] ss:$36 sps:$4 sm:$0xff]  }
  0x2e   :  { %2052 = vmatpush3.bf16.msra.mxu1 %v2236_v55  ;;  %1989 = vmatprep.subr.bf16.mxu0 %v2243_v60  ;;  %v2308_v49 = vld [vmem:[%s2951_s0 + $0xec] ss:$36 sps:$4 sm:$0xff]   ;;  %v2315_v55 = vld [vmem:[%s2951_s0 + $0x134] ss:$36 sps:$4 sm:$0xff]   ;;  %v2322_v60 = vld [vmem:[%s2951_s0 + $0x17c] ss:$36 sps:$4 sm:$0xff]  }
  0x2f   :  { %2053 = vmatprep.subr.bf16.mxu1 %v2244_v61  ;;  %v2324_v61 = vld [vmem:[%s2951_s0 + $0x184] ss:$36 sps:$4 sm:$0xff]  }
  0x31   :  { %1990 = vmatpush3.bf16.msra.mxu0 %v2245_v62  ;;  %v2326_v62 = vld [vmem:[%s2951_s0 + $0x178] ss:$36 sps:$4 sm:$0xff]  }
  0x32   :  { %2054 = vmatpush3.bf16.msra.mxu1 %v2246_v63  ;;  %1991 = vmatprep.subr.bf16.mxu0 %v2253_v3  ;;  %v2327_v63 = vld [vmem:[%s2951_s0 + $0x180] ss:$36 sps:$4 sm:$0xff]   ;;  %v2334_v3 = vld [vmem:[%s2951_s0 + $0x1c8] ss:$36 sps:$4 sm:$0xff]  }
  0x33   :  { %1095 = vmatmul.mubr.bf16.gmra.mxu0 %v2231_v50  ;;  %2055 = vmatprep.subr.bf16.mxu1 %v2254_v5  ;;  %v2310_v50 = vld [vmem:[%s2951_s0 + $0xf4] ss:$36 sps:$4 sm:$0xff]  }
  0x34   :  { %1192 = vmatmul.mubr.bf16.gmra.mxu1 %v2232_v51  ;;  %1102 = vmatprep.mubr.bf16.mxu0 %v2237_v56  ;;  %v2328_v51 = vld [vmem:[%s2950_s1 + $0x210] sm:$0xff]   ;;  %v2317_v56 = vld [vmem:[%s2951_s0 + $0x13c] ss:$36 sps:$4 sm:$0xff]  }
  0x35   :  { %1199 = vmatprep.mubr.bf16.mxu1 %v2239_v57  ;;  %1992 = vmatpush3.bf16.msra.mxu0 %v2255_v6  ;;  %v2342_v57 = vld [vmem:[%s2950_s1 + $0x200] sm:$0xff]   ;;  %v2338_v5 = vld [vmem:[%s2951_s0 + $0x214] ss:$36 sps:$4 sm:$0xff]   ;;  %v2340_v6 = vld [vmem:[%s2951_s0 + $0x208] ss:$36 sps:$4 sm:$0xff]  }
  0x36   :  { %2056 = vmatpush3.bf16.msra.mxu1 %v2256_v7  ;;  %1993 = vmatprep.subr.bf16.mxu0 %v2263_v10  ;;  %v2341_v7 = vld [vmem:[%s2951_s0 + $0x210] ss:$36 sps:$4 sm:$0xff]   ;;  %v2345_v10 = vld [vmem:[%s2951_s0 + $0x68] ss:$36 sps:$4 sm:$0xff]  }
  0x37   :  { %2057 = vmatprep.subr.bf16.mxu1 %v2264_v11  ;;  %v2346_v11 = vld [vmem:[%s2951_s0 + $0x188] ss:$36 sps:$4 sm:$0xff]  }
  0x39   :  { %1994 = vmatpush3.bf16.msra.mxu0 %v2265_v13  ;;  %v2348_v13 = vld [vmem:[%s2951_s0 + $0x1d0] ss:$36 sps:$4 sm:$0xff]  }
  0x3a   :  { %2058 = vmatpush3.bf16.msra.mxu1 %v2266_v14  ;;  %1995 = vmatprep.subr.bf16.mxu0 %v2273_v18  ;;  %v2349_v14 = vld [vmem:[%s2951_s0 + $0xf8] ss:$36 sps:$4 sm:$0xff]   ;;  %v2806_v18 = vld [vmem:[%s2952_s2] ss:$0 sm:$0xff] }
  0x3b   :  { %1103 = vmatmul.mubr.bf16.gmra.mxu0 %v2241_v58  ;;  %2059 = vmatprep.subr.bf16.mxu1 %v2274_v19  ;;  %v2319_v58 = vld [vmem:[%s2951_s0 + $0x130] ss:$36 sps:$4 sm:$0xff]  }
  0x3c   :  { %1200 = vmatmul.mubr.bf16.gmra.mxu1 %v2242_v59  ;;  %1110 = vmatprep.mubr.bf16.mxu0 %v2247_v0  ;;  %v2320_v59 = vld [vmem:[%s2951_s0 + $0x138] ss:$36 sps:$4 sm:$0xff]   ;;  %v2329_v0 = vld [vmem:[%s2951_s0 + $0x1c4] ss:$36 sps:$4 sm:$0xff]  }
  0x3d   :  { %1207 = vmatprep.mubr.bf16.mxu1 %v2249_v1  ;;  %1996 = vmatpush3.bf16.msra.mxu0 %v2275_v20  ;;  %v2331_v1 = vld [vmem:[%s2951_s0 + $0x1cc] ss:$36 sps:$4 sm:$0xff]  }
  0x3e   :  { %2060 = vmatpush3.bf16.msra.mxu1 %v2276_v21  ;;  %1997 = vmatprep.subr.bf16.mxu0 %v2283_v26 }
  0x3f   :  { %2061 = vmatprep.subr.bf16.mxu1 %v2284_v27 }
  0x41   :  { %1998 = vmatpush3.bf16.msra.mxu0 %v2285_v28 }
  0x42   :  { %2062 = vmatpush3.bf16.msra.mxu1 %v2286_v29  ;;  %2127 = vmatprep.subr.bf16.mxu0 %v2293_v32 }
  0x43   :  { %1111 = vmatmul.mubr.bf16.gmra.mxu0 %v2251_v2  ;;  %2159 = vmatprep.subr.bf16.mxu1 %v2293_v32  ;;  %v2333_v2 = vld [vmem:[%s2951_s0 + $0x1c0] ss:$36 sps:$4 sm:$0xff]  }
  0x44   :  { %1208 = vmatmul.mubr.bf16.gmra.mxu1 %v2252_v4  ;;  %1118 = vmatprep.mubr.bf16.mxu0 %v2257_v8  ;;  %v2336_v4 = vld [vmem:[%s2951_s0 + $0x20c] ss:$36 sps:$4 sm:$0xff]   ;;  %v2343_v8 = vld [vmem:[%s2951_s0 + $0x20] ss:$36 sps:$4 sm:$0xff]  }
  0x45   :  { %1215 = vmatprep.mubr.bf16.mxu1 %v2259_v9  ;;  %v2344_v9 = vld [vmem:[%s2951_s0 + $0x140] ss:$36 sps:$4 sm:$0xff]  }
  0x4b   :  { %1119 = vmatmul.mubr.bf16.gmra.mxu0 %v2261_v12  ;;  %v2347_v12 = vld [vmem:[%s2951_s0 + $0xb0] ss:$36 sps:$4 sm:$0xff]  }
  0x4c   :  { %1216 = vmatmul.mubr.bf16.gmra.mxu1 %v2262_v15  ;;  %1126 = vmatprep.mubr.bf16.mxu0 %v2267_v16  ;;  %v2350_v15 = vld [vmem:[%s2951_s0 + $0x218] ss:$36 sps:$4 sm:$0xff]  }
  0x4d   :  { %1223 = vmatprep.mubr.bf16.mxu1 %v2269_v17 }
  0x53   :  { %1127 = vmatmul.mubr.bf16.gmra.mxu0 %v2271_v22 }
  0x54   :  { %1224 = vmatmul.mubr.bf16.gmra.mxu1 %v2272_v23  ;;  %1134 = vmatprep.mubr.bf16.mxu0 %v2277_v24 }
  0x55   :  { %1231 = vmatprep.mubr.bf16.mxu1 %v2279_v25 }
  0x5b   :  { %1135 = vmatmul.mubr.bf16.gmra.mxu0 %v2281_v30 }
  0x5c   :  { %1232 = vmatmul.mubr.bf16.gmra.mxu1 %v2282_v31  ;;  %1272 = vmatprep.mubr.bf16.mxu0 %v2289_v33 }
  0x5d   :  { %1369 = vmatprep.mubr.bf16.mxu1 %v2292_v34 }
  0x63   :  { %1273 = vmatmul.mubr.bf16.vlgmr.msra.gmra.mxu0 %v2287_v35 }
  0x64   :  { %1370 = vmatmul.mubr.bf16.vlgmr.msra.gmra.mxu1 %v2290_v36  ;;  %2128 = vmatpush3.bf16.msra.mxu0 %v2293_v32 }
  0x65   :  { %2167 = vmatpush3.bf16.msra.mxu1 %v2293_v32  ;;  %1280 = vmatprep.mubr.bf16.mxu0 %v2294_v37 }
  0x66   :  { %1377 = vmatprep.mubr.bf16.mxu1 %v2296_v38  ;;  %2129 = vmatprep.subr.bf16.mxu0 %v2300_v39 }
  0x67   :  { %2160 = vmatprep.subr.bf16.mxu1 %v2300_v39 }
  0x68   :  { %2130 = vmatpush3.bf16.msra.mxu0 %v2300_v39 }
  0x69   :  { %2168 = vmatpush3.bf16.msra.mxu1 %v2300_v39  ;;  %2131 = vmatprep.subr.bf16.mxu0 %v2307_v40 }
  0x6a   :  { %2161 = vmatprep.subr.bf16.mxu1 %v2307_v40 }
  0x6b   :  { %1281 = vmatmul.mubr.bf16.gmra.mxu0 %v2298_v41 }
  0x6c   :  { %1378 = vmatmul.mubr.bf16.gmra.mxu1 %v2299_v42  ;;  %1288 = vmatprep.mubr.bf16.mxu0 %v2301_v43 }
  0x6d   :  { %1385 = vmatprep.mubr.bf16.mxu1 %v2303_v44  ;;  %2132 = vmatpush3.bf16.msra.mxu0 %v2307_v40 }
  0x6e   :  { %2169 = vmatpush3.bf16.msra.mxu1 %v2307_v40  ;;  %2133 = vmatprep.subr.bf16.mxu0 %v2314_v45 }
  0x6f   :  { %2162 = vmatprep.subr.bf16.mxu1 %v2314_v45 }
  0x71   :  { %2134 = vmatpush3.bf16.msra.mxu0 %v2314_v45 }
  0x72   :  { %2170 = vmatpush3.bf16.msra.mxu1 %v2314_v45  ;;  %2135 = vmatprep.subr.bf16.mxu0 %v2321_v46 }
  0x73   :  { %1289 = vmatmul.mubr.bf16.gmra.mxu0 %v2305_v47  ;;  %2163 = vmatprep.subr.bf16.mxu1 %v2321_v46 }
  0x74   :  { %1386 = vmatmul.mubr.bf16.gmra.mxu1 %v2306_v48  ;;  %1296 = vmatprep.mubr.bf16.mxu0 %v2308_v49 }
  0x75   :  { %1393 = vmatprep.mubr.bf16.mxu1 %v2310_v50  ;;  %2136 = vmatpush3.bf16.msra.mxu0 %v2321_v46 }
  0x76   :  { %2171 = vmatpush3.bf16.msra.mxu1 %v2321_v46  ;;  %2137 = vmatprep.subr.bf16.mxu0 %v2328_v51 }
  0x77   :  { %2164 = vmatprep.subr.bf16.mxu1 %v2328_v51 }
  0x79   :  { %2138 = vmatpush3.bf16.msra.mxu0 %v2328_v51 }
  0x7a   :  { %2172 = vmatpush3.bf16.msra.mxu1 %v2328_v51  ;;  %2139 = vmatprep.subr.bf16.mxu0 %v2335_v53 }
  0x7b   :  { %1297 = vmatmul.mubr.bf16.gmra.mxu0 %v2312_v52  ;;  %2165 = vmatprep.subr.bf16.mxu1 %v2335_v53 }
  0x7c   :  { %1394 = vmatmul.mubr.bf16.gmra.mxu1 %v2313_v54  ;;  %1304 = vmatprep.mubr.bf16.mxu0 %v2315_v55 }
  0x7d   :  { %1401 = vmatprep.mubr.bf16.mxu1 %v2317_v56  ;;  %2140 = vmatpush3.bf16.msra.mxu0 %v2335_v53 }
  0x7e   :  { %2173 = vmatpush3.bf16.msra.mxu1 %v2335_v53  ;;  %2141 = vmatprep.subr.bf16.mxu0 %v2342_v57 }
  0x7f   :  { %2166 = vmatprep.subr.bf16.mxu1 %v2342_v57 }
  0x81   :  { %2142 = vmatpush3.bf16.msra.mxu0 %v2342_v57 }
  0x82   :  { %2174 = vmatpush3.bf16.msra.mxu1 %v2342_v57 }
  0x83   :  { %1305 = vmatmul.mubr.bf16.gmra.mxu0 %v2319_v58 }
  0x84   :  { %1402 = vmatmul.mubr.bf16.gmra.mxu1 %v2320_v59  ;;  %1312 = vmatprep.mubr.bf16.mxu0 %v2322_v60 }
  0x85   :  { %1409 = vmatprep.mubr.bf16.mxu1 %v2324_v61 }
  0x8b   :  { %1313 = vmatmul.mubr.bf16.gmra.mxu0 %v2326_v62 }
  0x8c   :  { %1410 = vmatmul.mubr.bf16.gmra.mxu1 %v2327_v63  ;;  %1320 = vmatprep.mubr.bf16.mxu0 %v2329_v0 }
  0x8d   :  { %1417 = vmatprep.mubr.bf16.mxu1 %v2331_v1 }
  0x93   :  { %1321 = vmatmul.mubr.bf16.gmra.mxu0 %v2333_v2 }
  0x94   :  { %1418 = vmatmul.mubr.bf16.gmra.mxu1 %v2334_v3  ;;  %1328 = vmatprep.mubr.bf16.mxu0 %v2336_v4 }
  0x95   :  { %1425 = vmatprep.mubr.bf16.mxu1 %v2338_v5 }
  0x9b   :  { %1329 = vmatmul.mubr.bf16.gmra.mxu0 %v2340_v6 }
  0x9c   :  { %1426 = vmatmul.mubr.bf16.gmra.mxu1 %v2341_v7  ;;  %2143 = vmatprep.mubr.bf16.mxu0 %v2343_v8 }
  0x9d   :  { %2151 = vmatprep.mubr.bf16.mxu1 %v2344_v9 }
  0xa3   :  { %2144 = vmatmul.mubr.bf16.vlgmr.msra.gmra.mxu0 %v2345_v10 }
  0xa4   :  { %2152 = vmatmul.mubr.bf16.vlgmr.msra.gmra.mxu1 %v2346_v11  ;;  %2147 = vmatprep.mubr.bf16.mxu0 %v2347_v12 }
  0xa5   :  { %2155 = vmatprep.mubr.bf16.mxu1 %v2348_v13 }
  0xab   :  { %2148 = vmatmul.mubr.bf16.gmra.mxu0 %v2349_v14 }
  0xac   :  { %2156 = vmatmul.mubr.bf16.gmra.mxu1 %v2350_v15 }
  0xe3   :  { %v1871_v16 = vpop.f32.mrf.mxu0 }
  0xe4   :  { %v1935_v17 = vpop.f32.mrf.mxu1 }
  0xe5   :  { %v1872_v19 = vpop.f32.mrf.mxu0 }
  0xe6   :  { %v1873_v20 = vadd.f32 %v1872_v19, %v1871_v16  ;;  %v1936_v21 = vpop.f32.mrf.mxu1 }
  0xe7   :  { %v1937_v22 = vadd.f32 %v1936_v21, %v1935_v17  ;;  %v1874_v23 = vpop.f32.mrf.mxu0 }
  0xe8   :  { %v1081_v24 = vadd.f32 %v1873_v20, %v2806_v18  ;;  %v1938_v25 = vpop.f32.mrf.mxu1 }
  0xe9   :  { %v1875_v26 = vpop.f32.mrf.mxu0 }
  0xea   :  { %v2809_v27 = vadd.f32 %v1937_v22, %v1081_v24  ;;  %v1876_v28 = vadd.f32 %v1875_v26, %v1874_v23  ;;  %v1939_v29 = vpop.f32.mrf.mxu1 }
  0xeb   :  { %v1940_v30 = vadd.f32 %v1939_v29, %v1938_v25  ;;  %v1877_v31 = vpop.f32.mrf.mxu0 }
  0xec   :  { %v1084_v32 = vadd.f32 %v1876_v28, %v2806_v18  ;;  %v1941_v33 = vpop.f32.mrf.mxu1 }
  0xed   :  { %v1878_v34 = vpop.f32.mrf.mxu0 }
  0xee   :  { %v2812_v35 = vadd.f32 %v1940_v30, %v1084_v32  ;;  %v1879_v36 = vadd.f32 %v1878_v34, %v1877_v31  ;;  %v1942_v37 = vpop.f32.mrf.mxu1 }
  0xef   :  { %v1943_v38 = vadd.f32 %v1942_v37, %v1941_v33  ;;  %v1880_v39 = vpop.f32.mrf.mxu0 }
  0xf0   :  { %v1089_v40 = vadd.f32 %v1879_v36, %v2806_v18  ;;  %v1944_v41 = vpop.f32.mrf.mxu1 }
  0xf1   :  { %v1881_v42 = vpop.f32.mrf.mxu0 }
  0xf2   :  { %v2815_v43 = vadd.f32 %v1943_v38, %v1089_v40  ;;  %v1882_v44 = vadd.f32 %v1881_v42, %v1880_v39  ;;  %v1945_v45 = vpop.f32.mrf.mxu1 }
  0xf3   :  { %v1946_v46 = vadd.f32 %v1945_v45, %v1944_v41  ;;  %v1883_v47 = vpop.f32.mrf.mxu0 }
  0xf4   :  { %v1092_v48 = vadd.f32 %v1882_v44, %v2806_v18  ;;  %v1947_v49 = vpop.f32.mrf.mxu1 }
  0xf5   :  { %v1884_v50 = vpop.f32.mrf.mxu0 }
  0xf6   :  { %v2818_v51 = vadd.f32 %v1946_v46, %v1092_v48  ;;  %v1885_v52 = vadd.f32 %v1884_v50, %v1883_v47  ;;  %v1948_v53 = vpop.f32.mrf.mxu1 }
  0xf7   :  { %v1949_v54 = vadd.f32 %v1948_v53, %v1947_v49  ;;  %v1886_v55 = vpop.f32.mrf.mxu0 }
  0xf8   :  { %v1097_v56 = vadd.f32 %v1885_v52, %v2806_v18  ;;  %v1950_v57 = vpop.f32.mrf.mxu1 }
  0xf9   :  { %v1887_v58 = vpop.f32.mrf.mxu0 }
  0xfa   :  { %v2821_v59 = vadd.f32 %v1949_v54, %v1097_v56  ;;  %v1888_v60 = vadd.f32 %v1887_v58, %v1886_v55  ;;  %v1951_v61 = vpop.f32.mrf.mxu1 }
  0xfb   :  { %v1952_v62 = vadd.f32 %v1951_v61, %v1950_v57  ;;  %v1889_v63 = vpop.f32.mrf.mxu0 }
  0xfc   :  { %v1100_v0 = vadd.f32 %v1888_v60, %v2806_v18  ;;  %v1953_v1 = vpop.f32.mrf.mxu1 }
  0xfd   :  { %v1890_v2 = vpop.f32.mrf.mxu0 }
  0xfe   :  { %v2824_v3 = vadd.f32 %v1952_v62, %v1100_v0  ;;  %v1891_v4 = vadd.f32 %v1890_v2, %v1889_v63  ;;  %v1954_v5 = vpop.f32.mrf.mxu1 }
  0xff   :  { %v1955_v6 = vadd.f32 %v1954_v5, %v1953_v1  ;;  %v1892_v7 = vpop.f32.mrf.mxu0 }
 0x100   :  { %2954 = vst [vmem:[#allocation2_spill] sm:$0xff] %v2824_v3  ;;  %v1105_v8 = vadd.f32 %v1891_v4, %v2806_v18  ;;  %v1956_v9 = vpop.f32.mrf.mxu1 }
 0x101   :  { %v1893_v10 = vpop.f32.mrf.mxu0 }
 0x102   :  { %v2827_v11 = vadd.f32 %v1955_v6, %v1105_v8  ;;  %v1894_v12 = vadd.f32 %v1893_v10, %v1892_v7  ;;  %v1957_v13 = vpop.f32.mrf.mxu1 }
 0x103   :  { %v1958_v14 = vadd.f32 %v1957_v13, %v1956_v9  ;;  %v1895_v15 = vpop.f32.mrf.mxu0 }
 0x104   :  { %v1108_v16 = vadd.f32 %v1894_v12, %v2806_v18  ;;  %v1959_v17 = vpop.f32.mrf.mxu1 }
 0x105   :  { %v1896_v19 = vpop.f32.mrf.mxu0 }
 0x106   :  { %v2830_v20 = vadd.f32 %v1958_v14, %v1108_v16  ;;  %v1897_v21 = vadd.f32 %v1896_v19, %v1895_v15  ;;  %v1960_v22 = vpop.f32.mrf.mxu1 }
 0x107   :  { %v1961_v23 = vadd.f32 %v1960_v22, %v1959_v17  ;;  %v1898_v24 = vpop.f32.mrf.mxu0 }
 0x108   :  { %2955 = vst [vmem:[#allocation3_spill] sm:$0xff] %v2830_v20  ;;  %v1113_v25 = vadd.f32 %v1897_v21, %v2806_v18  ;;  %v1962_v26 = vpop.f32.mrf.mxu1 }
 0x109   :  { %v1899_v28 = vpop.f32.mrf.mxu0 }
 0x10a   :  { %v2833_v29 = vadd.f32 %v1961_v23, %v1113_v25  ;;  %v1900_v30 = vadd.f32 %v1899_v28, %v1898_v24  ;;  %v1963_v31 = vpop.f32.mrf.mxu1 }
 0x10b   :  { %v1964_v32 = vadd.f32 %v1963_v31, %v1962_v26  ;;  %v1901_v33 = vpop.f32.mrf.mxu0 }
 0x10c   :  { %v1116_v34 = vadd.f32 %v1900_v30, %v2806_v18  ;;  %v1965_v36 = vpop.f32.mrf.mxu1 }
 0x10d   :  { %v1902_v37 = vpop.f32.mrf.mxu0 }
 0x10e   :  { %v2836_v38 = vadd.f32 %v1964_v32, %v1116_v34  ;;  %v1903_v39 = vadd.f32 %v1902_v37, %v1901_v33  ;;  %v1966_v40 = vpop.f32.mrf.mxu1 }
 0x10f   :  { %v1967_v41 = vadd.f32 %v1966_v40, %v1965_v36  ;;  %v1904_v42 = vpop.f32.mrf.mxu0 }
 0x110   :  { %2956 = vst [vmem:[#allocation4_spill] sm:$0xff] %v2836_v38  ;;  %v1121_v44 = vadd.f32 %v1903_v39, %v2806_v18  ;;  %v1968_v45 = vpop.f32.mrf.mxu1 }
 0x111   :  { %v1905_v46 = vpop.f32.mrf.mxu0 }
 0x112   :  { %v2839_v47 = vadd.f32 %v1967_v41, %v1121_v44  ;;  %v1906_v48 = vadd.f32 %v1905_v46, %v1904_v42  ;;  %v1969_v49 = vpop.f32.mrf.mxu1 }
 0x113   :  { %v1970_v50 = vadd.f32 %v1969_v49, %v1968_v45  ;;  %v1907_v52 = vpop.f32.mrf.mxu0 }
 0x114   :  { %v1124_v53 = vadd.f32 %v1906_v48, %v2806_v18  ;;  %v1971_v54 = vpop.f32.mrf.mxu1 }
 0x115   :  { %v1908_v55 = vpop.f32.mrf.mxu0 }
 0x116   :  { %v2842_v56 = vadd.f32 %v1970_v50, %v1124_v53  ;;  %v1909_v57 = vadd.f32 %v1908_v55, %v1907_v52  ;;  %v1972_v58 = vpop.f32.mrf.mxu1 }
 0x117   :  { %v1973_v60 = vadd.f32 %v1972_v58, %v1971_v54  ;;  %v1910_v61 = vpop.f32.mrf.mxu0 }
 0x118   :  { %2957 = vst [vmem:[#allocation5_spill] sm:$0xff] %v2842_v56  ;;  %v1129_v62 = vadd.f32 %v1909_v57, %v2806_v18  ;;  %v1974_v63 = vpop.f32.mrf.mxu1 }
 0x119   :  { %v1911_v0 = vpop.f32.mrf.mxu0 }
 0x11a   :  { %v2845_v1 = vadd.f32 %v1973_v60, %v1129_v62  ;;  %v1912_v2 = vadd.f32 %v1911_v0, %v1910_v61  ;;  %v1975_v4 = vpop.f32.mrf.mxu1 }
 0x11b   :  { %v1976_v5 = vadd.f32 %v1975_v4, %v1974_v63  ;;  %v1913_v6 = vpop.f32.mrf.mxu0 }
 0x11c   :  { %2958 = vst [vmem:[#allocation6_spill] sm:$0xff] %v2845_v1  ;;  %v1132_v7 = vadd.f32 %v1912_v2, %v2806_v18  ;;  %v1977_v8 = vpop.f32.mrf.mxu1 }
 0x11d   :  { %v1914_v9 = vpop.f32.mrf.mxu0 }
 0x11e   :  { %v2848_v10 = vadd.f32 %v1976_v5, %v1132_v7  ;;  %v1915_v12 = vadd.f32 %v1914_v9, %v1913_v6  ;;  %v1978_v13 = vpop.f32.mrf.mxu1 }
 0x11f   :  { %v1979_v14 = vadd.f32 %v1978_v13, %v1977_v8  ;;  %v1916_v15 = vpop.f32.mrf.mxu0 }
 0x120   :  { %2959 = vst [vmem:[#allocation7_spill] sm:$0xff] %v2848_v10  ;;  %v1137_v16 = vadd.f32 %v1915_v12, %v2806_v18  ;;  %v1980_v17 = vpop.f32.mrf.mxu1 }
 0x121   :  { %v1917_v19 = vpop.f32.mrf.mxu0 }
 0x122   :  { %v2851_v21 = vadd.f32 %v1979_v14, %v1137_v16  ;;  %v1918_v22 = vadd.f32 %v1917_v19, %v1916_v15  ;;  %v1981_v23 = vpop.f32.mrf.mxu1 }
 0x123   :  { %v1982_v24 = vadd.f32 %v1981_v23, %v1980_v17  ;;  %v1999_v25 = vpop.f32.mrf.mxu0 }
 0x124   :  { %2960 = vst [vmem:[#allocation8_spill] sm:$0xff] %v2851_v21  ;;  %v1140_v26 = vadd.f32 %v1918_v22, %v2806_v18  ;;  %v2063_v28 = vpop.f32.mrf.mxu1 }
 0x125   :  { %v2000_v30 = vpop.f32.mrf.mxu0 }
 0x126   :  { %v2854_v31 = vadd.f32 %v1982_v24, %v1140_v26  ;;  %v2001_v32 = vadd.f32 %v2000_v30, %v1999_v25  ;;  %v2064_v33 = vpop.f32.mrf.mxu1 }
 0x127   :  { %v2002_v34 = vpop.f32.mrf.mxu0  ;;  %v2065_v37 = vadd.f32 %v2064_v33, %v2063_v28 }
 0x128   :  { %2961 = vst [vmem:[#allocation9_spill] sm:$0xff] %v2854_v31  ;;  %v1275_v36 = vadd.f32 %v2001_v32, %v2809_v27  ;;  %v2857_v39 = vpop.f32.mrf.mxu1 }
 0x129   :  { %v2003_v40 = vpop.f32.mrf.mxu0 }
 0x12a   :  { %v2859_v41 = vpop.f32.mrf.mxu1  ;;  %v2861_v42 = vadd.f32 %v2065_v37, %v1275_v36  ;;  %v2004_v10 = vadd.f32 %v2003_v40, %v2002_v34 }
 0x12b   :  { %v2005_v44 = vpop.f32.mrf.mxu0 }
 0x12c   :  { %2962 = vst [vmem:[#allocation10_spill] sm:$0xff] %v2861_v42  ;;  %v2069_v45 = vpop.f32.mrf.mxu1  ;;  %v1278_v56 = vadd.f32 %v2004_v10, %v2812_v35 }
 0x12d   :  { %v2006_v18 = vpop.f32.mrf.mxu0 }
 0x12e   :  { %v2070_v46 = vpop.f32.mrf.mxu1  ;;  %v2007_v42 = vadd.f32 %v2006_v18, %v2005_v44  ;;  %v2068_v44 = vadd.f32 %v2859_v41, %v2857_v39 }
 0x12f   :  { %v2008_v48 = vpop.f32.mrf.mxu0  ;;  %v2071_v18 = vadd.f32 %v2070_v46, %v2069_v45 }
 0x130   :  { %v2072_v49 = vpop.f32.mrf.mxu1 }
 0x131   :  { %v2009_v50 = vpop.f32.mrf.mxu0 }
 0x132   :  { %v2073_v52 = vpop.f32.mrf.mxu1  ;;  %v2010_v21 = vadd.f32 %v2009_v50, %v2008_v48 }
 0x133   :  { %v2011_v53 = vpop.f32.mrf.mxu0  ;;  %v2074_v48 = vadd.f32 %v2073_v52, %v2072_v49 }
 0x134   :  { %v2075_v54 = vpop.f32.mrf.mxu1 }
 0x135   :  { %v2012_v55 = vpop.f32.mrf.mxu0 }
 0x136   :  { %v2076_v27 = vpop.f32.mrf.mxu1 }
 0x137   :  { %v2014_v57 = vpop.f32.mrf.mxu0 }
 0x138   :  { %v2863_v58 = vpop.f32.mrf.mxu1 }
 0x139   :  { %v2015_v60 = vpop.f32.mrf.mxu0 }
 0x13a   :  { %v2865_v61 = vpop.f32.mrf.mxu1  ;;  %v2016_v35 = vadd.f32 %v2015_v60, %v2014_v57 }
 0x13b   :  { %v2017_v62 = vpop.f32.mrf.mxu0  ;;  %v2899_v41 = vadd.f32 %v2865_v61, %v2863_v58 }
 0x13c   :  { %v2867_v63 = vpop.f32.mrf.mxu1 }
 0x13d   :  { %v2018_v0 = vpop.f32.mrf.mxu0 }
 0x13e   :  { %v2082_v2 = vpop.f32.mrf.mxu1  ;;  %v2019_v38 = vadd.f32 %v2018_v0, %v2017_v62 }
 0x13f   :  { %v2020_v4 = vpop.f32.mrf.mxu0  ;;  %v2083_v45 = vadd.f32 %v2082_v2, %v2867_v63 }
 0x140   :  { %v2869_v5 = vpop.f32.mrf.mxu1 }
 0x141   :  { %2963 = vst [vmem:[#allocation11_spill] sm:$0xff] %v2869_v5  ;;  %v2021_v6 = vpop.f32.mrf.mxu0 }
 0x142   :  { %v2871_v7 = vpop.f32.mrf.mxu1  ;;  %v2022_v46 = vadd.f32 %v2021_v6, %v2020_v4 }
 0x143   :  { %2964 = vst [vmem:[#allocation12_spill] sm:$0xff] %v2871_v7  ;;  %v2023_v8 = vpop.f32.mrf.mxu0  ;;  %v2013_v7 = vadd.f32 %v2012_v55, %v2011_v53  ;;  %v2077_v55 = vadd.f32 %v2076_v27, %v2075_v54  ;;  %v2971_v27 = vld [vmem:[#allocation5_spill] sm:$0xff] }
 0x144   :  { %v2873_v9 = vpop.f32.mrf.mxu1 }
 0x145   :  { %2965 = vst [vmem:[#allocation13_spill] sm:$0xff] %v2873_v9  ;;  %v2024_v12 = vpop.f32.mrf.mxu0  ;;  %v1291_v34 = vadd.f32 %v2013_v7, %v2821_v59 }
 0x146   :  { %v2088_v13 = vpop.f32.mrf.mxu1  ;;  %v2025_v50 = vadd.f32 %v2024_v12, %v2023_v8 }
 0x147   :  { %v2026_v14 = vpop.f32.mrf.mxu0  ;;  %v2895_v39 = vadd.f32 %v2077_v55, %v1291_v34  ;;  %v2981_v55 = vld [vmem:[#allocation7_spill] sm:$0xff] }
 0x148   :  { %v2090_v15 = vpop.f32.mrf.mxu1  ;;  %v1307_v49 = vadd.f32 %v2025_v50, %v2833_v29 }
 0x149   :  { %v2027_v16 = vpop.f32.mrf.mxu0 }
 0x14a   :  { %v2091_v17 = vpop.f32.mrf.mxu1  ;;  %v2028_v10 = vadd.f32 %v2027_v16, %v2026_v14 }
 0x14b   :  { %v2029_v19 = vpop.f32.mrf.mxu0  ;;  %v2092_v14 = vadd.f32 %v2091_v17, %v2090_v15 }
 0x14c   :  { %v2093_v22 = vpop.f32.mrf.mxu1  ;;  %v2972_v8 = vld [vmem:[#allocation13_spill] sm:$0xff] }
 0x14d   :  { %v2030_v23 = vpop.f32.mrf.mxu0  ;;  %v2089_v12 = vadd.f32 %v2088_v13, %v2972_v8 }
 0x14e   :  { %v2094_v24 = vpop.f32.mrf.mxu1  ;;  %v2031_v40 = vadd.f32 %v2030_v23, %v2029_v19  ;;  %v2973_v23 = vld [vmem:[#allocation3_spill] sm:$0xff] }
 0x14f   :  { %v2032_v25 = vpop.f32.mrf.mxu0  ;;  %v2095_v54 = vadd.f32 %v2094_v24, %v2093_v22  ;;  %v1404_v24 = vadd.f32 %v2089_v12, %v1307_v49 }
 0x150   :  { %v2096_v26 = vpop.f32.mrf.mxu1  ;;  %v1315_v59 = vadd.f32 %v2031_v40, %v2839_v47 }
 0x151   :  { %v2033_v28 = vpop.f32.mrf.mxu0 }
 0x152   :  { %v2097_v30 = vpop.f32.mrf.mxu1  ;;  %v2034_v62 = vadd.f32 %v2033_v28, %v2032_v25  ;;  %v1412_v29 = vadd.f32 %v2095_v54, %v1315_v59  ;;  %v1302_v25 = vadd.f32 %v2022_v46, %v2973_v23  ;;  %v2974_v28 = vld [vmem:[#allocation11_spill] sm:$0xff]  ;;  %v2982_v46 = vld [vmem:[#allocation9_spill] sm:$0xff] }
 0x153   :  { %v2035_v32 = vpop.f32.mrf.mxu0  ;;  %v2098_v63 = vadd.f32 %v2097_v30, %v2096_v26  ;;  %v2978_v30 = vld [vmem:[#allocation8_spill] sm:$0xff] }
 0x154   :  { %v2875_v33 = vpop.f32.mrf.mxu1  ;;  %v1318_v57 = vadd.f32 %v2034_v62, %v2971_v27 }
 0x155   :  { %2966 = vst [vmem:[#allocation14_spill] sm:$0xff] %v2875_v33  ;;  %v2036_v36 = vpop.f32.mrf.mxu0  ;;  %v1283_v33 = vadd.f32 %v2007_v42, %v2815_v43  ;;  %v1299_v43 = vadd.f32 %v2019_v38, %v2827_v11  ;;  %v2969_v38 = vld [vmem:[#allocation2_spill] sm:$0xff] }
 0x156   :  { %v2877_v37 = vpop.f32.mrf.mxu1  ;;  %v2904_v52 = vadd.f32 %v2016_v35, %v2969_v38  ;;  %v2037_v2 = vadd.f32 %v2036_v36, %v2035_v32  ;;  %v1415_v15 = vadd.f32 %v2098_v63, %v1318_v57 }
 0x157   :  { %2967 = vst [vmem:[#allocation15_spill] sm:$0xff] %v2877_v37  ;;  %v2038_v31 = vpop.f32.mrf.mxu0  ;;  %v1286_v37 = vadd.f32 %v2010_v21, %v2818_v51  ;;  %v1375_v51 = vadd.f32 %v2068_v44, %v1278_v56  ;;  %v1380_v7 = vadd.f32 %v2071_v18, %v1283_v33  ;;  %v2970_v56 = vld [vmem:[#allocation4_spill] sm:$0xff]  ;;  %v1396_v16 = vadd.f32 %v2083_v45, %v1299_v43 }
 0x158   :  { %v2879_v1 = vpop.f32.mrf.mxu1  ;;  %v1310_v47 = vadd.f32 %v2028_v10, %v2970_v56  ;;  %v2975_v33 = vld [vmem:[#allocation12_spill] sm:$0xff] }
 0x159   :  { %2968 = vst [vmem:[#allocation16_spill] sm:$0xff] %v2879_v1  ;;  %v2039_v5 = vpop.f32.mrf.mxu0  ;;  %v1383_v19 = vadd.f32 %v2074_v48, %v1286_v37  ;;  %v2086_v37 = vadd.f32 %v2975_v33, %v2974_v28  ;;  %v2980_v48 = vld [vmem:[#allocation6_spill] sm:$0xff] }
 0x15a   :  { %v2881_v20 = vpop.f32.mrf.mxu1  ;;  %v2040_v4 = vadd.f32 %v2039_v5, %v2038_v31  ;;  %v2979_v5 = vld [vmem:[#allocation10_spill] sm:$0xff]  ;;  %v1323_v50 = vadd.f32 %v2037_v2, %v2980_v48 }
 0x15b   :  { %v2041_v9 = vpop.f32.mrf.mxu0 }
 0x15c   :  { %v2884_v3 = vpop.f32.mrf.mxu1  ;;  %v1326_v35 = vadd.f32 %v2040_v4, %v2981_v55  ;;  %v1399_v4 = vadd.f32 %v2086_v37, %v1302_v25  ;;  %v1391_v25 = vadd.f32 %v2899_v41, %v2904_v52 }
 0x15d   :  { %v2042_v1 = vpop.f32.mrf.mxu0 }
 0x15e   :  { %v2106_v53 = vpop.f32.mrf.mxu1  ;;  %v2043_v58 = vadd.f32 %v2042_v1, %v2041_v9  ;;  %v1407_v1 = vadd.f32 %v2092_v14, %v1310_v47  ;;  %v2976_v9 = vld [vmem:[#allocation14_spill] sm:$0xff]  ;;  %v2977_v17 = vld [vmem:[#allocation15_spill] sm:$0xff] }
 0x15f   :  { %v2044_v0 = vpop.f32.mrf.mxu0  ;;  %v2101_v26 = vadd.f32 %v2977_v17, %v2976_v9  ;;  %v2107_v43 = vadd.f32 %v2106_v53, %v2884_v3 }
 0x160   :  { %v2892_v42 = vpop.f32.mrf.mxu1  ;;  %v1331_v31 = vadd.f32 %v2043_v58, %v2978_v30 }
 0x161   :  { %v2045_v21 = vpop.f32.mrf.mxu0  ;;  %v1420_v63 = vadd.f32 %v2101_v26, %v1323_v50 }
 0x162   :  { %v2109_v11 = vpop.f32.mrf.mxu1  ;;  %v2046_v40 = vadd.f32 %v2045_v21, %v2044_v0 }
 0x163   :  { %v2145_v60 = vpop.f32.mrf.mxu0  ;;  %v2110_v12 = vadd.f32 %v2109_v11, %v2892_v42 }
 0x164   :  { %v2153_v61 = vpop.f32.mrf.mxu1  ;;  %v1477_v22 = vadd.f32 %v2145_v60, %v1380_v7  ;;  %v1334_v49 = vadd.f32 %v2046_v40, %v2982_v46  ;;  %v1428_v60 = vadd.f32 %v2107_v43, %v1331_v31 }
 0x165   :  { %v1468_v6 = vpop.f32.mrf.mxu0  ;;  %v1509_v44 = vadd.f32 %v2153_v61, %v1412_v29  ;;  %v2983_v29 = vld [vmem:[#allocation16_spill] sm:$0xff] }
 0x166   :  { %v1500_v34 = vpop.f32.mrf.mxu1  ;;  %v1469_v32 = vadd.f32 %v1468_v6, %v2979_v5  ;;  %v1533_v59 = vmax.f32 %v1477_v22, 0.0  ;;  %v2104_v6 = vadd.f32 %v2881_v20, %v2983_v29  ;;  %v1431_v28 = vadd.f32 %v2110_v12, %v1334_v49 }
 0x167   :  { %v2146_v13 = vpop.f32.mrf.mxu0  ;;  %v1501_v10 = vadd.f32 %v1500_v34, %v1404_v24  ;;  %v1541_v38 = vmax.f32 %v1509_v44, 0.0 }
 0x168   :  { %v1480_v36 = vadd.f32 %v2146_v13, %v1383_v19  ;;  %v2154_v18 = vpop.f32.mrf.mxu1  ;;  %v1531_v54 = vmax.f32 %v1469_v32, 0.0  ;;  %v1423_v34 = vadd.f32 %v2104_v6, %v1326_v35 }
 0x169   :  { %v1512_v62 = vadd.f32 %v2154_v18, %v1415_v15  ;;  %v1471_v0 = vpop.f32.mrf.mxu0  ;;  %v1539_v14 = vmax.f32 %v1501_v10, 0.0 }
 0x16a   :  { %v1534_v21 = vmax.f32 %v1480_v36, 0.0  ;;  %v1472_v7 = vadd.f32 %v1471_v0, %v1375_v51  ;;  %v1503_v45 = vpop.f32.mrf.mxu1 }
 0x16b   :  { %v1542_v56 = vmax.f32 %v1512_v62, 0.0  ;;  %v1504_v47 = vadd.f32 %v1503_v45, %v1407_v1  ;;  %v2149_v19 = vpop.f32.mrf.mxu0 }
 0x16c   :  { %v1816_v27 = vpack.c.bf16 %v1534_v21, %v1533_v59  ;;  %v1532_v57 = vmax.f32 %v1472_v7, 0.0  ;;  %v2157_v8 = vpop.f32.mrf.mxu1  ;;  %v1493_v61 = vadd.f32 %v2149_v19, %v1396_v16 }
 0x16d   :  { %v1836_v58 = vpack.c.bf16 %v1542_v56, %v1541_v38  ;;  %v1540_v3 = vmax.f32 %v1504_v47, 0.0  ;;  %v1484_v53 = vpop.f32.mrf.mxu0  ;;  %v1525_v11 = vadd.f32 %v2157_v8, %v1428_v60 }
 0x16e   :  { %1848 = vst [vmem:[%s2953_s3 + $0x8] sm:$0xff] %v1816_v27   ;;  %v1811_v51 = vpack.c.bf16 %v1532_v57, %v1531_v54  ;;  %v1516_v2 = vpop.f32.mrf.mxu1  ;;  %v1485_v16 = vadd.f32 %v1484_v53, %v2895_v39  ;;  %v1537_v40 = vmax.f32 %v1493_v61, 0.0 }
 0x16f   :  { %1852 = vst [vmem:[%s2953_s3 + $0x28] sm:$0xff] %v1836_v58   ;;  %v1831_v42 = vpack.c.bf16 %v1540_v3, %v1539_v14  ;;  %v2150_v23 = vpop.f32.mrf.mxu0  ;;  %v1517_v20 = vadd.f32 %v1516_v2, %v1420_v63  ;;  %v1545_v1 = vmax.f32 %v1525_v11, 0.0 }
 0x170   :  { %1812 = vst [vmem:[%s2953_s3] sm:$0xff] %v1811_v51   ;;  %v1496_v33 = vadd.f32 %v2150_v23, %v1399_v4  ;;  %v2158_v22 = vpop.f32.mrf.mxu1  ;;  %v1535_v17 = vmax.f32 %v1485_v16, 0.0 }
 0x171   :  { %1851 = vst [vmem:[%s2953_s3 + $0x20] sm:$0xff] %v1831_v42   ;;  %v1528_v37 = vadd.f32 %v2158_v22, %v1431_v28  ;;  %v1487_v24 = vpop.f32.mrf.mxu0  ;;  %v1543_v31 = vmax.f32 %v1517_v20, 0.0 }
 0x172   :  { %v1538_v44 = vmax.f32 %v1496_v33, 0.0  ;;  %v1488_v13 = vadd.f32 %v1487_v24, %v1391_v25  ;;  %v1519_v15 = vpop.f32.mrf.mxu1 }
 0x173   :  { %v1546_v9 = vmax.f32 %v1528_v37, 0.0  ;;  %v1520_v39 = vadd.f32 %v1519_v15, %v1423_v34 }
 0x174   :  { %v1826_v26 = vpack.c.bf16 %v1538_v44, %v1537_v40  ;;  %v1536_v30 = vmax.f32 %v1488_v13, 0.0 }
 0x175   :  { %v1846_v41 = vpack.c.bf16 %v1546_v9, %v1545_v1  ;;  %v1544_v52 = vmax.f32 %v1520_v39, 0.0 }
 0x176   :  { %1850 = vst [vmem:[%s2953_s3 + $0x18] sm:$0xff] %v1826_v26   ;;  %v1821_v5 = vpack.c.bf16 %v1536_v30, %v1535_v17 }
 0x177   :  { %1854 = vst [vmem:[%s2953_s3 + $0x38] sm:$0xff] %v1846_v41   ;;  %v1841_v32 = vpack.c.bf16 %v1544_v52, %v1543_v31 }
 0x178   :  { %1849 = vst [vmem:[%s2953_s3 + $0x10] sm:$0xff] %v1821_v5  }
 0x179   :  { %1853 = vst [vmem:[%s2953_s3 + $0x30] sm:$0xff] %v1841_v32  }

// kernel: perceptual_loss.18
= control target key start
LH: loop header
LB: loop body
LE: loop exit
PB: predicated region body
PF: predicated region fallthrough
CT: control target
= control target key end

     0   :  { %s214_s0 = inlined_call_operand.vmem [shape: bf16[2,64,128], index: 0, kind: input, shape index: {}]   ;;  %s215_s1 = inlined_call_operand.hbm [shape: f32[1,1], index: 1, kind: output, shape index: {}]  }
   0x1   :  { %v111_v0 = vld [vmem:[%s214_s0] sm:$0xff]   ;;  %v142_v2 = vld [vmem:[%s214_s0 + $0x8] sm:$0xff]   ;;  %v143_v8 = vld [vmem:[%s214_s0 + $0x10] sm:$0xff]  }
   0x2   :  { %v145_v1 = vld [vmem:[%s214_s0 + $0x20] sm:$0xff]   ;;  %v112_v3 = vunpack.c.l.bf16 %v111_v0  ;;  %v116_v5 = vunpack.c.l.bf16 %v142_v2  ;;  %v146_v6 = vld [vmem:[%s214_s0 + $0x28] sm:$0xff]   ;;  %v113_v7 = vunpack.c.h.bf16 %v111_v0  ;;  %v147_v9 = vld [vmem:[%s214_s0 + $0x30] sm:$0xff]   ;;  %v117_v12 = vunpack.c.h.bf16 %v142_v2 }
   0x3   :  { %v128_v4 = vunpack.c.l.bf16 %v145_v1  ;;  %v132_v10 = vunpack.c.l.bf16 %v146_v6  ;;  %v129_v11 = vunpack.c.h.bf16 %v145_v1  ;;  %v133_v13 = vunpack.c.h.bf16 %v146_v6 }
   0x4   :  { %6 = vsyncpa [#allocation3], 0  ;;  %v120_v15 = vunpack.c.l.bf16 %v143_v8  ;;  %v136_v16 = vunpack.c.l.bf16 %v147_v9  ;;  %v121_v17 = vunpack.c.h.bf16 %v143_v8  ;;  %v137_v21 = vunpack.c.h.bf16 %v147_v9  ;;  %v144_v22 = vld [vmem:[%s214_s0 + $0x18] sm:$0xff]  }
   0x5   :  { %v47_v14 = vsub.f32 %v112_v3, %v128_v4  ;;  %v49_v18 = vsub.f32 %v116_v5, %v132_v10  ;;  %v48_v19 = vsub.f32 %v113_v7, %v129_v11  ;;  %v50_v20 = vsub.f32 %v117_v12, %v133_v13  ;;  %v148_v23 = vld [vmem:[%s214_s0 + $0x38] sm:$0xff]   ;;  %s174_s0 = smov [#allocation2]  }
   0x6   :  { %v51_v27 = vsub.f32 %v120_v15, %v136_v16  ;;  %v124_v28 = vunpack.c.l.bf16 %v144_v22  ;;  %v140_v29 = vunpack.c.l.bf16 %v148_v23  ;;  %v52_v31 = vsub.f32 %v121_v17, %v137_v21  ;;  %s102_s22 = sshll.u32 %s174_s0, 4  ;;  %s103_s22 = int_to_ptr.vmem [resolvable:$true] %s102_s22 }
   0x7   :  { %v55_v24 = vand.u32 2147483647, %v47_v14  ;;  %v57_v25 = vand.u32 2147483647, %v49_v18  ;;  %v56_v26 = vand.u32 2147483647, %v48_v19  ;;  %v125_v32 = vunpack.c.h.bf16 %v144_v22  ;;  %p156_p1 = scmp.lt.s32.totalorder %s103_s22, %s103_s22 }
   0x8   :  { %v58_v30 = vand.u32 2147483647, %v50_v20  ;;  %v141_v33 = vunpack.c.h.bf16 %v148_v23  ;;  %v59_v34 = vand.u32 2147483647, %v51_v27  ;;  %v53_v35 = vsub.f32 %v124_v28, %v140_v29  ;;  %s151_s23 = scalar_lea.vmem %s103_s22, 16  ;;  %s155_s24 = scalar_lea.vmem %s103_s22, 32 }
   0x9   :  { %64 = vadd.xlane.f32.xlu0 %v55_v24  ;;  %68 = vadd.xlane.f32.xlu1 %v57_v25  ;;  %v60_v36 = vand.u32 2147483647, %v52_v31  ;;  %vm13_vm0 = vcmask 0   ;;  %v173_v40 = vmov 0.0   ;;  %p152_p0 = scmp.ne.s32.totalorder %s103_s22, %s151_s23  ;;  %p157_p2 = scmp.lt.s32.totalorder %s155_s24, %s151_s23 }
   0xa   :  { %v54_v37 = vsub.f32 %v125_v32, %v141_v33  ;;  %v61_v38 = vand.u32 2147483647, %v53_v35  ;;  %14 = vst.msk [vmem:[#allocation2] sm:$0x1] %vm13_vm0, %v173_v40 }
   0xb   :  { %p158_p3 = por %p157_p2, %p156_p1 }
   0xc   :  { %v62_v39 = vand.u32 2147483647, %v54_v37 }
   0xd   :  { %66 = vadd.xlane.f32.xlu0 %v56_v26  ;;  %70 = vadd.xlane.f32.xlu1 %v58_v30  ;;  %p159_p4 = pnand %p158_p3, %p152_p0 }
  0x11   :  { %72 = vadd.xlane.f32.xlu0 %v59_v34  ;;  %74 = vadd.xlane.f32.xlu1 %v60_v36  ;;  %v63_v61 = vld [vmem:[#allocation2] sm:$0x1] }
  0x15   :  { %76 = vadd.xlane.f32.xlu0 %v61_v38  ;;  %78 = vadd.xlane.f32.xlu1 %v62_v39 }
  0x92   :  { %v65_v41 = vpop.xlane.xlu0 %64  ;;  %v69_v42 = vpop.xlane.xlu1 %68 }
  0x96   :  { %v67_v43 = vpop.xlane.xlu0 %66  ;;  %v71_v45 = vpop.xlane.xlu1 %70 }
  0x97   :  { %v80_v44 = vadd.f32 %v67_v43, %v65_v41 }
  0x99   :  { %v81_v46 = vadd.f32 %v80_v44, %v69_v42 }
  0x9a   :  { %v73_v47 = vpop.xlane.xlu0 %72  ;;  %v75_v49 = vpop.xlane.xlu1 %74 }
  0x9b   :  { %v82_v48 = vadd.f32 %v81_v46, %v71_v45 }
  0x9d   :  { %v83_v50 = vadd.f32 %v82_v48, %v73_v47 }
  0x9e   :  { %v77_v51 = vpop.xlane.xlu0 %76  ;;  %v79_v53 = vpop.xlane.xlu1 %78 }
  0x9f   :  { %v84_v52 = vadd.f32 %v83_v50, %v75_v49 }
  0xa1   :  { %v85_v54 = vadd.f32 %v84_v52, %v77_v51 }
  0xa3   :  { %v86_v55 = vadd.f32 %v85_v54, %v79_v53 }
  0xa5   :  { %v87_v56 = vrot.slane %v86_v55, 4 }
  0xa7   :  { %v88_v57 = vadd.f32 %v87_v56, %v86_v55 }
  0xa9   :  { %v89_v58 = vrot.slane %v88_v57, 2 }
  0xab   :  { %v90_v59 = vadd.f32 %v89_v58, %v88_v57 }
  0xad   :  { %v91_v60 = vrot.slane %v90_v59, 1 }
  0xaf   :  { %v92_v62 = vadd.f32 %v91_v60, %v90_v59 }
  0xb1   :  { %v93_v63 = vadd.f32 %v92_v62, %v63_v61 }
  0xb3   :  { %95 = vst.msk [vmem:[#allocation2] sm:$0x1] %vm13_vm0, %v93_v63 }
  0xb4   :  { %162 = shalt.err (!%p159_p4)
}
  0xb5   :  { %105 = dma.vmem_to_hbm [thread:$0]  %s103_s22, 16, %s215_s1, [#allocation3]  }
  0xb6   :  { %171 = dma.done.wait [#allocation3], 16  }
  0xb7   :  { %172 = vsyncadd [#allocation3], 4294967280 }
  0xb8   :  { %109 = vsyncpa [#allocation3], 1 }

// kernel: perceptual_loss.19
= control target key start
LH: loop header
LB: loop body
LE: loop exit
PB: predicated region body
PF: predicated region fallthrough
CT: control target
= control target key end

     0   :  { %s119_s0 = inlined_call_operand.vmem [shape: bf16[2,16,256], index: 0, kind: input, shape index: {}]   ;;  %s120_s1 = inlined_call_operand.hbm [shape: f32[1,1], index: 1, kind: output, shape index: {}]  }
   0x1   :  { %v15_v0 = vld [vmem:[%s119_s0] sm:$0xff]  ;;  %v17_v1 = vld [vmem:[%s119_s0 + $0x10] sm:$0xff]  ;;  %v16_v2 = vld [vmem:[%s119_s0 + $0x8] sm:$0xff] }
   0x2   :  { %v19_v3 = vunpack.c.l.bf16 %v15_v0  ;;  %v20_v4 = vunpack.c.h.bf16 %v15_v0  ;;  %v23_v5 = vunpack.c.l.bf16 %v17_v1  ;;  %v24_v6 = vunpack.c.h.bf16 %v17_v1  ;;  %v18_v7 = vld [vmem:[%s119_s0 + $0x18] sm:$0xff] }
   0x3   :  { %6 = vsyncpa [#allocation3], 0  ;;  %v21_v8 = vunpack.c.l.bf16 %v16_v2  ;;  %v22_v9 = vunpack.c.h.bf16 %v16_v2  ;;  %v25_v10 = vunpack.c.l.bf16 %v18_v7  ;;  %v26_v11 = vunpack.c.h.bf16 %v18_v7  ;;  %s91_s0 = smov [#allocation2]  }
   0x4   :  { %v27_v12 = vsub.f32 %v19_v3, %v23_v5  ;;  %v28_v13 = vsub.f32 %v20_v4, %v24_v6  ;;  %vm13_vm0 = vcmask 0   ;;  %v90_v22 = vmov 0.0   ;;  %s58_s14 = sshll.u32 %s91_s0, 4  ;;  %s59_s14 = int_to_ptr.vmem [resolvable:$true] %s58_s14 }
   0x5   :  { %v29_v14 = vsub.f32 %v21_v8, %v25_v10  ;;  %v30_v15 = vsub.f32 %v22_v9, %v26_v11  ;;  %14 = vst.msk [vmem:[#allocation2] sm:$0x1] %vm13_vm0, %v90_v22  ;;  %s68_s15 = scalar_lea.vmem %s59_s14, 16  ;;  %s72_s16 = scalar_lea.vmem %s59_s14, 32 }
   0x6   :  { %v31_v16 = vand.u32 2147483647, %v27_v12  ;;  %v32_v17 = vand.u32 2147483647, %v28_v13  ;;  %p69_p0 = scmp.ne.s32.totalorder %s59_s14, %s68_s15  ;;  %p73_p1 = scmp.lt.s32.totalorder %s59_s14, %s59_s14 }
   0x7   :  { %v33_v18 = vand.u32 2147483647, %v29_v14  ;;  %v34_v19 = vand.u32 2147483647, %v30_v15  ;;  %p74_p2 = scmp.lt.s32.totalorder %s72_s16, %s68_s15 }
   0x8   :  { %v36_v20 = vadd.f32 %v32_v17, %v31_v16 }
   0x9   :  { %v39_v21 = vadd.f32 %v34_v19, %v33_v18  ;;  %p75_p3 = por %p74_p2, %p73_p1 }
   0xa   :  { %37 = vadd.xlane.f32.xlu0 %v36_v20 }
   0xb   :  { %p76_p4 = pnand %p75_p3, %p69_p0 }
   0xc   :  { %v35_v31 = vld [vmem:[#allocation2] sm:$0x1] }
   0xe   :  { %40 = vadd.xlane.f32.xlu0 %v39_v21 }
  0x93   :  { %v38_v23 = vpop.xlane.xlu0 %37 }
  0x97   :  { %v41_v24 = vpop.xlane.xlu0 %40 }
  0x98   :  { %v42_v25 = vadd.f32 %v41_v24, %v38_v23 }
  0x9a   :  { %v43_v26 = vrot.slane %v42_v25, 4 }
  0x9c   :  { %v44_v27 = vadd.f32 %v43_v26, %v42_v25 }
  0x9e   :  { %v45_v28 = vrot.slane %v44_v27, 2 }
  0xa0   :  { %v46_v29 = vadd.f32 %v45_v28, %v44_v27 }
  0xa2   :  { %v47_v30 = vrot.slane %v46_v29, 1 }
  0xa4   :  { %v48_v32 = vadd.f32 %v47_v30, %v46_v29 }
  0xa6   :  { %v49_v33 = vadd.f32 %v48_v32, %v35_v31 }
  0xa8   :  { %51 = vst.msk [vmem:[#allocation2] sm:$0x1] %vm13_vm0, %v49_v33 }
  0xa9   :  { %79 = shalt.err (!%p76_p4)
}
  0xaa   :  { %61 = dma.vmem_to_hbm [thread:$0]  %s59_s14, 16, %s120_s1, [#allocation3]  }
  0xab   :  { %88 = dma.done.wait [#allocation3], 16  }
  0xac   :  { %89 = vsyncadd [#allocation3], 4294967280 }
  0xad   :  { %65 = vsyncpa [#allocation3], 1 }

// kernel: perceptual_loss.17
= control target key start
LH: loop header
LB: loop body
LE: loop exit
PB: predicated region body
PF: predicated region fallthrough
CT: control target
= control target key end

     0   :  { %vm208_vm0 = vcmask 523264   ;;  %s687_s0 = inlined_call_operand.vmem [shape: bf16[2,256,64], index: 0, kind: input, shape index: {}]   ;;  %s688_s1 = inlined_call_operand.hbm [shape: f32[1,1], index: 1, kind: output, shape index: {}]  }
   0x1   :  { %v360_v0 = vld [vmem:[%s687_s0] sm:$0xff]   ;;  %v487_v2 = vld [vmem:[%s687_s0 + $0x8] sm:$0xff]   ;;  %v488_v8 = vld [vmem:[%s687_s0 + $0x10] sm:$0xff]  }
   0x2   :  { %v502_v1 = vld [vmem:[%s687_s0 + $0x80] sm:$0xff]   ;;  %v361_v3 = vunpack.c.l.bf16 %v360_v0  ;;  %v365_v5 = vunpack.c.l.bf16 %v487_v2  ;;  %v503_v6 = vld [vmem:[%s687_s0 + $0x88] sm:$0xff]   ;;  %v362_v7 = vunpack.c.h.bf16 %v360_v0  ;;  %v504_v9 = vld [vmem:[%s687_s0 + $0x90] sm:$0xff]   ;;  %v366_v12 = vunpack.c.h.bf16 %v487_v2 }
   0x3   :  { %v425_v4 = vunpack.c.l.bf16 %v502_v1  ;;  %v429_v10 = vunpack.c.l.bf16 %v503_v6  ;;  %v426_v11 = vunpack.c.h.bf16 %v502_v1  ;;  %v430_v13 = vunpack.c.h.bf16 %v503_v6  ;;  %v489_v14 = vld [vmem:[%s687_s0 + $0x18] sm:$0xff]   ;;  %v490_v28 = vld [vmem:[%s687_s0 + $0x20] sm:$0xff]   ;;  %v491_v43 = vld [vmem:[%s687_s0 + $0x28] sm:$0xff]  }
   0x4   :  { %v505_v15 = vld [vmem:[%s687_s0 + $0x98] sm:$0xff]   ;;  %v369_v17 = vunpack.c.l.bf16 %v488_v8  ;;  %v433_v18 = vunpack.c.l.bf16 %v504_v9  ;;  %v370_v19 = vunpack.c.h.bf16 %v488_v8  ;;  %v434_v23 = vunpack.c.h.bf16 %v504_v9  ;;  %v506_v35 = vld [vmem:[%s687_s0 + $0xa0] sm:$0xff]   ;;  %v507_v44 = vld [vmem:[%s687_s0 + $0xa8] sm:$0xff]  }
   0x5   :  { %v143_v16 = vsub.f32 %v361_v3, %v425_v4  ;;  %v145_v20 = vsub.f32 %v365_v5, %v429_v10  ;;  %v144_v21 = vsub.f32 %v362_v7, %v426_v11  ;;  %v146_v22 = vsub.f32 %v366_v12, %v430_v13 }
   0x6   :  { %v147_v25 = vsub.f32 %v369_v17, %v433_v18  ;;  %v373_v26 = vunpack.c.l.bf16 %v489_v14  ;;  %v437_v27 = vunpack.c.l.bf16 %v505_v15  ;;  %v148_v32 = vsub.f32 %v370_v19, %v434_v23 }
   0x7   :  { %v175_v24 = vand.u32 2147483647, %v143_v16  ;;  %v177_v29 = vand.u32 2147483647, %v145_v20  ;;  %v176_v30 = vand.u32 2147483647, %v144_v21  ;;  %v374_v34 = vunpack.c.h.bf16 %v489_v14 }
   0x8   :  { %v178_v31 = vand.u32 2147483647, %v146_v22  ;;  %v179_v37 = vand.u32 2147483647, %v147_v25  ;;  %v149_v38 = vsub.f32 %v373_v26, %v437_v27  ;;  %v438_v41 = vunpack.c.h.bf16 %v505_v15 }
   0x9   :  { %v209_v33 = vsel %vm208_vm0, %v175_v24, 0.0  ;;  %v215_v36 = vsel %vm208_vm0, %v177_v29, 0.0  ;;  %v212_v39 = vsel %vm208_vm0, %v176_v30, 0.0  ;;  %v377_v42 = vunpack.c.l.bf16 %v490_v28 }
   0xa   :  { %210 = vadd.xlane.f32.xlu0 %v209_v33  ;;  %216 = vadd.xlane.f32.xlu1 %v215_v36  ;;  %v218_v40 = vsel %vm208_vm0, %v178_v31, 0.0  ;;  %v180_v45 = vand.u32 2147483647, %v148_v32  ;;  %v441_v46 = vunpack.c.l.bf16 %v506_v35  ;;  %v378_v47 = vunpack.c.h.bf16 %v490_v28 }
   0xb   :  { %v442_v48 = vunpack.c.h.bf16 %v506_v35  ;;  %v150_v49 = vsub.f32 %v374_v34, %v438_v41  ;;  %v381_v50 = vunpack.c.l.bf16 %v491_v43  ;;  %v445_v51 = vunpack.c.l.bf16 %v507_v44 }
   0xe   :  { %213 = vadd.xlane.f32.xlu0 %v212_v39 }
   0xf   :  { %6 = vsyncpa [#allocation3], 0  ;;  %219 = vadd.xlane.f32.xlu1 %v218_v40  ;;  %v221_v52 = vsel %vm208_vm0, %v179_v37, 0.0  ;;  %v181_v53 = vand.u32 2147483647, %v149_v38  ;;  %v151_v54 = vsub.f32 %v377_v42, %v441_v46  ;;  %v152_v55 = vsub.f32 %v378_v47, %v442_v48  ;;  %v492_v56 = vld [vmem:[%s687_s0 + $0x30] sm:$0xff]  }
  0x10   :  { %v508_v57 = vld [vmem:[%s687_s0 + $0xb0] sm:$0xff]   ;;  %v224_v58 = vsel %vm208_vm0, %v180_v45, 0.0  ;;  %v182_v59 = vand.u32 2147483647, %v150_v49  ;;  %v382_v60 = vunpack.c.h.bf16 %v491_v43  ;;  %v446_v61 = vunpack.c.h.bf16 %v507_v44  ;;  %v493_v8 = vld [vmem:[%s687_s0 + $0x38] sm:$0xff]   ;;  %v494_v16 = vld [vmem:[%s687_s0 + $0x40] sm:$0xff]  }
  0x11   :  { %v153_v62 = vsub.f32 %v381_v50, %v445_v51  ;;  %v385_v63 = vunpack.c.l.bf16 %v492_v56  ;;  %v449_v0 = vunpack.c.l.bf16 %v508_v57  ;;  %v227_v1 = vsel %vm208_vm0, %v181_v53, 0.0  ;;  %v509_v9 = vld [vmem:[%s687_s0 + $0xb8] sm:$0xff]   ;;  %v510_v17 = vld [vmem:[%s687_s0 + $0xc0] sm:$0xff]   ;;  %v495_v29 = vld [vmem:[%s687_s0 + $0x48] sm:$0xff]  }
  0x12   :  { %222 = vadd.xlane.f32.xlu0 %v221_v52  ;;  %v183_v2 = vand.u32 2147483647, %v151_v54  ;;  %v184_v3 = vand.u32 2147483647, %v152_v55  ;;  %v230_v4 = vsel %vm208_vm0, %v182_v59, 0.0  ;;  %v154_v5 = vsub.f32 %v382_v60, %v446_v61  ;;  %v511_v30 = vld [vmem:[%s687_s0 + $0xc8] sm:$0xff]  }
  0x13   :  { %225 = vadd.xlane.f32.xlu1 %v224_v58  ;;  %v386_v6 = vunpack.c.h.bf16 %v492_v56  ;;  %v450_v7 = vunpack.c.h.bf16 %v508_v57  ;;  %v185_v10 = vand.u32 2147483647, %v153_v62  ;;  %v155_v11 = vsub.f32 %v385_v63, %v449_v0  ;;  %v496_v44 = vld [vmem:[%s687_s0 + $0x50] sm:$0xff]   ;;  %v497_v56 = vld [vmem:[%s687_s0 + $0x58] sm:$0xff]   ;;  %v498_v0 = vld [vmem:[%s687_s0 + $0x60] sm:$0xff]  }
  0x14   :  { %v233_v12 = vsel %vm208_vm0, %v183_v2, 0.0  ;;  %v236_v13 = vsel %vm208_vm0, %v184_v3, 0.0  ;;  %v389_v14 = vunpack.c.l.bf16 %v493_v8  ;;  %v453_v15 = vunpack.c.l.bf16 %v509_v9  ;;  %v512_v45 = vld [vmem:[%s687_s0 + $0xd0] sm:$0xff]   ;;  %v513_v57 = vld [vmem:[%s687_s0 + $0xd8] sm:$0xff]  }
  0x15   :  { %v186_v18 = vand.u32 2147483647, %v154_v5  ;;  %v156_v19 = vsub.f32 %v386_v6, %v450_v7  ;;  %v390_v20 = vunpack.c.h.bf16 %v493_v8  ;;  %v454_v21 = vunpack.c.h.bf16 %v509_v9 }
  0x16   :  { %228 = vadd.xlane.f32.xlu0 %v227_v1  ;;  %v239_v22 = vsel %vm208_vm0, %v185_v10, 0.0  ;;  %v393_v23 = vunpack.c.l.bf16 %v494_v16  ;;  %v457_v24 = vunpack.c.l.bf16 %v510_v17  ;;  %v187_v25 = vand.u32 2147483647, %v155_v11  ;;  %v514_v1 = vld [vmem:[%s687_s0 + $0xe0] sm:$0xff]  }
  0x17   :  { %231 = vadd.xlane.f32.xlu1 %v230_v4  ;;  %v157_v26 = vsub.f32 %v389_v14, %v453_v15  ;;  %v394_v27 = vunpack.c.h.bf16 %v494_v16  ;;  %v458_v28 = vunpack.c.h.bf16 %v510_v17  ;;  %v242_v31 = vsel %vm208_vm0, %v186_v18, 0.0  ;;  %v515_v14 = vld [vmem:[%s687_s0 + $0xe8] sm:$0xff]  }
  0x18   :  { %v188_v32 = vand.u32 2147483647, %v156_v19  ;;  %v158_v33 = vsub.f32 %v390_v20, %v454_v21  ;;  %v159_v34 = vsub.f32 %v393_v23, %v457_v24  ;;  %v397_v35 = vunpack.c.l.bf16 %v495_v29 }
  0x19   :  { %v461_v36 = vunpack.c.l.bf16 %v511_v30  ;;  %v245_v37 = vsel %vm208_vm0, %v187_v25, 0.0  ;;  %v189_v38 = vand.u32 2147483647, %v157_v26  ;;  %v160_v39 = vsub.f32 %v394_v27, %v458_v28  ;;  %v500_v28 = vld [vmem:[%s687_s0 + $0x70] sm:$0xff]  }
  0x1a   :  { %234 = vadd.xlane.f32.xlu0 %v233_v12  ;;  %v248_v40 = vsel %vm208_vm0, %v188_v32, 0.0  ;;  %v190_v41 = vand.u32 2147483647, %v158_v33  ;;  %v398_v42 = vunpack.c.h.bf16 %v495_v29  ;;  %v462_v43 = vunpack.c.h.bf16 %v511_v30  ;;  %v516_v29 = vld [vmem:[%s687_s0 + $0xf0] sm:$0xff]  }
  0x1b   :  { %237 = vadd.xlane.f32.xlu1 %v236_v13  ;;  %v191_v46 = vand.u32 2147483647, %v159_v34  ;;  %v161_v47 = vsub.f32 %v397_v35, %v461_v36  ;;  %v251_v48 = vsel %vm208_vm0, %v189_v38, 0.0  ;;  %v192_v49 = vand.u32 2147483647, %v160_v39  ;;  %v499_v13 = vld [vmem:[%s687_s0 + $0x68] sm:$0xff]  }
  0x1c   :  { %v401_v50 = vunpack.c.l.bf16 %v496_v44  ;;  %v465_v51 = vunpack.c.l.bf16 %v512_v45  ;;  %v254_v52 = vsel %vm208_vm0, %v190_v41, 0.0  ;;  %v162_v53 = vsub.f32 %v398_v42, %v462_v43  ;;  %v517_v41 = vld [vmem:[%s687_s0 + $0xf8] sm:$0xff]  }
  0x1d   :  { %v402_v54 = vunpack.c.h.bf16 %v496_v44  ;;  %v466_v55 = vunpack.c.h.bf16 %v512_v45  ;;  %v257_v58 = vsel %vm208_vm0, %v191_v46, 0.0  ;;  %v193_v59 = vand.u32 2147483647, %v161_v47 }
  0x1e   :  { %240 = vadd.xlane.f32.xlu0 %v239_v22  ;;  %v260_v60 = vsel %vm208_vm0, %v192_v49, 0.0  ;;  %v163_v61 = vsub.f32 %v401_v50, %v465_v51  ;;  %v405_v62 = vunpack.c.l.bf16 %v497_v56  ;;  %v469_v63 = vunpack.c.l.bf16 %v513_v57 }
  0x1f   :  { %243 = vadd.xlane.f32.xlu1 %v242_v31  ;;  %v194_v2 = vand.u32 2147483647, %v162_v53  ;;  %v164_v3 = vsub.f32 %v402_v54, %v466_v55  ;;  %v406_v4 = vunpack.c.h.bf16 %v497_v56  ;;  %v470_v5 = vunpack.c.h.bf16 %v513_v57 }
  0x20   :  { %v263_v6 = vsel %vm208_vm0, %v193_v59, 0.0  ;;  %v409_v7 = vunpack.c.l.bf16 %v498_v0  ;;  %v473_v8 = vunpack.c.l.bf16 %v514_v1  ;;  %v195_v9 = vand.u32 2147483647, %v163_v61 }
  0x21   :  { %v165_v10 = vsub.f32 %v405_v62, %v469_v63  ;;  %v410_v11 = vunpack.c.h.bf16 %v498_v0  ;;  %v474_v12 = vunpack.c.h.bf16 %v514_v1  ;;  %v266_v15 = vsel %vm208_vm0, %v194_v2, 0.0 }
  0x22   :  { %246 = vadd.xlane.f32.xlu0 %v245_v37  ;;  %v196_v16 = vand.u32 2147483647, %v164_v3  ;;  %v166_v17 = vsub.f32 %v406_v4, %v470_v5  ;;  %v167_v18 = vsub.f32 %v409_v7, %v473_v8  ;;  %v413_v19 = vunpack.c.l.bf16 %v499_v13 }
  0x23   :  { %249 = vadd.xlane.f32.xlu1 %v248_v40  ;;  %v477_v20 = vunpack.c.l.bf16 %v515_v14  ;;  %v269_v21 = vsel %vm208_vm0, %v195_v9, 0.0  ;;  %v197_v22 = vand.u32 2147483647, %v165_v10  ;;  %v168_v23 = vsub.f32 %v410_v11, %v474_v12  ;;  %v501_v40 = vld [vmem:[%s687_s0 + $0x78] sm:$0xff]   ;;  %s543_s0 = smov [#allocation2]  }
  0x24   :  { %v272_v24 = vsel %vm208_vm0, %v196_v16, 0.0  ;;  %v198_v25 = vand.u32 2147483647, %v166_v17  ;;  %v414_v26 = vunpack.c.h.bf16 %v499_v13  ;;  %v478_v27 = vunpack.c.h.bf16 %v515_v14  ;;  %s351_s12 = sshll.u32 %s543_s0, 4  ;;  %s352_s12 = int_to_ptr.vmem [resolvable:$true] %s351_s12 }
  0x25   :  { %v199_v30 = vand.u32 2147483647, %v167_v18  ;;  %v169_v31 = vsub.f32 %v413_v19, %v477_v20  ;;  %v275_v32 = vsel %vm208_vm0, %v197_v22, 0.0  ;;  %v200_v33 = vand.u32 2147483647, %v168_v23  ;;  %s520_s13 = scalar_lea.vmem %s352_s12, 16  ;;  %p525_p1 = scmp.lt.s32.totalorder %s352_s12, %s352_s12 }
  0x26   :  { %252 = vadd.xlane.f32.xlu0 %v251_v48  ;;  %v417_v34 = vunpack.c.l.bf16 %v500_v28  ;;  %v481_v35 = vunpack.c.l.bf16 %v516_v29  ;;  %v278_v36 = vsel %vm208_vm0, %v198_v25, 0.0  ;;  %v170_v37 = vsub.f32 %v414_v26, %v478_v27  ;;  %p521_p0 = scmp.ne.s32.totalorder %s352_s12, %s520_s13  ;;  %s524_s14 = scalar_lea.vmem %s352_s12, 32 }
  0x27   :  { %255 = vadd.xlane.f32.xlu1 %v254_v52  ;;  %v418_v38 = vunpack.c.h.bf16 %v500_v28  ;;  %v482_v39 = vunpack.c.h.bf16 %v516_v29  ;;  %v281_v42 = vsel %vm208_vm0, %v199_v30, 0.0  ;;  %v201_v43 = vand.u32 2147483647, %v169_v31  ;;  %p526_p2 = scmp.lt.s32.totalorder %s524_s14, %s520_s13 }
  0x28   :  { %v284_v44 = vsel %vm208_vm0, %v200_v33, 0.0  ;;  %v171_v45 = vsub.f32 %v417_v34, %v481_v35  ;;  %v421_v46 = vunpack.c.l.bf16 %v501_v40  ;;  %v485_v47 = vunpack.c.l.bf16 %v517_v41 }
  0x29   :  { %v202_v48 = vand.u32 2147483647, %v170_v37  ;;  %v172_v49 = vsub.f32 %v418_v38, %v482_v39  ;;  %v422_v50 = vunpack.c.h.bf16 %v501_v40  ;;  %v486_v51 = vunpack.c.h.bf16 %v517_v41  ;;  %p527_p3 = por %p526_p2, %p525_p1 }
  0x2a   :  { %258 = vadd.xlane.f32.xlu0 %v257_v58  ;;  %v287_v52 = vsel %vm208_vm0, %v201_v43, 0.0  ;;  %v203_v53 = vand.u32 2147483647, %v171_v45  ;;  %v173_v54 = vsub.f32 %v421_v46, %v485_v47  ;;  %vm13_vm1 = vcmask 0  }
  0x2b   :  { %261 = vadd.xlane.f32.xlu1 %v260_v60  ;;  %v290_v55 = vsel %vm208_vm0, %v202_v48, 0.0  ;;  %v204_v56 = vand.u32 2147483647, %v172_v49  ;;  %v174_v57 = vsub.f32 %v422_v50, %v486_v51  ;;  %v542_v0 = vmov 0.0   ;;  %p528_p4 = pnand %p527_p3, %p521_p0 }
  0x2c   :  { %v293_v58 = vsel %vm208_vm0, %v203_v53, 0.0  ;;  %v205_v59 = vand.u32 2147483647, %v173_v54  ;;  %14 = vst.msk [vmem:[#allocation2] sm:$0x1] %vm13_vm1, %v542_v0 }
  0x2d   :  { %v296_v60 = vsel %vm208_vm0, %v204_v56, 0.0  ;;  %v206_v61 = vand.u32 2147483647, %v174_v57 }
  0x2e   :  { %264 = vadd.xlane.f32.xlu0 %v263_v6  ;;  %v299_v62 = vsel %vm208_vm0, %v205_v59, 0.0 }
  0x2f   :  { %267 = vadd.xlane.f32.xlu1 %v266_v15  ;;  %v302_v63 = vsel %vm208_vm0, %v206_v61, 0.0 }
  0x32   :  { %270 = vadd.xlane.f32.xlu0 %v269_v21 }
  0x33   :  { %273 = vadd.xlane.f32.xlu1 %v272_v24 }
  0x36   :  { %276 = vadd.xlane.f32.xlu0 %v275_v32 }
  0x37   :  { %279 = vadd.xlane.f32.xlu1 %v278_v36 }
  0x3a   :  { %282 = vadd.xlane.f32.xlu0 %v281_v42 }
  0x3b   :  { %285 = vadd.xlane.f32.xlu1 %v284_v44 }
  0x3e   :  { %288 = vadd.xlane.f32.xlu0 %v287_v52 }
  0x3f   :  { %291 = vadd.xlane.f32.xlu1 %v290_v55 }
  0x42   :  { %294 = vadd.xlane.f32.xlu0 %v293_v58 }
  0x43   :  { %297 = vadd.xlane.f32.xlu1 %v296_v60 }
  0x46   :  { %300 = vadd.xlane.f32.xlu0 %v299_v62 }
  0x47   :  { %303 = vadd.xlane.f32.xlu1 %v302_v63 }
  0x93   :  { %v211_v1 = vpop.xlane.xlu0 %210  ;;  %v217_v2 = vpop.xlane.xlu1 %216 }
  0x97   :  { %v214_v3 = vpop.xlane.xlu0 %213 }
  0x98   :  { %v305_v4 = vadd.f32 %v214_v3, %v211_v1  ;;  %v220_v5 = vpop.xlane.xlu1 %219 }
  0x9a   :  { %v306_v6 = vadd.f32 %v305_v4, %v217_v2 }
  0x9b   :  { %v223_v7 = vpop.xlane.xlu0 %222 }
  0x9c   :  { %v307_v8 = vadd.f32 %v306_v6, %v220_v5  ;;  %v226_v9 = vpop.xlane.xlu1 %225  ;;  %v207_v5 = vld [vmem:[#allocation2] sm:$0x1] }
  0x9e   :  { %v308_v10 = vadd.f32 %v307_v8, %v223_v7 }
  0x9f   :  { %v229_v11 = vpop.xlane.xlu0 %228 }
  0xa0   :  { %v309_v12 = vadd.f32 %v308_v10, %v226_v9  ;;  %v232_v13 = vpop.xlane.xlu1 %231 }
  0xa2   :  { %v310_v14 = vadd.f32 %v309_v12, %v229_v11 }
  0xa3   :  { %v235_v15 = vpop.xlane.xlu0 %234 }
  0xa4   :  { %v311_v16 = vadd.f32 %v310_v14, %v232_v13  ;;  %v238_v17 = vpop.xlane.xlu1 %237 }
  0xa6   :  { %v312_v18 = vadd.f32 %v311_v16, %v235_v15 }
  0xa7   :  { %v241_v19 = vpop.xlane.xlu0 %240 }
  0xa8   :  { %v313_v20 = vadd.f32 %v312_v18, %v238_v17  ;;  %v244_v21 = vpop.xlane.xlu1 %243 }
  0xaa   :  { %v314_v22 = vadd.f32 %v313_v20, %v241_v19 }
  0xab   :  { %v247_v23 = vpop.xlane.xlu0 %246 }
  0xac   :  { %v315_v24 = vadd.f32 %v314_v22, %v244_v21  ;;  %v250_v25 = vpop.xlane.xlu1 %249 }
  0xae   :  { %v316_v26 = vadd.f32 %v315_v24, %v247_v23 }
  0xaf   :  { %v253_v27 = vpop.xlane.xlu0 %252 }
  0xb0   :  { %v317_v28 = vadd.f32 %v316_v26, %v250_v25  ;;  %v256_v29 = vpop.xlane.xlu1 %255 }
  0xb2   :  { %v318_v30 = vadd.f32 %v317_v28, %v253_v27 }
  0xb3   :  { %v259_v31 = vpop.xlane.xlu0 %258 }
  0xb4   :  { %v319_v32 = vadd.f32 %v318_v30, %v256_v29  ;;  %v262_v33 = vpop.xlane.xlu1 %261 }
  0xb6   :  { %v320_v34 = vadd.f32 %v319_v32, %v259_v31 }
  0xb7   :  { %v265_v35 = vpop.xlane.xlu0 %264 }
  0xb8   :  { %v321_v36 = vadd.f32 %v320_v34, %v262_v33  ;;  %v268_v37 = vpop.xlane.xlu1 %267 }
  0xba   :  { %v322_v38 = vadd.f32 %v321_v36, %v265_v35 }
  0xbb   :  { %v271_v39 = vpop.xlane.xlu0 %270 }
  0xbc   :  { %v323_v40 = vadd.f32 %v322_v38, %v268_v37  ;;  %v274_v41 = vpop.xlane.xlu1 %273 }
  0xbe   :  { %v324_v42 = vadd.f32 %v323_v40, %v271_v39 }
  0xbf   :  { %v277_v43 = vpop.xlane.xlu0 %276 }
  0xc0   :  { %v325_v44 = vadd.f32 %v324_v42, %v274_v41  ;;  %v280_v45 = vpop.xlane.xlu1 %279 }
  0xc2   :  { %v326_v46 = vadd.f32 %v325_v44, %v277_v43 }
  0xc3   :  { %v283_v47 = vpop.xlane.xlu0 %282 }
  0xc4   :  { %v327_v48 = vadd.f32 %v326_v46, %v280_v45  ;;  %v286_v49 = vpop.xlane.xlu1 %285 }
  0xc6   :  { %v328_v50 = vadd.f32 %v327_v48, %v283_v47 }
  0xc7   :  { %v289_v51 = vpop.xlane.xlu0 %288 }
  0xc8   :  { %v329_v52 = vadd.f32 %v328_v50, %v286_v49  ;;  %v292_v53 = vpop.xlane.xlu1 %291 }
  0xca   :  { %v330_v54 = vadd.f32 %v329_v52, %v289_v51 }
  0xcb   :  { %v295_v55 = vpop.xlane.xlu0 %294 }
  0xcc   :  { %v331_v56 = vadd.f32 %v330_v54, %v292_v53  ;;  %v298_v57 = vpop.xlane.xlu1 %297 }
  0xce   :  { %v332_v58 = vadd.f32 %v331_v56, %v295_v55 }
  0xcf   :  { %v301_v59 = vpop.xlane.xlu0 %300 }
  0xd0   :  { %v333_v60 = vadd.f32 %v332_v58, %v298_v57  ;;  %v304_v61 = vpop.xlane.xlu1 %303 }
  0xd2   :  { %v334_v62 = vadd.f32 %v333_v60, %v301_v59 }
  0xd4   :  { %v335_v63 = vadd.f32 %v334_v62, %v304_v61 }
  0xd6   :  { %v336_v0 = vrot.slane %v335_v63, 4 }
  0xd8   :  { %v337_v1 = vadd.f32 %v336_v0, %v335_v63 }
  0xda   :  { %v338_v2 = vrot.slane %v337_v1, 2 }
  0xdc   :  { %v339_v3 = vadd.f32 %v338_v2, %v337_v1 }
  0xde   :  { %v340_v4 = vrot.slane %v339_v3, 1 }
  0xe0   :  { %v341_v6 = vadd.f32 %v340_v4, %v339_v3 }
  0xe2   :  { %v342_v7 = vadd.f32 %v341_v6, %v207_v5 }
  0xe4   :  { %344 = vst.msk [vmem:[#allocation2] sm:$0x1] %vm13_vm1, %v342_v7 }
  0xe5   :  { %531 = shalt.err (!%p528_p4)
}
  0xe6   :  { %354 = dma.vmem_to_hbm [thread:$0]  %s352_s12, 16, %s688_s1, [#allocation3]  }
  0xe7   :  { %540 = dma.done.wait [#allocation3], 16  }
  0xe8   :  { %541 = vsyncadd [#allocation3], 4294967280 }
  0xe9   :  { %358 = vsyncpa [#allocation3], 1 }

// kernel: perceptual_loss.16
= control target key start
LH: loop header
LB: loop body
LE: loop exit
PB: predicated region body
PF: predicated region fallthrough
CT: control target
= control target key end

     0   :  { %s3621_s1 = inlined_call_operand.vmem [shape: bf16[1152,256], index: 1, kind: input, shape index: {}]   ;;  %s3622_s0 = inlined_call_operand.vmem [shape: bf16[128,1152], index: 0, kind: input, shape index: {}]   ;;  %s3623_s2 = inlined_call_operand.vmem [shape: f32[1,256], index: 2, kind: input, shape index: {}]   ;;  %s3624_s3 = inlined_call_operand.vmem [shape: bf16[128,256], index: 3, kind: output, shape index: {}]  }
   0x1   :  { %v2317_v0 = vld [vmem:[%s3621_s1 + $0x74] ss:$8 sps:$4 sm:$0xff]   ;;  %v2321_v2 = vld [vmem:[%s3621_s1 + $0x70] ss:$8 sps:$4 sm:$0xff]   ;;  %v2323_v4 = vld [vmem:[%s3621_s1 + $0x64] ss:$8 sps:$4 sm:$0xff]  }
   0x2   :  { %v2319_v1 = vld [vmem:[%s3621_s1 + $0x174] ss:$8 sps:$4 sm:$0xff]   ;;  %1339 = vmatprep.subr.bf16.mxu0 %v2317_v0  ;;  %v2322_v3 = vld [vmem:[%s3621_s1 + $0x170] ss:$8 sps:$4 sm:$0xff]   ;;  %v2325_v5 = vld [vmem:[%s3621_s1 + $0x164] ss:$8 sps:$4 sm:$0xff]  }
   0x3   :  { %1452 = vmatprep.subr.bf16.mxu1 %v2319_v1  ;;  %1340 = vmatpush1.bf16.msra.mxu0 %v2321_v2  ;;  %v2327_v6 = vld [vmem:[%s3621_s1 + $0x60] ss:$8 sps:$4 sm:$0xff]   ;;  %v2329_v8 = vld [vmem:[%s3621_s1 + $0x54] ss:$8 sps:$4 sm:$0xff]   ;;  %v2333_v10 = vld [vmem:[%s3621_s1 + $0x50] ss:$8 sps:$4 sm:$0xff]  }
   0x4   :  { %1453 = vmatpush1.bf16.msra.mxu1 %v2322_v3  ;;  %1341 = vmatprep.subr.bf16.mxu0 %v2323_v4  ;;  %v2328_v7 = vld [vmem:[%s3621_s1 + $0x160] ss:$8 sps:$4 sm:$0xff]   ;;  %v2331_v9 = vld [vmem:[%s3621_s1 + $0x154] ss:$8 sps:$4 sm:$0xff]   ;;  %v2334_v11 = vld [vmem:[%s3621_s1 + $0x150] ss:$8 sps:$4 sm:$0xff]  }
   0x5   :  { %1454 = vmatprep.subr.bf16.mxu1 %v2325_v5  ;;  %v2335_v12 = vld [vmem:[%s3621_s1 + $0x44] ss:$8 sps:$4 sm:$0xff]   ;;  %v2339_v14 = vld [vmem:[%s3621_s1 + $0x40] ss:$8 sps:$4 sm:$0xff]   ;;  %v2341_v16 = vld [vmem:[%s3621_s1 + $0x34] ss:$8 sps:$4 sm:$0xff]  }
   0x6   :  { %v2337_v13 = vld [vmem:[%s3621_s1 + $0x144] ss:$8 sps:$4 sm:$0xff]   ;;  %v2340_v15 = vld [vmem:[%s3621_s1 + $0x140] ss:$8 sps:$4 sm:$0xff]   ;;  %v2343_v17 = vld [vmem:[%s3621_s1 + $0x134] ss:$8 sps:$4 sm:$0xff]  }
   0x7   :  { %1342 = vmatpush1.bf16.msra.mxu0 %v2327_v6  ;;  %v2345_v18 = vld [vmem:[%s3621_s1 + $0x30] ss:$8 sps:$4 sm:$0xff]   ;;  %v2347_v20 = vld [vmem:[%s3621_s1 + $0x24] ss:$8 sps:$4 sm:$0xff]   ;;  %v2351_v22 = vld [vmem:[%s3621_s1 + $0x20] ss:$8 sps:$4 sm:$0xff]  }
   0x8   :  { %1455 = vmatpush1.bf16.msra.mxu1 %v2328_v7  ;;  %1343 = vmatprep.subr.bf16.mxu0 %v2329_v8  ;;  %v2346_v19 = vld [vmem:[%s3621_s1 + $0x130] ss:$8 sps:$4 sm:$0xff]   ;;  %v2349_v21 = vld [vmem:[%s3621_s1 + $0x124] ss:$8 sps:$4 sm:$0xff]   ;;  %v2352_v23 = vld [vmem:[%s3621_s1 + $0x120] ss:$8 sps:$4 sm:$0xff]  }
   0x9   :  { %1456 = vmatprep.subr.bf16.mxu1 %v2331_v9  ;;  %v2353_v24 = vld [vmem:[%s3621_s1 + $0x14] ss:$8 sps:$4 sm:$0xff]   ;;  %v2357_v26 = vld [vmem:[%s3621_s1 + $0x10] ss:$8 sps:$4 sm:$0xff]   ;;  %v2359_v28 = vld [vmem:[%s3621_s1 + $0x4] ss:$8 sps:$4 sm:$0xff]  }
   0xa   :  { %v2355_v25 = vld [vmem:[%s3621_s1 + $0x114] ss:$8 sps:$4 sm:$0xff]   ;;  %v2358_v27 = vld [vmem:[%s3621_s1 + $0x110] ss:$8 sps:$4 sm:$0xff]   ;;  %v2361_v29 = vld [vmem:[%s3621_s1 + $0x104] ss:$8 sps:$4 sm:$0xff]  }
   0xb   :  { %1344 = vmatpush1.bf16.msra.mxu0 %v2333_v10  ;;  %v2363_v30 = vld [vmem:[%s3621_s1] ss:$8 sps:$4 sm:$0xff]   ;;  %v2365_v32 = vld [vmem:[%s3621_s1 + $0xf4] ss:$8 sps:$4 sm:$0xff]   ;;  %v2369_v34 = vld [vmem:[%s3621_s1 + $0xf0] ss:$8 sps:$4 sm:$0xff]  }
   0xc   :  { %1457 = vmatpush1.bf16.msra.mxu1 %v2334_v11  ;;  %1345 = vmatprep.subr.bf16.mxu0 %v2335_v12  ;;  %v2364_v31 = vld [vmem:[%s3621_s1 + $0x100] ss:$8 sps:$4 sm:$0xff]   ;;  %v2367_v33 = vld [vmem:[%s3621_s1 + $0x1f4] ss:$8 sps:$4 sm:$0xff]   ;;  %v2370_v35 = vld [vmem:[%s3621_s1 + $0x1f0] ss:$8 sps:$4 sm:$0xff]  }
   0xd   :  { %1458 = vmatprep.subr.bf16.mxu1 %v2337_v13  ;;  %v2371_v36 = vld [vmem:[%s3621_s1 + $0xe4] ss:$8 sps:$4 sm:$0xff]   ;;  %v2375_v38 = vld [vmem:[%s3621_s1 + $0xe0] ss:$8 sps:$4 sm:$0xff]   ;;  %v2377_v40 = vld [vmem:[%s3621_s1 + $0xd4] ss:$8 sps:$4 sm:$0xff]  }
   0xe   :  { %v2373_v37 = vld [vmem:[%s3621_s1 + $0x1e4] ss:$8 sps:$4 sm:$0xff]   ;;  %v2376_v39 = vld [vmem:[%s3621_s1 + $0x1e0] ss:$8 sps:$4 sm:$0xff]   ;;  %v2379_v41 = vld [vmem:[%s3621_s1 + $0x1d4] ss:$8 sps:$4 sm:$0xff]  }
   0xf   :  { %1346 = vmatpush1.bf16.msra.mxu0 %v2339_v14  ;;  %v2381_v42 = vld [vmem:[%s3621_s1 + $0xd0] ss:$8 sps:$4 sm:$0xff]   ;;  %v2383_v44 = vld [vmem:[%s3621_s1 + $0xc4] ss:$8 sps:$4 sm:$0xff]   ;;  %v2387_v46 = vld [vmem:[%s3621_s1 + $0xc0] ss:$8 sps:$4 sm:$0xff]  }
  0x10   :  { %1459 = vmatpush1.bf16.msra.mxu1 %v2340_v15  ;;  %1347 = vmatprep.subr.bf16.mxu0 %v2341_v16  ;;  %v2382_v43 = vld [vmem:[%s3621_s1 + $0x1d0] ss:$8 sps:$4 sm:$0xff]   ;;  %v2385_v45 = vld [vmem:[%s3621_s1 + $0x1c4] ss:$8 sps:$4 sm:$0xff]   ;;  %v2388_v47 = vld [vmem:[%s3621_s1 + $0x1c0] ss:$8 sps:$4 sm:$0xff]  }
  0x11   :  { %1460 = vmatprep.subr.bf16.mxu1 %v2343_v17  ;;  %v2389_v48 = vld [vmem:[%s3621_s1 + $0xb4] ss:$8 sps:$4 sm:$0xff]   ;;  %v2415_v49 = vld [vmem:[%s3622_s0 + $0x4] ss:$36 sps:$4 sm:$0xff]   ;;  %v2418_v51 = vld [vmem:[%s3622_s0 + $0xc] ss:$36 sps:$4 sm:$0xff]  }
  0x12   :  { %v2391_v50 = vld [vmem:[%s3621_s1 + $0x1b4] ss:$8 sps:$4 sm:$0xff]   ;;  %1371 = vmatprep.mubr.bf16.mxu0 %v2415_v49  ;;  %v2393_v52 = vld [vmem:[%s3621_s1 + $0xb0] ss:$8 sps:$4 sm:$0xff]   ;;  %1484 = vmatprep.mubr.bf16.mxu1 %v2418_v51  ;;  %v2395_v54 = vld [vmem:[%s3621_s1 + $0xa4] ss:$8 sps:$4 sm:$0xff]  }
  0x13   :  { %1348 = vmatpush1.bf16.msra.mxu0 %v2345_v18  ;;  %v2394_v53 = vld [vmem:[%s3621_s1 + $0x1b0] ss:$8 sps:$4 sm:$0xff]   ;;  %v2397_v55 = vld [vmem:[%s3621_s1 + $0x1a4] ss:$8 sps:$4 sm:$0xff]   ;;  %v2399_v56 = vld [vmem:[%s3621_s1 + $0xa0] ss:$8 sps:$4 sm:$0xff]  }
  0x14   :  { %1461 = vmatpush1.bf16.msra.mxu1 %v2346_v19  ;;  %1349 = vmatprep.subr.bf16.mxu0 %v2347_v20  ;;  %v2400_v57 = vld [vmem:[%s3621_s1 + $0x1a0] ss:$8 sps:$4 sm:$0xff]   ;;  %v2401_v58 = vld [vmem:[%s3621_s1 + $0x94] ss:$8 sps:$4 sm:$0xff]   ;;  %v2405_v60 = vld [vmem:[%s3621_s1 + $0x90] ss:$8 sps:$4 sm:$0xff]  }
  0x15   :  { %1462 = vmatprep.subr.bf16.mxu1 %v2349_v21  ;;  %v2403_v59 = vld [vmem:[%s3621_s1 + $0x194] ss:$8 sps:$4 sm:$0xff]   ;;  %v2406_v61 = vld [vmem:[%s3621_s1 + $0x190] ss:$8 sps:$4 sm:$0xff]   ;;  %v2407_v62 = vld [vmem:[%s3621_s1 + $0x84] ss:$8 sps:$4 sm:$0xff]  }
  0x16   :  { %v2409_v63 = vld [vmem:[%s3621_s1 + $0x184] ss:$8 sps:$4 sm:$0xff]   ;;  %v2411_v0 = vld [vmem:[%s3621_s1 + $0x80] ss:$8 sps:$4 sm:$0xff]   ;;  %v2421_v2 = vld [vmem:[%s3621_s1 + $0x274] ss:$8 sps:$4 sm:$0xff]  }
  0x17   :  { %1350 = vmatpush1.bf16.msra.mxu0 %v2351_v22  ;;  %v2412_v1 = vld [vmem:[%s3621_s1 + $0x180] ss:$8 sps:$4 sm:$0xff]   ;;  %v2424_v3 = vld [vmem:[%s3621_s1 + $0x374] ss:$8 sps:$4 sm:$0xff]   ;;  %v2419_v6 = vld [vmem:[%s3621_s1 + $0x270] ss:$8 sps:$4 sm:$0xff]  }
  0x18   :  { %1463 = vmatpush1.bf16.msra.mxu1 %v2352_v23  ;;  %1351 = vmatprep.subr.bf16.mxu0 %v2353_v24  ;;  %v2413_v4 = vld [vmem:[%s3622_s0] ss:$36 sps:$4 sm:$0xff]   ;;  %v2416_v5 = vld [vmem:[%s3622_s0 + $0x8] ss:$36 sps:$4 sm:$0xff]   ;;  %v2422_v7 = vld [vmem:[%s3621_s1 + $0x370] ss:$8 sps:$4 sm:$0xff]  }
  0x19   :  { %1464 = vmatprep.subr.bf16.mxu1 %v2355_v25  ;;  %v2427_v8 = vld [vmem:[%s3621_s1 + $0x264] ss:$8 sps:$4 sm:$0xff]   ;;  %v2433_v11 = vld [vmem:[%s3622_s0 + $0x54] ss:$36 sps:$4 sm:$0xff]   ;;  %v2425_v12 = vld [vmem:[%s3621_s1 + $0x260] ss:$8 sps:$4 sm:$0xff]  }
  0x1a   :  { %v2430_v9 = vld [vmem:[%s3621_s1 + $0x364] ss:$8 sps:$4 sm:$0xff]   ;;  %v2428_v13 = vld [vmem:[%s3621_s1 + $0x360] ss:$8 sps:$4 sm:$0xff]   ;;  %v2439_v14 = vld [vmem:[%s3621_s1 + $0x254] ss:$8 sps:$4 sm:$0xff]  }
  0x1b   :  { %1352 = vmatpush1.bf16.msra.mxu0 %v2357_v26  ;;  %v2431_v10 = vld [vmem:[%s3622_s0 + $0x4c] ss:$36 sps:$4 sm:$0xff]   ;;  %v2442_v15 = vld [vmem:[%s3621_s1 + $0x354] ss:$8 sps:$4 sm:$0xff]   ;;  %v2443_v24 = vld [vmem:[%s3621_s1 + $0x240] ss:$8 sps:$4 sm:$0xff]  }
  0x1c   :  { %1465 = vmatpush1.bf16.msra.mxu1 %v2358_v27  ;;  %1353 = vmatprep.subr.bf16.mxu0 %v2359_v28  ;;  %v2435_v16 = vld [vmem:[%s3622_s0 + $0x48] ss:$36 sps:$4 sm:$0xff]   ;;  %v2436_v17 = vld [vmem:[%s3622_s0 + $0x50] ss:$36 sps:$4 sm:$0xff]   ;;  %v2451_v23 = vld [vmem:[%s3622_s0 + $0x9c] ss:$36 sps:$4 sm:$0xff]  }
  0x1d   :  { %1466 = vmatprep.subr.bf16.mxu1 %v2361_v29  ;;  %v2437_v18 = vld [vmem:[%s3621_s1 + $0x250] ss:$8 sps:$4 sm:$0xff]   ;;  %v2445_v20 = vld [vmem:[%s3621_s1 + $0x244] ss:$8 sps:$4 sm:$0xff]   ;;  %v2446_v25 = vld [vmem:[%s3621_s1 + $0x340] ss:$8 sps:$4 sm:$0xff]  }
  0x1e   :  { %v2440_v19 = vld [vmem:[%s3621_s1 + $0x350] ss:$8 sps:$4 sm:$0xff]   ;;  %v2448_v21 = vld [vmem:[%s3621_s1 + $0x344] ss:$8 sps:$4 sm:$0xff]   ;;  %v2457_v26 = vld [vmem:[%s3621_s1 + $0x234] ss:$8 sps:$4 sm:$0xff]  }
  0x1f   :  { %1354 = vmatpush1.bf16.msra.mxu0 %v2363_v30  ;;  %v2449_v22 = vld [vmem:[%s3622_s0 + $0x94] ss:$36 sps:$4 sm:$0xff]   ;;  %v2482_v49 = vld [vmem:[%s3621_s1 + $0x300] ss:$8 sps:$4 sm:$0xff]  }
  0x20   :  { %1467 = vmatpush1.bf16.msra.mxu1 %v2364_v31  ;;  %1355 = vmatprep.subr.bf16.mxu0 %v2365_v32  ;;  %v2460_v27 = vld [vmem:[%s3621_s1 + $0x334] ss:$8 sps:$4 sm:$0xff]   ;;  %v2455_v30 = vld [vmem:[%s3621_s1 + $0x230] ss:$8 sps:$4 sm:$0xff]   ;;  %v2463_v32 = vld [vmem:[%s3621_s1 + $0x224] ss:$8 sps:$4 sm:$0xff]  }
  0x21   :  { %1468 = vmatprep.subr.bf16.mxu1 %v2367_v33  ;;  %v2453_v28 = vld [vmem:[%s3622_s0 + $0x90] ss:$36 sps:$4 sm:$0xff]   ;;  %v2454_v29 = vld [vmem:[%s3622_s0 + $0x98] ss:$36 sps:$4 sm:$0xff]   ;;  %v2466_v33 = vld [vmem:[%s3621_s1 + $0x324] ss:$8 sps:$4 sm:$0xff]  }
  0x22   :  { %v2458_v31 = vld [vmem:[%s3621_s1 + $0x330] ss:$8 sps:$4 sm:$0xff]   ;;  %v2496_v51 = vld [vmem:[%s3621_s1 + $0x3f4] ss:$8 sps:$4 sm:$0xff]  }
  0x23   :  { %1356 = vmatpush2.bf16.msra.mxu0 %v2369_v34  ;;  %v2467_v34 = vld [vmem:[%s3622_s0 + $0xdc] ss:$36 sps:$4 sm:$0xff]  }
  0x24   :  { %1469 = vmatpush2.bf16.msra.mxu1 %v2370_v35  ;;  %1357 = vmatprep.subr.bf16.mxu0 %v2371_v36  ;;  %v2469_v35 = vld [vmem:[%s3622_s0 + $0xe4] ss:$36 sps:$4 sm:$0xff]  }
  0x25   :  { %1470 = vmatprep.subr.bf16.mxu1 %v2373_v37  ;;  %v2461_v36 = vld [vmem:[%s3621_s1 + $0x220] ss:$8 sps:$4 sm:$0xff]  }
  0x26   :  { %v2464_v37 = vld [vmem:[%s3621_s1 + $0x320] ss:$8 sps:$4 sm:$0xff]  }
  0x27   :  { %1358 = vmatpush2.bf16.msra.mxu0 %v2375_v38  ;;  %v2475_v38 = vld [vmem:[%s3621_s1 + $0x214] ss:$8 sps:$4 sm:$0xff]  }
  0x28   :  { %1471 = vmatpush2.bf16.msra.mxu1 %v2376_v39  ;;  %1359 = vmatprep.subr.bf16.mxu0 %v2377_v40  ;;  %v2478_v39 = vld [vmem:[%s3621_s1 + $0x314] ss:$8 sps:$4 sm:$0xff]  }
  0x29   :  { %1472 = vmatprep.subr.bf16.mxu1 %v2379_v41  ;;  %v2471_v40 = vld [vmem:[%s3622_s0 + $0xd8] ss:$36 sps:$4 sm:$0xff]   ;;  %v2472_v41 = vld [vmem:[%s3622_s0 + $0xe0] ss:$36 sps:$4 sm:$0xff]  }
  0x2b   :  { %1360 = vmatpush2.bf16.msra.mxu0 %v2381_v42  ;;  %v2473_v42 = vld [vmem:[%s3621_s1 + $0x210] ss:$8 sps:$4 sm:$0xff]  }
  0x2c   :  { %1473 = vmatpush2.bf16.msra.mxu1 %v2382_v43  ;;  %1361 = vmatprep.subr.bf16.mxu0 %v2383_v44  ;;  %v2476_v43 = vld [vmem:[%s3621_s1 + $0x310] ss:$8 sps:$4 sm:$0xff]   ;;  %v2481_v44 = vld [vmem:[%s3621_s1 + $0x204] ss:$8 sps:$4 sm:$0xff]  }
  0x2d   :  { %1474 = vmatprep.subr.bf16.mxu1 %v2385_v45  ;;  %v2484_v45 = vld [vmem:[%s3621_s1 + $0x304] ss:$8 sps:$4 sm:$0xff]  }
  0x2f   :  { %1362 = vmatpush2.bf16.msra.mxu0 %v2387_v46  ;;  %v2485_v46 = vld [vmem:[%s3622_s0 + $0x124] ss:$36 sps:$4 sm:$0xff]  }
  0x30   :  { %1475 = vmatpush2.bf16.msra.mxu1 %v2388_v47  ;;  %1363 = vmatprep.subr.bf16.mxu0 %v2389_v48  ;;  %v2487_v47 = vld [vmem:[%s3622_s0 + $0x12c] ss:$36 sps:$4 sm:$0xff]   ;;  %v2479_v48 = vld [vmem:[%s3621_s1 + $0x200] ss:$8 sps:$4 sm:$0xff]  }
  0x31   :  { %1476 = vmatprep.subr.bf16.mxu1 %v2391_v50  ;;  %v2493_v50 = vld [vmem:[%s3621_s1 + $0x2f4] ss:$8 sps:$4 sm:$0xff]  }
  0x33   :  { %1364 = vmatpush2.bf16.msra.mxu0 %v2393_v52  ;;  %v2489_v52 = vld [vmem:[%s3622_s0 + $0x120] ss:$36 sps:$4 sm:$0xff]  }
  0x34   :  { %1477 = vmatpush2.bf16.msra.mxu1 %v2394_v53  ;;  %1365 = vmatprep.subr.bf16.mxu0 %v2395_v54  ;;  %v2490_v53 = vld [vmem:[%s3622_s0 + $0x128] ss:$36 sps:$4 sm:$0xff]   ;;  %v2491_v54 = vld [vmem:[%s3621_s1 + $0x2f0] ss:$8 sps:$4 sm:$0xff]  }
  0x35   :  { %1478 = vmatprep.subr.bf16.mxu1 %v2397_v55  ;;  %v2494_v55 = vld [vmem:[%s3621_s1 + $0x3f0] ss:$8 sps:$4 sm:$0xff]  }
  0x37   :  { %1366 = vmatpush2.bf16.msra.mxu0 %v2399_v56  ;;  %v2499_v56 = vld [vmem:[%s3621_s1 + $0x2e4] ss:$8 sps:$4 sm:$0xff]  }
  0x38   :  { %1479 = vmatpush2.bf16.msra.mxu1 %v2400_v57  ;;  %1367 = vmatprep.subr.bf16.mxu0 %v2401_v58  ;;  %v2502_v57 = vld [vmem:[%s3621_s1 + $0x3e4] ss:$8 sps:$4 sm:$0xff]  }
  0x39   :  { %1480 = vmatprep.subr.bf16.mxu1 %v2403_v59  ;;  %v2503_v58 = vld [vmem:[%s3622_s0 + $0x16c] ss:$36 sps:$4 sm:$0xff]   ;;  %v2505_v59 = vld [vmem:[%s3622_s0 + $0x174] ss:$36 sps:$4 sm:$0xff]  }
  0x3b   :  { %1368 = vmatpush2.bf16.msra.mxu0 %v2405_v60  ;;  %v2497_v60 = vld [vmem:[%s3621_s1 + $0x2e0] ss:$8 sps:$4 sm:$0xff]  }
  0x3c   :  { %1481 = vmatpush2.bf16.msra.mxu1 %v2406_v61  ;;  %1369 = vmatprep.subr.bf16.mxu0 %v2407_v62  ;;  %v2500_v61 = vld [vmem:[%s3621_s1 + $0x3e0] ss:$8 sps:$4 sm:$0xff]   ;;  %v2511_v62 = vld [vmem:[%s3621_s1 + $0x2d4] ss:$8 sps:$4 sm:$0xff]  }
  0x3d   :  { %1482 = vmatprep.subr.bf16.mxu1 %v2409_v63  ;;  %v2514_v63 = vld [vmem:[%s3621_s1 + $0x3d4] ss:$8 sps:$4 sm:$0xff]  }
  0x3f   :  { %1370 = vmatpush2.bf16.msra.mxu0 %v2411_v0  ;;  %v2507_v0 = vld [vmem:[%s3622_s0 + $0x168] ss:$36 sps:$4 sm:$0xff]  }
  0x40   :  { %1483 = vmatpush2.bf16.msra.mxu1 %v2412_v1  ;;  %1565 = vmatprep.subr.bf16.mxu0 %v2421_v2  ;;  %v2508_v1 = vld [vmem:[%s3622_s0 + $0x170] ss:$36 sps:$4 sm:$0xff]  }
  0x41   :  { %1678 = vmatprep.subr.bf16.mxu1 %v2424_v3  ;;  %v2509_v2 = vld [vmem:[%s3621_s1 + $0x2d0] ss:$8 sps:$4 sm:$0xff]  }
  0x42   :  { %1372 = vmatmul.mubr.bf16.vlgmr.msra.gmra.mxu0 %v2413_v4  ;;  %v2512_v3 = vld [vmem:[%s3621_s1 + $0x3d0] ss:$8 sps:$4 sm:$0xff]   ;;  %v2517_v4 = vld [vmem:[%s3621_s1 + $0x2c4] ss:$8 sps:$4 sm:$0xff]  }
  0x43   :  { %1485 = vmatmul.mubr.bf16.vlgmr.msra.gmra.mxu1 %v2416_v5  ;;  %1566 = vmatpush1.bf16.msra.mxu0 %v2419_v6  ;;  %v2520_v5 = vld [vmem:[%s3621_s1 + $0x3c4] ss:$8 sps:$4 sm:$0xff]   ;;  %v2521_v6 = vld [vmem:[%s3622_s0 + $0x1b4] ss:$36 sps:$4 sm:$0xff]  }
  0x44   :  { %1679 = vmatpush1.bf16.msra.mxu1 %v2422_v7  ;;  %1567 = vmatprep.subr.bf16.mxu0 %v2427_v8  ;;  %v2523_v7 = vld [vmem:[%s3622_s0 + $0x1bc] ss:$36 sps:$4 sm:$0xff]  }
  0x45   :  { %1680 = vmatprep.subr.bf16.mxu1 %v2430_v9  ;;  %1381 = vmatprep.mubr.bf16.mxu0 %v2431_v10  ;;  %v2515_v8 = vld [vmem:[%s3621_s1 + $0x2c0] ss:$8 sps:$4 sm:$0xff]   ;;  %v2529_v10 = vld [vmem:[%s3621_s1 + $0x2b4] ss:$8 sps:$4 sm:$0xff]  }
  0x46   :  { %1494 = vmatprep.mubr.bf16.mxu1 %v2433_v11  ;;  %v2518_v9 = vld [vmem:[%s3621_s1 + $0x3c0] ss:$8 sps:$4 sm:$0xff]   ;;  %v2532_v11 = vld [vmem:[%s3621_s1 + $0x3b4] ss:$8 sps:$4 sm:$0xff]  }
  0x47   :  { %1568 = vmatpush1.bf16.msra.mxu0 %v2425_v12  ;;  %v2525_v12 = vld [vmem:[%s3622_s0 + $0x1b0] ss:$36 sps:$4 sm:$0xff]  }
  0x48   :  { %1681 = vmatpush1.bf16.msra.mxu1 %v2428_v13  ;;  %1569 = vmatprep.subr.bf16.mxu0 %v2439_v14  ;;  %v2526_v13 = vld [vmem:[%s3622_s0 + $0x1b8] ss:$36 sps:$4 sm:$0xff]  }
  0x49   :  { %1682 = vmatprep.subr.bf16.mxu1 %v2442_v15  ;;  %v2527_v14 = vld [vmem:[%s3621_s1 + $0x2b0] ss:$8 sps:$4 sm:$0xff]  }
  0x4a   :  { %1382 = vmatmul.mubr.bf16.gmra.mxu0 %v2435_v16  ;;  %v2530_v15 = vld [vmem:[%s3621_s1 + $0x3b0] ss:$8 sps:$4 sm:$0xff]   ;;  %v2535_v16 = vld [vmem:[%s3621_s1 + $0x2a4] ss:$8 sps:$4 sm:$0xff]  }
  0x4b   :  { %1495 = vmatmul.mubr.bf16.gmra.mxu1 %v2436_v17  ;;  %1570 = vmatpush1.bf16.msra.mxu0 %v2437_v18  ;;  %v2538_v17 = vld [vmem:[%s3621_s1 + $0x3a4] ss:$8 sps:$4 sm:$0xff]   ;;  %v2539_v18 = vld [vmem:[%s3622_s0 + $0x1fc] ss:$36 sps:$4 sm:$0xff]  }
  0x4c   :  { %1683 = vmatpush1.bf16.msra.mxu1 %v2440_v19  ;;  %1571 = vmatprep.subr.bf16.mxu0 %v2445_v20  ;;  %v2541_v19 = vld [vmem:[%s3622_s0 + $0x204] ss:$36 sps:$4 sm:$0xff]  }
  0x4d   :  { %1684 = vmatprep.subr.bf16.mxu1 %v2448_v21  ;;  %1391 = vmatprep.mubr.bf16.mxu0 %v2449_v22  ;;  %v2533_v20 = vld [vmem:[%s3621_s1 + $0x2a0] ss:$8 sps:$4 sm:$0xff]   ;;  %v2547_v22 = vld [vmem:[%s3621_s1 + $0x294] ss:$8 sps:$4 sm:$0xff]  }
  0x4e   :  { %1504 = vmatprep.mubr.bf16.mxu1 %v2451_v23  ;;  %v2536_v21 = vld [vmem:[%s3621_s1 + $0x3a0] ss:$8 sps:$4 sm:$0xff]   ;;  %v2550_v23 = vld [vmem:[%s3621_s1 + $0x394] ss:$8 sps:$4 sm:$0xff]  }
  0x4f   :  { %1572 = vmatpush1.bf16.msra.mxu0 %v2443_v24  ;;  %v2543_v24 = vld [vmem:[%s3622_s0 + $0x1f8] ss:$36 sps:$4 sm:$0xff]  }
  0x50   :  { %1685 = vmatpush1.bf16.msra.mxu1 %v2446_v25  ;;  %1573 = vmatprep.subr.bf16.mxu0 %v2457_v26  ;;  %v2544_v25 = vld [vmem:[%s3622_s0 + $0x200] ss:$36 sps:$4 sm:$0xff]   ;;  %v2545_v26 = vld [vmem:[%s3621_s1 + $0x290] ss:$8 sps:$4 sm:$0xff]  }
  0x51   :  { %1686 = vmatprep.subr.bf16.mxu1 %v2460_v27  ;;  %v2548_v27 = vld [vmem:[%s3621_s1 + $0x390] ss:$8 sps:$4 sm:$0xff]  }
  0x52   :  { %1392 = vmatmul.mubr.bf16.gmra.mxu0 %v2453_v28  ;;  %v2553_v28 = vld [vmem:[%s3621_s1 + $0x284] ss:$8 sps:$4 sm:$0xff]  }
  0x53   :  { %1505 = vmatmul.mubr.bf16.gmra.mxu1 %v2454_v29  ;;  %1574 = vmatpush1.bf16.msra.mxu0 %v2455_v30  ;;  %v2556_v29 = vld [vmem:[%s3621_s1 + $0x384] ss:$8 sps:$4 sm:$0xff]   ;;  %v2559_v30 = vld [vmem:[%s3622_s0 + $0x14] ss:$36 sps:$4 sm:$0xff]  }
  0x54   :  { %1687 = vmatpush1.bf16.msra.mxu1 %v2458_v31  ;;  %1575 = vmatprep.subr.bf16.mxu0 %v2463_v32  ;;  %v2562_v31 = vld [vmem:[%s3622_s0 + $0x1c] ss:$36 sps:$4 sm:$0xff]  }
  0x55   :  { %1688 = vmatprep.subr.bf16.mxu1 %v2466_v33  ;;  %1401 = vmatprep.mubr.bf16.mxu0 %v2467_v34  ;;  %v2551_v32 = vld [vmem:[%s3621_s1 + $0x280] ss:$8 sps:$4 sm:$0xff]   ;;  %v2565_v34 = vld [vmem:[%s3621_s1 + $0x474] ss:$8 sps:$4 sm:$0xff]  }
  0x56   :  { %1514 = vmatprep.mubr.bf16.mxu1 %v2469_v35  ;;  %v2554_v33 = vld [vmem:[%s3621_s1 + $0x380] ss:$8 sps:$4 sm:$0xff]   ;;  %v2557_v35 = vld [vmem:[%s3622_s0 + $0x10] ss:$36 sps:$4 sm:$0xff]  }
  0x57   :  { %1576 = vmatpush1.bf16.msra.mxu0 %v2461_v36  ;;  %v2560_v36 = vld [vmem:[%s3622_s0 + $0x18] ss:$36 sps:$4 sm:$0xff]  }
  0x58   :  { %1689 = vmatpush1.bf16.msra.mxu1 %v2464_v37  ;;  %1577 = vmatprep.subr.bf16.mxu0 %v2475_v38  ;;  %v2563_v37 = vld [vmem:[%s3621_s1 + $0x470] ss:$8 sps:$4 sm:$0xff]   ;;  %v2566_v38 = vld [vmem:[%s3622_s0 + $0x5c] ss:$36 sps:$4 sm:$0xff]  }
  0x59   :  { %1690 = vmatprep.subr.bf16.mxu1 %v2478_v39  ;;  %v2568_v39 = vld [vmem:[%s3622_s0 + $0x64] ss:$36 sps:$4 sm:$0xff]  }
  0x5a   :  { %1402 = vmatmul.mubr.bf16.gmra.mxu0 %v2471_v40  ;;  %v2574_v40 = vld [vmem:[%s3621_s1 + $0x464] ss:$8 sps:$4 sm:$0xff]  }
  0x5b   :  { %1515 = vmatmul.mubr.bf16.gmra.mxu1 %v2472_v41  ;;  %1578 = vmatpush1.bf16.msra.mxu0 %v2473_v42  ;;  %v2572_v41 = vld [vmem:[%s3621_s1 + $0x460] ss:$8 sps:$4 sm:$0xff]   ;;  %v2583_v42 = vld [vmem:[%s3621_s1 + $0x454] ss:$8 sps:$4 sm:$0xff]  }
  0x5c   :  { %1691 = vmatpush1.bf16.msra.mxu1 %v2476_v43  ;;  %1579 = vmatprep.subr.bf16.mxu0 %v2481_v44  ;;  %v2570_v43 = vld [vmem:[%s3622_s0 + $0x58] ss:$36 sps:$4 sm:$0xff]   ;;  %v2571_v44 = vld [vmem:[%s3622_s0 + $0x60] ss:$36 sps:$4 sm:$0xff]  }
  0x5d   :  { %1692 = vmatprep.subr.bf16.mxu1 %v2484_v45  ;;  %1411 = vmatprep.mubr.bf16.mxu0 %v2485_v46  ;;  %v2575_v45 = vld [vmem:[%s3622_s0 + $0xa4] ss:$36 sps:$4 sm:$0xff]   ;;  %v2577_v46 = vld [vmem:[%s3622_s0 + $0xac] ss:$36 sps:$4 sm:$0xff]  }
  0x5e   :  { %1524 = vmatprep.mubr.bf16.mxu1 %v2487_v47  ;;  %v2581_v47 = vld [vmem:[%s3621_s1 + $0x450] ss:$8 sps:$4 sm:$0xff]  }
  0x5f   :  { %1580 = vmatpush1.bf16.msra.mxu0 %v2479_v48  ;;  %v2592_v48 = vld [vmem:[%s3621_s1 + $0x444] ss:$8 sps:$4 sm:$0xff]  }
  0x60   :  { %1693 = vmatpush1.bf16.msra.mxu1 %v2482_v49  ;;  %1581 = vmatprep.subr.bf16.mxu0 %v2493_v50  ;;  %v2579_v49 = vld [vmem:[%s3622_s0 + $0xa0] ss:$36 sps:$4 sm:$0xff]   ;;  %v2580_v50 = vld [vmem:[%s3622_s0 + $0xa8] ss:$36 sps:$4 sm:$0xff]  }
  0x61   :  { %1694 = vmatprep.subr.bf16.mxu1 %v2496_v51  ;;  %v2590_v51 = vld [vmem:[%s3621_s1 + $0x440] ss:$8 sps:$4 sm:$0xff]  }
  0x62   :  { %1412 = vmatmul.mubr.bf16.gmra.mxu0 %v2489_v52  ;;  %v2601_v52 = vld [vmem:[%s3621_s1 + $0x434] ss:$8 sps:$4 sm:$0xff]  }
  0x63   :  { %1525 = vmatmul.mubr.bf16.gmra.mxu1 %v2490_v53  ;;  %1582 = vmatpush2.bf16.msra.mxu0 %v2491_v54  ;;  %v2584_v53 = vld [vmem:[%s3622_s0 + $0xec] ss:$36 sps:$4 sm:$0xff]   ;;  %v2586_v54 = vld [vmem:[%s3622_s0 + $0xf4] ss:$36 sps:$4 sm:$0xff]  }
  0x64   :  { %1695 = vmatpush2.bf16.msra.mxu1 %v2494_v55  ;;  %1583 = vmatprep.subr.bf16.mxu0 %v2499_v56  ;;  %v2599_v55 = vld [vmem:[%s3621_s1 + $0x430] ss:$8 sps:$4 sm:$0xff]   ;;  %v2610_v56 = vld [vmem:[%s3621_s1 + $0x424] ss:$8 sps:$4 sm:$0xff]  }
  0x65   :  { %1696 = vmatprep.subr.bf16.mxu1 %v2502_v57  ;;  %1421 = vmatprep.mubr.bf16.mxu0 %v2503_v58  ;;  %v2608_v57 = vld [vmem:[%s3621_s1 + $0x420] ss:$8 sps:$4 sm:$0xff]   ;;  %v2619_v58 = vld [vmem:[%s3621_s1 + $0x414] ss:$8 sps:$4 sm:$0xff]  }
  0x66   :  { %1534 = vmatprep.mubr.bf16.mxu1 %v2505_v59  ;;  %v2588_v59 = vld [vmem:[%s3622_s0 + $0xe8] ss:$36 sps:$4 sm:$0xff]  }
  0x67   :  { %1584 = vmatpush2.bf16.msra.mxu0 %v2497_v60  ;;  %v2589_v60 = vld [vmem:[%s3622_s0 + $0xf0] ss:$36 sps:$4 sm:$0xff]  }
  0x68   :  { %1697 = vmatpush2.bf16.msra.mxu1 %v2500_v61  ;;  %1585 = vmatprep.subr.bf16.mxu0 %v2511_v62  ;;  %v2593_v61 = vld [vmem:[%s3622_s0 + $0x134] ss:$36 sps:$4 sm:$0xff]   ;;  %v2595_v62 = vld [vmem:[%s3622_s0 + $0x13c] ss:$36 sps:$4 sm:$0xff]  }
  0x69   :  { %1698 = vmatprep.subr.bf16.mxu1 %v2514_v63  ;;  %v2617_v63 = vld [vmem:[%s3621_s1 + $0x410] ss:$8 sps:$4 sm:$0xff]  }
  0x6a   :  { %1422 = vmatmul.mubr.bf16.gmra.mxu0 %v2507_v0  ;;  %v2628_v0 = vld [vmem:[%s3621_s1 + $0x404] ss:$8 sps:$4 sm:$0xff]  }
  0x6b   :  { %1535 = vmatmul.mubr.bf16.gmra.mxu1 %v2508_v1  ;;  %1586 = vmatpush2.bf16.msra.mxu0 %v2509_v2  ;;  %v2626_v1 = vld [vmem:[%s3621_s1 + $0x400] ss:$8 sps:$4 sm:$0xff]   ;;  %v2597_v2 = vld [vmem:[%s3622_s0 + $0x130] ss:$36 sps:$4 sm:$0xff]  }
  0x6c   :  { %1699 = vmatpush2.bf16.msra.mxu1 %v2512_v3  ;;  %1587 = vmatprep.subr.bf16.mxu0 %v2517_v4  ;;  %v2598_v3 = vld [vmem:[%s3622_s0 + $0x138] ss:$36 sps:$4 sm:$0xff]  }
  0x6d   :  { %1700 = vmatprep.subr.bf16.mxu1 %v2520_v5  ;;  %1431 = vmatprep.mubr.bf16.mxu0 %v2521_v6  ;;  %v2602_v4 = vld [vmem:[%s3622_s0 + $0x17c] ss:$36 sps:$4 sm:$0xff]   ;;  %v2604_v5 = vld [vmem:[%s3622_s0 + $0x184] ss:$36 sps:$4 sm:$0xff]  }
  0x6e   :  { %1544 = vmatprep.mubr.bf16.mxu1 %v2523_v7  ;;  %v2606_v6 = vld [vmem:[%s3622_s0 + $0x178] ss:$36 sps:$4 sm:$0xff]   ;;  %v2607_v7 = vld [vmem:[%s3622_s0 + $0x180] ss:$36 sps:$4 sm:$0xff]  }
  0x6f   :  { %1588 = vmatpush2.bf16.msra.mxu0 %v2515_v8  ;;  %v2611_v8 = vld [vmem:[%s3622_s0 + $0x1c4] ss:$36 sps:$4 sm:$0xff]  }
  0x70   :  { %1701 = vmatpush2.bf16.msra.mxu1 %v2518_v9  ;;  %1589 = vmatprep.subr.bf16.mxu0 %v2529_v10  ;;  %v2613_v9 = vld [vmem:[%s3622_s0 + $0x1cc] ss:$36 sps:$4 sm:$0xff]   ;;  %v2615_v10 = vld [vmem:[%s3622_s0 + $0x1c0] ss:$36 sps:$4 sm:$0xff]  }
  0x71   :  { %1702 = vmatprep.subr.bf16.mxu1 %v2532_v11  ;;  %v2616_v11 = vld [vmem:[%s3622_s0 + $0x1c8] ss:$36 sps:$4 sm:$0xff]  }
  0x72   :  { %1432 = vmatmul.mubr.bf16.gmra.mxu0 %v2525_v12  ;;  %v2620_v12 = vld [vmem:[%s3622_s0 + $0x20c] ss:$36 sps:$4 sm:$0xff]  }
  0x73   :  { %1545 = vmatmul.mubr.bf16.gmra.mxu1 %v2526_v13  ;;  %1590 = vmatpush2.bf16.msra.mxu0 %v2527_v14  ;;  %v2622_v13 = vld [vmem:[%s3622_s0 + $0x214] ss:$36 sps:$4 sm:$0xff]   ;;  %v2624_v14 = vld [vmem:[%s3622_s0 + $0x208] ss:$36 sps:$4 sm:$0xff]  }
  0x74   :  { %1703 = vmatpush2.bf16.msra.mxu1 %v2530_v15  ;;  %1591 = vmatprep.subr.bf16.mxu0 %v2535_v16  ;;  %v2625_v15 = vld [vmem:[%s3622_s0 + $0x210] ss:$36 sps:$4 sm:$0xff]   ;;  %v2637_v16 = vmov 0  }
  0x75   :  { %1704 = vmatprep.subr.bf16.mxu1 %v2538_v17  ;;  %1441 = vmatprep.mubr.bf16.mxu0 %v2539_v18  ;;  %v2629_v17 = vld [vmem:[%s3622_s0 + $0x20] ss:$36 sps:$4 sm:$0xff]  }
  0x76   :  { %1554 = vmatprep.mubr.bf16.mxu1 %v2541_v19  ;;  %v2630_v18 = vld [vmem:[%s3622_s0 + $0x140] ss:$36 sps:$4 sm:$0xff]   ;;  %v2631_v19 = vld [vmem:[%s3622_s0 + $0x68] ss:$36 sps:$4 sm:$0xff]  }
  0x77   :  { %1592 = vmatpush2.bf16.msra.mxu0 %v2533_v20  ;;  %v2632_v20 = vld [vmem:[%s3622_s0 + $0x188] ss:$36 sps:$4 sm:$0xff]  }
  0x78   :  { %1705 = vmatpush2.bf16.msra.mxu1 %v2536_v21  ;;  %1593 = vmatprep.subr.bf16.mxu0 %v2547_v22  ;;  %v2633_v21 = vld [vmem:[%s3622_s0 + $0xb0] ss:$36 sps:$4 sm:$0xff]  }
  0x79   :  { %1706 = vmatprep.subr.bf16.mxu1 %v2550_v23  ;;  %v2634_v22 = vld [vmem:[%s3622_s0 + $0x1d0] ss:$36 sps:$4 sm:$0xff]   ;;  %v2635_v23 = vld [vmem:[%s3622_s0 + $0xf8] ss:$36 sps:$4 sm:$0xff]  }
  0x7a   :  { %1442 = vmatmul.mubr.bf16.gmra.mxu0 %v2543_v24  ;;  %v2636_v24 = vld [vmem:[%s3622_s0 + $0x218] ss:$36 sps:$4 sm:$0xff]  }
  0x7b   :  { %1555 = vmatmul.mubr.bf16.gmra.mxu1 %v2544_v25  ;;  %1594 = vmatpush2.bf16.msra.mxu0 %v2545_v26  ;;  %v241_v25 = vlaneseq }
  0x7c   :  { %1707 = vmatpush2.bf16.msra.mxu1 %v2548_v27  ;;  %1595 = vmatprep.subr.bf16.mxu0 %v2553_v28  ;;  %v239_v28 = vld [vmem:[%s3623_s2] sm:$0x3] }
  0x7d   :  { %1708 = vmatprep.subr.bf16.mxu1 %v2556_v29  ;;  %1597 = vmatprep.mubr.bf16.mxu0 %v2559_v30  ;;  %v242_v26 = vshrl.u32 %v241_v25, 7 }
  0x7e   :  { %1710 = vmatprep.mubr.bf16.mxu1 %v2562_v31 }
  0x7f   :  { %1596 = vmatpush2.bf16.msra.mxu0 %v2551_v32  ;;  %v243_v27 = vsub.s32 0, %v242_v26  ;;  %v247_v29 = vsub.s32 1, %v242_v26 }
  0x80   :  { %1709 = vmatpush2.bf16.msra.mxu1 %v2554_v33  ;;  %1791 = vmatprep.subr.bf16.mxu0 %v2565_v34 }
  0x81   :  { %2300 = vmatprep.subr.bf16.mxu1 %v2565_v34  ;;  %v3309_v30 = vrot.slane %v239_v28, %v243_v27  ;;  %v3311_v31 = vrot.slane %v239_v28, %v247_v29 }
  0x82   :  { %1598 = vmatmul.mubr.bf16.vlgmr.msra.gmra.mxu0 %v2557_v35 }
  0x83   :  { %1711 = vmatmul.mubr.bf16.vlgmr.msra.gmra.mxu1 %v2560_v36  ;;  %1792 = vmatpush1.bf16.msra.mxu0 %v2563_v37 }
  0x84   :  { %2308 = vmatpush1.bf16.msra.mxu1 %v2563_v37  ;;  %1607 = vmatprep.mubr.bf16.mxu0 %v2566_v38 }
  0x85   :  { %1720 = vmatprep.mubr.bf16.mxu1 %v2568_v39  ;;  %1793 = vmatprep.subr.bf16.mxu0 %v2574_v40 }
  0x86   :  { %2301 = vmatprep.subr.bf16.mxu1 %v2574_v40 }
  0x87   :  { %1794 = vmatpush1.bf16.msra.mxu0 %v2572_v41 }
  0x88   :  { %2309 = vmatpush1.bf16.msra.mxu1 %v2572_v41  ;;  %1795 = vmatprep.subr.bf16.mxu0 %v2583_v42 }
  0x89   :  { %2302 = vmatprep.subr.bf16.mxu1 %v2583_v42 }
  0x8a   :  { %1608 = vmatmul.mubr.bf16.gmra.mxu0 %v2570_v43 }
  0x8b   :  { %1721 = vmatmul.mubr.bf16.gmra.mxu1 %v2571_v44  ;;  %1617 = vmatprep.mubr.bf16.mxu0 %v2575_v45 }
  0x8c   :  { %1730 = vmatprep.mubr.bf16.mxu1 %v2577_v46  ;;  %1796 = vmatpush1.bf16.msra.mxu0 %v2581_v47 }
  0x8d   :  { %2310 = vmatpush1.bf16.msra.mxu1 %v2581_v47  ;;  %1797 = vmatprep.subr.bf16.mxu0 %v2592_v48 }
  0x8e   :  { %2303 = vmatprep.subr.bf16.mxu1 %v2592_v48 }
  0x90   :  { %1798 = vmatpush1.bf16.msra.mxu0 %v2590_v51 }
  0x91   :  { %2311 = vmatpush1.bf16.msra.mxu1 %v2590_v51  ;;  %1799 = vmatprep.subr.bf16.mxu0 %v2601_v52 }
  0x92   :  { %2304 = vmatprep.subr.bf16.mxu1 %v2601_v52  ;;  %1618 = vmatmul.mubr.bf16.gmra.mxu0 %v2579_v49 }
  0x93   :  { %1731 = vmatmul.mubr.bf16.gmra.mxu1 %v2580_v50  ;;  %1627 = vmatprep.mubr.bf16.mxu0 %v2584_v53 }
  0x94   :  { %1740 = vmatprep.mubr.bf16.mxu1 %v2586_v54  ;;  %1800 = vmatpush1.bf16.msra.mxu0 %v2599_v55 }
  0x95   :  { %2312 = vmatpush1.bf16.msra.mxu1 %v2599_v55  ;;  %1801 = vmatprep.subr.bf16.mxu0 %v2610_v56 }
  0x96   :  { %2305 = vmatprep.subr.bf16.mxu1 %v2610_v56 }
  0x98   :  { %1802 = vmatpush1.bf16.msra.mxu0 %v2608_v57 }
  0x99   :  { %2313 = vmatpush1.bf16.msra.mxu1 %v2608_v57  ;;  %1803 = vmatprep.subr.bf16.mxu0 %v2619_v58 }
  0x9a   :  { %2306 = vmatprep.subr.bf16.mxu1 %v2619_v58  ;;  %1628 = vmatmul.mubr.bf16.gmra.mxu0 %v2588_v59 }
  0x9b   :  { %1741 = vmatmul.mubr.bf16.gmra.mxu1 %v2589_v60  ;;  %1637 = vmatprep.mubr.bf16.mxu0 %v2593_v61 }
  0x9c   :  { %1750 = vmatprep.mubr.bf16.mxu1 %v2595_v62  ;;  %1804 = vmatpush1.bf16.msra.mxu0 %v2617_v63 }
  0x9d   :  { %2314 = vmatpush1.bf16.msra.mxu1 %v2617_v63  ;;  %1805 = vmatprep.subr.bf16.mxu0 %v2628_v0 }
  0x9e   :  { %2307 = vmatprep.subr.bf16.mxu1 %v2628_v0 }
  0xa0   :  { %1806 = vmatpush1.bf16.msra.mxu0 %v2626_v1 }
  0xa1   :  { %2315 = vmatpush1.bf16.msra.mxu1 %v2626_v1 }
  0xa2   :  { %1638 = vmatmul.mubr.bf16.gmra.mxu0 %v2597_v2 }
  0xa3   :  { %1751 = vmatmul.mubr.bf16.gmra.mxu1 %v2598_v3  ;;  %1647 = vmatprep.mubr.bf16.mxu0 %v2602_v4 }
  0xa4   :  { %1760 = vmatprep.mubr.bf16.mxu1 %v2604_v5 }
  0xaa   :  { %1648 = vmatmul.mubr.bf16.gmra.mxu0 %v2606_v6 }
  0xab   :  { %1761 = vmatmul.mubr.bf16.gmra.mxu1 %v2607_v7  ;;  %1657 = vmatprep.mubr.bf16.mxu0 %v2611_v8 }
  0xac   :  { %1770 = vmatprep.mubr.bf16.mxu1 %v2613_v9 }
  0xb2   :  { %1658 = vmatmul.mubr.bf16.gmra.mxu0 %v2615_v10 }
  0xb3   :  { %1771 = vmatmul.mubr.bf16.gmra.mxu1 %v2616_v11  ;;  %1667 = vmatprep.mubr.bf16.mxu0 %v2620_v12 }
  0xb4   :  { %1780 = vmatprep.mubr.bf16.mxu1 %v2622_v13 }
  0xba   :  { %1668 = vmatmul.mubr.bf16.gmra.mxu0 %v2624_v14 }
  0xbb   :  { %1781 = vmatmul.mubr.bf16.gmra.mxu1 %v2625_v15  ;;  %1823 = vmatprep.mubr.bf16.mxu0 %v2637_v16 }
  0xbc   :  { %1863 = vmatprep.mubr.bf16.mxu1 %v2637_v16 }
  0xc2   :  { %1824 = vmatmul.mubr.bf16.vlgmr.msra.gmra.mxu0 %v2629_v17 }
  0xc3   :  { %1864 = vmatmul.mubr.bf16.vlgmr.msra.gmra.mxu1 %v2630_v18  ;;  %1833 = vmatprep.mubr.bf16.mxu0 %v2637_v16 }
  0xc4   :  { %1873 = vmatprep.mubr.bf16.mxu1 %v2637_v16 }
  0xca   :  { %1834 = vmatmul.mubr.bf16.gmra.mxu0 %v2631_v19 }
  0xcb   :  { %1874 = vmatmul.mubr.bf16.gmra.mxu1 %v2632_v20  ;;  %1843 = vmatprep.mubr.bf16.mxu0 %v2637_v16 }
  0xcc   :  { %1883 = vmatprep.mubr.bf16.mxu1 %v2637_v16 }
  0xd2   :  { %1844 = vmatmul.mubr.bf16.gmra.mxu0 %v2633_v21 }
  0xd3   :  { %1884 = vmatmul.mubr.bf16.gmra.mxu1 %v2634_v22  ;;  %1853 = vmatprep.mubr.bf16.mxu0 %v2637_v16 }
  0xd4   :  { %1893 = vmatprep.mubr.bf16.mxu1 %v2637_v16 }
  0xda   :  { %1854 = vmatmul.mubr.bf16.gmra.mxu0 %v2635_v23 }
  0xdb   :  { %1894 = vmatmul.mubr.bf16.gmra.mxu1 %v2636_v24 }
 0x102   :  { %v1373_v32 = vpop.f32.mrf.mxu0 }
 0x103   :  { %v1486_v33 = vpop.f32.mrf.mxu1  ;;  %v1374_v34 = vadd.f32 %v1373_v32, %v3309_v30 }
 0x104   :  { %v1375_v35 = vpop.f32.mrf.mxu0 }
 0x105   :  { %v1488_v36 = vpop.f32.mrf.mxu1  ;;  %v3314_v37 = vadd.f32 %v1486_v33, %v1374_v34  ;;  %v1376_v38 = vadd.f32 %v1375_v35, %v3311_v31 }
 0x106   :  { %v1377_v39 = vpop.f32.mrf.mxu0 }
 0x107   :  { %v1490_v40 = vpop.f32.mrf.mxu1  ;;  %v3317_v41 = vadd.f32 %v1488_v36, %v1376_v38  ;;  %v1378_v42 = vadd.f32 %v1377_v39, %v3309_v30 }
 0x108   :  { %v1379_v43 = vpop.f32.mrf.mxu0 }
 0x109   :  { %v1492_v44 = vpop.f32.mrf.mxu1  ;;  %v3320_v45 = vadd.f32 %v1490_v40, %v1378_v42  ;;  %v1380_v46 = vadd.f32 %v1379_v43, %v3311_v31 }
 0x10a   :  { %v1383_v47 = vpop.f32.mrf.mxu0 }
 0x10b   :  { %v1496_v48 = vpop.f32.mrf.mxu1  ;;  %v3323_v49 = vadd.f32 %v1492_v44, %v1380_v46  ;;  %v1384_v50 = vadd.f32 %v1383_v47, %v3309_v30 }
 0x10c   :  { %v1385_v51 = vpop.f32.mrf.mxu0 }
 0x10d   :  { %v1498_v52 = vpop.f32.mrf.mxu1  ;;  %v3326_v53 = vadd.f32 %v1496_v48, %v1384_v50  ;;  %v1386_v54 = vadd.f32 %v1385_v51, %v3311_v31 }
 0x10e   :  { %v1387_v55 = vpop.f32.mrf.mxu0 }
 0x10f   :  { %v1500_v56 = vpop.f32.mrf.mxu1  ;;  %v3329_v57 = vadd.f32 %v1498_v52, %v1386_v54  ;;  %v1388_v58 = vadd.f32 %v1387_v55, %v3309_v30 }
 0x110   :  { %v1389_v59 = vpop.f32.mrf.mxu0 }
 0x111   :  { %v1502_v60 = vpop.f32.mrf.mxu1  ;;  %v3332_v61 = vadd.f32 %v1500_v56, %v1388_v58  ;;  %v1390_v62 = vadd.f32 %v1389_v59, %v3311_v31 }
 0x112   :  { %v1393_v63 = vpop.f32.mrf.mxu0 }
 0x113   :  { %v1506_v0 = vpop.f32.mrf.mxu1  ;;  %v3335_v1 = vadd.f32 %v1502_v60, %v1390_v62  ;;  %v1394_v2 = vadd.f32 %v1393_v63, %v3309_v30 }
 0x114   :  { %v1395_v3 = vpop.f32.mrf.mxu0 }
 0x115   :  { %v1508_v4 = vpop.f32.mrf.mxu1  ;;  %v3338_v5 = vadd.f32 %v1506_v0, %v1394_v2  ;;  %v1396_v6 = vadd.f32 %v1395_v3, %v3311_v31 }
 0x116   :  { %v1397_v7 = vpop.f32.mrf.mxu0 }
 0x117   :  { %v1510_v8 = vpop.f32.mrf.mxu1  ;;  %v3341_v9 = vadd.f32 %v1508_v4, %v1396_v6  ;;  %v1398_v10 = vadd.f32 %v1397_v7, %v3309_v30 }
 0x118   :  { %v1399_v11 = vpop.f32.mrf.mxu0 }
 0x119   :  { %v1512_v12 = vpop.f32.mrf.mxu1  ;;  %v3344_v13 = vadd.f32 %v1510_v8, %v1398_v10  ;;  %v1400_v14 = vadd.f32 %v1399_v11, %v3311_v31 }
 0x11a   :  { %v1403_v15 = vpop.f32.mrf.mxu0 }
 0x11b   :  { %v1516_v16 = vpop.f32.mrf.mxu1  ;;  %v3347_v17 = vadd.f32 %v1512_v12, %v1400_v14  ;;  %v1404_v18 = vadd.f32 %v1403_v15, %v3309_v30 }
 0x11c   :  { %v1405_v19 = vpop.f32.mrf.mxu0 }
 0x11d   :  { %v1518_v20 = vpop.f32.mrf.mxu1  ;;  %v3350_v21 = vadd.f32 %v1516_v16, %v1404_v18  ;;  %v1406_v22 = vadd.f32 %v1405_v19, %v3311_v31 }
 0x11e   :  { %v1407_v23 = vpop.f32.mrf.mxu0 }
 0x11f   :  { %v1520_v24 = vpop.f32.mrf.mxu1  ;;  %v3353_v25 = vadd.f32 %v1518_v20, %v1406_v22  ;;  %v1408_v26 = vadd.f32 %v1407_v23, %v3309_v30 }
 0x120   :  { %v1409_v27 = vpop.f32.mrf.mxu0 }
 0x121   :  { %3625 = vst [vmem:[#allocation2_spill] sm:$0xff] %v3353_v25  ;;  %v1522_v28 = vpop.f32.mrf.mxu1  ;;  %v3356_v29 = vadd.f32 %v1520_v24, %v1408_v26  ;;  %v1410_v32 = vadd.f32 %v1409_v27, %v3311_v31 }
 0x122   :  { %v1413_v33 = vpop.f32.mrf.mxu0 }
 0x123   :  { %v1526_v34 = vpop.f32.mrf.mxu1  ;;  %v3359_v35 = vadd.f32 %v1522_v28, %v1410_v32  ;;  %v1414_v36 = vadd.f32 %v1413_v33, %v3309_v30 }
 0x124   :  { %v1415_v38 = vpop.f32.mrf.mxu0 }
 0x125   :  { %3626 = vst [vmem:[#allocation3_spill] sm:$0xff] %v3359_v35  ;;  %v1528_v39 = vpop.f32.mrf.mxu1  ;;  %v3362_v40 = vadd.f32 %v1526_v34, %v1414_v36  ;;  %v1416_v42 = vadd.f32 %v1415_v38, %v3311_v31 }
 0x126   :  { %v1417_v43 = vpop.f32.mrf.mxu0 }
 0x127   :  { %v1530_v44 = vpop.f32.mrf.mxu1  ;;  %v3365_v46 = vadd.f32 %v1528_v39, %v1416_v42  ;;  %v1418_v47 = vadd.f32 %v1417_v43, %v3309_v30 }
 0x128   :  { %v1419_v48 = vpop.f32.mrf.mxu0 }
 0x129   :  { %v1532_v50 = vpop.f32.mrf.mxu1  ;;  %v3368_v51 = vadd.f32 %v1530_v44, %v1418_v47  ;;  %v1420_v52 = vadd.f32 %v1419_v48, %v3311_v31 }
 0x12a   :  { %v1423_v54 = vpop.f32.mrf.mxu0 }
 0x12b   :  { %v1536_v55 = vpop.f32.mrf.mxu1  ;;  %v3371_v56 = vadd.f32 %v1532_v50, %v1420_v52  ;;  %v1424_v58 = vadd.f32 %v1423_v54, %v3309_v30 }
 0x12c   :  { %v1425_v59 = vpop.f32.mrf.mxu0 }
 0x12d   :  { %v1538_v60 = vpop.f32.mrf.mxu1  ;;  %v3374_v62 = vadd.f32 %v1536_v55, %v1424_v58  ;;  %v1426_v63 = vadd.f32 %v1425_v59, %v3311_v31 }
 0x12e   :  { %v1427_v0 = vpop.f32.mrf.mxu0 }
 0x12f   :  { %v1540_v2 = vpop.f32.mrf.mxu1  ;;  %v3377_v3 = vadd.f32 %v1538_v60, %v1426_v63  ;;  %v1428_v4 = vadd.f32 %v1427_v0, %v3309_v30 }
 0x130   :  { %v1429_v6 = vpop.f32.mrf.mxu0 }
 0x131   :  { %v1542_v7 = vpop.f32.mrf.mxu1  ;;  %v3380_v8 = vadd.f32 %v1540_v2, %v1428_v4  ;;  %v1430_v10 = vadd.f32 %v1429_v6, %v3311_v31 }
 0x132   :  { %v1433_v11 = vpop.f32.mrf.mxu0 }
 0x133   :  { %v1546_v12 = vpop.f32.mrf.mxu1  ;;  %v3383_v14 = vadd.f32 %v1542_v7, %v1430_v10  ;;  %v1434_v15 = vadd.f32 %v1433_v11, %v3309_v30 }
 0x134   :  { %v1435_v16 = vpop.f32.mrf.mxu0 }
 0x135   :  { %v1548_v18 = vpop.f32.mrf.mxu1  ;;  %v3386_v19 = vadd.f32 %v1546_v12, %v1434_v15  ;;  %v1436_v20 = vadd.f32 %v1435_v16, %v3311_v31 }
 0x136   :  { %v1437_v22 = vpop.f32.mrf.mxu0 }
 0x137   :  { %v1550_v23 = vpop.f32.mrf.mxu1  ;;  %v3389_v24 = vadd.f32 %v1548_v18, %v1436_v20  ;;  %v1438_v26 = vadd.f32 %v1437_v22, %v3309_v30 }
 0x138   :  { %v1439_v27 = vpop.f32.mrf.mxu0 }
 0x139   :  { %v1552_v28 = vpop.f32.mrf.mxu1  ;;  %v3392_v32 = vadd.f32 %v1550_v23, %v1438_v26  ;;  %v1440_v33 = vadd.f32 %v1439_v27, %v3311_v31 }
 0x13a   :  { %v1443_v34 = vpop.f32.mrf.mxu0 }
 0x13b   :  { %v1556_v36 = vpop.f32.mrf.mxu1  ;;  %v3395_v38 = vadd.f32 %v1552_v28, %v1440_v33  ;;  %v1444_v39 = vadd.f32 %v1443_v34, %v3309_v30 }
 0x13c   :  { %v1445_v42 = vpop.f32.mrf.mxu0 }
 0x13d   :  { %3627 = vst [vmem:[#allocation4_spill] sm:$0xff] %v3395_v38  ;;  %v1558_v43 = vpop.f32.mrf.mxu1  ;;  %v3398_v44 = vadd.f32 %v1556_v36, %v1444_v39  ;;  %v1446_v47 = vadd.f32 %v1445_v42, %v3311_v31 }
 0x13e   :  { %v1447_v48 = vpop.f32.mrf.mxu0 }
 0x13f   :  { %3628 = vst [vmem:[#allocation5_spill] sm:$0xff] %v3398_v44  ;;  %v1560_v50 = vpop.f32.mrf.mxu1  ;;  %v3401_v52 = vadd.f32 %v1558_v43, %v1446_v47  ;;  %v1448_v54 = vadd.f32 %v1447_v48, %v3309_v30 }
 0x140   :  { %v1449_v55 = vpop.f32.mrf.mxu0 }
 0x141   :  { %3629 = vst [vmem:[#allocation6_spill] sm:$0xff] %v3401_v52  ;;  %v1562_v58 = vpop.f32.mrf.mxu1  ;;  %v3404_v59 = vadd.f32 %v1560_v50, %v1448_v54  ;;  %v1450_v60 = vadd.f32 %v1449_v55, %v3311_v31 }
 0x142   :  { %v1599_v63 = vpop.f32.mrf.mxu0 }
 0x143   :  { %3630 = vst [vmem:[#allocation7_spill] sm:$0xff] %v3404_v59  ;;  %v1712_v0 = vpop.f32.mrf.mxu1  ;;  %v3407_v2 = vadd.f32 %v1562_v58, %v1450_v60  ;;  %v1600_v4 = vadd.f32 %v1599_v63, %v3314_v37 }
 0x144   :  { %v3410_v6 = vpop.f32.mrf.mxu0 }
 0x145   :  { %3631 = vst [vmem:[#allocation8_spill] sm:$0xff] %v3407_v2  ;;  %v3412_v7 = vpop.f32.mrf.mxu1  ;;  %v3414_v10 = vadd.f32 %v1712_v0, %v1600_v4 }
 0x146   :  { %v1603_v11 = vpop.f32.mrf.mxu0 }
 0x147   :  { %v1716_v30 = vpop.f32.mrf.mxu1  ;;  %v1604_v12 = vadd.f32 %v1603_v11, %v3320_v45 }
 0x148   :  { %v3417_v15 = vpop.f32.mrf.mxu0 }
 0x149   :  { %v3419_v16 = vpop.f32.mrf.mxu1  ;;  %v3421_v31 = vadd.f32 %v1716_v30, %v1604_v12 }
 0x14a   :  { %v1609_v18 = vpop.f32.mrf.mxu0 }
 0x14b   :  { %v1722_v20 = vpop.f32.mrf.mxu1  ;;  %v1610_v37 = vadd.f32 %v1609_v18, %v3326_v53 }
 0x14c   :  { %v3424_v22 = vpop.f32.mrf.mxu0 }
 0x14d   :  { %v3426_v23 = vpop.f32.mrf.mxu1  ;;  %v3428_v26 = vadd.f32 %v1722_v20, %v1610_v37 }
 0x14e   :  { %v1613_v27 = vpop.f32.mrf.mxu0 }
 0x14f   :  { %v1726_v28 = vpop.f32.mrf.mxu1  ;;  %v1614_v45 = vadd.f32 %v1613_v27, %v3332_v61 }
 0x150   :  { %v3431_v33 = vpop.f32.mrf.mxu0 }
 0x151   :  { %v3433_v34 = vpop.f32.mrf.mxu1  ;;  %v3435_v36 = vadd.f32 %v1726_v28, %v1614_v45 }
 0x152   :  { %v1619_v39 = vpop.f32.mrf.mxu0 }
 0x153   :  { %v1732_v42 = vpop.f32.mrf.mxu1  ;;  %v1620_v53 = vadd.f32 %v1619_v39, %v3338_v5 }
 0x154   :  { %v3438_v43 = vpop.f32.mrf.mxu0 }
 0x155   :  { %v3440_v47 = vpop.f32.mrf.mxu1  ;;  %v3442_v48 = vadd.f32 %v1732_v42, %v1620_v53 }
 0x156   :  { %v1623_v50 = vpop.f32.mrf.mxu0 }
 0x157   :  { %3632 = vst [vmem:[#allocation9_spill] sm:$0xff] %v3442_v48  ;;  %v1736_v54 = vpop.f32.mrf.mxu1  ;;  %v1624_v61 = vadd.f32 %v1623_v50, %v3344_v13 }
 0x158   :  { %v3445_v55 = vpop.f32.mrf.mxu0 }
 0x159   :  { %v3447_v58 = vpop.f32.mrf.mxu1  ;;  %v3449_v60 = vadd.f32 %v1736_v54, %v1624_v61 }
 0x15a   :  { %3633 = vst [vmem:[#allocation10_spill] sm:$0xff] %v3447_v58  ;;  %v1629_v63 = vpop.f32.mrf.mxu0 }
 0x15b   :  { %3634 = vst [vmem:[#allocation11_spill] sm:$0xff] %v3449_v60  ;;  %v1742_v0 = vpop.f32.mrf.mxu1  ;;  %v1630_v5 = vadd.f32 %v1629_v63, %v3350_v21 }
 0x15c   :  { %v3452_v4 = vpop.f32.mrf.mxu0 }
 0x15d   :  { %3635 = vst [vmem:[#allocation12_spill] sm:$0xff] %v3452_v4  ;;  %v3454_v11 = vpop.f32.mrf.mxu1  ;;  %v3456_v30 = vadd.f32 %v1742_v0, %v1630_v5 }
 0x15e   :  { %3636 = vst [vmem:[#allocation13_spill] sm:$0xff] %v3454_v11  ;;  %v1633_v12 = vpop.f32.mrf.mxu0 }
 0x15f   :  { %3637 = vst [vmem:[#allocation14_spill] sm:$0xff] %v3456_v30  ;;  %v1746_v18 = vpop.f32.mrf.mxu1  ;;  %v1634_v13 = vadd.f32 %v1633_v12, %v3356_v29 }
 0x160   :  { %v3459_v20 = vpop.f32.mrf.mxu0 }
 0x161   :  { %3638 = vst [vmem:[#allocation15_spill] sm:$0xff] %v3459_v20  ;;  %v3461_v37 = vpop.f32.mrf.mxu1  ;;  %v3463_v27 = vadd.f32 %v1746_v18, %v1634_v13 }
 0x162   :  { %3639 = vst [vmem:[#allocation16_spill] sm:$0xff] %v3461_v37  ;;  %v1639_v28 = vpop.f32.mrf.mxu0 }
 0x163   :  { %3640 = vst [vmem:[#allocation17_spill] sm:$0xff] %v3463_v27  ;;  %v1752_v45 = vpop.f32.mrf.mxu1  ;;  %v1640_v4 = vadd.f32 %v1639_v28, %v3362_v40 }
 0x164   :  { %v1641_v39 = vpop.f32.mrf.mxu0 }
 0x165   :  { %v1754_v21 = vpop.f32.mrf.mxu1 }
 0x166   :  { %v1643_v42 = vpop.f32.mrf.mxu0 }
 0x167   :  { %v1756_v53 = vpop.f32.mrf.mxu1 }
 0x168   :  { %v1645_v50 = vpop.f32.mrf.mxu0 }
 0x169   :  { %v1758_v54 = vpop.f32.mrf.mxu1 }
 0x16a   :  { %v1649_v61 = vpop.f32.mrf.mxu0 }
 0x16b   :  { %v1762_v63 = vpop.f32.mrf.mxu1 }
 0x16c   :  { %v1651_v0 = vpop.f32.mrf.mxu0 }
 0x16d   :  { %v3465_v5 = vpop.f32.mrf.mxu1 }
 0x16e   :  { %v1653_v29 = vpop.f32.mrf.mxu0 }
 0x16f   :  { %v3467_v12 = vpop.f32.mrf.mxu1 }
 0x170   :  { %v3469_v30 = vpop.f32.mrf.mxu0 }
 0x171   :  { %v3471_v18 = vpop.f32.mrf.mxu1 }
 0x172   :  { %v3473_v13 = vpop.f32.mrf.mxu0 }
 0x173   :  { %v3475_v27 = vpop.f32.mrf.mxu1 }
 0x174   :  { %v3477_v37 = vpop.f32.mrf.mxu0 }
 0x175   :  { %v3479_v2 = vpop.f32.mrf.mxu1 }
 0x176   :  { %v3481_v59 = vpop.f32.mrf.mxu0 }
 0x177   :  { %v3483_v20 = vpop.f32.mrf.mxu1 }
 0x178   :  { %3641 = vst [vmem:[#allocation18_spill] sm:$0xff] %v3483_v20  ;;  %v3485_v35 = vpop.f32.mrf.mxu0  ;;  %v1602_v20 = vadd.f32 %v3410_v6, %v3317_v41  ;;  %v1606_v41 = vadd.f32 %v3417_v15, %v3323_v49 }
 0x179   :  { %3642 = vst [vmem:[#allocation19_spill] sm:$0xff] %v3485_v35  ;;  %v3487_v11 = vpop.f32.mrf.mxu1  ;;  %v1642_v35 = vadd.f32 %v1641_v39, %v3365_v46  ;;  %v1646_v46 = vadd.f32 %v1645_v50, %v3371_v56 }
 0x17a   :  { %3643 = vst [vmem:[#allocation20_spill] sm:$0xff] %v3487_v11  ;;  %v3489_v60 = vpop.f32.mrf.mxu0  ;;  %v1715_v40 = vadd.f32 %v3412_v7, %v1602_v20  ;;  %v1719_v56 = vadd.f32 %v3419_v16, %v1606_v41 }
 0x17b   :  { %3644 = vst [vmem:[#allocation21_spill] sm:$0xff] %v3489_v60  ;;  %v3491_v58 = vpop.f32.mrf.mxu1  ;;  %v1755_v28 = vadd.f32 %v1754_v21, %v1642_v35  ;;  %v1652_v35 = vadd.f32 %v1651_v0, %v3377_v3  ;;  %v1759_v15 = vadd.f32 %v1758_v54, %v1646_v46  ;;  %v1616_v3 = vadd.f32 %v3431_v33, %v3335_v1 }
 0x17c   :  { %3645 = vst [vmem:[#allocation22_spill] sm:$0xff] %v3491_v58  ;;  %v3493_v52 = vpop.f32.mrf.mxu0  ;;  %v1753_v58 = vadd.f32 %v1752_v45, %v1640_v4  ;;  %v1612_v4 = vadd.f32 %v3424_v22, %v3329_v57 }
 0x17d   :  { %3646 = vst [vmem:[#allocation23_spill] sm:$0xff] %v3493_v52  ;;  %v3495_v44 = vpop.f32.mrf.mxu1  ;;  %v1644_v52 = vadd.f32 %v1643_v42, %v3368_v51  ;;  %v1650_v51 = vadd.f32 %v1649_v61, %v3374_v62  ;;  %v1765_v54 = vadd.f32 %v3465_v5, %v1652_v35 }
 0x17e   :  { %3647 = vst [vmem:[#allocation24_spill] sm:$0xff] %v3495_v44  ;;  %v3498_v25 = vpop.f32.mrf.mxu0  ;;  %v1725_v62 = vadd.f32 %v3426_v23, %v1612_v4 }
 0x17f   :  { %3648 = vst [vmem:[#allocation25_spill] sm:$0xff] %v3498_v25  ;;  %v3500_v48 = vpop.f32.mrf.mxu1  ;;  %v1763_v50 = vadd.f32 %v1762_v63, %v1650_v51 }
 0x180   :  { %3649 = vst [vmem:[#allocation26_spill] sm:$0xff] %v3500_v48  ;;  %v3505_v11 = vpop.f32.mrf.mxu0 }
 0x181   :  { %v3507_v60 = vpop.f32.mrf.mxu1 }
 0x182   :  { %3650 = vst [vmem:[#allocation27_spill] sm:$0xff] %v3507_v60  ;;  %v1825_v38 = vpop.f32.mrf.mxu0  ;;  %v1757_v60 = vadd.f32 %v1756_v53, %v1644_v52 }
 0x183   :  { %v1865_v44 = vpop.f32.mrf.mxu1  ;;  %v1826_v25 = vadd.f32 %v1825_v38, %v3414_v10 }
 0x184   :  { %v1866_v48 = vadd.f32 %v1865_v44, %v1753_v58  ;;  %v1827_v6 = vpop.f32.mrf.mxu0 }
 0x185   :  { %v1867_v39 = vpop.f32.mrf.mxu1  ;;  %v1828_v45 = vadd.f32 %v1827_v6, %v1715_v40  ;;  %v1904_v44 = vmax.f32 %v1826_v25, 0.0  ;;  %v1654_v25 = vadd.f32 %v1653_v29, %v3380_v8 }
 0x186   :  { %v1868_v42 = vadd.f32 %v1867_v39, %v1755_v28  ;;  %v1829_v7 = vpop.f32.mrf.mxu0  ;;  %v1920_v10 = vmax.f32 %v1866_v48, 0.0 }
 0x187   :  { %v1869_v38 = vpop.f32.mrf.mxu1  ;;  %v1905_v58 = vmax.f32 %v1828_v45, 0.0  ;;  %v1830_v20 = vadd.f32 %v1829_v7, %v3421_v31  ;;  %v1656_v31 = vadd.f32 %v3469_v30, %v3383_v14  ;;  %v1622_v14 = vadd.f32 %v3438_v43, %v3341_v9 }
 0x188   :  { %v1921_v49 = vmax.f32 %v1868_v42, 0.0  ;;  %v1870_v21 = vadd.f32 %v1869_v38, %v1757_v60  ;;  %v1831_v57 = vpop.f32.mrf.mxu0  ;;  %v1660_v30 = vadd.f32 %v3473_v13, %v3386_v19  ;;  %v1767_v41 = vadd.f32 %v3467_v12, %v1654_v25 }
 0x189   :  { %v1871_v22 = vpop.f32.mrf.mxu1  ;;  %v2284_v52 = vpack.c.bf16 %v1905_v58, %v1904_v44  ;;  %v1832_v48 = vadd.f32 %v1831_v57, %v1719_v56  ;;  %v1906_v23 = vmax.f32 %v1830_v20, 0.0  ;;  %v1729_v9 = vadd.f32 %v3433_v34, %v1616_v3  ;;  %v3652_v20 = vld [vmem:[#allocation19_spill] sm:$0xff]  ;;  %v3657_v3 = vld [vmem:[#allocation21_spill] sm:$0xff] }
 0x18a   :  { %v2292_v53 = vpack.c.bf16 %v1921_v49, %v1920_v10  ;;  %v1872_v61 = vadd.f32 %v1871_v22, %v1759_v15  ;;  %v1835_v0 = vpop.f32.mrf.mxu0  ;;  %v1922_v33 = vmax.f32 %v1870_v21, 0.0  ;;  %v1769_v43 = vadd.f32 %v3471_v18, %v1656_v31  ;;  %v3651_v15 = vld [vmem:[#allocation4_spill] sm:$0xff]  ;;  %v3660_v31 = vld [vmem:[#allocation23_spill] sm:$0xff] }
 0x18b   :  { %v1875_v16 = vpop.f32.mrf.mxu1  ;;  %2032 = vst [vmem:[%s3624_s3] sm:$0xff] %v2284_v52  ;;  %v1836_v1 = vadd.f32 %v1835_v0, %v3428_v26  ;;  %v1907_v60 = vmax.f32 %v1832_v48, 0.0  ;;  %v1662_v26 = vadd.f32 %v3477_v37, %v3389_v24  ;;  %v1735_v13 = vadd.f32 %v3440_v47, %v1622_v14  ;;  %v3658_v0 = vld [vmem:[#allocation18_spill] sm:$0xff] }
 0x18c   :  { %2040 = vst [vmem:[%s3624_s3 + $0x40] sm:$0xff] %v2292_v53  ;;  %v1876_v8 = vadd.f32 %v1875_v16, %v1763_v50  ;;  %v1923_v63 = vmax.f32 %v1872_v61, 0.0  ;;  %v1837_v29 = vpop.f32.mrf.mxu0  ;;  %v1773_v7 = vadd.f32 %v3475_v27, %v1660_v30  ;;  %v1626_v18 = vadd.f32 %v3445_v55, %v3347_v17  ;;  %v3653_v17 = vld [vmem:[#allocation9_spill] sm:$0xff]  ;;  %v3655_v50 = vld [vmem:[#allocation12_spill] sm:$0xff]  ;;  %v3661_v30 = vld [vmem:[#allocation10_spill] sm:$0xff] }
 0x18d   :  { %v1877_v5 = vpop.f32.mrf.mxu1  ;;  %v1838_v40 = vadd.f32 %v1837_v29, %v1725_v62  ;;  %v2285_v46 = vpack.c.bf16 %v1907_v60, %v1906_v23  ;;  %v1908_v51 = vmax.f32 %v1836_v1, 0.0  ;;  %v1664_v44 = vadd.f32 %v3481_v59, %v3392_v32  ;;  %v3654_v62 = vld [vmem:[#allocation2_spill] sm:$0xff]  ;;  %v3656_v53 = vld [vmem:[#allocation5_spill] sm:$0xff] }
 0x18e   :  { %v1878_v28 = vadd.f32 %v1877_v5, %v1765_v54  ;;  %v2293_v6 = vpack.c.bf16 %v1923_v63, %v1922_v33  ;;  %v1839_v39 = vpop.f32.mrf.mxu0  ;;  %v1924_v45 = vmax.f32 %v1876_v8, 0.0  ;;  %v1666_v21 = vadd.f32 %v3652_v20, %v3651_v15  ;;  %v3659_v54 = vld [vmem:[#allocation6_spill] sm:$0xff] }
 0x18f   :  { %v1879_v4 = vpop.f32.mrf.mxu1  ;;  %v1909_v42 = vmax.f32 %v1838_v40, 0.0  ;;  %2033 = vst [vmem:[%s3624_s3 + $0x8] sm:$0xff] %v2285_v46  ;;  %v1840_v19 = vadd.f32 %v1839_v39, %v3435_v36  ;;  %v1775_v36 = vadd.f32 %v3479_v2, %v1662_v26  ;;  %v1632_v52 = vadd.f32 %v3655_v50, %v3654_v62  ;;  %v3663_v26 = vld [vmem:[#allocation11_spill] sm:$0xff] }
 0x190   :  { %v1925_v35 = vmax.f32 %v1878_v28, 0.0  ;;  %2041 = vst [vmem:[%s3624_s3 + $0x48] sm:$0xff] %v2293_v6  ;;  %v1880_v24 = vadd.f32 %v1879_v4, %v1767_v41  ;;  %v1841_v37 = vpop.f32.mrf.mxu0  ;;  %v1670_v25 = vadd.f32 %v3657_v3, %v3656_v53  ;;  %v1777_v16 = vadd.f32 %v3658_v0, %v1664_v44  ;;  %v3662_v28 = vld [vmem:[#allocation20_spill] sm:$0xff] }
 0x191   :  { %v1881_v12 = vpop.f32.mrf.mxu1  ;;  %v2286_v34 = vpack.c.bf16 %v1909_v42, %v1908_v51  ;;  %v1842_v10 = vadd.f32 %v1841_v37, %v1729_v9  ;;  %v1910_v59 = vmax.f32 %v1840_v19, 0.0  ;;  %v1672_v1 = vadd.f32 %v3660_v31, %v3659_v54  ;;  %v3664_v51 = vld [vmem:[#allocation13_spill] sm:$0xff]  ;;  %v3665_v42 = vld [vmem:[#allocation22_spill] sm:$0xff]  ;;  %v3666_v19 = vld [vmem:[#allocation3_spill] sm:$0xff] }
 0x192   :  { %v2294_v38 = vpack.c.bf16 %v1925_v35, %v1924_v45  ;;  %v1882_v58 = vadd.f32 %v1881_v12, %v1769_v43  ;;  %v1845_v49 = vpop.f32.mrf.mxu0  ;;  %v1926_v55 = vmax.f32 %v1880_v24, 0.0  ;;  %v1739_v40 = vadd.f32 %v3661_v30, %v1626_v18  ;;  %v3667_v24 = vld [vmem:[#allocation15_spill] sm:$0xff]  ;;  %v3676_v31 = vld [vmem:[#allocation17_spill] sm:$0xff] }
 0x193   :  { %v1885_v56 = vpop.f32.mrf.mxu1  ;;  %2034 = vst [vmem:[%s3624_s3 + $0x10] sm:$0xff] %v2286_v34  ;;  %v1846_v47 = vadd.f32 %v1845_v49, %v3653_v17  ;;  %v1911_v27 = vmax.f32 %v1842_v10, 0.0  ;;  %v1779_v41 = vadd.f32 %v3662_v28, %v1666_v21  ;;  %v1745_v45 = vadd.f32 %v3664_v51, %v1632_v52  ;;  %v3668_v12 = vld [vmem:[#allocation7_spill] sm:$0xff]  ;;  %v3670_v10 = vld [vmem:[#allocation24_spill] sm:$0xff] }
 0x194   :  { %2042 = vst [vmem:[%s3624_s3 + $0x50] sm:$0xff] %v2294_v38  ;;  %v1886_v32 = vadd.f32 %v1885_v56, %v1773_v7  ;;  %v1927_v57 = vmax.f32 %v1882_v58, 0.0  ;;  %v1847_v22 = vpop.f32.mrf.mxu0  ;;  %v1783_v35 = vadd.f32 %v3665_v42, %v1670_v25  ;;  %v1636_v37 = vadd.f32 %v3667_v24, %v3666_v19  ;;  %v3671_v49 = vld [vmem:[#allocation8_spill] sm:$0xff] }
 0x195   :  { %v1887_v2 = vpop.f32.mrf.mxu1  ;;  %v1848_v48 = vadd.f32 %v1847_v22, %v1735_v13  ;;  %v2287_v8 = vpack.c.bf16 %v1911_v27, %v1910_v59  ;;  %v1912_v63 = vmax.f32 %v1846_v47, 0.0  ;;  %v3669_v13 = vld [vmem:[#allocation25_spill] sm:$0xff]  ;;  %v1785_v58 = vadd.f32 %v3670_v10, %v1672_v1 }
 0x196   :  { %v1888_v61 = vadd.f32 %v1887_v2, %v1775_v36  ;;  %v2295_v23 = vpack.c.bf16 %v1927_v57, %v1926_v55  ;;  %v1849_v33 = vpop.f32.mrf.mxu0  ;;  %v1928_v29 = vmax.f32 %v1886_v32, 0.0  ;;  %v1674_v7 = vadd.f32 %v3669_v13, %v3668_v12  ;;  %v3672_v36 = vld [vmem:[#allocation14_spill] sm:$0xff] }
 0x197   :  { %v1889_v60 = vpop.f32.mrf.mxu1  ;;  %v1913_v5 = vmax.f32 %v1848_v48, 0.0  ;;  %2035 = vst [vmem:[%s3624_s3 + $0x18] sm:$0xff] %v2287_v8  ;;  %v1850_v46 = vadd.f32 %v1849_v33, %v3663_v26  ;;  %v1676_v56 = vadd.f32 %v3505_v11, %v3671_v49  ;;  %v3673_v11 = vld [vmem:[#allocation26_spill] sm:$0xff] }
 0x198   :  { %v1929_v14 = vmax.f32 %v1888_v61, 0.0  ;;  %2043 = vst [vmem:[%s3624_s3 + $0x58] sm:$0xff] %v2295_v23  ;;  %v1890_v6 = vadd.f32 %v1889_v60, %v1777_v16  ;;  %v1851_v39 = vpop.f32.mrf.mxu0  ;;  %v1787_v22 = vadd.f32 %v3673_v11, %v1674_v7  ;;  %v3674_v61 = vld [vmem:[#allocation16_spill] sm:$0xff]  ;;  %v3675_v16 = vld [vmem:[#allocation27_spill] sm:$0xff] }
 0x199   :  { %v1891_v4 = vpop.f32.mrf.mxu1  ;;  %v2288_v9 = vpack.c.bf16 %v1913_v5, %v1912_v63  ;;  %v1852_v34 = vadd.f32 %v1851_v39, %v1739_v40  ;;  %v1914_v21 = vmax.f32 %v1850_v46, 0.0  ;;  %v1749_v0 = vadd.f32 %v3674_v61, %v1636_v37 }
 0x19a   :  { %v2296_v43 = vpack.c.bf16 %v1929_v14, %v1928_v29  ;;  %v1892_v38 = vadd.f32 %v1891_v4, %v1779_v41  ;;  %v1855_v18 = vpop.f32.mrf.mxu0  ;;  %v1930_v17 = vmax.f32 %v1890_v6, 0.0  ;;  %v1789_v54 = vadd.f32 %v3675_v16, %v1676_v56 }
 0x19b   :  { %v1895_v44 = vpop.f32.mrf.mxu1  ;;  %2036 = vst [vmem:[%s3624_s3 + $0x20] sm:$0xff] %v2288_v9  ;;  %v1856_v15 = vadd.f32 %v1855_v18, %v3672_v36  ;;  %v1915_v47 = vmax.f32 %v1852_v34, 0.0 }
 0x19c   :  { %2044 = vst [vmem:[%s3624_s3 + $0x60] sm:$0xff] %v2296_v43  ;;  %v1896_v20 = vadd.f32 %v1895_v44, %v1783_v35  ;;  %v1931_v32 = vmax.f32 %v1892_v38, 0.0  ;;  %v1857_v59 = vpop.f32.mrf.mxu0 }
 0x19d   :  { %v1897_v55 = vpop.f32.mrf.mxu1  ;;  %v1858_v27 = vadd.f32 %v1857_v59, %v1745_v45  ;;  %v2289_v2 = vpack.c.bf16 %v1915_v47, %v1914_v21  ;;  %v1916_v53 = vmax.f32 %v1856_v15, 0.0 }
 0x19e   :  { %v1898_v57 = vadd.f32 %v1897_v55, %v1785_v58  ;;  %v2297_v62 = vpack.c.bf16 %v1931_v32, %v1930_v17  ;;  %v1859_v50 = vpop.f32.mrf.mxu0  ;;  %v1932_v3 = vmax.f32 %v1896_v20, 0.0 }
 0x19f   :  { %v1899_v52 = vpop.f32.mrf.mxu1  ;;  %v1917_v25 = vmax.f32 %v1858_v27, 0.0  ;;  %2037 = vst [vmem:[%s3624_s3 + $0x28] sm:$0xff] %v2289_v2  ;;  %v1860_v1 = vadd.f32 %v1859_v50, %v3676_v31 }
 0x1a0   :  { %v1933_v48 = vmax.f32 %v1898_v57, 0.0  ;;  %2045 = vst [vmem:[%s3624_s3 + $0x68] sm:$0xff] %v2297_v62  ;;  %v1900_v8 = vadd.f32 %v1899_v52, %v1787_v22  ;;  %v1861_v23 = vpop.f32.mrf.mxu0 }
 0x1a1   :  { %v1901_v33 = vpop.f32.mrf.mxu1  ;;  %v2290_v60 = vpack.c.bf16 %v1917_v25, %v1916_v53  ;;  %v1862_v29 = vadd.f32 %v1861_v23, %v1749_v0  ;;  %v1918_v14 = vmax.f32 %v1860_v1, 0.0 }
 0x1a2   :  { %v2298_v63 = vpack.c.bf16 %v1933_v48, %v1932_v3  ;;  %v1902_v5 = vadd.f32 %v1901_v33, %v1789_v54  ;;  %v1934_v30 = vmax.f32 %v1900_v8, 0.0 }
 0x1a3   :  { %2038 = vst [vmem:[%s3624_s3 + $0x30] sm:$0xff] %v2290_v60  ;;  %v1919_v40 = vmax.f32 %v1862_v29, 0.0 }
 0x1a4   :  { %2046 = vst [vmem:[%s3624_s3 + $0x70] sm:$0xff] %v2298_v63  ;;  %v1935_v28 = vmax.f32 %v1902_v5, 0.0 }
 0x1a5   :  { %v2291_v41 = vpack.c.bf16 %v1919_v40, %v1918_v14 }
 0x1a6   :  { %v2299_v26 = vpack.c.bf16 %v1935_v28, %v1934_v30 }
 0x1a7   :  { %2039 = vst [vmem:[%s3624_s3 + $0x38] sm:$0xff] %v2291_v41 }
 0x1a8   :  { %2047 = vst [vmem:[%s3624_s3 + $0x78] sm:$0xff] %v2299_v26 }

</bundles_post_ra>
